<compile_context>
chip_gen: v5e
topology: v5e:2x2
jax: 0.10.0
libtpu: 0.0.40
codegen_flags: <defaults>
</compile_context>

<pallas_src>
import functools

import jax
import jax.numpy as jnp
from jax.experimental import pallas as pl
from jax.experimental.pallas import tpu as pltpu


def _round_up(x, m):
    return ((x + m - 1) // m) * m


_VMEM_LIMIT_CACHE = None


def _vmem_limit():
    """Per-generation VMEM budget: ~75% of physical, capped at 100 MiB.
    v5e/v6e (128 MiB physical) -> 96 MiB, v7x (64 MiB physical) -> 48 MiB."""
    global _VMEM_LIMIT_CACHE
    if _VMEM_LIMIT_CACHE is None:
        cap = 0
        try:
            info = pltpu.get_tpu_info()
            for attr in ("vmem_capacity_bytes", "vmem_bytes", "vmem_size_bytes"):
                v = getattr(info, attr, None)
                if v:
                    cap = int(v)
                    break
        except Exception:
            cap = 0
        if not cap:
            cap = 64 * 1024 * 1024  # conservative fallback: v7x physical VMEM
        _VMEM_LIMIT_CACHE = min(int(cap * 3 // 4), 100 * 1024 * 1024)
    return _VMEM_LIMIT_CACHE


# ---------------------------------------------------------------------------
# Kernel 1: fused 1x1 conv matmul.
#   out = maybe_relu(x @ W + bias [+ residual] [+ xd @ Wd])
# Frozen-BN scale is pre-folded into W; bias is the folded BN bias (f32).
# ---------------------------------------------------------------------------
def _mm_bias_kernel(x_ref, w_ref, b_ref, o_ref, *, relu):
    acc = jnp.dot(x_ref[...], w_ref[...], preferred_element_type=jnp.float32)
    out = acc + b_ref[...]
    if relu:
        out = jnp.maximum(out, 0.0)
    o_ref[...] = out.astype(o_ref.dtype)


def _mm_bias_res_kernel(x_ref, w_ref, b_ref, r_ref, o_ref, *, relu):
    acc = jnp.dot(x_ref[...], w_ref[...], preferred_element_type=jnp.float32)
    out = acc + b_ref[...] + r_ref[...].astype(jnp.float32)
    if relu:
        out = jnp.maximum(out, 0.0)
    o_ref[...] = out.astype(o_ref.dtype)


def _mm_bias_down_kernel(x_ref, w_ref, xd_ref, wd_ref, b_ref, o_ref, *, relu):
    # conv3 + fused downsample identity: relu(x@w3 + xs@wd + (b3 + bd))
    acc = jnp.dot(x_ref[...], w_ref[...], preferred_element_type=jnp.float32)
    acc = acc + jnp.dot(xd_ref[...], wd_ref[...],
                        preferred_element_type=jnp.float32)
    out = acc + b_ref[...]
    if relu:
        out = jnp.maximum(out, 0.0)
    o_ref[...] = out.astype(o_ref.dtype)


def matmul_bias(x, w, bias, *, residual=None, down=None, relu=True,
                out_dtype=jnp.bfloat16):
    """x:(M,K) w:(K,N) bias:(N,). residual:(M,N)|None. down:(xd,wd)|None."""
    M, K = x.shape
    N = w.shape[1]
    x = x.astype(jnp.bfloat16)
    w = w.astype(jnp.bfloat16)
    bias = bias.astype(jnp.float32).reshape(1, N)

    limit = _vmem_limit()
    budget = int(limit * 0.55)
    k2 = down[1].shape[0] if down is not None else 0

    def footprint(t):
        # double-buffered streamed tiles + double-buffered resident weights
        f = 2 * t * K * 2 + 2 * t * N * 2 + 2 * K * N * 2 + 2 * N * 4
        if residual is not None:
            f += 2 * t * N * 2
        if down is not None:
            f += 2 * t * k2 * 2 + 2 * k2 * N * 2
        return f

    # per-generation tile: v5e/v6e (128 MiB VMEM) go to 1024, v7x stays <= 512
    max_tm = 512 if limit <= 48 * 1024 * 1024 else 1024
    tm = 8
    for cand in (c for c in (1024, 768, 512, 384, 256, 128, 64, 32, 16, 8)
                 if c <= max_tm):
        if footprint(cand) <= budget:
            tm = cand
            break
    tm = min(tm, _round_up(M, 8))
    # keep >= 2 grid steps so both v7x TensorCores get work
    if M > 8 and pl.cdiv(M, tm) < 2:
        tm = _round_up(pl.cdiv(M, 2), 8)
    grid = (pl.cdiv(M, tm),)  # ragged last block: OOB rows computed on garbage
    #                           and dropped by the masked store.

    # TODO(synk): on v7x, pipeline_mode=pl.Buffered(1) on the resident weight /
    # bias specs would free VMEM for a larger tm (index_map is constant).
    in_specs = [pl.BlockSpec((tm, K), lambda i: (i, 0)),     # streamed x tile
                pl.BlockSpec((K, N), lambda i: (0, 0))]      # resident weight
    args = [x, w]
    if down is not None:
        xd, wd = down
        in_specs += [pl.BlockSpec((tm, k2), lambda i: (i, 0)),
                     pl.BlockSpec((k2, N), lambda i: (0, 0))]
        args += [xd.astype(jnp.bfloat16), wd.astype(jnp.bfloat16)]
    in_specs.append(pl.BlockSpec((1, N), lambda i: (0, 0)))  # resident bias
    args.append(bias)

    if down is not None:
        kernel = functools.partial(_mm_bias_down_kernel, relu=relu)
    elif residual is not None:
        kernel = functools.partial(_mm_bias_res_kernel, relu=relu)
        in_specs.append(pl.BlockSpec((tm, N), lambda i: (i, 0)))
        args.append(residual.astype(jnp.bfloat16))
    else:
        kernel = functools.partial(_mm_bias_kernel, relu=relu)

    return pl.pallas_call(
        kernel,
        out_shape=jax.ShapeDtypeStruct((M, N), out_dtype),
        grid=grid,
        in_specs=in_specs,
        out_specs=pl.BlockSpec((tm, N), lambda i: (i, 0)),
        compiler_params=pltpu.CompilerParams(
            dimension_semantics=("parallel",),
            vmem_limit_bytes=limit),
    )(*args)


def conv1x1_bn(x_nhwc, w, bias, *, relu=True, residual=None):
    R, H, W, Cin = x_nhwc.shape
    Cout = w.shape[1]
    xf = x_nhwc.reshape(R * H * W, Cin)
    rf = residual.reshape(R * H * W, Cout) if residual is not None else None
    out = matmul_bias(xf, w, bias, residual=rf, relu=relu)
    return out.reshape(R, H, W, Cout)


def conv1x1_bn_add_down(x_nhwc, w, xd_nhwc, wd, bias, *, relu=True):
    """conv3(x) + downsample(xd) fused in one kernel (no identity HBM trip)."""
    R, H, W, Cin = x_nhwc.shape
    Cout = w.shape[1]
    xf = x_nhwc.reshape(R * H * W, Cin)
    xdf = xd_nhwc.reshape(R * H * W, xd_nhwc.shape[-1])
    out = matmul_bias(xf, w, bias, down=(xdf, wd), relu=relu)
    return out.reshape(R, H, W, Cout)


# ---------------------------------------------------------------------------
# Kernel 2: 3x3 conv (stride 1, pad 1) + folded FrozenBN + ReLU, ROI-batched.
#
# Per grid step: TR ROIs. The unpadded (TR,H,W,Cin) block is copied into a
# zeroed VMEM staging buffer laid out as one "stacked padded frame"
# (TR * Hp * Wp rows, Hp=H+3, Wp=W+2); ROI r pixel (i,j) sits at row
# r*Hp*Wp + (i+1)*Wp + (j+1).  Because every ROI is self-contained inside its
# own Hp*Wp window, each conv tap (kh,kw) is ONE contiguous row-shifted slice
# of length L across the whole batch.  kw is folded into the contraction dim,
# so only 3 matmuls of shape (L, 3*Cin) @ (3*Cin, Cout) run per step,
# accumulated in an f32 VMEM scratch.  Valid (H,W) pixels are extracted
# in-kernel into a lane-dense (TR,H,W,Cout) output block: no HBM pad copy, no
# garbage columns, no wrapper slice.
# ---------------------------------------------------------------------------
def _conv3x3_kernel(x_ref, w_ref, b_ref, o_ref, xpad_ref, acc_ref,
                    *, TR, H, W, Wp, S, L, relu):
    # Zero the staging buffer every step (keeps the pad rows/cols zero and is
    # megacore-safe under dimension_semantics="parallel"), then fill interior.
    xpad_ref[...] = jnp.zeros(xpad_ref.shape, xpad_ref.dtype)
    for r in range(TR):
        for i in range(H):
            xpad_ref[pl.ds(r * S + (i + 1) * Wp + 1, W), :] = x_ref[r, i, :, :]

    # 3 taps: kw folded into the contraction dim (K = 3*Cin).
    for kh in range(3):
        xcat = jnp.concatenate(
            [xpad_ref[pl.ds(kh * Wp + kw, L), :] for kw in range(3)], axis=-1)
        part = jnp.dot(xcat, w_ref[kh], preferred_element_type=jnp.float32)
        if kh == 0:
            acc_ref[...] = part
        else:
            acc_ref[...] = acc_ref[...] + part

    # Epilogue + valid-pixel extraction straight into the (TR,H,W,Cout) block.
    bias = b_ref[...]
    for r in range(TR):
        for i in range(H):
            row = acc_ref[pl.ds(r * S + i * Wp, W), :] + bias
            if relu:
                row = jnp.maximum(row, 0.0)
            o_ref[r, i, :, :] = row.astype(o_ref.dtype)


def conv3x3_bn(x_nhwc, w, bias, *, relu=True, tr=8):
    """3x3 conv, stride=1, pad=1, dilation=1. w: (3,3,Cin,Cout), scale folded."""
    R, H, W, Cin = x_nhwc.shape
    Cout = w.shape[3]
    Wp = W + 2               # left/right pad 1
    Hp = H + 3               # top pad 1, bottom pad 2 (keeps every tap slice
    #                          inside the ROI's own stacked-frame window)
    S = Hp * Wp
    TR = max(1, min(tr, R))  # ROIs per grid step; real workloads keep
    #                          grid = cdiv(R, TR) >= 2 so both v7x cores work.
    L = (TR - 1) * S + (H - 1) * Wp + W   # rows needed per tap slice

    kernel = functools.partial(_conv3x3_kernel, TR=TR, H=H, W=W, Wp=Wp, S=S,
                               L=L, relu=relu)
    return pl.pallas_call(
        kernel,
        out_shape=jax.ShapeDtypeStruct((R, H, W, Cout), jnp.bfloat16),
        grid=(pl.cdiv(R, TR),),
        in_specs=[
            pl.BlockSpec((TR, H, W, Cin), lambda i: (i, 0, 0, 0)),
            pl.BlockSpec((3, 3 * Cin, Cout), lambda i: (0, 0, 0)),  # resident
            pl.BlockSpec((1, Cout), lambda i: (0, 0)),              # resident
        ],
        out_specs=pl.BlockSpec((TR, H, W, Cout), lambda i: (i, 0, 0, 0)),
        scratch_shapes=[
            pltpu.VMEM((TR * S, Cin), jnp.bfloat16),   # stacked padded frame
            pltpu.VMEM((L, Cout), jnp.float32),        # f32 accumulator
        ],
        compiler_params=pltpu.CompilerParams(
            dimension_semantics=("parallel",),
            vmem_limit_bytes=_vmem_limit()),
    )(x_nhwc.astype(jnp.bfloat16),
      w.astype(jnp.bfloat16).reshape(3, 3 * Cin, Cout),
      bias.astype(jnp.float32).reshape(1, Cout))


# ---------------------------------------------------------------------------
# Kernel 3: ROIAlign pooler (maskrcnn-benchmark semantics, aligned=False,
# single scale, sampling_ratio > 0).  The ROI batch index is scalar-prefetched
# and drives the feature-map index_map, so only the per-image feature block is
# DMA'd (and reused for consecutive ROIs of the same image) -- no (R,H,W,C)
# gather in HBM.  Bilinear interpolation is separable and the sr x sr average
# is folded into the (ph,H)/(pw,W) weight matrices.
# ---------------------------------------------------------------------------
def _roi_align_kernel(bidx_ref, feat_ref, wy_ref, wx_ref, o_ref):
    ph, pw, C = o_ref.shape[1], o_ref.shape[2], o_ref.shape[3]
    W = wx_ref.shape[2]
    fm = feat_ref[0, :, :]                                 # (H, W*C) bf16
    wy = wy_ref[0, :, :]                                   # (ph, H) bf16
    wx = wx_ref[0, :, :].astype(jnp.float32)               # (pw, W)
    # contract over feature rows h: one MXU matmul, channels stay on lanes
    t = jnp.dot(wy, fm, preferred_element_type=jnp.float32)   # (ph, W*C)
    # contract over feature cols w: W broadcast-FMAs on the VPU
    # TODO(synk): for very wide feature maps, an in-kernel transpose would turn
    # this into a second MXU matmul.
    acc = jnp.zeros((ph, pw, C), jnp.float32)
    for w in range(W):
        acc = acc + (wx[:, w][None, :, None] *
                     t[:, w * C:(w + 1) * C][:, None, :])
    o_ref[0, :, :, :] = acc.astype(o_ref.dtype)


def _interp_matrix(coords, size):
    # Detectron/maskrcnn-benchmark bilinear weights with out-of-range zeroing.
    valid = ((coords >= -1.0) & (coords <= size)).astype(jnp.float32)
    c = jnp.clip(coords, 0.0, size - 1.0)
    lo = jnp.floor(c)
    lo_i = lo.astype(jnp.int32)
    hi_i = jnp.minimum(lo_i + 1, size - 1)
    frac = c - lo
    w_lo = (1.0 - frac) * valid
    w_hi = frac * valid
    return (w_lo[..., None] * jax.nn.one_hot(lo_i, size, dtype=jnp.float32)
            + w_hi[..., None] * jax.nn.one_hot(hi_i, size, dtype=jnp.float32))


def _pooled_interp_matrix(coords, size, sr):
    m = _interp_matrix(coords, size)                 # (R, p*sr, size)
    r, ps, s = m.shape
    return m.reshape(r, ps // sr, sr, s).mean(axis=2)   # fold the sr average


def roi_align(feat_nhwc, rois, output_size, spatial_scale, sampling_ratio):
    """feat_nhwc: (N,H,W,C); rois: (R,5) = [batch_idx, x1, y1, x2, y2]."""
    # TODO(synk): adaptive sampling_ratio=0 path not implemented (sr must be >0)
    N, H, W, C = feat_nhwc.shape
    ph, pw = output_size
    sr = sampling_ratio
    R = rois.shape[0]

    bidx = rois[:, 0].astype(jnp.int32)
    x1 = rois[:, 1] * spatial_scale
    y1 = rois[:, 2] * spatial_scale
    x2 = rois[:, 3] * spatial_scale
    y2 = rois[:, 4] * spatial_scale
    bin_w = jnp.maximum(x2 - x1, 1.0) / pw
    bin_h = jnp.maximum(y2 - y1, 1.0) / ph

    gy = (jnp.arange(ph * sr, dtype=jnp.float32) + 0.5) / sr
    gx = (jnp.arange(pw * sr, dtype=jnp.float32) + 0.5) / sr
    ys = y1[:, None] + gy[None, :] * bin_h[:, None]
    xs = x1[:, None] + gx[None, :] * bin_w[:, None]
    wy = _pooled_interp_matrix(ys, H, sr).astype(jnp.bfloat16)   # (R, ph, H)
    wx = _pooled_interp_matrix(xs, W, sr).astype(jnp.bfloat16)   # (R, pw, W)

    feat2d = feat_nhwc.astype(jnp.bfloat16).reshape(N, H, W * C)  # free reshape

    return pl.pallas_call(
        _roi_align_kernel,
        out_shape=jax.ShapeDtypeStruct((R, ph, pw, C), jnp.bfloat16),
        grid_spec=pltpu.PrefetchScalarGridSpec(
            num_scalar_prefetch=1,
            grid=(R,),
            in_specs=[
                # per-image feature block, selected by the prefetched batch idx
                pl.BlockSpec((1, H, W * C), lambda r, b: (b[r], 0, 0)),
                pl.BlockSpec((1, ph, H), lambda r, b: (r, 0, 0)),
                pl.BlockSpec((1, pw, W), lambda r, b: (r, 0, 0)),
            ],
            out_specs=pl.BlockSpec((1, ph, pw, C), lambda r, b: (r, 0, 0, 0)),
        ),
        # "arbitrary": sequential grid lets consecutive ROIs of the same image
        # reuse the resident feature block instead of re-DMAing it per core.
        compiler_params=pltpu.CompilerParams(
            dimension_semantics=("arbitrary",),
            vmem_limit_bytes=_vmem_limit()),
    )(bidx, feat2d, wy, wx)


# ---------------------------------------------------------------------------
# Parameters (synthetic, deterministic). Frozen-BN scale folded into weights.
# ---------------------------------------------------------------------------
def _frozen_bn_params(key, c):
    k1, k2, k3, k4 = jax.random.split(key, 4)
    gamma = jax.random.uniform(k1, (c,), minval=0.5, maxval=1.5)
    beta = jax.random.normal(k2, (c,)) * 0.1
    mean = jax.random.normal(k3, (c,)) * 0.1
    var = jax.random.uniform(k4, (c,), minval=0.5, maxval=1.5)
    scale = gamma / jnp.sqrt(var + 1e-5)
    bias = beta - mean * scale
    return scale.astype(jnp.float32), bias.astype(jnp.float32)


def init_bottleneck(key, cin, cbot, cout, stride, has_down):
    ks = jax.random.split(key, 8)
    s1, b1 = _frozen_bn_params(ks[1], cbot)
    s2, b2 = _frozen_bn_params(ks[3], cbot)
    s3, b3 = _frozen_bn_params(ks[5], cout)
    w1 = jax.random.normal(ks[0], (cin, cbot)) * 0.05
    w2 = jax.random.normal(ks[2], (3, 3, cbot, cbot)) * 0.05
    w3 = jax.random.normal(ks[4], (cbot, cout)) * 0.05
    p = {
        "stride": stride,
        "w1": (w1 * s1[None, :]).astype(jnp.bfloat16), "b1": b1,
        "w2": (w2 * s2[None, None, None, :]).astype(jnp.bfloat16), "b2": b2,
        "w3": (w3 * s3[None, :]).astype(jnp.bfloat16), "b3": b3,
    }
    if has_down:
        sd, bd = _frozen_bn_params(ks[7], cout)
        wd = jax.random.normal(ks[6], (cin, cout)) * 0.05
        p["wd"] = (wd * sd[None, :]).astype(jnp.bfloat16)
        p["bd"] = bd
    return p


def bottleneck_forward(x_nhwc, p):
    """Bottleneck, FrozenBN, stride_in_1x1=True, num_groups=1, dilation=1."""
    stride = p["stride"]
    # stride on a 1x1 conv == subsample first; shared by conv1 and downsample
    xs = x_nhwc[:, ::stride, ::stride, :] if stride > 1 else x_nhwc

    out = conv1x1_bn(xs, p["w1"], p["b1"], relu=True)
    out = conv3x3_bn(out, p["w2"], p["b2"], relu=True)
    if "wd" in p:
        # conv3 + BN3 + downsample 1x1 + BN_d + add + ReLU fused in one kernel
        out = conv1x1_bn_add_down(out, p["w3"], xs, p["wd"],
                                  p["b3"] + p["bd"], relu=True)
    else:
        # conv3 + BN3 + identity add + ReLU fused in one kernel
        out = conv1x1_bn(out, p["w3"], p["b3"], relu=True, residual=xs)
    return out


def roi_feature_extractor(x_nchw, rois, params, *, resolution, spatial_scale,
                          sampling_ratio):
    feat = jnp.transpose(x_nchw, (0, 2, 3, 1))                       # NHWC
    y = roi_align(feat, rois, (resolution, resolution),
                  spatial_scale, sampling_ratio)                     # bf16
    for blk in params["blocks"]:
        y = bottleneck_forward(y, blk)
    return jnp.transpose(y, (0, 3, 1, 2)).astype(jnp.float32)        # NCHW


# ---------------------------------------------------------------------------
if __name__ == "__main__":
    key = jax.random.PRNGKey(0)
    kx, kp = jax.random.split(key, 2)

    # Scaled-down ResNet50-Conv5 head (real: 1024 / 512 / 2048, resolution 14).
    # Channel widths kept multiples of 128 so output stores stay lane-dense.
    IN_C, BOT_C, OUT_C = 128, 128, 256
    RESOLUTION = 8
    SPATIAL_SCALE = 0.25
    SAMPLING_RATIO = 2

    x = jax.random.normal(kx, (2, IN_C, 16, 16), dtype=jnp.float32)
    rois = jnp.array(
        [
            [0.0, 4.0, 4.0, 40.0, 40.0],
            [0.0, 8.0, 16.0, 56.0, 48.0],
            [1.0, 0.0, 0.0, 30.0, 62.0],
        ],
        dtype=jnp.float32,
    )

    bkeys = jax.random.split(kp, 3)
    params = {
        "blocks": [
            init_bottleneck(bkeys[0], IN_C, BOT_C, OUT_C, stride=2,
                            has_down=True),
            init_bottleneck(bkeys[1], OUT_C, BOT_C, OUT_C, stride=1,
                            has_down=False),
            init_bottleneck(bkeys[2], OUT_C, BOT_C, OUT_C, stride=1,
                            has_down=False),
        ]
    }

    @jax.jit
    def fwd(x_, rois_):
        return roi_feature_extractor(
            x_, rois_, params,
            resolution=RESOLUTION,
            spatial_scale=SPATIAL_SCALE,
            sampling_ratio=SAMPLING_RATIO,
        )

    out = jax.block_until_ready(fwd(x, rois))
    assert out.shape == (rois.shape[0], OUT_C, RESOLUTION // 2,
                         RESOLUTION // 2), out.shape
    assert bool(jnp.all(jnp.isfinite(out)))
    print("KERNEL_OK")
</pallas_src>

<mosaic_0001>
module attributes {stable_mosaic.version = 11 : i64} {
  func.func @_mm_bias_down_kernel(%arg0: i32, %arg1: memref<24x128xbf16, #tpu.memory_space<vmem>>, %arg2: memref<128x256xbf16, #tpu.memory_space<vmem>>, %arg3: memref<24x128xbf16, #tpu.memory_space<vmem>>, %arg4: memref<128x256xbf16, #tpu.memory_space<vmem>>, %arg5: memref<1x256xf32, #tpu.memory_space<vmem>>, %arg6: memref<24x256xbf16, #tpu.memory_space<vmem>>) attributes {dimension_semantics = [#tpu.dimension_semantics<parallel>], iteration_bounds = array<i64: 2>, scalar_prefetch = 0 : i64, scratch_operands = 0 : i64, tpu.core_type = #tpu.core_type<tc>, window_params = [{transform_indices = @transform_0, window_bounds = array<i64: 24, 128>}, {pipeline_mode = #tpu.pipeline_mode<synchronous>, transform_indices = @transform_1, window_bounds = array<i64: 128, 256>}, {transform_indices = @transform_2, window_bounds = array<i64: 24, 128>}, {pipeline_mode = #tpu.pipeline_mode<synchronous>, transform_indices = @transform_3, window_bounds = array<i64: 128, 256>}, {pipeline_mode = #tpu.pipeline_mode<synchronous>, transform_indices = @transform_4, window_bounds = array<i64: 1, 256>}, {transform_indices = @transform_5, window_bounds = array<i64: 24, 256>}]} {
    %c0 = arith.constant 0 : index
    %c0_0 = arith.constant 0 : index
    %0 = vector.load %arg1[%c0, %c0_0] : memref<24x128xbf16, #tpu.memory_space<vmem>>, vector<24x128xbf16>
    %c0_1 = arith.constant 0 : index
    %c0_2 = arith.constant 0 : index
    %1 = vector.load %arg2[%c0_1, %c0_2] : memref<128x256xbf16, #tpu.memory_space<vmem>>, vector<128x256xbf16>
    %cst = arith.constant dense<0.000000e+00> : vector<24x256xf32>
    %2 = tpu.matmul %0, %1, %cst {dimension_numbers = #tpu.dot_dimension_numbers<[1], [0], [0], [1], [0, 0, 1, 1], [], []>} : vector<24x128xbf16>, vector<128x256xbf16>, vector<24x256xf32> -> vector<24x256xf32>
    %c0_3 = arith.constant 0 : index
    %c0_4 = arith.constant 0 : index
    %3 = vector.load %arg3[%c0_3, %c0_4] : memref<24x128xbf16, #tpu.memory_space<vmem>>, vector<24x128xbf16>
    %c0_5 = arith.constant 0 : index
    %c0_6 = arith.constant 0 : index
    %4 = vector.load %arg4[%c0_5, %c0_6] : memref<128x256xbf16, #tpu.memory_space<vmem>>, vector<128x256xbf16>
    %cst_7 = arith.constant dense<0.000000e+00> : vector<24x256xf32>
    %5 = tpu.matmul %3, %4, %cst_7 {dimension_numbers = #tpu.dot_dimension_numbers<[1], [0], [0], [1], [0, 0, 1, 1], [], []>} : vector<24x128xbf16>, vector<128x256xbf16>, vector<24x256xf32> -> vector<24x256xf32>
    %6 = arith.addf %2, %5 : vector<24x256xf32>
    %c0_8 = arith.constant 0 : index
    %c0_9 = arith.constant 0 : index
    %7 = vector.load %arg5[%c0_8, %c0_9] : memref<1x256xf32, #tpu.memory_space<vmem>>, vector<1x256xf32>
    %8 = vector.broadcast %7 : vector<1x256xf32> to vector<24x256xf32>
    %9 = arith.addf %6, %8 : vector<24x256xf32>
    %cst_10 = arith.constant 0.000000e+00 : f32
    %10 = vector.broadcast %cst_10 : f32 to vector<24x256xf32>
    %11 = arith.maximumf %9, %10 : vector<24x256xf32>
    %12 = arith.truncf %11 : vector<24x256xf32> to vector<24x256xbf16>
    %c0_11 = arith.constant 0 : index
    %c0_12 = arith.constant 0 : index
    %13 = vector.load %arg6[%c0_11, %c0_12] : memref<24x256xbf16, #tpu.memory_space<vmem>>, vector<24x256xbf16>
    tpu.vector_store %arg6[%c0_11, %c0_12], %12 {strides = array<i32>} : memref<24x256xbf16, #tpu.memory_space<vmem>>, vector<24x256xbf16>,
    return
  }
  func.func @transform_0(%arg0: i32) -> (i32, i32) {
    %c0_i32 = arith.constant 0 : i32
    %c0_i32_0 = arith.constant 0 : i32
    return %arg0, %c0_i32 : i32, i32
  }
  func.func @transform_1(%arg0: i32) -> (i32, i32) {
    %c0_i32 = arith.constant 0 : i32
    %c0_i32_0 = arith.constant 0 : i32
    %c0_i32_1 = arith.constant 0 : i32
    return %c0_i32, %c0_i32_0 : i32, i32
  }
  func.func @transform_2(%arg0: i32) -> (i32, i32) {
    %c0_i32 = arith.constant 0 : i32
    %c0_i32_0 = arith.constant 0 : i32
    return %arg0, %c0_i32 : i32, i32
  }
  func.func @transform_3(%arg0: i32) -> (i32, i32) {
    %c0_i32 = arith.constant 0 : i32
    %c0_i32_0 = arith.constant 0 : i32
    %c0_i32_1 = arith.constant 0 : i32
    return %c0_i32, %c0_i32_0 : i32, i32
  }
  func.func @transform_4(%arg0: i32) -> (i32, i32) {
    %c0_i32 = arith.constant 0 : i32
    %c0_i32_0 = arith.constant 0 : i32
    %c0_i32_1 = arith.constant 0 : i32
    return %c0_i32, %c0_i32_0 : i32, i32
  }
  func.func @transform_5(%arg0: i32) -> (i32, i32) {
    %c0_i32 = arith.constant 0 : i32
    %c0_i32_0 = arith.constant 0 : i32
    return %arg0, %c0_i32 : i32, i32
  }
}

module attributes {stable_mosaic.version = 11 : i64} {
  func.func @_conv3x3_kernel(%arg0: i32, %arg1: memref<3x4x4x128xbf16, #tpu.memory_space<vmem>>, %arg2: memref<3x384x128xbf16, #tpu.memory_space<vmem>>, %arg3: memref<1x128xf32, #tpu.memory_space<vmem>>, %arg4: memref<3x4x4x128xbf16, #tpu.memory_space<vmem>>, %arg5: memref<126x128xbf16, #tpu.memory_space<vmem>>, %arg6: memref<106x128xf32, #tpu.memory_space<vmem>>) attributes {dimension_semantics = [#tpu.dimension_semantics<parallel>], iteration_bounds = array<i64: 1>, scalar_prefetch = 0 : i64, scratch_operands = 2 : i64, tpu.core_type = #tpu.core_type<tc>, window_params = [{transform_indices = @transform_0, window_bounds = array<i64: 3, 4, 4, 128>}, {pipeline_mode = #tpu.pipeline_mode<synchronous>, transform_indices = @transform_1, window_bounds = array<i64: 3, 384, 128>}, {pipeline_mode = #tpu.pipeline_mode<synchronous>, transform_indices = @transform_2, window_bounds = array<i64: 1, 128>}, {transform_indices = @transform_3, window_bounds = array<i64: 3, 4, 4, 128>}]} {
    %cst = arith.constant 0.000000e+00 : bf16
    %0 = vector.broadcast %cst : bf16 to vector<126x128xbf16>
    %c0 = arith.constant 0 : index
    %c0_0 = arith.constant 0 : index
    %1 = vector.load %arg5[%c0, %c0_0] : memref<126x128xbf16, #tpu.memory_space<vmem>>, vector<126x128xbf16>
    tpu.vector_store %arg5[%c0, %c0_0], %0 {strides = array<i32>} : memref<126x128xbf16, #tpu.memory_space<vmem>>, vector<126x128xbf16>,
    %c0_1 = arith.constant 0 : index
    %c0_2 = arith.constant 0 : index
    %c0_3 = arith.constant 0 : index
    %c0_4 = arith.constant 0 : index
    %2 = vector.load %arg1[%c0_1, %c0_2, %c0_3, %c0_4] : memref<3x4x4x128xbf16, #tpu.memory_space<vmem>>, vector<1x1x4x128xbf16>
    %3 = vector.shape_cast %2 : vector<1x1x4x128xbf16> to vector<4x128xbf16>
    %c7 = arith.constant 7 : index
    %c0_5 = arith.constant 0 : index
    %4 = vector.load %arg5[%c7, %c0_5] : memref<126x128xbf16, #tpu.memory_space<vmem>>, vector<4x128xbf16>
    tpu.vector_store %arg5[%c7, %c0_5], %3 {strides = array<i32>} : memref<126x128xbf16, #tpu.memory_space<vmem>>, vector<4x128xbf16>,
    %c0_6 = arith.constant 0 : index
    %c1 = arith.constant 1 : index
    %c0_7 = arith.constant 0 : index
    %c0_8 = arith.constant 0 : index
    %5 = vector.load %arg1[%c0_6, %c1, %c0_7, %c0_8] : memref<3x4x4x128xbf16, #tpu.memory_space<vmem>>, vector<1x1x4x128xbf16>
    %6 = vector.shape_cast %5 : vector<1x1x4x128xbf16> to vector<4x128xbf16>
    %c13 = arith.constant 13 : index
    %c0_9 = arith.constant 0 : index
    %7 = vector.load %arg5[%c13, %c0_9] : memref<126x128xbf16, #tpu.memory_space<vmem>>, vector<4x128xbf16>
    tpu.vector_store %arg5[%c13, %c0_9], %6 {strides = array<i32>} : memref<126x128xbf16, #tpu.memory_space<vmem>>, vector<4x128xbf16>,
    %c0_10 = arith.constant 0 : index
    %c2 = arith.constant 2 : index
    %c0_11 = arith.constant 0 : index
    %c0_12 = arith.constant 0 : index
    %8 = vector.load %arg1[%c0_10, %c2, %c0_11, %c0_12] : memref<3x4x4x128xbf16, #tpu.memory_space<vmem>>, vector<1x1x4x128xbf16>
    %9 = vector.shape_cast %8 : vector<1x1x4x128xbf16> to vector<4x128xbf16>
    %c19 = arith.constant 19 : index
    %c0_13 = arith.constant 0 : index
    %10 = vector.load %arg5[%c19, %c0_13] : memref<126x128xbf16, #tpu.memory_space<vmem>>, vector<4x128xbf16>
    tpu.vector_store %arg5[%c19, %c0_13], %9 {strides = array<i32>} : memref<126x128xbf16, #tpu.memory_space<vmem>>, vector<4x128xbf16>,
    %c0_14 = arith.constant 0 : index
    %c3 = arith.constant 3 : index
    %c0_15 = arith.constant 0 : index
    %c0_16 = arith.constant 0 : index
    %11 = vector.load %arg1[%c0_14, %c3, %c0_15, %c0_16] : memref<3x4x4x128xbf16, #tpu.memory_space<vmem>>, vector<1x1x4x128xbf16>
    %12 = vector.shape_cast %11 : vector<1x1x4x128xbf16> to vector<4x128xbf16>
    %c25 = arith.constant 25 : index
    %c0_17 = arith.constant 0 : index
    %13 = vector.load %arg5[%c25, %c0_17] : memref<126x128xbf16, #tpu.memory_space<vmem>>, vector<4x128xbf16>
    tpu.vector_store %arg5[%c25, %c0_17], %12 {strides = array<i32>} : memref<126x128xbf16, #tpu.memory_space<vmem>>, vector<4x128xbf16>,
    %c1_18 = arith.constant 1 : index
    %c0_19 = arith.constant 0 : index
    %c0_20 = arith.constant 0 : index
    %c0_21 = arith.constant 0 : index
    %14 = vector.load %arg1[%c1_18, %c0_19, %c0_20, %c0_21] : memref<3x4x4x128xbf16, #tpu.memory_space<vmem>>, vector<1x1x4x128xbf16>
    %15 = vector.shape_cast %14 : vector<1x1x4x128xbf16> to vector<4x128xbf16>
    %c49 = arith.constant 49 : index
    %c0_22 = arith.constant 0 : index
    %16 = vector.load %arg5[%c49, %c0_22] : memref<126x128xbf16, #tpu.memory_space<vmem>>, vector<4x128xbf16>
    tpu.vector_store %arg5[%c49, %c0_22], %15 {strides = array<i32>} : memref<126x128xbf16, #tpu.memory_space<vmem>>, vector<4x128xbf16>,
    %c1_23 = arith.constant 1 : index
    %c1_24 = arith.constant 1 : index
    %c0_25 = arith.constant 0 : index
    %c0_26 = arith.constant 0 : index
    %17 = vector.load %arg1[%c1_23, %c1_24, %c0_25, %c0_26] : memref<3x4x4x128xbf16, #tpu.memory_space<vmem>>, vector<1x1x4x128xbf16>
    %18 = vector.shape_cast %17 : vector<1x1x4x128xbf16> to vector<4x128xbf16>
    %c55 = arith.constant 55 : index
    %c0_27 = arith.constant 0 : index
    %19 = vector.load %arg5[%c55, %c0_27] : memref<126x128xbf16, #tpu.memory_space<vmem>>, vector<4x128xbf16>
    tpu.vector_store %arg5[%c55, %c0_27], %18 {strides = array<i32>} : memref<126x128xbf16, #tpu.memory_space<vmem>>, vector<4x128xbf16>,
    %c1_28 = arith.constant 1 : index
    %c2_29 = arith.constant 2 : index
    %c0_30 = arith.constant 0 : index
    %c0_31 = arith.constant 0 : index
    %20 = vector.load %arg1[%c1_28, %c2_29, %c0_30, %c0_31] : memref<3x4x4x128xbf16, #tpu.memory_space<vmem>>, vector<1x1x4x128xbf16>
    %21 = vector.shape_cast %20 : vector<1x1x4x128xbf16> to vector<4x128xbf16>
    %c61 = arith.constant 61 : index
    %c0_32 = arith.constant 0 : index
    %22 = vector.load %arg5[%c61, %c0_32] : memref<126x128xbf16, #tpu.memory_space<vmem>>, vector<4x128xbf16>
    tpu.vector_store %arg5[%c61, %c0_32], %21 {strides = array<i32>} : memref<126x128xbf16, #tpu.memory_space<vmem>>, vector<4x128xbf16>,
    %c1_33 = arith.constant 1 : index
    %c3_34 = arith.constant 3 : index
    %c0_35 = arith.constant 0 : index
    %c0_36 = arith.constant 0 : index
    %23 = vector.load %arg1[%c1_33, %c3_34, %c0_35, %c0_36] : memref<3x4x4x128xbf16, #tpu.memory_space<vmem>>, vector<1x1x4x128xbf16>
    %24 = vector.shape_cast %23 : vector<1x1x4x128xbf16> to vector<4x128xbf16>
    %c67 = arith.constant 67 : index
    %c0_37 = arith.constant 0 : index
    %25 = vector.load %arg5[%c67, %c0_37] : memref<126x128xbf16, #tpu.memory_space<vmem>>, vector<4x128xbf16>
    tpu.vector_store %arg5[%c67, %c0_37], %24 {strides = array<i32>} : memref<126x128xbf16, #tpu.memory_space<vmem>>, vector<4x128xbf16>,
    %c2_38 = arith.constant 2 : index
    %c0_39 = arith.constant 0 : index
    %c0_40 = arith.constant 0 : index
    %c0_41 = arith.constant 0 : index
    %26 = vector.load %arg1[%c2_38, %c0_39, %c0_40, %c0_41] : memref<3x4x4x128xbf16, #tpu.memory_space<vmem>>, vector<1x1x4x128xbf16>
    %27 = vector.shape_cast %26 : vector<1x1x4x128xbf16> to vector<4x128xbf16>
    %c91 = arith.constant 91 : index
    %c0_42 = arith.constant 0 : index
    %28 = vector.load %arg5[%c91, %c0_42] : memref<126x128xbf16, #tpu.memory_space<vmem>>, vector<4x128xbf16>
    tpu.vector_store %arg5[%c91, %c0_42], %27 {strides = array<i32>} : memref<126x128xbf16, #tpu.memory_space<vmem>>, vector<4x128xbf16>,
    %c2_43 = arith.constant 2 : index
    %c1_44 = arith.constant 1 : index
    %c0_45 = arith.constant 0 : index
    %c0_46 = arith.constant 0 : index
    %29 = vector.load %arg1[%c2_43, %c1_44, %c0_45, %c0_46] : memref<3x4x4x128xbf16, #tpu.memory_space<vmem>>, vector<1x1x4x128xbf16>
    %30 = vector.shape_cast %29 : vector<1x1x4x128xbf16> to vector<4x128xbf16>
    %c97 = arith.constant 97 : index
    %c0_47 = arith.constant 0 : index
    %31 = vector.load %arg5[%c97, %c0_47] : memref<126x128xbf16, #tpu.memory_space<vmem>>, vector<4x128xbf16>
    tpu.vector_store %arg5[%c97, %c0_47], %30 {strides = array<i32>} : memref<126x128xbf16, #tpu.memory_space<vmem>>, vector<4x128xbf16>,
    %c2_48 = arith.constant 2 : index
    %c2_49 = arith.constant 2 : index
    %c0_50 = arith.constant 0 : index
    %c0_51 = arith.constant 0 : index
    %32 = vector.load %arg1[%c2_48, %c2_49, %c0_50, %c0_51] : memref<3x4x4x128xbf16, #tpu.memory_space<vmem>>, vector<1x1x4x128xbf16>
    %33 = vector.shape_cast %32 : vector<1x1x4x128xbf16> to vector<4x128xbf16>
    %c103 = arith.constant 103 : index
    %c0_52 = arith.constant 0 : index
    %34 = vector.load %arg5[%c103, %c0_52] : memref<126x128xbf16, #tpu.memory_space<vmem>>, vector<4x128xbf16>
    tpu.vector_store %arg5[%c103, %c0_52], %33 {strides = array<i32>} : memref<126x128xbf16, #tpu.memory_space<vmem>>, vector<4x128xbf16>,
    %c2_53 = arith.constant 2 : index
    %c3_54 = arith.constant 3 : index
    %c0_55 = arith.constant 0 : index
    %c0_56 = arith.constant 0 : index
    %35 = vector.load %arg1[%c2_53, %c3_54, %c0_55, %c0_56] : memref<3x4x4x128xbf16, #tpu.memory_space<vmem>>, vector<1x1x4x128xbf16>
    %36 = vector.shape_cast %35 : vector<1x1x4x128xbf16> to vector<4x128xbf16>
    %c109 = arith.constant 109 : index
    %c0_57 = arith.constant 0 : index
    %37 = vector.load %arg5[%c109, %c0_57] : memref<126x128xbf16, #tpu.memory_space<vmem>>, vector<4x128xbf16>
    tpu.vector_store %arg5[%c109, %c0_57], %36 {strides = array<i32>} : memref<126x128xbf16, #tpu.memory_space<vmem>>, vector<4x128xbf16>,
    %c0_58 = arith.constant 0 : index
    %c0_59 = arith.constant 0 : index
    %38 = vector.load %arg5[%c0_58, %c0_59] : memref<126x128xbf16, #tpu.memory_space<vmem>>, vector<106x128xbf16>
    %c1_60 = arith.constant 1 : index
    %c0_61 = arith.constant 0 : index
    %39 = vector.load %arg5[%c1_60, %c0_61] : memref<126x128xbf16, #tpu.memory_space<vmem>>, vector<106x128xbf16>
    %c2_62 = arith.constant 2 : index
    %c0_63 = arith.constant 0 : index
    %40 = vector.load %arg5[%c2_62, %c0_63] : memref<126x128xbf16, #tpu.memory_space<vmem>>, vector<106x128xbf16>
    %41 = tpu.concatenate %38, %39, %40 in 1 : vector<106x128xbf16>, vector<106x128xbf16>, vector<106x128xbf16> -> vector<106x384xbf16>
    %c0_64 = arith.constant 0 : index
    %c0_65 = arith.constant 0 : index
    %c0_66 = arith.constant 0 : index
    %42 = vector.load %arg2[%c0_64, %c0_65, %c0_66] : memref<3x384x128xbf16, #tpu.memory_space<vmem>>, vector<1x384x128xbf16>
    %43 = vector.shape_cast %42 : vector<1x384x128xbf16> to vector<384x128xbf16>
    %cst_67 = arith.constant dense<0.000000e+00> : vector<106x128xf32>
    %44 = tpu.matmul %41, %43, %cst_67 {dimension_numbers = #tpu.dot_dimension_numbers<[1], [0], [0], [1], [0, 0, 1, 1], [], []>} : vector<106x384xbf16>, vector<384x128xbf16>, vector<106x128xf32> -> vector<106x128xf32>
    %c0_68 = arith.constant 0 : index
    %c0_69 = arith.constant 0 : index
    %45 = vector.load %arg6[%c0_68, %c0_69] : memref<106x128xf32, #tpu.memory_space<vmem>>, vector<106x128xf32>
    tpu.vector_store %arg6[%c0_68, %c0_69], %44 {strides = array<i32>} : memref<106x128xf32, #tpu.memory_space<vmem>>, vector<106x128xf32>,
    %c6 = arith.constant 6 : index
    %c0_70 = arith.constant 0 : index
    %46 = vector.load %arg5[%c6, %c0_70] : memref<126x128xbf16, #tpu.memory_space<vmem>>, vector<106x128xbf16>
    %c7_71 = arith.constant 7 : index
    %c0_72 = arith.constant 0 : index
    %47 = vector.load %arg5[%c7_71, %c0_72] : memref<126x128xbf16, #tpu.memory_space<vmem>>, vector<106x128xbf16>
    %c8 = arith.constant 8 : index
    %c0_73 = arith.constant 0 : index
    %48 = vector.load %arg5[%c8, %c0_73] : memref<126x128xbf16, #tpu.memory_space<vmem>>, vector<106x128xbf16>
    %49 = tpu.concatenate %46, %47, %48 in 1 : vector<106x128xbf16>, vector<106x128xbf16>, vector<106x128xbf16> -> vector<106x384xbf16>
    %c1_74 = arith.constant 1 : index
    %c0_75 = arith.constant 0 : index
    %c0_76 = arith.constant 0 : index
    %50 = vector.load %arg2[%c1_74, %c0_75, %c0_76] : memref<3x384x128xbf16, #tpu.memory_space<vmem>>, vector<1x384x128xbf16>
    %51 = vector.shape_cast %50 : vector<1x384x128xbf16> to vector<384x128xbf16>
    %cst_77 = arith.constant dense<0.000000e+00> : vector<106x128xf32>
    %52 = tpu.matmul %49, %51, %cst_77 {dimension_numbers = #tpu.dot_dimension_numbers<[1], [0], [0], [1], [0, 0, 1, 1], [], []>} : vector<106x384xbf16>, vector<384x128xbf16>, vector<106x128xf32> -> vector<106x128xf32>
    %c0_78 = arith.constant 0 : index
    %c0_79 = arith.constant 0 : index
    %53 = vector.load %arg6[%c0_78, %c0_79] : memref<106x128xf32, #tpu.memory_space<vmem>>, vector<106x128xf32>
    %54 = arith.addf %53, %52 : vector<106x128xf32>
    %c0_80 = arith.constant 0 : index
    %c0_81 = arith.constant 0 : index
    %55 = vector.load %arg6[%c0_80, %c0_81] : memref<106x128xf32, #tpu.memory_space<vmem>>, vector<106x128xf32>
    tpu.vector_store %arg6[%c0_80, %c0_81], %54 {strides = array<i32>} : memref<106x128xf32, #tpu.memory_space<vmem>>, vector<106x128xf32>,
    %c12 = arith.constant 12 : index
    %c0_82 = arith.constant 0 : index
    %56 = vector.load %arg5[%c12, %c0_82] : memref<126x128xbf16, #tpu.memory_space<vmem>>, vector<106x128xbf16>
    %c13_83 = arith.constant 13 : index
    %c0_84 = arith.constant 0 : index
    %57 = vector.load %arg5[%c13_83, %c0_84] : memref<126x128xbf16, #tpu.memory_space<vmem>>, vector<106x128xbf16>
    %c14 = arith.constant 14 : index
    %c0_85 = arith.constant 0 : index
    %58 = vector.load %arg5[%c14, %c0_85] : memref<126x128xbf16, #tpu.memory_space<vmem>>, vector<106x128xbf16>
    %59 = tpu.concatenate %56, %57, %58 in 1 : vector<106x128xbf16>, vector<106x128xbf16>, vector<106x128xbf16> -> vector<106x384xbf16>
    %c2_86 = arith.constant 2 : index
    %c0_87 = arith.constant 0 : index
    %c0_88 = arith.constant 0 : index
    %60 = vector.load %arg2[%c2_86, %c0_87, %c0_88] : memref<3x384x128xbf16, #tpu.memory_space<vmem>>, vector<1x384x128xbf16>
    %61 = vector.shape_cast %60 : vector<1x384x128xbf16> to vector<384x128xbf16>
    %cst_89 = arith.constant dense<0.000000e+00> : vector<106x128xf32>
    %62 = tpu.matmul %59, %61, %cst_89 {dimension_numbers = #tpu.dot_dimension_numbers<[1], [0], [0], [1], [0, 0, 1, 1], [], []>} : vector<106x384xbf16>, vector<384x128xbf16>, vector<106x128xf32> -> vector<106x128xf32>
    %c0_90 = arith.constant 0 : index
    %c0_91 = arith.constant 0 : index
    %63 = vector.load %arg6[%c0_90, %c0_91] : memref<106x128xf32, #tpu.memory_space<vmem>>, vector<106x128xf32>
    %64 = arith.addf %63, %62 : vector<106x128xf32>
    %c0_92 = arith.constant 0 : index
    %c0_93 = arith.constant 0 : index
    %65 = vector.load %arg6[%c0_92, %c0_93] : memref<106x128xf32, #tpu.memory_space<vmem>>, vector<106x128xf32>
    tpu.vector_store %arg6[%c0_92, %c0_93], %64 {strides = array<i32>} : memref<106x128xf32, #tpu.memory_space<vmem>>, vector<106x128xf32>,
    %c0_94 = arith.constant 0 : index
    %c0_95 = arith.constant 0 : index
    %66 = vector.load %arg3[%c0_94, %c0_95] : memref<1x128xf32, #tpu.memory_space<vmem>>, vector<1x128xf32>
    %c0_96 = arith.constant 0 : index
    %c0_97 = arith.constant 0 : index
    %67 = vector.load %arg6[%c0_96, %c0_97] : memref<106x128xf32, #tpu.memory_space<vmem>>, vector<4x128xf32>
    %68 = vector.broadcast %66 : vector<1x128xf32> to vector<4x128xf32>
    %69 = arith.addf %67, %68 : vector<4x128xf32>
    %cst_98 = arith.constant 0.000000e+00 : f32
    %70 = vector.broadcast %cst_98 : f32 to vector<4x128xf32>
    %71 = arith.maximumf %69, %70 : vector<4x128xf32>
    %72 = arith.truncf %71 : vector<4x128xf32> to vector<4x128xbf16>
    %c0_99 = arith.constant 0 : index
    %c0_100 = arith.constant 0 : index
    %c0_101 = arith.constant 0 : index
    %c0_102 = arith.constant 0 : index
    %73 = vector.load %arg4[%c0_99, %c0_100, %c0_101, %c0_102] : memref<3x4x4x128xbf16, #tpu.memory_space<vmem>>, vector<1x1x4x128xbf16>
    %74 = vector.shape_cast %73 : vector<1x1x4x128xbf16> to vector<4x128xbf16>
    %75 = vector.shape_cast %72 : vector<4x128xbf16> to vector<1x1x4x128xbf16>
    tpu.vector_store %arg4[%c0_99, %c0_100, %c0_101, %c0_102], %75 {strides = array<i32>} : memref<3x4x4x128xbf16, #tpu.memory_space<vmem>>, vector<1x1x4x128xbf16>,
    %c6_103 = arith.constant 6 : index
    %c0_104 = arith.constant 0 : index
    %76 = vector.load %arg6[%c6_103, %c0_104] : memref<106x128xf32, #tpu.memory_space<vmem>>, vector<4x128xf32>
    %77 = vector.broadcast %66 : vector<1x128xf32> to vector<4x128xf32>
    %78 = arith.addf %76, %77 : vector<4x128xf32>
    %cst_105 = arith.constant 0.000000e+00 : f32
    %79 = vector.broadcast %cst_105 : f32 to vector<4x128xf32>
    %80 = arith.maximumf %78, %79 : vector<4x128xf32>
    %81 = arith.truncf %80 : vector<4x128xf32> to vector<4x128xbf16>
    %c0_106 = arith.constant 0 : index
    %c1_107 = arith.constant 1 : index
    %c0_108 = arith.constant 0 : index
    %c0_109 = arith.constant 0 : index
    %82 = vector.load %arg4[%c0_106, %c1_107, %c0_108, %c0_109] : memref<3x4x4x128xbf16, #tpu.memory_space<vmem>>, vector<1x1x4x128xbf16>
    %83 = vector.shape_cast %82 : vector<1x1x4x128xbf16> to vector<4x128xbf16>
    %84 = vector.shape_cast %81 : vector<4x128xbf16> to vector<1x1x4x128xbf16>
    tpu.vector_store %arg4[%c0_106, %c1_107, %c0_108, %c0_109], %84 {strides = array<i32>} : memref<3x4x4x128xbf16, #tpu.memory_space<vmem>>, vector<1x1x4x128xbf16>,
    %c12_110 = arith.constant 12 : index
    %c0_111 = arith.constant 0 : index
    %85 = vector.load %arg6[%c12_110, %c0_111] : memref<106x128xf32, #tpu.memory_space<vmem>>, vector<4x128xf32>
    %86 = vector.broadcast %66 : vector<1x128xf32> to vector<4x128xf32>
    %87 = arith.addf %85, %86 : vector<4x128xf32>
    %cst_112 = arith.constant 0.000000e+00 : f32
    %88 = vector.broadcast %cst_112 : f32 to vector<4x128xf32>
    %89 = arith.maximumf %87, %88 : vector<4x128xf32>
    %90 = arith.truncf %89 : vector<4x128xf32> to vector<4x128xbf16>
    %c0_113 = arith.constant 0 : index
    %c2_114 = arith.constant 2 : index
    %c0_115 = arith.constant 0 : index
    %c0_116 = arith.constant 0 : index
    %91 = vector.load %arg4[%c0_113, %c2_114, %c0_115, %c0_116] : memref<3x4x4x128xbf16, #tpu.memory_space<vmem>>, vector<1x1x4x128xbf16>
    %92 = vector.shape_cast %91 : vector<1x1x4x128xbf16> to vector<4x128xbf16>
    %93 = vector.shape_cast %90 : vector<4x128xbf16> to vector<1x1x4x128xbf16>
    tpu.vector_store %arg4[%c0_113, %c2_114, %c0_115, %c0_116], %93 {strides = array<i32>} : memref<3x4x4x128xbf16, #tpu.memory_space<vmem>>, vector<1x1x4x128xbf16>,
    %c18 = arith.constant 18 : index
    %c0_117 = arith.constant 0 : index
    %94 = vector.load %arg6[%c18, %c0_117] : memref<106x128xf32, #tpu.memory_space<vmem>>, vector<4x128xf32>
    %95 = vector.broadcast %66 : vector<1x128xf32> to vector<4x128xf32>
    %96 = arith.addf %94, %95 : vector<4x128xf32>
    %cst_118 = arith.constant 0.000000e+00 : f32
    %97 = vector.broadcast %cst_118 : f32 to vector<4x128xf32>
    %98 = arith.maximumf %96, %97 : vector<4x128xf32>
    %99 = arith.truncf %98 : vector<4x128xf32> to vector<4x128xbf16>
    %c0_119 = arith.constant 0 : index
    %c3_120 = arith.constant 3 : index
    %c0_121 = arith.constant 0 : index
    %c0_122 = arith.constant 0 : index
    %100 = vector.load %arg4[%c0_119, %c3_120, %c0_121, %c0_122] : memref<3x4x4x128xbf16, #tpu.memory_space<vmem>>, vector<1x1x4x128xbf16>
    %101 = vector.shape_cast %100 : vector<1x1x4x128xbf16> to vector<4x128xbf16>
    %102 = vector.shape_cast %99 : vector<4x128xbf16> to vector<1x1x4x128xbf16>
    tpu.vector_store %arg4[%c0_119, %c3_120, %c0_121, %c0_122], %102 {strides = array<i32>} : memref<3x4x4x128xbf16, #tpu.memory_space<vmem>>, vector<1x1x4x128xbf16>,
    %c42 = arith.constant 42 : index
    %c0_123 = arith.constant 0 : index
    %103 = vector.load %arg6[%c42, %c0_123] : memref<106x128xf32, #tpu.memory_space<vmem>>, vector<4x128xf32>
    %104 = vector.broadcast %66 : vector<1x128xf32> to vector<4x128xf32>
    %105 = arith.addf %103, %104 : vector<4x128xf32>
    %cst_124 = arith.constant 0.000000e+00 : f32
    %106 = vector.broadcast %cst_124 : f32 to vector<4x128xf32>
    %107 = arith.maximumf %105, %106 : vector<4x128xf32>
    %108 = arith.truncf %107 : vector<4x128xf32> to vector<4x128xbf16>
    %c1_125 = arith.constant 1 : index
    %c0_126 = arith.constant 0 : index
    %c0_127 = arith.constant 0 : index
    %c0_128 = arith.constant 0 : index
    %109 = vector.load %arg4[%c1_125, %c0_126, %c0_127, %c0_128] : memref<3x4x4x128xbf16, #tpu.memory_space<vmem>>, vector<1x1x4x128xbf16>
    %110 = vector.shape_cast %109 : vector<1x1x4x128xbf16> to vector<4x128xbf16>
    %111 = vector.shape_cast %108 : vector<4x128xbf16> to vector<1x1x4x128xbf16>
    tpu.vector_store %arg4[%c1_125, %c0_126, %c0_127, %c0_128], %111 {strides = array<i32>} : memref<3x4x4x128xbf16, #tpu.memory_space<vmem>>, vector<1x1x4x128xbf16>,
    %c48 = arith.constant 48 : index
    %c0_129 = arith.constant 0 : index
    %112 = vector.load %arg6[%c48, %c0_129] : memref<106x128xf32, #tpu.memory_space<vmem>>, vector<4x128xf32>
    %113 = vector.broadcast %66 : vector<1x128xf32> to vector<4x128xf32>
    %114 = arith.addf %112, %113 : vector<4x128xf32>
    %cst_130 = arith.constant 0.000000e+00 : f32
    %115 = vector.broadcast %cst_130 : f32 to vector<4x128xf32>
    %116 = arith.maximumf %114, %115 : vector<4x128xf32>
    %117 = arith.truncf %116 : vector<4x128xf32> to vector<4x128xbf16>
    %c1_131 = arith.constant 1 : index
    %c1_132 = arith.constant 1 : index
    %c0_133 = arith.constant 0 : index
    %c0_134 = arith.constant 0 : index
    %118 = vector.load %arg4[%c1_131, %c1_132, %c0_133, %c0_134] : memref<3x4x4x128xbf16, #tpu.memory_space<vmem>>, vector<1x1x4x128xbf16>
    %119 = vector.shape_cast %118 : vector<1x1x4x128xbf16> to vector<4x128xbf16>
    %120 = vector.shape_cast %117 : vector<4x128xbf16> to vector<1x1x4x128xbf16>
    tpu.vector_store %arg4[%c1_131, %c1_132, %c0_133, %c0_134], %120 {strides = array<i32>} : memref<3x4x4x128xbf16, #tpu.memory_space<vmem>>, vector<1x1x4x128xbf16>,
    %c54 = arith.constant 54 : index
    %c0_135 = arith.constant 0 : index
    %121 = vector.load %arg6[%c54, %c0_135] : memref<106x128xf32, #tpu.memory_space<vmem>>, vector<4x128xf32>
    %122 = vector.broadcast %66 : vector<1x128xf32> to vector<4x128xf32>
    %123 = arith.addf %121, %122 : vector<4x128xf32>
    %cst_136 = arith.constant 0.000000e+00 : f32
    %124 = vector.broadcast %cst_136 : f32 to vector<4x128xf32>
    %125 = arith.maximumf %123, %124 : vector<4x128xf32>
    %126 = arith.truncf %125 : vector<4x128xf32> to vector<4x128xbf16>
    %c1_137 = arith.constant 1 : index
    %c2_138 = arith.constant 2 : index
    %c0_139 = arith.constant 0 : index
    %c0_140 = arith.constant 0 : index
    %127 = vector.load %arg4[%c1_137, %c2_138, %c0_139, %c0_140] : memref<3x4x4x128xbf16, #tpu.memory_space<vmem>>, vector<1x1x4x128xbf16>
    %128 = vector.shape_cast %127 : vector<1x1x4x128xbf16> to vector<4x128xbf16>
    %129 = vector.shape_cast %126 : vector<4x128xbf16> to vector<1x1x4x128xbf16>
    tpu.vector_store %arg4[%c1_137, %c2_138, %c0_139, %c0_140], %129 {strides = array<i32>} : memref<3x4x4x128xbf16, #tpu.memory_space<vmem>>, vector<1x1x4x128xbf16>,
    %c60 = arith.constant 60 : index
    %c0_141 = arith.constant 0 : index
    %130 = vector.load %arg6[%c60, %c0_141] : memref<106x128xf32, #tpu.memory_space<vmem>>, vector<4x128xf32>
    %131 = vector.broadcast %66 : vector<1x128xf32> to vector<4x128xf32>
    %132 = arith.addf %130, %131 : vector<4x128xf32>
    %cst_142 = arith.constant 0.000000e+00 : f32
    %133 = vector.broadcast %cst_142 : f32 to vector<4x128xf32>
    %134 = arith.maximumf %132, %133 : vector<4x128xf32>
    %135 = arith.truncf %134 : vector<4x128xf32> to vector<4x128xbf16>
    %c1_143 = arith.constant 1 : index
    %c3_144 = arith.constant 3 : index
    %c0_145 = arith.constant 0 : index
    %c0_146 = arith.constant 0 : index
    %136 = vector.load %arg4[%c1_143, %c3_144, %c0_145, %c0_146] : memref<3x4x4x128xbf16, #tpu.memory_space<vmem>>, vector<1x1x4x128xbf16>
    %137 = vector.shape_cast %136 : vector<1x1x4x128xbf16> to vector<4x128xbf16>
    %138 = vector.shape_cast %135 : vector<4x128xbf16> to vector<1x1x4x128xbf16>
    tpu.vector_store %arg4[%c1_143, %c3_144, %c0_145, %c0_146], %138 {strides = array<i32>} : memref<3x4x4x128xbf16, #tpu.memory_space<vmem>>, vector<1x1x4x128xbf16>,
    %c84 = arith.constant 84 : index
    %c0_147 = arith.constant 0 : index
    %139 = vector.load %arg6[%c84, %c0_147] : memref<106x128xf32, #tpu.memory_space<vmem>>, vector<4x128xf32>
    %140 = vector.broadcast %66 : vector<1x128xf32> to vector<4x128xf32>
    %141 = arith.addf %139, %140 : vector<4x128xf32>
    %cst_148 = arith.constant 0.000000e+00 : f32
    %142 = vector.broadcast %cst_148 : f32 to vector<4x128xf32>
    %143 = arith.maximumf %141, %142 : vector<4x128xf32>
    %144 = arith.truncf %143 : vector<4x128xf32> to vector<4x128xbf16>
    %c2_149 = arith.constant 2 : index
    %c0_150 = arith.constant 0 : index
    %c0_151 = arith.constant 0 : index
    %c0_152 = arith.constant 0 : index
    %145 = vector.load %arg4[%c2_149, %c0_150, %c0_151, %c0_152] : memref<3x4x4x128xbf16, #tpu.memory_space<vmem>>, vector<1x1x4x128xbf16>
    %146 = vector.shape_cast %145 : vector<1x1x4x128xbf16> to vector<4x128xbf16>
    %147 = vector.shape_cast %144 : vector<4x128xbf16> to vector<1x1x4x128xbf16>
    tpu.vector_store %arg4[%c2_149, %c0_150, %c0_151, %c0_152], %147 {strides = array<i32>} : memref<3x4x4x128xbf16, #tpu.memory_space<vmem>>, vector<1x1x4x128xbf16>,
    %c90 = arith.constant 90 : index
    %c0_153 = arith.constant 0 : index
    %148 = vector.load %arg6[%c90, %c0_153] : memref<106x128xf32, #tpu.memory_space<vmem>>, vector<4x128xf32>
    %149 = vector.broadcast %66 : vector<1x128xf32> to vector<4x128xf32>
    %150 = arith.addf %148, %149 : vector<4x128xf32>
    %cst_154 = arith.constant 0.000000e+00 : f32
    %151 = vector.broadcast %cst_154 : f32 to vector<4x128xf32>
    %152 = arith.maximumf %150, %151 : vector<4x128xf32>
    %153 = arith.truncf %152 : vector<4x128xf32> to vector<4x128xbf16>
    %c2_155 = arith.constant 2 : index
    %c1_156 = arith.constant 1 : index
    %c0_157 = arith.constant 0 : index
    %c0_158 = arith.constant 0 : index
    %154 = vector.load %arg4[%c2_155, %c1_156, %c0_157, %c0_158] : memref<3x4x4x128xbf16, #tpu.memory_space<vmem>>, vector<1x1x4x128xbf16>
    %155 = vector.shape_cast %154 : vector<1x1x4x128xbf16> to vector<4x128xbf16>
    %156 = vector.shape_cast %153 : vector<4x128xbf16> to vector<1x1x4x128xbf16>
    tpu.vector_store %arg4[%c2_155, %c1_156, %c0_157, %c0_158], %156 {strides = array<i32>} : memref<3x4x4x128xbf16, #tpu.memory_space<vmem>>, vector<1x1x4x128xbf16>,
    %c96 = arith.constant 96 : index
    %c0_159 = arith.constant 0 : index
    %157 = vector.load %arg6[%c96, %c0_159] : memref<106x128xf32, #tpu.memory_space<vmem>>, vector<4x128xf32>
    %158 = vector.broadcast %66 : vector<1x128xf32> to vector<4x128xf32>
    %159 = arith.addf %157, %158 : vector<4x128xf32>
    %cst_160 = arith.constant 0.000000e+00 : f32
    %160 = vector.broadcast %cst_160 : f32 to vector<4x128xf32>
    %161 = arith.maximumf %159, %160 : vector<4x128xf32>
    %162 = arith.truncf %161 : vector<4x128xf32> to vector<4x128xbf16>
    %c2_161 = arith.constant 2 : index
    %c2_162 = arith.constant 2 : index
    %c0_163 = arith.constant 0 : index
    %c0_164 = arith.constant 0 : index
    %163 = vector.load %arg4[%c2_161, %c2_162, %c0_163, %c0_164] : memref<3x4x4x128xbf16, #tpu.memory_space<vmem>>, vector<1x1x4x128xbf16>
    %164 = vector.shape_cast %163 : vector<1x1x4x128xbf16> to vector<4x128xbf16>
    %165 = vector.shape_cast %162 : vector<4x128xbf16> to vector<1x1x4x128xbf16>
    tpu.vector_store %arg4[%c2_161, %c2_162, %c0_163, %c0_164], %165 {strides = array<i32>} : memref<3x4x4x128xbf16, #tpu.memory_space<vmem>>, vector<1x1x4x128xbf16>,
    %c102 = arith.constant 102 : index
    %c0_165 = arith.constant 0 : index
    %166 = vector.load %arg6[%c102, %c0_165] : memref<106x128xf32, #tpu.memory_space<vmem>>, vector<4x128xf32>
    %167 = vector.broadcast %66 : vector<1x128xf32> to vector<4x128xf32>
    %168 = arith.addf %166, %167 : vector<4x128xf32>
    %cst_166 = arith.constant 0.000000e+00 : f32
    %169 = vector.broadcast %cst_166 : f32 to vector<4x128xf32>
    %170 = arith.maximumf %168, %169 : vector<4x128xf32>
    %171 = arith.truncf %170 : vector<4x128xf32> to vector<4x128xbf16>
    %c2_167 = arith.constant 2 : index
    %c3_168 = arith.constant 3 : index
    %c0_169 = arith.constant 0 : index
    %c0_170 = arith.constant 0 : index
    %172 = vector.load %arg4[%c2_167, %c3_168, %c0_169, %c0_170] : memref<3x4x4x128xbf16, #tpu.memory_space<vmem>>, vector<1x1x4x128xbf16>
    %173 = vector.shape_cast %172 : vector<1x1x4x128xbf16> to vector<4x128xbf16>
    %174 = vector.shape_cast %171 : vector<4x128xbf16> to vector<1x1x4x128xbf16>
    tpu.vector_store %arg4[%c2_167, %c3_168, %c0_169, %c0_170], %174 {strides = array<i32>} : memref<3x4x4x128xbf16, #tpu.memory_space<vmem>>, vector<1x1x4x128xbf16>,
    return
  }
  func.func @transform_0(%arg0: i32) -> (i32, i32, i32, i32) {
    %c0_i32 = arith.constant 0 : i32
    %c0_i32_0 = arith.constant 0 : i32
    %c0_i32_1 = arith.constant 0 : i32
    %c0_i32_2 = arith.constant 0 : i32
    return %arg0, %c0_i32, %c0_i32_0, %c0_i32_1 : i32, i32, i32, i32
  }
  func.func @transform_1(%arg0: i32) -> (i32, i32, i32) {
    %c0_i32 = arith.constant 0 : i32
    %c0_i32_0 = arith.constant 0 : i32
    %c0_i32_1 = arith.constant 0 : i32
    %c0_i32_2 = arith.constant 0 : i32
    return %c0_i32, %c0_i32_0, %c0_i32_1 : i32, i32, i32
  }
  func.func @transform_2(%arg0: i32) -> (i32, i32) {
    %c0_i32 = arith.constant 0 : i32
    %c0_i32_0 = arith.constant 0 : i32
    %c0_i32_1 = arith.constant 0 : i32
    return %c0_i32, %c0_i32_0 : i32, i32
  }
  func.func @transform_3(%arg0: i32) -> (i32, i32, i32, i32) {
    %c0_i32 = arith.constant 0 : i32
    %c0_i32_0 = arith.constant 0 : i32
    %c0_i32_1 = arith.constant 0 : i32
    %c0_i32_2 = arith.constant 0 : i32
    return %arg0, %c0_i32, %c0_i32_0, %c0_i32_1 : i32, i32, i32, i32
  }
}

module attributes {stable_mosaic.version = 11 : i64} {
  func.func @_mm_bias_kernel(%arg0: i32, %arg1: memref<24x128xbf16, #tpu.memory_space<vmem>>, %arg2: memref<128x128xbf16, #tpu.memory_space<vmem>>, %arg3: memref<1x128xf32, #tpu.memory_space<vmem>>, %arg4: memref<24x128xbf16, #tpu.memory_space<vmem>>) attributes {dimension_semantics = [#tpu.dimension_semantics<parallel>], iteration_bounds = array<i64: 2>, scalar_prefetch = 0 : i64, scratch_operands = 0 : i64, tpu.core_type = #tpu.core_type<tc>, window_params = [{transform_indices = @transform_0, window_bounds = array<i64: 24, 128>}, {pipeline_mode = #tpu.pipeline_mode<synchronous>, transform_indices = @transform_1, window_bounds = array<i64: 128, 128>}, {pipeline_mode = #tpu.pipeline_mode<synchronous>, transform_indices = @transform_2, window_bounds = array<i64: 1, 128>}, {transform_indices = @transform_3, window_bounds = array<i64: 24, 128>}]} {
    %c0 = arith.constant 0 : index
    %c0_0 = arith.constant 0 : index
    %0 = vector.load %arg1[%c0, %c0_0] : memref<24x128xbf16, #tpu.memory_space<vmem>>, vector<24x128xbf16>
    %c0_1 = arith.constant 0 : index
    %c0_2 = arith.constant 0 : index
    %1 = vector.load %arg2[%c0_1, %c0_2] : memref<128x128xbf16, #tpu.memory_space<vmem>>, vector<128x128xbf16>
    %cst = arith.constant dense<0.000000e+00> : vector<24x128xf32>
    %2 = tpu.matmul %0, %1, %cst {dimension_numbers = #tpu.dot_dimension_numbers<[1], [0], [0], [1], [0, 0, 1, 1], [], []>} : vector<24x128xbf16>, vector<128x128xbf16>, vector<24x128xf32> -> vector<24x128xf32>
    %c0_3 = arith.constant 0 : index
    %c0_4 = arith.constant 0 : index
    %3 = vector.load %arg3[%c0_3, %c0_4] : memref<1x128xf32, #tpu.memory_space<vmem>>, vector<1x128xf32>
    %4 = vector.broadcast %3 : vector<1x128xf32> to vector<24x128xf32>
    %5 = arith.addf %2, %4 : vector<24x128xf32>
    %cst_5 = arith.constant 0.000000e+00 : f32
    %6 = vector.broadcast %cst_5 : f32 to vector<24x128xf32>
    %7 = arith.maximumf %5, %6 : vector<24x128xf32>
    %8 = arith.truncf %7 : vector<24x128xf32> to vector<24x128xbf16>
    %c0_6 = arith.constant 0 : index
    %c0_7 = arith.constant 0 : index
    %9 = vector.load %arg4[%c0_6, %c0_7] : memref<24x128xbf16, #tpu.memory_space<vmem>>, vector<24x128xbf16>
    tpu.vector_store %arg4[%c0_6, %c0_7], %8 {strides = array<i32>} : memref<24x128xbf16, #tpu.memory_space<vmem>>, vector<24x128xbf16>,
    return
  }
  func.func @transform_0(%arg0: i32) -> (i32, i32) {
    %c0_i32 = arith.constant 0 : i32
    %c0_i32_0 = arith.constant 0 : i32
    return %arg0, %c0_i32 : i32, i32
  }
  func.func @transform_1(%arg0: i32) -> (i32, i32) {
    %c0_i32 = arith.constant 0 : i32
    %c0_i32_0 = arith.constant 0 : i32
    %c0_i32_1 = arith.constant 0 : i32
    return %c0_i32, %c0_i32_0 : i32, i32
  }
  func.func @transform_2(%arg0: i32) -> (i32, i32) {
    %c0_i32 = arith.constant 0 : i32
    %c0_i32_0 = arith.constant 0 : i32
    %c0_i32_1 = arith.constant 0 : i32
    return %c0_i32, %c0_i32_0 : i32, i32
  }
  func.func @transform_3(%arg0: i32) -> (i32, i32) {
    %c0_i32 = arith.constant 0 : i32
    %c0_i32_0 = arith.constant 0 : i32
    return %arg0, %c0_i32 : i32, i32
  }
}

module attributes {stable_mosaic.version = 11 : i64} {
  func.func @_roi_align_kernel(%arg0: i32, %arg1: memref<3xi32, #tpu.memory_space<smem>>, %arg2: memref<1x16x2048xbf16, #tpu.memory_space<vmem>>, %arg3: memref<1x8x16xbf16, #tpu.memory_space<vmem>>, %arg4: memref<1x8x16xbf16, #tpu.memory_space<vmem>>, %arg5: memref<1x8x8x128xbf16, #tpu.memory_space<vmem>>) attributes {dimension_semantics = [#tpu.dimension_semantics<arbitrary>], iteration_bounds = array<i64: 3>, scalar_prefetch = 1 : i64, scratch_operands = 0 : i64, tpu.core_type = #tpu.core_type<tc>, window_params = [{transform_indices = @transform_0, window_bounds = array<i64: 1, 16, 2048>}, {transform_indices = @transform_1, window_bounds = array<i64: 1, 8, 16>}, {transform_indices = @transform_2, window_bounds = array<i64: 1, 8, 16>}, {transform_indices = @transform_3, window_bounds = array<i64: 1, 8, 8, 128>}]} {
    %c0 = arith.constant 0 : index
    %c0_0 = arith.constant 0 : index
    %c0_1 = arith.constant 0 : index
    %0 = vector.load %arg2[%c0, %c0_0, %c0_1] : memref<1x16x2048xbf16, #tpu.memory_space<vmem>>, vector<1x16x2048xbf16>
    %1 = vector.shape_cast %0 : vector<1x16x2048xbf16> to vector<16x2048xbf16>
    %c0_2 = arith.constant 0 : index
    %c0_3 = arith.constant 0 : index
    %c0_4 = arith.constant 0 : index
    %2 = vector.load %arg3[%c0_2, %c0_3, %c0_4] : memref<1x8x16xbf16, #tpu.memory_space<vmem>>, vector<1x8x16xbf16>
    %3 = vector.shape_cast %2 : vector<1x8x16xbf16> to vector<8x16xbf16>
    %c0_5 = arith.constant 0 : index
    %c0_6 = arith.constant 0 : index
    %c0_7 = arith.constant 0 : index
    %4 = vector.load %arg4[%c0_5, %c0_6, %c0_7] : memref<1x8x16xbf16, #tpu.memory_space<vmem>>, vector<1x8x16xbf16>
    %5 = vector.shape_cast %4 : vector<1x8x16xbf16> to vector<8x16xbf16>
    %6 = arith.extf %5 : vector<8x16xbf16> to vector<8x16xf32>
    %cst = arith.constant dense<0.000000e+00> : vector<8x2048xf32>
    %7 = tpu.matmul %3, %1, %cst {dimension_numbers = #tpu.dot_dimension_numbers<[1], [0], [0], [1], [0, 0, 1, 1], [], []>} : vector<8x16xbf16>, vector<16x2048xbf16>, vector<8x2048xf32> -> vector<8x2048xf32>
    %cst_8 = arith.constant 0.000000e+00 : f32
    %8 = vector.broadcast %cst_8 : f32 to vector<8x8x128xf32>
    %9 = vector.extract_strided_slice %6 {offsets = [0, 0], sizes = [8, 1], strides = [1, 1]} : vector<8x16xf32> to vector<8x1xf32>
    %10 = vector.shape_cast %9 : vector<8x1xf32> to vector<8xf32>
    %11 = vector.shape_cast %10 : vector<8xf32> to vector<1x8x1xf32>
    %12 = vector.extract_strided_slice %7 {offsets = [0, 0], sizes = [8, 128], strides = [1, 1]} : vector<8x2048xf32> to vector<8x128xf32>
    %13 = vector.shape_cast %12 : vector<8x128xf32> to vector<8x1x128xf32>
    %14 = vector.broadcast %11 : vector<1x8x1xf32> to vector<8x8x128xf32>
    %15 = vector.broadcast %13 : vector<8x1x128xf32> to vector<8x8x128xf32>
    %16 = arith.mulf %14, %15 : vector<8x8x128xf32>
    %17 = arith.addf %8, %16 : vector<8x8x128xf32>
    %18 = vector.extract_strided_slice %6 {offsets = [0, 1], sizes = [8, 1], strides = [1, 1]} : vector<8x16xf32> to vector<8x1xf32>
    %19 = vector.shape_cast %18 : vector<8x1xf32> to vector<8xf32>
    %20 = vector.shape_cast %19 : vector<8xf32> to vector<1x8x1xf32>
    %21 = vector.extract_strided_slice %7 {offsets = [0, 128], sizes = [8, 128], strides = [1, 1]} : vector<8x2048xf32> to vector<8x128xf32>
    %22 = vector.shape_cast %21 : vector<8x128xf32> to vector<8x1x128xf32>
    %23 = vector.broadcast %20 : vector<1x8x1xf32> to vector<8x8x128xf32>
    %24 = vector.broadcast %22 : vector<8x1x128xf32> to vector<8x8x128xf32>
    %25 = arith.mulf %23, %24 : vector<8x8x128xf32>
    %26 = arith.addf %17, %25 : vector<8x8x128xf32>
    %27 = vector.extract_strided_slice %6 {offsets = [0, 2], sizes = [8, 1], strides = [1, 1]} : vector<8x16xf32> to vector<8x1xf32>
    %28 = vector.shape_cast %27 : vector<8x1xf32> to vector<8xf32>
    %29 = vector.shape_cast %28 : vector<8xf32> to vector<1x8x1xf32>
    %30 = vector.extract_strided_slice %7 {offsets = [0, 256], sizes = [8, 128], strides = [1, 1]} : vector<8x2048xf32> to vector<8x128xf32>
    %31 = vector.shape_cast %30 : vector<8x128xf32> to vector<8x1x128xf32>
    %32 = vector.broadcast %29 : vector<1x8x1xf32> to vector<8x8x128xf32>
    %33 = vector.broadcast %31 : vector<8x1x128xf32> to vector<8x8x128xf32>
    %34 = arith.mulf %32, %33 : vector<8x8x128xf32>
    %35 = arith.addf %26, %34 : vector<8x8x128xf32>
    %36 = vector.extract_strided_slice %6 {offsets = [0, 3], sizes = [8, 1], strides = [1, 1]} : vector<8x16xf32> to vector<8x1xf32>
    %37 = vector.shape_cast %36 : vector<8x1xf32> to vector<8xf32>
    %38 = vector.shape_cast %37 : vector<8xf32> to vector<1x8x1xf32>
    %39 = vector.extract_strided_slice %7 {offsets = [0, 384], sizes = [8, 128], strides = [1, 1]} : vector<8x2048xf32> to vector<8x128xf32>
    %40 = vector.shape_cast %39 : vector<8x128xf32> to vector<8x1x128xf32>
    %41 = vector.broadcast %38 : vector<1x8x1xf32> to vector<8x8x128xf32>
    %42 = vector.broadcast %40 : vector<8x1x128xf32> to vector<8x8x128xf32>
    %43 = arith.mulf %41, %42 : vector<8x8x128xf32>
    %44 = arith.addf %35, %43 : vector<8x8x128xf32>
    %45 = vector.extract_strided_slice %6 {offsets = [0, 4], sizes = [8, 1], strides = [1, 1]} : vector<8x16xf32> to vector<8x1xf32>
    %46 = vector.shape_cast %45 : vector<8x1xf32> to vector<8xf32>
    %47 = vector.shape_cast %46 : vector<8xf32> to vector<1x8x1xf32>
    %48 = vector.extract_strided_slice %7 {offsets = [0, 512], sizes = [8, 128], strides = [1, 1]} : vector<8x2048xf32> to vector<8x128xf32>
    %49 = vector.shape_cast %48 : vector<8x128xf32> to vector<8x1x128xf32>
    %50 = vector.broadcast %47 : vector<1x8x1xf32> to vector<8x8x128xf32>
    %51 = vector.broadcast %49 : vector<8x1x128xf32> to vector<8x8x128xf32>
    %52 = arith.mulf %50, %51 : vector<8x8x128xf32>
    %53 = arith.addf %44, %52 : vector<8x8x128xf32>
    %54 = vector.extract_strided_slice %6 {offsets = [0, 5], sizes = [8, 1], strides = [1, 1]} : vector<8x16xf32> to vector<8x1xf32>
    %55 = vector.shape_cast %54 : vector<8x1xf32> to vector<8xf32>
    %56 = vector.shape_cast %55 : vector<8xf32> to vector<1x8x1xf32>
    %57 = vector.extract_strided_slice %7 {offsets = [0, 640], sizes = [8, 128], strides = [1, 1]} : vector<8x2048xf32> to vector<8x128xf32>
    %58 = vector.shape_cast %57 : vector<8x128xf32> to vector<8x1x128xf32>
    %59 = vector.broadcast %56 : vector<1x8x1xf32> to vector<8x8x128xf32>
    %60 = vector.broadcast %58 : vector<8x1x128xf32> to vector<8x8x128xf32>
    %61 = arith.mulf %59, %60 : vector<8x8x128xf32>
    %62 = arith.addf %53, %61 : vector<8x8x128xf32>
    %63 = vector.extract_strided_slice %6 {offsets = [0, 6], sizes = [8, 1], strides = [1, 1]} : vector<8x16xf32> to vector<8x1xf32>
    %64 = vector.shape_cast %63 : vector<8x1xf32> to vector<8xf32>
    %65 = vector.shape_cast %64 : vector<8xf32> to vector<1x8x1xf32>
    %66 = vector.extract_strided_slice %7 {offsets = [0, 768], sizes = [8, 128], strides = [1, 1]} : vector<8x2048xf32> to vector<8x128xf32>
    %67 = vector.shape_cast %66 : vector<8x128xf32> to vector<8x1x128xf32>
    %68 = vector.broadcast %65 : vector<1x8x1xf32> to vector<8x8x128xf32>
    %69 = vector.broadcast %67 : vector<8x1x128xf32> to vector<8x8x128xf32>
    %70 = arith.mulf %68, %69 : vector<8x8x128xf32>
    %71 = arith.addf %62, %70 : vector<8x8x128xf32>
    %72 = vector.extract_strided_slice %6 {offsets = [0, 7], sizes = [8, 1], strides = [1, 1]} : vector<8x16xf32> to vector<8x1xf32>
    %73 = vector.shape_cast %72 : vector<8x1xf32> to vector<8xf32>
    %74 = vector.shape_cast %73 : vector<8xf32> to vector<1x8x1xf32>
    %75 = vector.extract_strided_slice %7 {offsets = [0, 896], sizes = [8, 128], strides = [1, 1]} : vector<8x2048xf32> to vector<8x128xf32>
    %76 = vector.shape_cast %75 : vector<8x128xf32> to vector<8x1x128xf32>
    %77 = vector.broadcast %74 : vector<1x8x1xf32> to vector<8x8x128xf32>
    %78 = vector.broadcast %76 : vector<8x1x128xf32> to vector<8x8x128xf32>
    %79 = arith.mulf %77, %78 : vector<8x8x128xf32>
    %80 = arith.addf %71, %79 : vector<8x8x128xf32>
    %81 = vector.extract_strided_slice %6 {offsets = [0, 8], sizes = [8, 1], strides = [1, 1]} : vector<8x16xf32> to vector<8x1xf32>
    %82 = vector.shape_cast %81 : vector<8x1xf32> to vector<8xf32>
    %83 = vector.shape_cast %82 : vector<8xf32> to vector<1x8x1xf32>
    %84 = vector.extract_strided_slice %7 {offsets = [0, 1024], sizes = [8, 128], strides = [1, 1]} : vector<8x2048xf32> to vector<8x128xf32>
    %85 = vector.shape_cast %84 : vector<8x128xf32> to vector<8x1x128xf32>
    %86 = vector.broadcast %83 : vector<1x8x1xf32> to vector<8x8x128xf32>
    %87 = vector.broadcast %85 : vector<8x1x128xf32> to vector<8x8x128xf32>
    %88 = arith.mulf %86, %87 : vector<8x8x128xf32>
    %89 = arith.addf %80, %88 : vector<8x8x128xf32>
    %90 = vector.extract_strided_slice %6 {offsets = [0, 9], sizes = [8, 1], strides = [1, 1]} : vector<8x16xf32> to vector<8x1xf32>
    %91 = vector.shape_cast %90 : vector<8x1xf32> to vector<8xf32>
    %92 = vector.shape_cast %91 : vector<8xf32> to vector<1x8x1xf32>
    %93 = vector.extract_strided_slice %7 {offsets = [0, 1152], sizes = [8, 128], strides = [1, 1]} : vector<8x2048xf32> to vector<8x128xf32>
    %94 = vector.shape_cast %93 : vector<8x128xf32> to vector<8x1x128xf32>
    %95 = vector.broadcast %92 : vector<1x8x1xf32> to vector<8x8x128xf32>
    %96 = vector.broadcast %94 : vector<8x1x128xf32> to vector<8x8x128xf32>
    %97 = arith.mulf %95, %96 : vector<8x8x128xf32>
    %98 = arith.addf %89, %97 : vector<8x8x128xf32>
    %99 = vector.extract_strided_slice %6 {offsets = [0, 10], sizes = [8, 1], strides = [1, 1]} : vector<8x16xf32> to vector<8x1xf32>
    %100 = vector.shape_cast %99 : vector<8x1xf32> to vector<8xf32>
    %101 = vector.shape_cast %100 : vector<8xf32> to vector<1x8x1xf32>
    %102 = vector.extract_strided_slice %7 {offsets = [0, 1280], sizes = [8, 128], strides = [1, 1]} : vector<8x2048xf32> to vector<8x128xf32>
    %103 = vector.shape_cast %102 : vector<8x128xf32> to vector<8x1x128xf32>
    %104 = vector.broadcast %101 : vector<1x8x1xf32> to vector<8x8x128xf32>
    %105 = vector.broadcast %103 : vector<8x1x128xf32> to vector<8x8x128xf32>
    %106 = arith.mulf %104, %105 : vector<8x8x128xf32>
    %107 = arith.addf %98, %106 : vector<8x8x128xf32>
    %108 = vector.extract_strided_slice %6 {offsets = [0, 11], sizes = [8, 1], strides = [1, 1]} : vector<8x16xf32> to vector<8x1xf32>
    %109 = vector.shape_cast %108 : vector<8x1xf32> to vector<8xf32>
    %110 = vector.shape_cast %109 : vector<8xf32> to vector<1x8x1xf32>
    %111 = vector.extract_strided_slice %7 {offsets = [0, 1408], sizes = [8, 128], strides = [1, 1]} : vector<8x2048xf32> to vector<8x128xf32>
    %112 = vector.shape_cast %111 : vector<8x128xf32> to vector<8x1x128xf32>
    %113 = vector.broadcast %110 : vector<1x8x1xf32> to vector<8x8x128xf32>
    %114 = vector.broadcast %112 : vector<8x1x128xf32> to vector<8x8x128xf32>
    %115 = arith.mulf %113, %114 : vector<8x8x128xf32>
    %116 = arith.addf %107, %115 : vector<8x8x128xf32>
    %117 = vector.extract_strided_slice %6 {offsets = [0, 12], sizes = [8, 1], strides = [1, 1]} : vector<8x16xf32> to vector<8x1xf32>
    %118 = vector.shape_cast %117 : vector<8x1xf32> to vector<8xf32>
    %119 = vector.shape_cast %118 : vector<8xf32> to vector<1x8x1xf32>
    %120 = vector.extract_strided_slice %7 {offsets = [0, 1536], sizes = [8, 128], strides = [1, 1]} : vector<8x2048xf32> to vector<8x128xf32>
    %121 = vector.shape_cast %120 : vector<8x128xf32> to vector<8x1x128xf32>
    %122 = vector.broadcast %119 : vector<1x8x1xf32> to vector<8x8x128xf32>
    %123 = vector.broadcast %121 : vector<8x1x128xf32> to vector<8x8x128xf32>
    %124 = arith.mulf %122, %123 : vector<8x8x128xf32>
    %125 = arith.addf %116, %124 : vector<8x8x128xf32>
    %126 = vector.extract_strided_slice %6 {offsets = [0, 13], sizes = [8, 1], strides = [1, 1]} : vector<8x16xf32> to vector<8x1xf32>
    %127 = vector.shape_cast %126 : vector<8x1xf32> to vector<8xf32>
    %128 = vector.shape_cast %127 : vector<8xf32> to vector<1x8x1xf32>
    %129 = vector.extract_strided_slice %7 {offsets = [0, 1664], sizes = [8, 128], strides = [1, 1]} : vector<8x2048xf32> to vector<8x128xf32>
    %130 = vector.shape_cast %129 : vector<8x128xf32> to vector<8x1x128xf32>
    %131 = vector.broadcast %128 : vector<1x8x1xf32> to vector<8x8x128xf32>
    %132 = vector.broadcast %130 : vector<8x1x128xf32> to vector<8x8x128xf32>
    %133 = arith.mulf %131, %132 : vector<8x8x128xf32>
    %134 = arith.addf %125, %133 : vector<8x8x128xf32>
    %135 = vector.extract_strided_slice %6 {offsets = [0, 14], sizes = [8, 1], strides = [1, 1]} : vector<8x16xf32> to vector<8x1xf32>
    %136 = vector.shape_cast %135 : vector<8x1xf32> to vector<8xf32>
    %137 = vector.shape_cast %136 : vector<8xf32> to vector<1x8x1xf32>
    %138 = vector.extract_strided_slice %7 {offsets = [0, 1792], sizes = [8, 128], strides = [1, 1]} : vector<8x2048xf32> to vector<8x128xf32>
    %139 = vector.shape_cast %138 : vector<8x128xf32> to vector<8x1x128xf32>
    %140 = vector.broadcast %137 : vector<1x8x1xf32> to vector<8x8x128xf32>
    %141 = vector.broadcast %139 : vector<8x1x128xf32> to vector<8x8x128xf32>
    %142 = arith.mulf %140, %141 : vector<8x8x128xf32>
    %143 = arith.addf %134, %142 : vector<8x8x128xf32>
    %144 = vector.extract_strided_slice %6 {offsets = [0, 15], sizes = [8, 1], strides = [1, 1]} : vector<8x16xf32> to vector<8x1xf32>
    %145 = vector.shape_cast %144 : vector<8x1xf32> to vector<8xf32>
    %146 = vector.shape_cast %145 : vector<8xf32> to vector<1x8x1xf32>
    %147 = vector.extract_strided_slice %7 {offsets = [0, 1920], sizes = [8, 128], strides = [1, 1]} : vector<8x2048xf32> to vector<8x128xf32>
    %148 = vector.shape_cast %147 : vector<8x128xf32> to vector<8x1x128xf32>
    %149 = vector.broadcast %146 : vector<1x8x1xf32> to vector<8x8x128xf32>
    %150 = vector.broadcast %148 : vector<8x1x128xf32> to vector<8x8x128xf32>
    %151 = arith.mulf %149, %150 : vector<8x8x128xf32>
    %152 = arith.addf %143, %151 : vector<8x8x128xf32>
    %153 = arith.truncf %152 : vector<8x8x128xf32> to vector<8x8x128xbf16>
    %c0_9 = arith.constant 0 : index
    %c0_10 = arith.constant 0 : index
    %c0_11 = arith.constant 0 : index
    %c0_12 = arith.constant 0 : index
    %154 = vector.load %arg5[%c0_9, %c0_10, %c0_11, %c0_12] : memref<1x8x8x128xbf16, #tpu.memory_space<vmem>>, vector<1x8x8x128xbf16>
    %155 = vector.shape_cast %154 : vector<1x8x8x128xbf16> to vector<8x8x128xbf16>
    %156 = vector.shape_cast %153 : vector<8x8x128xbf16> to vector<1x8x8x128xbf16>
    tpu.vector_store %arg5[%c0_9, %c0_10, %c0_11, %c0_12], %156 {strides = array<i32>} : memref<1x8x8x128xbf16, #tpu.memory_space<vmem>>, vector<1x8x8x128xbf16>,
    return
  }
  func.func @transform_0(%arg0: i32, %arg1: memref<3xi32, #tpu.memory_space<smem>>) -> (i32, i32, i32) {
    %0 = arith.index_cast %arg0 : i32 to index
    %1 = memref.load %arg1[%0] : memref<3xi32, #tpu.memory_space<smem>>
    %c0_i32 = arith.constant 0 : i32
    %c0_i32_0 = arith.constant 0 : i32
    %c0_i32_1 = arith.constant 0 : i32
    return %1, %c0_i32, %c0_i32_0 : i32, i32, i32
  }
  func.func @transform_1(%arg0: i32, %arg1: memref<3xi32, #tpu.memory_space<smem>>) -> (i32, i32, i32) {
    %c0_i32 = arith.constant 0 : i32
    %c0_i32_0 = arith.constant 0 : i32
    %c0_i32_1 = arith.constant 0 : i32
    return %arg0, %c0_i32, %c0_i32_0 : i32, i32, i32
  }
  func.func @transform_2(%arg0: i32, %arg1: memref<3xi32, #tpu.memory_space<smem>>) -> (i32, i32, i32) {
    %c0_i32 = arith.constant 0 : i32
    %c0_i32_0 = arith.constant 0 : i32
    %c0_i32_1 = arith.constant 0 : i32
    return %arg0, %c0_i32, %c0_i32_0 : i32, i32, i32
  }
  func.func @transform_3(%arg0: i32, %arg1: memref<3xi32, #tpu.memory_space<smem>>) -> (i32, i32, i32, i32) {
    %c0_i32 = arith.constant 0 : i32
    %c0_i32_0 = arith.constant 0 : i32
    %c0_i32_1 = arith.constant 0 : i32
    %c0_i32_2 = arith.constant 0 : i32
    return %arg0, %c0_i32, %c0_i32_0, %c0_i32_1 : i32, i32, i32, i32
  }
}

module attributes {stable_mosaic.version = 11 : i64} {
  func.func @_mm_bias_kernel(%arg0: i32, %arg1: memref<24x256xbf16, #tpu.memory_space<vmem>>, %arg2: memref<256x128xbf16, #tpu.memory_space<vmem>>, %arg3: memref<1x128xf32, #tpu.memory_space<vmem>>, %arg4: memref<24x128xbf16, #tpu.memory_space<vmem>>) attributes {dimension_semantics = [#tpu.dimension_semantics<parallel>], iteration_bounds = array<i64: 2>, scalar_prefetch = 0 : i64, scratch_operands = 0 : i64, tpu.core_type = #tpu.core_type<tc>, window_params = [{transform_indices = @transform_0, window_bounds = array<i64: 24, 256>}, {pipeline_mode = #tpu.pipeline_mode<synchronous>, transform_indices = @transform_1, window_bounds = array<i64: 256, 128>}, {pipeline_mode = #tpu.pipeline_mode<synchronous>, transform_indices = @transform_2, window_bounds = array<i64: 1, 128>}, {transform_indices = @transform_3, window_bounds = array<i64: 24, 128>}]} {
    %c0 = arith.constant 0 : index
    %c0_0 = arith.constant 0 : index
    %0 = vector.load %arg1[%c0, %c0_0] : memref<24x256xbf16, #tpu.memory_space<vmem>>, vector<24x256xbf16>
    %c0_1 = arith.constant 0 : index
    %c0_2 = arith.constant 0 : index
    %1 = vector.load %arg2[%c0_1, %c0_2] : memref<256x128xbf16, #tpu.memory_space<vmem>>, vector<256x128xbf16>
    %cst = arith.constant dense<0.000000e+00> : vector<24x128xf32>
    %2 = tpu.matmul %0, %1, %cst {dimension_numbers = #tpu.dot_dimension_numbers<[1], [0], [0], [1], [0, 0, 1, 1], [], []>} : vector<24x256xbf16>, vector<256x128xbf16>, vector<24x128xf32> -> vector<24x128xf32>
    %c0_3 = arith.constant 0 : index
    %c0_4 = arith.constant 0 : index
    %3 = vector.load %arg3[%c0_3, %c0_4] : memref<1x128xf32, #tpu.memory_space<vmem>>, vector<1x128xf32>
    %4 = vector.broadcast %3 : vector<1x128xf32> to vector<24x128xf32>
    %5 = arith.addf %2, %4 : vector<24x128xf32>
    %cst_5 = arith.constant 0.000000e+00 : f32
    %6 = vector.broadcast %cst_5 : f32 to vector<24x128xf32>
    %7 = arith.maximumf %5, %6 : vector<24x128xf32>
    %8 = arith.truncf %7 : vector<24x128xf32> to vector<24x128xbf16>
    %c0_6 = arith.constant 0 : index
    %c0_7 = arith.constant 0 : index
    %9 = vector.load %arg4[%c0_6, %c0_7] : memref<24x128xbf16, #tpu.memory_space<vmem>>, vector<24x128xbf16>
    tpu.vector_store %arg4[%c0_6, %c0_7], %8 {strides = array<i32>} : memref<24x128xbf16, #tpu.memory_space<vmem>>, vector<24x128xbf16>,
    return
  }
  func.func @transform_0(%arg0: i32) -> (i32, i32) {
    %c0_i32 = arith.constant 0 : i32
    %c0_i32_0 = arith.constant 0 : i32
    return %arg0, %c0_i32 : i32, i32
  }
  func.func @transform_1(%arg0: i32) -> (i32, i32) {
    %c0_i32 = arith.constant 0 : i32
    %c0_i32_0 = arith.constant 0 : i32
    %c0_i32_1 = arith.constant 0 : i32
    return %c0_i32, %c0_i32_0 : i32, i32
  }
  func.func @transform_2(%arg0: i32) -> (i32, i32) {
    %c0_i32 = arith.constant 0 : i32
    %c0_i32_0 = arith.constant 0 : i32
    %c0_i32_1 = arith.constant 0 : i32
    return %c0_i32, %c0_i32_0 : i32, i32
  }
  func.func @transform_3(%arg0: i32) -> (i32, i32) {
    %c0_i32 = arith.constant 0 : i32
    %c0_i32_0 = arith.constant 0 : i32
    return %arg0, %c0_i32 : i32, i32
  }
}

module attributes {stable_mosaic.version = 11 : i64} {
  func.func @_conv3x3_kernel(%arg0: i32, %arg1: memref<3x4x4x128xbf16, #tpu.memory_space<vmem>>, %arg2: memref<3x384x128xbf16, #tpu.memory_space<vmem>>, %arg3: memref<1x128xf32, #tpu.memory_space<vmem>>, %arg4: memref<3x4x4x128xbf16, #tpu.memory_space<vmem>>, %arg5: memref<126x128xbf16, #tpu.memory_space<vmem>>, %arg6: memref<106x128xf32, #tpu.memory_space<vmem>>) attributes {dimension_semantics = [#tpu.dimension_semantics<parallel>], iteration_bounds = array<i64: 1>, scalar_prefetch = 0 : i64, scratch_operands = 2 : i64, tpu.core_type = #tpu.core_type<tc>, window_params = [{transform_indices = @transform_0, window_bounds = array<i64: 3, 4, 4, 128>}, {pipeline_mode = #tpu.pipeline_mode<synchronous>, transform_indices = @transform_1, window_bounds = array<i64: 3, 384, 128>}, {pipeline_mode = #tpu.pipeline_mode<synchronous>, transform_indices = @transform_2, window_bounds = array<i64: 1, 128>}, {transform_indices = @transform_3, window_bounds = array<i64: 3, 4, 4, 128>}]} {
    %cst = arith.constant 0.000000e+00 : bf16
    %0 = vector.broadcast %cst : bf16 to vector<126x128xbf16>
    %c0 = arith.constant 0 : index
    %c0_0 = arith.constant 0 : index
    %1 = vector.load %arg5[%c0, %c0_0] : memref<126x128xbf16, #tpu.memory_space<vmem>>, vector<126x128xbf16>
    tpu.vector_store %arg5[%c0, %c0_0], %0 {strides = array<i32>} : memref<126x128xbf16, #tpu.memory_space<vmem>>, vector<126x128xbf16>,
    %c0_1 = arith.constant 0 : index
    %c0_2 = arith.constant 0 : index
    %c0_3 = arith.constant 0 : index
    %c0_4 = arith.constant 0 : index
    %2 = vector.load %arg1[%c0_1, %c0_2, %c0_3, %c0_4] : memref<3x4x4x128xbf16, #tpu.memory_space<vmem>>, vector<1x1x4x128xbf16>
    %3 = vector.shape_cast %2 : vector<1x1x4x128xbf16> to vector<4x128xbf16>
    %c7 = arith.constant 7 : index
    %c0_5 = arith.constant 0 : index
    %4 = vector.load %arg5[%c7, %c0_5] : memref<126x128xbf16, #tpu.memory_space<vmem>>, vector<4x128xbf16>
    tpu.vector_store %arg5[%c7, %c0_5], %3 {strides = array<i32>} : memref<126x128xbf16, #tpu.memory_space<vmem>>, vector<4x128xbf16>,
    %c0_6 = arith.constant 0 : index
    %c1 = arith.constant 1 : index
    %c0_7 = arith.constant 0 : index
    %c0_8 = arith.constant 0 : index
    %5 = vector.load %arg1[%c0_6, %c1, %c0_7, %c0_8] : memref<3x4x4x128xbf16, #tpu.memory_space<vmem>>, vector<1x1x4x128xbf16>
    %6 = vector.shape_cast %5 : vector<1x1x4x128xbf16> to vector<4x128xbf16>
    %c13 = arith.constant 13 : index
    %c0_9 = arith.constant 0 : index
    %7 = vector.load %arg5[%c13, %c0_9] : memref<126x128xbf16, #tpu.memory_space<vmem>>, vector<4x128xbf16>
    tpu.vector_store %arg5[%c13, %c0_9], %6 {strides = array<i32>} : memref<126x128xbf16, #tpu.memory_space<vmem>>, vector<4x128xbf16>,
    %c0_10 = arith.constant 0 : index
    %c2 = arith.constant 2 : index
    %c0_11 = arith.constant 0 : index
    %c0_12 = arith.constant 0 : index
    %8 = vector.load %arg1[%c0_10, %c2, %c0_11, %c0_12] : memref<3x4x4x128xbf16, #tpu.memory_space<vmem>>, vector<1x1x4x128xbf16>
    %9 = vector.shape_cast %8 : vector<1x1x4x128xbf16> to vector<4x128xbf16>
    %c19 = arith.constant 19 : index
    %c0_13 = arith.constant 0 : index
    %10 = vector.load %arg5[%c19, %c0_13] : memref<126x128xbf16, #tpu.memory_space<vmem>>, vector<4x128xbf16>
    tpu.vector_store %arg5[%c19, %c0_13], %9 {strides = array<i32>} : memref<126x128xbf16, #tpu.memory_space<vmem>>, vector<4x128xbf16>,
    %c0_14 = arith.constant 0 : index
    %c3 = arith.constant 3 : index
    %c0_15 = arith.constant 0 : index
    %c0_16 = arith.constant 0 : index
    %11 = vector.load %arg1[%c0_14, %c3, %c0_15, %c0_16] : memref<3x4x4x128xbf16, #tpu.memory_space<vmem>>, vector<1x1x4x128xbf16>
    %12 = vector.shape_cast %11 : vector<1x1x4x128xbf16> to vector<4x128xbf16>
    %c25 = arith.constant 25 : index
    %c0_17 = arith.constant 0 : index
    %13 = vector.load %arg5[%c25, %c0_17] : memref<126x128xbf16, #tpu.memory_space<vmem>>, vector<4x128xbf16>
    tpu.vector_store %arg5[%c25, %c0_17], %12 {strides = array<i32>} : memref<126x128xbf16, #tpu.memory_space<vmem>>, vector<4x128xbf16>,
    %c1_18 = arith.constant 1 : index
    %c0_19 = arith.constant 0 : index
    %c0_20 = arith.constant 0 : index
    %c0_21 = arith.constant 0 : index
    %14 = vector.load %arg1[%c1_18, %c0_19, %c0_20, %c0_21] : memref<3x4x4x128xbf16, #tpu.memory_space<vmem>>, vector<1x1x4x128xbf16>
    %15 = vector.shape_cast %14 : vector<1x1x4x128xbf16> to vector<4x128xbf16>
    %c49 = arith.constant 49 : index
    %c0_22 = arith.constant 0 : index
    %16 = vector.load %arg5[%c49, %c0_22] : memref<126x128xbf16, #tpu.memory_space<vmem>>, vector<4x128xbf16>
    tpu.vector_store %arg5[%c49, %c0_22], %15 {strides = array<i32>} : memref<126x128xbf16, #tpu.memory_space<vmem>>, vector<4x128xbf16>,
    %c1_23 = arith.constant 1 : index
    %c1_24 = arith.constant 1 : index
    %c0_25 = arith.constant 0 : index
    %c0_26 = arith.constant 0 : index
    %17 = vector.load %arg1[%c1_23, %c1_24, %c0_25, %c0_26] : memref<3x4x4x128xbf16, #tpu.memory_space<vmem>>, vector<1x1x4x128xbf16>
    %18 = vector.shape_cast %17 : vector<1x1x4x128xbf16> to vector<4x128xbf16>
    %c55 = arith.constant 55 : index
    %c0_27 = arith.constant 0 : index
    %19 = vector.load %arg5[%c55, %c0_27] : memref<126x128xbf16, #tpu.memory_space<vmem>>, vector<4x128xbf16>
    tpu.vector_store %arg5[%c55, %c0_27], %18 {strides = array<i32>} : memref<126x128xbf16, #tpu.memory_space<vmem>>, vector<4x128xbf16>,
    %c1_28 = arith.constant 1 : index
    %c2_29 = arith.constant 2 : index
    %c0_30 = arith.constant 0 : index
    %c0_31 = arith.constant 0 : index
    %20 = vector.load %arg1[%c1_28, %c2_29, %c0_30, %c0_31] : memref<3x4x4x128xbf16, #tpu.memory_space<vmem>>, vector<1x1x4x128xbf16>
    %21 = vector.shape_cast %20 : vector<1x1x4x128xbf16> to vector<4x128xbf16>
    %c61 = arith.constant 61 : index
    %c0_32 = arith.constant 0 : index
    %22 = vector.load %arg5[%c61, %c0_32] : memref<126x128xbf16, #tpu.memory_space<vmem>>, vector<4x128xbf16>
    tpu.vector_store %arg5[%c61, %c0_32], %21 {strides = array<i32>} : memref<126x128xbf16, #tpu.memory_space<vmem>>, vector<4x128xbf16>,
    %c1_33 = arith.constant 1 : index
    %c3_34 = arith.constant 3 : index
    %c0_35 = arith.constant 0 : index
    %c0_36 = arith.constant 0 : index
    %23 = vector.load %arg1[%c1_33, %c3_34, %c0_35, %c0_36] : memref<3x4x4x128xbf16, #tpu.memory_space<vmem>>, vector<1x1x4x128xbf16>
    %24 = vector.shape_cast %23 : vector<1x1x4x128xbf16> to vector<4x128xbf16>
    %c67 = arith.constant 67 : index
    %c0_37 = arith.constant 0 : index
    %25 = vector.load %arg5[%c67, %c0_37] : memref<126x128xbf16, #tpu.memory_space<vmem>>, vector<4x128xbf16>
    tpu.vector_store %arg5[%c67, %c0_37], %24 {strides = array<i32>} : memref<126x128xbf16, #tpu.memory_space<vmem>>, vector<4x128xbf16>,
    %c2_38 = arith.constant 2 : index
    %c0_39 = arith.constant 0 : index
    %c0_40 = arith.constant 0 : index
    %c0_41 = arith.constant 0 : index
    %26 = vector.load %arg1[%c2_38, %c0_39, %c0_40, %c0_41] : memref<3x4x4x128xbf16, #tpu.memory_space<vmem>>, vector<1x1x4x128xbf16>
    %27 = vector.shape_cast %26 : vector<1x1x4x128xbf16> to vector<4x128xbf16>
    %c91 = arith.constant 91 : index
    %c0_42 = arith.constant 0 : index
    %28 = vector.load %arg5[%c91, %c0_42] : memref<126x128xbf16, #tpu.memory_space<vmem>>, vector<4x128xbf16>
    tpu.vector_store %arg5[%c91, %c0_42], %27 {strides = array<i32>} : memref<126x128xbf16, #tpu.memory_space<vmem>>, vector<4x128xbf16>,
    %c2_43 = arith.constant 2 : index
    %c1_44 = arith.constant 1 : index
    %c0_45 = arith.constant 0 : index
    %c0_46 = arith.constant 0 : index
    %29 = vector.load %arg1[%c2_43, %c1_44, %c0_45, %c0_46] : memref<3x4x4x128xbf16, #tpu.memory_space<vmem>>, vector<1x1x4x128xbf16>
    %30 = vector.shape_cast %29 : vector<1x1x4x128xbf16> to vector<4x128xbf16>
    %c97 = arith.constant 97 : index
    %c0_47 = arith.constant 0 : index
    %31 = vector.load %arg5[%c97, %c0_47] : memref<126x128xbf16, #tpu.memory_space<vmem>>, vector<4x128xbf16>
    tpu.vector_store %arg5[%c97, %c0_47], %30 {strides = array<i32>} : memref<126x128xbf16, #tpu.memory_space<vmem>>, vector<4x128xbf16>,
    %c2_48 = arith.constant 2 : index
    %c2_49 = arith.constant 2 : index
    %c0_50 = arith.constant 0 : index
    %c0_51 = arith.constant 0 : index
    %32 = vector.load %arg1[%c2_48, %c2_49, %c0_50, %c0_51] : memref<3x4x4x128xbf16, #tpu.memory_space<vmem>>, vector<1x1x4x128xbf16>
    %33 = vector.shape_cast %32 : vector<1x1x4x128xbf16> to vector<4x128xbf16>
    %c103 = arith.constant 103 : index
    %c0_52 = arith.constant 0 : index
    %34 = vector.load %arg5[%c103, %c0_52] : memref<126x128xbf16, #tpu.memory_space<vmem>>, vector<4x128xbf16>
    tpu.vector_store %arg5[%c103, %c0_52], %33 {strides = array<i32>} : memref<126x128xbf16, #tpu.memory_space<vmem>>, vector<4x128xbf16>,
    %c2_53 = arith.constant 2 : index
    %c3_54 = arith.constant 3 : index
    %c0_55 = arith.constant 0 : index
    %c0_56 = arith.constant 0 : index
    %35 = vector.load %arg1[%c2_53, %c3_54, %c0_55, %c0_56] : memref<3x4x4x128xbf16, #tpu.memory_space<vmem>>, vector<1x1x4x128xbf16>
    %36 = vector.shape_cast %35 : vector<1x1x4x128xbf16> to vector<4x128xbf16>
    %c109 = arith.constant 109 : index
    %c0_57 = arith.constant 0 : index
    %37 = vector.load %arg5[%c109, %c0_57] : memref<126x128xbf16, #tpu.memory_space<vmem>>, vector<4x128xbf16>
    tpu.vector_store %arg5[%c109, %c0_57], %36 {strides = array<i32>} : memref<126x128xbf16, #tpu.memory_space<vmem>>, vector<4x128xbf16>,
    %c0_58 = arith.constant 0 : index
    %c0_59 = arith.constant 0 : index
    %38 = vector.load %arg5[%c0_58, %c0_59] : memref<126x128xbf16, #tpu.memory_space<vmem>>, vector<106x128xbf16>
    %c1_60 = arith.constant 1 : index
    %c0_61 = arith.constant 0 : index
    %39 = vector.load %arg5[%c1_60, %c0_61] : memref<126x128xbf16, #tpu.memory_space<vmem>>, vector<106x128xbf16>
    %c2_62 = arith.constant 2 : index
    %c0_63 = arith.constant 0 : index
    %40 = vector.load %arg5[%c2_62, %c0_63] : memref<126x128xbf16, #tpu.memory_space<vmem>>, vector<106x128xbf16>
    %41 = tpu.concatenate %38, %39, %40 in 1 : vector<106x128xbf16>, vector<106x128xbf16>, vector<106x128xbf16> -> vector<106x384xbf16>
    %c0_64 = arith.constant 0 : index
    %c0_65 = arith.constant 0 : index
    %c0_66 = arith.constant 0 : index
    %42 = vector.load %arg2[%c0_64, %c0_65, %c0_66] : memref<3x384x128xbf16, #tpu.memory_space<vmem>>, vector<1x384x128xbf16>
    %43 = vector.shape_cast %42 : vector<1x384x128xbf16> to vector<384x128xbf16>
    %cst_67 = arith.constant dense<0.000000e+00> : vector<106x128xf32>
    %44 = tpu.matmul %41, %43, %cst_67 {dimension_numbers = #tpu.dot_dimension_numbers<[1], [0], [0], [1], [0, 0, 1, 1], [], []>} : vector<106x384xbf16>, vector<384x128xbf16>, vector<106x128xf32> -> vector<106x128xf32>
    %c0_68 = arith.constant 0 : index
    %c0_69 = arith.constant 0 : index
    %45 = vector.load %arg6[%c0_68, %c0_69] : memref<106x128xf32, #tpu.memory_space<vmem>>, vector<106x128xf32>
    tpu.vector_store %arg6[%c0_68, %c0_69], %44 {strides = array<i32>} : memref<106x128xf32, #tpu.memory_space<vmem>>, vector<106x128xf32>,
    %c6 = arith.constant 6 : index
    %c0_70 = arith.constant 0 : index
    %46 = vector.load %arg5[%c6, %c0_70] : memref<126x128xbf16, #tpu.memory_space<vmem>>, vector<106x128xbf16>
    %c7_71 = arith.constant 7 : index
    %c0_72 = arith.constant 0 : index
    %47 = vector.load %arg5[%c7_71, %c0_72] : memref<126x128xbf16, #tpu.memory_space<vmem>>, vector<106x128xbf16>
    %c8 = arith.constant 8 : index
    %c0_73 = arith.constant 0 : index
    %48 = vector.load %arg5[%c8, %c0_73] : memref<126x128xbf16, #tpu.memory_space<vmem>>, vector<106x128xbf16>
    %49 = tpu.concatenate %46, %47, %48 in 1 : vector<106x128xbf16>, vector<106x128xbf16>, vector<106x128xbf16> -> vector<106x384xbf16>
    %c1_74 = arith.constant 1 : index
    %c0_75 = arith.constant 0 : index
    %c0_76 = arith.constant 0 : index
    %50 = vector.load %arg2[%c1_74, %c0_75, %c0_76] : memref<3x384x128xbf16, #tpu.memory_space<vmem>>, vector<1x384x128xbf16>
    %51 = vector.shape_cast %50 : vector<1x384x128xbf16> to vector<384x128xbf16>
    %cst_77 = arith.constant dense<0.000000e+00> : vector<106x128xf32>
    %52 = tpu.matmul %49, %51, %cst_77 {dimension_numbers = #tpu.dot_dimension_numbers<[1], [0], [0], [1], [0, 0, 1, 1], [], []>} : vector<106x384xbf16>, vector<384x128xbf16>, vector<106x128xf32> -> vector<106x128xf32>
    %c0_78 = arith.constant 0 : index
    %c0_79 = arith.constant 0 : index
    %53 = vector.load %arg6[%c0_78, %c0_79] : memref<106x128xf32, #tpu.memory_space<vmem>>, vector<106x128xf32>
    %54 = arith.addf %53, %52 : vector<106x128xf32>
    %c0_80 = arith.constant 0 : index
    %c0_81 = arith.constant 0 : index
    %55 = vector.load %arg6[%c0_80, %c0_81] : memref<106x128xf32, #tpu.memory_space<vmem>>, vector<106x128xf32>
    tpu.vector_store %arg6[%c0_80, %c0_81], %54 {strides = array<i32>} : memref<106x128xf32, #tpu.memory_space<vmem>>, vector<106x128xf32>,
    %c12 = arith.constant 12 : index
    %c0_82 = arith.constant 0 : index
    %56 = vector.load %arg5[%c12, %c0_82] : memref<126x128xbf16, #tpu.memory_space<vmem>>, vector<106x128xbf16>
    %c13_83 = arith.constant 13 : index
    %c0_84 = arith.constant 0 : index
    %57 = vector.load %arg5[%c13_83, %c0_84] : memref<126x128xbf16, #tpu.memory_space<vmem>>, vector<106x128xbf16>
    %c14 = arith.constant 14 : index
    %c0_85 = arith.constant 0 : index
    %58 = vector.load %arg5[%c14, %c0_85] : memref<126x128xbf16, #tpu.memory_space<vmem>>, vector<106x128xbf16>
    %59 = tpu.concatenate %56, %57, %58 in 1 : vector<106x128xbf16>, vector<106x128xbf16>, vector<106x128xbf16> -> vector<106x384xbf16>
    %c2_86 = arith.constant 2 : index
    %c0_87 = arith.constant 0 : index
    %c0_88 = arith.constant 0 : index
    %60 = vector.load %arg2[%c2_86, %c0_87, %c0_88] : memref<3x384x128xbf16, #tpu.memory_space<vmem>>, vector<1x384x128xbf16>
    %61 = vector.shape_cast %60 : vector<1x384x128xbf16> to vector<384x128xbf16>
    %cst_89 = arith.constant dense<0.000000e+00> : vector<106x128xf32>
    %62 = tpu.matmul %59, %61, %cst_89 {dimension_numbers = #tpu.dot_dimension_numbers<[1], [0], [0], [1], [0, 0, 1, 1], [], []>} : vector<106x384xbf16>, vector<384x128xbf16>, vector<106x128xf32> -> vector<106x128xf32>
    %c0_90 = arith.constant 0 : index
    %c0_91 = arith.constant 0 : index
    %63 = vector.load %arg6[%c0_90, %c0_91] : memref<106x128xf32, #tpu.memory_space<vmem>>, vector<106x128xf32>
    %64 = arith.addf %63, %62 : vector<106x128xf32>
    %c0_92 = arith.constant 0 : index
    %c0_93 = arith.constant 0 : index
    %65 = vector.load %arg6[%c0_92, %c0_93] : memref<106x128xf32, #tpu.memory_space<vmem>>, vector<106x128xf32>
    tpu.vector_store %arg6[%c0_92, %c0_93], %64 {strides = array<i32>} : memref<106x128xf32, #tpu.memory_space<vmem>>, vector<106x128xf32>,
    %c0_94 = arith.constant 0 : index
    %c0_95 = arith.constant 0 : index
    %66 = vector.load %arg3[%c0_94, %c0_95] : memref<1x128xf32, #tpu.memory_space<vmem>>, vector<1x128xf32>
    %c0_96 = arith.constant 0 : index
    %c0_97 = arith.constant 0 : index
    %67 = vector.load %arg6[%c0_96, %c0_97] : memref<106x128xf32, #tpu.memory_space<vmem>>, vector<4x128xf32>
    %68 = vector.broadcast %66 : vector<1x128xf32> to vector<4x128xf32>
    %69 = arith.addf %67, %68 : vector<4x128xf32>
    %cst_98 = arith.constant 0.000000e+00 : f32
    %70 = vector.broadcast %cst_98 : f32 to vector<4x128xf32>
    %71 = arith.maximumf %69, %70 : vector<4x128xf32>
    %72 = arith.truncf %71 : vector<4x128xf32> to vector<4x128xbf16>
    %c0_99 = arith.constant 0 : index
    %c0_100 = arith.constant 0 : index
    %c0_101 = arith.constant 0 : index
    %c0_102 = arith.constant 0 : index
    %73 = vector.load %arg4[%c0_99, %c0_100, %c0_101, %c0_102] : memref<3x4x4x128xbf16, #tpu.memory_space<vmem>>, vector<1x1x4x128xbf16>
    %74 = vector.shape_cast %73 : vector<1x1x4x128xbf16> to vector<4x128xbf16>
    %75 = vector.shape_cast %72 : vector<4x128xbf16> to vector<1x1x4x128xbf16>
    tpu.vector_store %arg4[%c0_99, %c0_100, %c0_101, %c0_102], %75 {strides = array<i32>} : memref<3x4x4x128xbf16, #tpu.memory_space<vmem>>, vector<1x1x4x128xbf16>,
    %c6_103 = arith.constant 6 : index
    %c0_104 = arith.constant 0 : index
    %76 = vector.load %arg6[%c6_103, %c0_104] : memref<106x128xf32, #tpu.memory_space<vmem>>, vector<4x128xf32>
    %77 = vector.broadcast %66 : vector<1x128xf32> to vector<4x128xf32>
    %78 = arith.addf %76, %77 : vector<4x128xf32>
    %cst_105 = arith.constant 0.000000e+00 : f32
    %79 = vector.broadcast %cst_105 : f32 to vector<4x128xf32>
    %80 = arith.maximumf %78, %79 : vector<4x128xf32>
    %81 = arith.truncf %80 : vector<4x128xf32> to vector<4x128xbf16>
    %c0_106 = arith.constant 0 : index
    %c1_107 = arith.constant 1 : index
    %c0_108 = arith.constant 0 : index
    %c0_109 = arith.constant 0 : index
    %82 = vector.load %arg4[%c0_106, %c1_107, %c0_108, %c0_109] : memref<3x4x4x128xbf16, #tpu.memory_space<vmem>>, vector<1x1x4x128xbf16>
    %83 = vector.shape_cast %82 : vector<1x1x4x128xbf16> to vector<4x128xbf16>
    %84 = vector.shape_cast %81 : vector<4x128xbf16> to vector<1x1x4x128xbf16>
    tpu.vector_store %arg4[%c0_106, %c1_107, %c0_108, %c0_109], %84 {strides = array<i32>} : memref<3x4x4x128xbf16, #tpu.memory_space<vmem>>, vector<1x1x4x128xbf16>,
    %c12_110 = arith.constant 12 : index
    %c0_111 = arith.constant 0 : index
    %85 = vector.load %arg6[%c12_110, %c0_111] : memref<106x128xf32, #tpu.memory_space<vmem>>, vector<4x128xf32>
    %86 = vector.broadcast %66 : vector<1x128xf32> to vector<4x128xf32>
    %87 = arith.addf %85, %86 : vector<4x128xf32>
    %cst_112 = arith.constant 0.000000e+00 : f32
    %88 = vector.broadcast %cst_112 : f32 to vector<4x128xf32>
    %89 = arith.maximumf %87, %88 : vector<4x128xf32>
    %90 = arith.truncf %89 : vector<4x128xf32> to vector<4x128xbf16>
    %c0_113 = arith.constant 0 : index
    %c2_114 = arith.constant 2 : index
    %c0_115 = arith.constant 0 : index
    %c0_116 = arith.constant 0 : index
    %91 = vector.load %arg4[%c0_113, %c2_114, %c0_115, %c0_116] : memref<3x4x4x128xbf16, #tpu.memory_space<vmem>>, vector<1x1x4x128xbf16>
    %92 = vector.shape_cast %91 : vector<1x1x4x128xbf16> to vector<4x128xbf16>
    %93 = vector.shape_cast %90 : vector<4x128xbf16> to vector<1x1x4x128xbf16>
    tpu.vector_store %arg4[%c0_113, %c2_114, %c0_115, %c0_116], %93 {strides = array<i32>} : memref<3x4x4x128xbf16, #tpu.memory_space<vmem>>, vector<1x1x4x128xbf16>,
    %c18 = arith.constant 18 : index
    %c0_117 = arith.constant 0 : index
    %94 = vector.load %arg6[%c18, %c0_117] : memref<106x128xf32, #tpu.memory_space<vmem>>, vector<4x128xf32>
    %95 = vector.broadcast %66 : vector<1x128xf32> to vector<4x128xf32>
    %96 = arith.addf %94, %95 : vector<4x128xf32>
    %cst_118 = arith.constant 0.000000e+00 : f32
    %97 = vector.broadcast %cst_118 : f32 to vector<4x128xf32>
    %98 = arith.maximumf %96, %97 : vector<4x128xf32>
    %99 = arith.truncf %98 : vector<4x128xf32> to vector<4x128xbf16>
    %c0_119 = arith.constant 0 : index
    %c3_120 = arith.constant 3 : index
    %c0_121 = arith.constant 0 : index
    %c0_122 = arith.constant 0 : index
    %100 = vector.load %arg4[%c0_119, %c3_120, %c0_121, %c0_122] : memref<3x4x4x128xbf16, #tpu.memory_space<vmem>>, vector<1x1x4x128xbf16>
    %101 = vector.shape_cast %100 : vector<1x1x4x128xbf16> to vector<4x128xbf16>
    %102 = vector.shape_cast %99 : vector<4x128xbf16> to vector<1x1x4x128xbf16>
    tpu.vector_store %arg4[%c0_119, %c3_120, %c0_121, %c0_122], %102 {strides = array<i32>} : memref<3x4x4x128xbf16, #tpu.memory_space<vmem>>, vector<1x1x4x128xbf16>,
    %c42 = arith.constant 42 : index
    %c0_123 = arith.constant 0 : index
    %103 = vector.load %arg6[%c42, %c0_123] : memref<106x128xf32, #tpu.memory_space<vmem>>, vector<4x128xf32>
    %104 = vector.broadcast %66 : vector<1x128xf32> to vector<4x128xf32>
    %105 = arith.addf %103, %104 : vector<4x128xf32>
    %cst_124 = arith.constant 0.000000e+00 : f32
    %106 = vector.broadcast %cst_124 : f32 to vector<4x128xf32>
    %107 = arith.maximumf %105, %106 : vector<4x128xf32>
    %108 = arith.truncf %107 : vector<4x128xf32> to vector<4x128xbf16>
    %c1_125 = arith.constant 1 : index
    %c0_126 = arith.constant 0 : index
    %c0_127 = arith.constant 0 : index
    %c0_128 = arith.constant 0 : index
    %109 = vector.load %arg4[%c1_125, %c0_126, %c0_127, %c0_128] : memref<3x4x4x128xbf16, #tpu.memory_space<vmem>>, vector<1x1x4x128xbf16>
    %110 = vector.shape_cast %109 : vector<1x1x4x128xbf16> to vector<4x128xbf16>
    %111 = vector.shape_cast %108 : vector<4x128xbf16> to vector<1x1x4x128xbf16>
    tpu.vector_store %arg4[%c1_125, %c0_126, %c0_127, %c0_128], %111 {strides = array<i32>} : memref<3x4x4x128xbf16, #tpu.memory_space<vmem>>, vector<1x1x4x128xbf16>,
    %c48 = arith.constant 48 : index
    %c0_129 = arith.constant 0 : index
    %112 = vector.load %arg6[%c48, %c0_129] : memref<106x128xf32, #tpu.memory_space<vmem>>, vector<4x128xf32>
    %113 = vector.broadcast %66 : vector<1x128xf32> to vector<4x128xf32>
    %114 = arith.addf %112, %113 : vector<4x128xf32>
    %cst_130 = arith.constant 0.000000e+00 : f32
    %115 = vector.broadcast %cst_130 : f32 to vector<4x128xf32>
    %116 = arith.maximumf %114, %115 : vector<4x128xf32>
    %117 = arith.truncf %116 : vector<4x128xf32> to vector<4x128xbf16>
    %c1_131 = arith.constant 1 : index
    %c1_132 = arith.constant 1 : index
    %c0_133 = arith.constant 0 : index
    %c0_134 = arith.constant 0 : index
    %118 = vector.load %arg4[%c1_131, %c1_132, %c0_133, %c0_134] : memref<3x4x4x128xbf16, #tpu.memory_space<vmem>>, vector<1x1x4x128xbf16>
    %119 = vector.shape_cast %118 : vector<1x1x4x128xbf16> to vector<4x128xbf16>
    %120 = vector.shape_cast %117 : vector<4x128xbf16> to vector<1x1x4x128xbf16>
    tpu.vector_store %arg4[%c1_131, %c1_132, %c0_133, %c0_134], %120 {strides = array<i32>} : memref<3x4x4x128xbf16, #tpu.memory_space<vmem>>, vector<1x1x4x128xbf16>,
    %c54 = arith.constant 54 : index
    %c0_135 = arith.constant 0 : index
    %121 = vector.load %arg6[%c54, %c0_135] : memref<106x128xf32, #tpu.memory_space<vmem>>, vector<4x128xf32>
    %122 = vector.broadcast %66 : vector<1x128xf32> to vector<4x128xf32>
    %123 = arith.addf %121, %122 : vector<4x128xf32>
    %cst_136 = arith.constant 0.000000e+00 : f32
    %124 = vector.broadcast %cst_136 : f32 to vector<4x128xf32>
    %125 = arith.maximumf %123, %124 : vector<4x128xf32>
    %126 = arith.truncf %125 : vector<4x128xf32> to vector<4x128xbf16>
    %c1_137 = arith.constant 1 : index
    %c2_138 = arith.constant 2 : index
    %c0_139 = arith.constant 0 : index
    %c0_140 = arith.constant 0 : index
    %127 = vector.load %arg4[%c1_137, %c2_138, %c0_139, %c0_140] : memref<3x4x4x128xbf16, #tpu.memory_space<vmem>>, vector<1x1x4x128xbf16>
    %128 = vector.shape_cast %127 : vector<1x1x4x128xbf16> to vector<4x128xbf16>
    %129 = vector.shape_cast %126 : vector<4x128xbf16> to vector<1x1x4x128xbf16>
    tpu.vector_store %arg4[%c1_137, %c2_138, %c0_139, %c0_140], %129 {strides = array<i32>} : memref<3x4x4x128xbf16, #tpu.memory_space<vmem>>, vector<1x1x4x128xbf16>,
    %c60 = arith.constant 60 : index
    %c0_141 = arith.constant 0 : index
    %130 = vector.load %arg6[%c60, %c0_141] : memref<106x128xf32, #tpu.memory_space<vmem>>, vector<4x128xf32>
    %131 = vector.broadcast %66 : vector<1x128xf32> to vector<4x128xf32>
    %132 = arith.addf %130, %131 : vector<4x128xf32>
    %cst_142 = arith.constant 0.000000e+00 : f32
    %133 = vector.broadcast %cst_142 : f32 to vector<4x128xf32>
    %134 = arith.maximumf %132, %133 : vector<4x128xf32>
    %135 = arith.truncf %134 : vector<4x128xf32> to vector<4x128xbf16>
    %c1_143 = arith.constant 1 : index
    %c3_144 = arith.constant 3 : index
    %c0_145 = arith.constant 0 : index
    %c0_146 = arith.constant 0 : index
    %136 = vector.load %arg4[%c1_143, %c3_144, %c0_145, %c0_146] : memref<3x4x4x128xbf16, #tpu.memory_space<vmem>>, vector<1x1x4x128xbf16>
    %137 = vector.shape_cast %136 : vector<1x1x4x128xbf16> to vector<4x128xbf16>
    %138 = vector.shape_cast %135 : vector<4x128xbf16> to vector<1x1x4x128xbf16>
    tpu.vector_store %arg4[%c1_143, %c3_144, %c0_145, %c0_146], %138 {strides = array<i32>} : memref<3x4x4x128xbf16, #tpu.memory_space<vmem>>, vector<1x1x4x128xbf16>,
    %c84 = arith.constant 84 : index
    %c0_147 = arith.constant 0 : index
    %139 = vector.load %arg6[%c84, %c0_147] : memref<106x128xf32, #tpu.memory_space<vmem>>, vector<4x128xf32>
    %140 = vector.broadcast %66 : vector<1x128xf32> to vector<4x128xf32>
    %141 = arith.addf %139, %140 : vector<4x128xf32>
    %cst_148 = arith.constant 0.000000e+00 : f32
    %142 = vector.broadcast %cst_148 : f32 to vector<4x128xf32>
    %143 = arith.maximumf %141, %142 : vector<4x128xf32>
    %144 = arith.truncf %143 : vector<4x128xf32> to vector<4x128xbf16>
    %c2_149 = arith.constant 2 : index
    %c0_150 = arith.constant 0 : index
    %c0_151 = arith.constant 0 : index
    %c0_152 = arith.constant 0 : index
    %145 = vector.load %arg4[%c2_149, %c0_150, %c0_151, %c0_152] : memref<3x4x4x128xbf16, #tpu.memory_space<vmem>>, vector<1x1x4x128xbf16>
    %146 = vector.shape_cast %145 : vector<1x1x4x128xbf16> to vector<4x128xbf16>
    %147 = vector.shape_cast %144 : vector<4x128xbf16> to vector<1x1x4x128xbf16>
    tpu.vector_store %arg4[%c2_149, %c0_150, %c0_151, %c0_152], %147 {strides = array<i32>} : memref<3x4x4x128xbf16, #tpu.memory_space<vmem>>, vector<1x1x4x128xbf16>,
    %c90 = arith.constant 90 : index
    %c0_153 = arith.constant 0 : index
    %148 = vector.load %arg6[%c90, %c0_153] : memref<106x128xf32, #tpu.memory_space<vmem>>, vector<4x128xf32>
    %149 = vector.broadcast %66 : vector<1x128xf32> to vector<4x128xf32>
    %150 = arith.addf %148, %149 : vector<4x128xf32>
    %cst_154 = arith.constant 0.000000e+00 : f32
    %151 = vector.broadcast %cst_154 : f32 to vector<4x128xf32>
    %152 = arith.maximumf %150, %151 : vector<4x128xf32>
    %153 = arith.truncf %152 : vector<4x128xf32> to vector<4x128xbf16>
    %c2_155 = arith.constant 2 : index
    %c1_156 = arith.constant 1 : index
    %c0_157 = arith.constant 0 : index
    %c0_158 = arith.constant 0 : index
    %154 = vector.load %arg4[%c2_155, %c1_156, %c0_157, %c0_158] : memref<3x4x4x128xbf16, #tpu.memory_space<vmem>>, vector<1x1x4x128xbf16>
    %155 = vector.shape_cast %154 : vector<1x1x4x128xbf16> to vector<4x128xbf16>
    %156 = vector.shape_cast %153 : vector<4x128xbf16> to vector<1x1x4x128xbf16>
    tpu.vector_store %arg4[%c2_155, %c1_156, %c0_157, %c0_158], %156 {strides = array<i32>} : memref<3x4x4x128xbf16, #tpu.memory_space<vmem>>, vector<1x1x4x128xbf16>,
    %c96 = arith.constant 96 : index
    %c0_159 = arith.constant 0 : index
    %157 = vector.load %arg6[%c96, %c0_159] : memref<106x128xf32, #tpu.memory_space<vmem>>, vector<4x128xf32>
    %158 = vector.broadcast %66 : vector<1x128xf32> to vector<4x128xf32>
    %159 = arith.addf %157, %158 : vector<4x128xf32>
    %cst_160 = arith.constant 0.000000e+00 : f32
    %160 = vector.broadcast %cst_160 : f32 to vector<4x128xf32>
    %161 = arith.maximumf %159, %160 : vector<4x128xf32>
    %162 = arith.truncf %161 : vector<4x128xf32> to vector<4x128xbf16>
    %c2_161 = arith.constant 2 : index
    %c2_162 = arith.constant 2 : index
    %c0_163 = arith.constant 0 : index
    %c0_164 = arith.constant 0 : index
    %163 = vector.load %arg4[%c2_161, %c2_162, %c0_163, %c0_164] : memref<3x4x4x128xbf16, #tpu.memory_space<vmem>>, vector<1x1x4x128xbf16>
    %164 = vector.shape_cast %163 : vector<1x1x4x128xbf16> to vector<4x128xbf16>
    %165 = vector.shape_cast %162 : vector<4x128xbf16> to vector<1x1x4x128xbf16>
    tpu.vector_store %arg4[%c2_161, %c2_162, %c0_163, %c0_164], %165 {strides = array<i32>} : memref<3x4x4x128xbf16, #tpu.memory_space<vmem>>, vector<1x1x4x128xbf16>,
    %c102 = arith.constant 102 : index
    %c0_165 = arith.constant 0 : index
    %166 = vector.load %arg6[%c102, %c0_165] : memref<106x128xf32, #tpu.memory_space<vmem>>, vector<4x128xf32>
    %167 = vector.broadcast %66 : vector<1x128xf32> to vector<4x128xf32>
    %168 = arith.addf %166, %167 : vector<4x128xf32>
    %cst_166 = arith.constant 0.000000e+00 : f32
    %169 = vector.broadcast %cst_166 : f32 to vector<4x128xf32>
    %170 = arith.maximumf %168, %169 : vector<4x128xf32>
    %171 = arith.truncf %170 : vector<4x128xf32> to vector<4x128xbf16>
    %c2_167 = arith.constant 2 : index
    %c3_168 = arith.constant 3 : index
    %c0_169 = arith.constant 0 : index
    %c0_170 = arith.constant 0 : index
    %172 = vector.load %arg4[%c2_167, %c3_168, %c0_169, %c0_170] : memref<3x4x4x128xbf16, #tpu.memory_space<vmem>>, vector<1x1x4x128xbf16>
    %173 = vector.shape_cast %172 : vector<1x1x4x128xbf16> to vector<4x128xbf16>
    %174 = vector.shape_cast %171 : vector<4x128xbf16> to vector<1x1x4x128xbf16>
    tpu.vector_store %arg4[%c2_167, %c3_168, %c0_169, %c0_170], %174 {strides = array<i32>} : memref<3x4x4x128xbf16, #tpu.memory_space<vmem>>, vector<1x1x4x128xbf16>,
    return
  }
  func.func @transform_0(%arg0: i32) -> (i32, i32, i32, i32) {
    %c0_i32 = arith.constant 0 : i32
    %c0_i32_0 = arith.constant 0 : i32
    %c0_i32_1 = arith.constant 0 : i32
    %c0_i32_2 = arith.constant 0 : i32
    return %arg0, %c0_i32, %c0_i32_0, %c0_i32_1 : i32, i32, i32, i32
  }
  func.func @transform_1(%arg0: i32) -> (i32, i32, i32) {
    %c0_i32 = arith.constant 0 : i32
    %c0_i32_0 = arith.constant 0 : i32
    %c0_i32_1 = arith.constant 0 : i32
    %c0_i32_2 = arith.constant 0 : i32
    return %c0_i32, %c0_i32_0, %c0_i32_1 : i32, i32, i32
  }
  func.func @transform_2(%arg0: i32) -> (i32, i32) {
    %c0_i32 = arith.constant 0 : i32
    %c0_i32_0 = arith.constant 0 : i32
    %c0_i32_1 = arith.constant 0 : i32
    return %c0_i32, %c0_i32_0 : i32, i32
  }
  func.func @transform_3(%arg0: i32) -> (i32, i32, i32, i32) {
    %c0_i32 = arith.constant 0 : i32
    %c0_i32_0 = arith.constant 0 : i32
    %c0_i32_1 = arith.constant 0 : i32
    %c0_i32_2 = arith.constant 0 : i32
    return %arg0, %c0_i32, %c0_i32_0, %c0_i32_1 : i32, i32, i32, i32
  }
}

module attributes {stable_mosaic.version = 11 : i64} {
  func.func @_mm_bias_res_kernel(%arg0: i32, %arg1: memref<24x128xbf16, #tpu.memory_space<vmem>>, %arg2: memref<128x256xbf16, #tpu.memory_space<vmem>>, %arg3: memref<1x256xf32, #tpu.memory_space<vmem>>, %arg4: memref<24x256xbf16, #tpu.memory_space<vmem>>, %arg5: memref<24x256xbf16, #tpu.memory_space<vmem>>) attributes {dimension_semantics = [#tpu.dimension_semantics<parallel>], iteration_bounds = array<i64: 2>, scalar_prefetch = 0 : i64, scratch_operands = 0 : i64, tpu.core_type = #tpu.core_type<tc>, window_params = [{transform_indices = @transform_0, window_bounds = array<i64: 24, 128>}, {pipeline_mode = #tpu.pipeline_mode<synchronous>, transform_indices = @transform_1, window_bounds = array<i64: 128, 256>}, {pipeline_mode = #tpu.pipeline_mode<synchronous>, transform_indices = @transform_2, window_bounds = array<i64: 1, 256>}, {transform_indices = @transform_3, window_bounds = array<i64: 24, 256>}, {transform_indices = @transform_4, window_bounds = array<i64: 24, 256>}]} {
    %c0 = arith.constant 0 : index
    %c0_0 = arith.constant 0 : index
    %0 = vector.load %arg1[%c0, %c0_0] : memref<24x128xbf16, #tpu.memory_space<vmem>>, vector<24x128xbf16>
    %c0_1 = arith.constant 0 : index
    %c0_2 = arith.constant 0 : index
    %1 = vector.load %arg2[%c0_1, %c0_2] : memref<128x256xbf16, #tpu.memory_space<vmem>>, vector<128x256xbf16>
    %cst = arith.constant dense<0.000000e+00> : vector<24x256xf32>
    %2 = tpu.matmul %0, %1, %cst {dimension_numbers = #tpu.dot_dimension_numbers<[1], [0], [0], [1], [0, 0, 1, 1], [], []>} : vector<24x128xbf16>, vector<128x256xbf16>, vector<24x256xf32> -> vector<24x256xf32>
    %c0_3 = arith.constant 0 : index
    %c0_4 = arith.constant 0 : index
    %3 = vector.load %arg3[%c0_3, %c0_4] : memref<1x256xf32, #tpu.memory_space<vmem>>, vector<1x256xf32>
    %4 = vector.broadcast %3 : vector<1x256xf32> to vector<24x256xf32>
    %5 = arith.addf %2, %4 : vector<24x256xf32>
    %c0_5 = arith.constant 0 : index
    %c0_6 = arith.constant 0 : index
    %6 = vector.load %arg4[%c0_5, %c0_6] : memref<24x256xbf16, #tpu.memory_space<vmem>>, vector<24x256xbf16>
    %7 = arith.extf %6 : vector<24x256xbf16> to vector<24x256xf32>
    %8 = arith.addf %5, %7 : vector<24x256xf32>
    %cst_7 = arith.constant 0.000000e+00 : f32
    %9 = vector.broadcast %cst_7 : f32 to vector<24x256xf32>
    %10 = arith.maximumf %8, %9 : vector<24x256xf32>
    %11 = arith.truncf %10 : vector<24x256xf32> to vector<24x256xbf16>
    %c0_8 = arith.constant 0 : index
    %c0_9 = arith.constant 0 : index
    %12 = vector.load %arg5[%c0_8, %c0_9] : memref<24x256xbf16, #tpu.memory_space<vmem>>, vector<24x256xbf16>
    tpu.vector_store %arg5[%c0_8, %c0_9], %11 {strides = array<i32>} : memref<24x256xbf16, #tpu.memory_space<vmem>>, vector<24x256xbf16>,
    return
  }
  func.func @transform_0(%arg0: i32) -> (i32, i32) {
    %c0_i32 = arith.constant 0 : i32
    %c0_i32_0 = arith.constant 0 : i32
    return %arg0, %c0_i32 : i32, i32
  }
  func.func @transform_1(%arg0: i32) -> (i32, i32) {
    %c0_i32 = arith.constant 0 : i32
    %c0_i32_0 = arith.constant 0 : i32
    %c0_i32_1 = arith.constant 0 : i32
    return %c0_i32, %c0_i32_0 : i32, i32
  }
  func.func @transform_2(%arg0: i32) -> (i32, i32) {
    %c0_i32 = arith.constant 0 : i32
    %c0_i32_0 = arith.constant 0 : i32
    %c0_i32_1 = arith.constant 0 : i32
    return %c0_i32, %c0_i32_0 : i32, i32
  }
  func.func @transform_3(%arg0: i32) -> (i32, i32) {
    %c0_i32 = arith.constant 0 : i32
    %c0_i32_0 = arith.constant 0 : i32
    return %arg0, %c0_i32 : i32, i32
  }
  func.func @transform_4(%arg0: i32) -> (i32, i32) {
    %c0_i32 = arith.constant 0 : i32
    %c0_i32_0 = arith.constant 0 : i32
    return %arg0, %c0_i32 : i32, i32
  }
}

module attributes {stable_mosaic.version = 11 : i64} {
  func.func @_mm_bias_kernel(%arg0: i32, %arg1: memref<24x256xbf16, #tpu.memory_space<vmem>>, %arg2: memref<256x128xbf16, #tpu.memory_space<vmem>>, %arg3: memref<1x128xf32, #tpu.memory_space<vmem>>, %arg4: memref<24x128xbf16, #tpu.memory_space<vmem>>) attributes {dimension_semantics = [#tpu.dimension_semantics<parallel>], iteration_bounds = array<i64: 2>, scalar_prefetch = 0 : i64, scratch_operands = 0 : i64, tpu.core_type = #tpu.core_type<tc>, window_params = [{transform_indices = @transform_0, window_bounds = array<i64: 24, 256>}, {pipeline_mode = #tpu.pipeline_mode<synchronous>, transform_indices = @transform_1, window_bounds = array<i64: 256, 128>}, {pipeline_mode = #tpu.pipeline_mode<synchronous>, transform_indices = @transform_2, window_bounds = array<i64: 1, 128>}, {transform_indices = @transform_3, window_bounds = array<i64: 24, 128>}]} {
    %c0 = arith.constant 0 : index
    %c0_0 = arith.constant 0 : index
    %0 = vector.load %arg1[%c0, %c0_0] : memref<24x256xbf16, #tpu.memory_space<vmem>>, vector<24x256xbf16>
    %c0_1 = arith.constant 0 : index
    %c0_2 = arith.constant 0 : index
    %1 = vector.load %arg2[%c0_1, %c0_2] : memref<256x128xbf16, #tpu.memory_space<vmem>>, vector<256x128xbf16>
    %cst = arith.constant dense<0.000000e+00> : vector<24x128xf32>
    %2 = tpu.matmul %0, %1, %cst {dimension_numbers = #tpu.dot_dimension_numbers<[1], [0], [0], [1], [0, 0, 1, 1], [], []>} : vector<24x256xbf16>, vector<256x128xbf16>, vector<24x128xf32> -> vector<24x128xf32>
    %c0_3 = arith.constant 0 : index
    %c0_4 = arith.constant 0 : index
    %3 = vector.load %arg3[%c0_3, %c0_4] : memref<1x128xf32, #tpu.memory_space<vmem>>, vector<1x128xf32>
    %4 = vector.broadcast %3 : vector<1x128xf32> to vector<24x128xf32>
    %5 = arith.addf %2, %4 : vector<24x128xf32>
    %cst_5 = arith.constant 0.000000e+00 : f32
    %6 = vector.broadcast %cst_5 : f32 to vector<24x128xf32>
    %7 = arith.maximumf %5, %6 : vector<24x128xf32>
    %8 = arith.truncf %7 : vector<24x128xf32> to vector<24x128xbf16>
    %c0_6 = arith.constant 0 : index
    %c0_7 = arith.constant 0 : index
    %9 = vector.load %arg4[%c0_6, %c0_7] : memref<24x128xbf16, #tpu.memory_space<vmem>>, vector<24x128xbf16>
    tpu.vector_store %arg4[%c0_6, %c0_7], %8 {strides = array<i32>} : memref<24x128xbf16, #tpu.memory_space<vmem>>, vector<24x128xbf16>,
    return
  }
  func.func @transform_0(%arg0: i32) -> (i32, i32) {
    %c0_i32 = arith.constant 0 : i32
    %c0_i32_0 = arith.constant 0 : i32
    return %arg0, %c0_i32 : i32, i32
  }
  func.func @transform_1(%arg0: i32) -> (i32, i32) {
    %c0_i32 = arith.constant 0 : i32
    %c0_i32_0 = arith.constant 0 : i32
    %c0_i32_1 = arith.constant 0 : i32
    return %c0_i32, %c0_i32_0 : i32, i32
  }
  func.func @transform_2(%arg0: i32) -> (i32, i32) {
    %c0_i32 = arith.constant 0 : i32
    %c0_i32_0 = arith.constant 0 : i32
    %c0_i32_1 = arith.constant 0 : i32
    return %c0_i32, %c0_i32_0 : i32, i32
  }
  func.func @transform_3(%arg0: i32) -> (i32, i32) {
    %c0_i32 = arith.constant 0 : i32
    %c0_i32_0 = arith.constant 0 : i32
    return %arg0, %c0_i32 : i32, i32
  }
}

</mosaic_0001>

<bundles_post_ra>
// kernel: fwd.11
= control target key start
LH: loop header
LB: loop body
LE: loop exit
PB: predicated region body
PF: predicated region fallthrough
CT: control target
= control target key end

     0   :  { %s442_s12 = smov 0   ;;  %s489_s0 = inlined_call_operand.vmem [shape: bf16[48,128], index: 0, kind: input, shape index: {}]   ;;  %s490_s1 = inlined_call_operand.vmem [shape: bf16[128,128], index: 1, kind: input, shape index: {}]   ;;  %s491_s2 = inlined_call_operand.vmem [shape: f32[1,128], index: 2, kind: input, shape index: {}]   ;;  %s492_s3 = inlined_call_operand.vmem [shape: bf16[48,128], index: 3, kind: output, shape index: {}]  }
   0x1 LB: > { %s338_s13 = sadd.s32 4294967295, %s420_s12   ;;  %p342_p0 = scmp.ge.s32.totalorder %s420_s12, 1  ;;  %s420_s12 = sphi %s442_s12, %s13_s12  }
   0x2   : > { %p138_p1 = scmp.lt.s32.totalorder %s420_s12, 3 }
   0x4   : > { %p139_p2 = pnand %p342_p0, %p138_p1 }
   0x5   : > { %s162_s18 = smul.u32 (!%p139_p2), 3, %s338_s13 }
   0x6   : > { %142 = sbr.rel (%p139_p2) target bundleno = 184 (0xb8), region = 32 }
   0x7   : > { %p163_p3 = scmp.lt.s32.totalorder (!%p139_p2), %s162_s18, 5 }
   0xb   : > { %v391_v0 = vld [vmem:[%s490_s1 + $0x38] sm:$0xff]  ;;  %v390_v1 = vld [vmem:[%s490_s1 + $0x30] sm:$0xff]  ;;  %v389_v2 = vld [vmem:[%s490_s1 + $0x28] sm:$0xff]  ;;  %s494_s18 = smov (!%p163_p3, %s162_s18), 5 }
   0xc   : > { %255 = vmatpush.bf16.msra.mxu0 %v391_v0  ;;  %397 = vmatpush.bf16.msra.mxu1 %v391_v0  ;;  %v388_v3 = vld [vmem:[%s490_s1 + $0x20] sm:$0xff]  ;;  %v387_v4 = vld [vmem:[%s490_s1 + $0x18] sm:$0xff]  ;;  %s343_s25 = sshll.u32 %s494_s18, 2  ;;  %v386_v5 = vld [vmem:[%s490_s1 + $0x10] sm:$0xff] }
   0xd   : > { %s166_s30 = scalar_lea.vmem %s489_s0, %s343_s25  ;;  %v385_v6 = vld [vmem:[%s490_s1 + $0x8] sm:$0xff]  ;;  %v384_v9 = vld [vmem:[%s490_s1] sm:$0xff]  ;;  %s172_s13 = scalar_lea.vmem %s492_s3, %s343_s25 }
   0xe   : > { %v176_v7 = vld [vmem:[%s166_s30 + $0x8] sm:$0xf]  ;;  %v383_v10 = vld [vmem:[%s166_s30] sm:$0xff] }
   0xf   : > { %v202_v8 = vunpack.c.l.b16 %v176_v7  ;;  %v413_v12 = vld [vmem:[%s491_s2] ss:$0 sm:$0xff] }
  0x10   : > { %256 = vmatpush.bf16.msra.mxu0 %v390_v1  ;;  %398 = vmatpush.bf16.msra.mxu1 %v390_v1 }
  0x11   : > { %v204_v11 = vpack.c.b16 %v202_v8, %v202_v8 }
  0x14   : > { %257 = vmatpush.bf16.msra.mxu0 %v389_v2  ;;  %399 = vmatpush.bf16.msra.mxu1 %v389_v2 }
  0x18   : > { %258 = vmatpush.bf16.msra.mxu0 %v388_v3  ;;  %400 = vmatpush.bf16.msra.mxu1 %v388_v3 }
  0x1c   : > { %259 = vmatpush.bf16.msra.mxu0 %v387_v4  ;;  %401 = vmatpush.bf16.msra.mxu1 %v387_v4 }
  0x20   : > { %260 = vmatpush.bf16.msra.mxu0 %v386_v5  ;;  %402 = vmatpush.bf16.msra.mxu1 %v386_v5 }
  0x24   : > { %261 = vmatpush.bf16.msra.mxu0 %v385_v6  ;;  %403 = vmatpush.bf16.msra.mxu1 %v385_v6 }
  0x28   : > { %262 = vmatpush.bf16.msra.mxu0 %v384_v9  ;;  %404 = vmatpush.bf16.msra.mxu1 %v384_v9 }
  0x2b   : > { %263 = vmatmul.bf16.vlgmr.msra.gmra.mxu0 %v383_v10  ;;  %268 = vmatmul.bf16.vlgmr.msra.gmra.mxu1 %v204_v11 }
  0xa8   : > { %v264_v13 = vpop.f32.mrf.mxu0  ;;  %v269_v14 = vpop.f32.mrf.mxu1 }
  0xa9   : > { %v270_v15 = vadd.f32 %v413_v12, %v269_v14  ;;  %v265_v18 = vadd.f32 %v413_v12, %v264_v13 }
  0xab   : > { %v275_v16 = vmax.f32 %v270_v15, 0.0  ;;  %v273_v22 = vmax.f32 %v265_v18, 0.0 }
  0xad   : > { %v278_v17 = vpack.c.bf16 %v275_v16, %v275_v16 }
  0xaf   : > { %281 = vst [vmem:[%s172_s13 + $0x8] sm:$0xf] %v278_v17 }
  0xb0   : > { %v266_v19 = vpop.f32.mrf.mxu0  ;;  %v271_v20 = vpop.f32.mrf.mxu1 }
  0xb1   : > { %v267_v21 = vadd.f32 %v413_v12, %v266_v19 }
  0xb3   : > { %v274_v23 = vmax.f32 %v267_v21, 0.0 }
  0xb5   : > { %v395_v24 = vpack.c.bf16 %v274_v23, %v273_v22 }
  0xb7   : > { %396 = vst [vmem:[%s172_s13] sm:$0xff] %v395_v24  }
  0xb8 PF: > { %s13_s12 = sadd.s32 1, %s420_s12  }
  0xb9   : > { %p10_p4 = scmp.ge.s32.totalorder %s13_s12, 4  }
  0xbb   :  { %12 = sbr.rel (!%p10_p4) target bundleno = 1 (0x1), region = 62 }

// kernel: fwd.13
= control target key start
LH: loop header
LB: loop body
LE: loop exit
PB: predicated region body
PF: predicated region fallthrough
CT: control target
= control target key end

     0   :  { %10 = vsyncpa [#allocation3], 0  ;;  %s1084_s0 = inlined_call_operand.vmem [shape: bf16[48,128], index: 0, kind: input, shape index: {}]   ;;  %s1085_s1 = inlined_call_operand.hbm [shape: bf16[128,256], index: 1, kind: input, shape index: {}]   ;;  %s1086_s2 = inlined_call_operand.vmem [shape: bf16[48,128], index: 2, kind: input, shape index: {}]   ;;  %s1087_s3 = inlined_call_operand.hbm [shape: bf16[128,256], index: 3, kind: input, shape index: {}]   ;;  %s1088_s4 = inlined_call_operand.vmem [shape: f32[1,256], index: 4, kind: input, shape index: {}]   ;;  %s1089_s5 = inlined_call_operand.vmem [shape: bf16[48,256], index: 5, kind: output, shape index: {}]  }
   0x1   :  { %11 = vsyncpa [#allocation5], 0  ;;  %s1019_s18 = smov 0  }
   0x2 LB: > { %s174_s21 = sshll.u32 %s1085_s1, 4  ;;  %s692_s22 = sadd.s32 4294967295, %s983_s18   ;;  %s983_s18 = sphi %s1019_s18, %s17_s18   ;;  %s175_s21 = int_to_ptr.hbm [resolvable:$true] %s174_s21 }
   0x3   : > { %p694_p0 = scmp.ge.s32.totalorder %s983_s18, 1  ;;  %p163_p1 = scmp.lt.s32.totalorder %s983_s18, 3 }
   0x4   : > { %p1032_p2 = scmp.eq.s32.totalorder %s692_s22, 0  ;;  %s985_s25 = smov [#allocation2]  }
   0x5   : > { %p1036_p3 = pnand %p694_p0, %p163_p1  ;;  %s176_s26 = sshll.u32 %s985_s25, 4  ;;  %s177_s26 = int_to_ptr.vmem [resolvable:$true] %s176_s26 }
   0x6   : > { %s188_s29 = sshll.u32 %s1087_s3, 4  ;;  %s986_s30 = smov [#allocation4]   ;;  %s189_s29 = int_to_ptr.hbm [resolvable:$true] %s188_s29 }
   0x7   : > { %p886_p4 = pneg %p1036_p3  ;;  %s190_s6 = sshll.u32 %s986_s30, 4  ;;  %s191_s6 = int_to_ptr.vmem [resolvable:$true] %s190_s6 }
   0x8   : > { %s987_s7 = smov 128   ;;  %s988_s8 = smov 8  }
   0x9   : > { %p887_p5 = pnand %p1032_p2, %p886_p4  ;;  %227 = sbr.rel (%p1036_p3) target bundleno = 210 (0xd2), region = 40 }
   0xb   : > { %889 = dma.hbm_to_vmem [thread:$0]  (!%p887_p5), %s175_s21, 2048, %s177_s26, [#allocation3], %s987_s7, %s987_s7, %s988_s8  }
   0xc   : > { %892 = dma.hbm_to_vmem [thread:$0]  (!%p887_p5), %s189_s29, 2048, %s191_s6, [#allocation5], %s987_s7, %s987_s7, %s988_s8  }
   0xe   : > { %974 = dma.done.wait (%p1032_p2), [#allocation3], 2048  }
   0xf   : > { %976 = vsyncadd (%p1032_p2), [#allocation3], 4294965248 }
  0x10   : > { %978 = dma.done.wait (%p1032_p2), [#allocation5], 2048  }
  0x11   : > { %980 = vsyncadd (%p1032_p2), [#allocation5], 4294965248  ;;  %v767_v0 = vld [vmem:[#allocation4 + $0x70] sm:$0xf]  ;;  %v877_v1 = vld [vmem:[#allocation4 + $0x74] sm:$0xf0] }
  0x12   : > { %v876_v2 = vld [vmem:[#allocation4 + $0x74] sm:$0xf]  ;;  %v768_v3 = vor.u32 %v877_v1, %v767_v0  ;;  %v769_v4 = vld [vmem:[#allocation4 + $0x78] sm:$0xf0]  ;;  %v835_v5 = vld [vmem:[#allocation2 + $0x70] sm:$0xf] }
  0x13   : > { %v860_v6 = vld [vmem:[#allocation2 + $0x74] sm:$0xf0]  ;;  %v772_v7 = vor.u32 %v876_v2, %v769_v4  ;;  %v859_v9 = vld [vmem:[#allocation2 + $0x74] sm:$0xf]  ;;  %v837_v10 = vld [vmem:[#allocation2 + $0x78] sm:$0xf0] }
  0x14   : > { %v836_v8 = vor.u32 %v860_v6, %v835_v5  ;;  %v759_v11 = vld [vmem:[#allocation4 + $0x60] sm:$0xf]  ;;  %414 = vmatpush.bf16.msra.mxu0 %v768_v3  ;;  %v840_v12 = vor.u32 %v859_v9, %v837_v10  ;;  %v875_v13 = vld [vmem:[#allocation4 + $0x64] sm:$0xf0]  ;;  %v874_v14 = vld [vmem:[#allocation4 + $0x64] sm:$0xf] }
  0x15   : > { %v761_v15 = vld [vmem:[#allocation4 + $0x68] sm:$0xf0]  ;;  %432 = vmatpush.bf16.msra.mxu1 %v772_v7  ;;  %v760_v16 = vor.u32 %v875_v13, %v759_v11  ;;  %v827_v18 = vld [vmem:[#allocation2 + $0x60] sm:$0xf]  ;;  %v858_v19 = vld [vmem:[#allocation2 + $0x64] sm:$0xf0] }
  0x16   : > { %540 = vmatpush.bf16.msra.mxu2 %v836_v8  ;;  %v764_v17 = vor.u32 %v874_v14, %v761_v15  ;;  %v857_v20 = vld [vmem:[#allocation2 + $0x64] sm:$0xf]  ;;  %558 = vmatpush.bf16.msra.mxu3 %v840_v12  ;;  %v828_v21 = vor.u32 %v858_v19, %v827_v18  ;;  %v829_v22 = vld [vmem:[#allocation2 + $0x68] sm:$0xf0]  ;;  %v751_v23 = vld [vmem:[#allocation4 + $0x50] sm:$0xf] }
  0x17   : > { %v873_v24 = vld [vmem:[#allocation4 + $0x54] sm:$0xf0]  ;;  %v832_v25 = vor.u32 %v857_v20, %v829_v22  ;;  %v872_v26 = vld [vmem:[#allocation4 + $0x54] sm:$0xf]  ;;  %v753_v27 = vld [vmem:[#allocation4 + $0x58] sm:$0xf0] }
  0x18   : > { %v819_v28 = vld [vmem:[#allocation2 + $0x50] sm:$0xf]  ;;  %415 = vmatpush.bf16.msra.mxu0 %v760_v16  ;;  %v752_v29 = vor.u32 %v873_v24, %v751_v23  ;;  %v856_v30 = vld [vmem:[#allocation2 + $0x54] sm:$0xf0]  ;;  %v855_v31 = vld [vmem:[#allocation2 + $0x54] sm:$0xf]  ;;  %v756_v33 = vor.u32 %v872_v26, %v753_v27 }
  0x19   : > { %v821_v32 = vld [vmem:[#allocation2 + $0x58] sm:$0xf0]  ;;  %433 = vmatpush.bf16.msra.mxu1 %v764_v17  ;;  %v820_v34 = vor.u32 %v856_v30, %v819_v28  ;;  %v743_v35 = vld [vmem:[#allocation4 + $0x40] sm:$0xf]  ;;  %v871_v36 = vld [vmem:[#allocation4 + $0x44] sm:$0xf0] }
  0x1a   : > { %541 = vmatpush.bf16.msra.mxu2 %v828_v21  ;;  %v870_v37 = vld [vmem:[#allocation4 + $0x44] sm:$0xf]  ;;  %559 = vmatpush.bf16.msra.mxu3 %v832_v25  ;;  %v824_v38 = vor.u32 %v855_v31, %v821_v32  ;;  %v745_v39 = vld [vmem:[#allocation4 + $0x48] sm:$0xf0]  ;;  %v811_v40 = vld [vmem:[#allocation2 + $0x40] sm:$0xf]  ;;  %v744_v44 = vor.u32 %v871_v36, %v743_v35 }
  0x1b   : > { %v854_v41 = vld [vmem:[#allocation2 + $0x44] sm:$0xf0]  ;;  %v853_v42 = vld [vmem:[#allocation2 + $0x44] sm:$0xf]  ;;  %v813_v43 = vld [vmem:[#allocation2 + $0x48] sm:$0xf0]  ;;  %v748_v45 = vor.u32 %v870_v37, %v745_v39 }
  0x1c   : > { %416 = vmatpush.bf16.msra.mxu0 %v752_v29  ;;  %s1059_s9 = smul.u32 3, %s692_s22  ;;  %v812_v46 = vor.u32 %v854_v41, %v811_v40  ;;  %v735_v47 = vld [vmem:[#allocation4 + $0x30] sm:$0xf]  ;;  %v869_v48 = vld [vmem:[#allocation4 + $0x34] sm:$0xf0]  ;;  %v816_v50 = vor.u32 %v853_v42, %v813_v43 }
  0x1d   : > { %434 = vmatpush.bf16.msra.mxu1 %v756_v33  ;;  %v868_v49 = vld [vmem:[#allocation4 + $0x34] sm:$0xf]  ;;  %v737_v51 = vld [vmem:[#allocation4 + $0x38] sm:$0xf0]  ;;  %v803_v52 = vld [vmem:[#allocation2 + $0x30] sm:$0xf]  ;;  %v736_v56 = vor.u32 %v869_v48, %v735_v47 }
  0x1e   : > { %542 = vmatpush.bf16.msra.mxu2 %v820_v34  ;;  %560 = vmatpush.bf16.msra.mxu3 %v824_v38  ;;  %v852_v53 = vld [vmem:[#allocation2 + $0x34] sm:$0xf0]  ;;  %v851_v54 = vld [vmem:[#allocation2 + $0x34] sm:$0xf]  ;;  %v805_v55 = vld [vmem:[#allocation2 + $0x38] sm:$0xf0]  ;;  %v740_v57 = vor.u32 %v868_v49, %v737_v51 }
  0x1f   : > { %p268_p6 = scmp.lt.s32.totalorder %s1059_s9, 5  ;;  %v804_v58 = vor.u32 %v852_v53, %v803_v52  ;;  %v727_v59 = vld [vmem:[#allocation4 + $0x20] sm:$0xf]  ;;  %v867_v60 = vld [vmem:[#allocation4 + $0x24] sm:$0xf0]  ;;  %v808_v62 = vor.u32 %v851_v54, %v805_v55 }
  0x20   : > { %417 = vmatpush.bf16.msra.mxu0 %v744_v44  ;;  %v866_v61 = vld [vmem:[#allocation4 + $0x24] sm:$0xf]  ;;  %v729_v63 = vld [vmem:[#allocation4 + $0x28] sm:$0xf0]  ;;  %v795_v0 = vld [vmem:[#allocation2 + $0x20] sm:$0xf]  ;;  %v728_v4 = vor.u32 %v867_v60, %v727_v59 }
  0x21   : > { %435 = vmatpush.bf16.msra.mxu1 %v748_v45  ;;  %v850_v1 = vld [vmem:[#allocation2 + $0x24] sm:$0xf0]  ;;  %v849_v2 = vld [vmem:[#allocation2 + $0x24] sm:$0xf]  ;;  %v797_v3 = vld [vmem:[#allocation2 + $0x28] sm:$0xf0]  ;;  %v732_v5 = vor.u32 %v866_v61, %v729_v63 }
  0x22   : > { %543 = vmatpush.bf16.msra.mxu2 %v812_v46  ;;  %561 = vmatpush.bf16.msra.mxu3 %v816_v50  ;;  %s1093_s9 = smov (!%p268_p6, %s1059_s9), 5  ;;  %v796_v6 = vor.u32 %v850_v1, %v795_v0  ;;  %v719_v7 = vld [vmem:[#allocation4 + $0x10] sm:$0xf]  ;;  %v865_v8 = vld [vmem:[#allocation4 + $0x14] sm:$0xf0]  ;;  %v800_v10 = vor.u32 %v849_v2, %v797_v3 }
  0x23   : > { %v864_v9 = vld [vmem:[#allocation4 + $0x14] sm:$0xf]  ;;  %v721_v11 = vld [vmem:[#allocation4 + $0x18] sm:$0xf0]  ;;  %v787_v12 = vld [vmem:[#allocation2 + $0x10] sm:$0xf]  ;;  %v720_v16 = vor.u32 %v865_v8, %v719_v7 }
  0x24   : > { %418 = vmatpush.bf16.msra.mxu0 %v736_v56  ;;  %v848_v13 = vld [vmem:[#allocation2 + $0x14] sm:$0xf0]  ;;  %v847_v14 = vld [vmem:[#allocation2 + $0x14] sm:$0xf]  ;;  %v789_v15 = vld [vmem:[#allocation2 + $0x18] sm:$0xf0]  ;;  %v724_v17 = vor.u32 %v864_v9, %v721_v11 }
  0x25   : > { %436 = vmatpush.bf16.msra.mxu1 %v740_v57  ;;  %s701_s10 = sshll.u32 %s1093_s9, 2  ;;  %v788_v18 = vor.u32 %v848_v13, %v787_v12  ;;  %v711_v19 = vld [vmem:[#allocation4] sm:$0xf]  ;;  %v863_v20 = vld [vmem:[#allocation4 + $0x4] sm:$0xf0]  ;;  %v792_v22 = vor.u32 %v847_v14, %v789_v15  ;;  %s843_s20 = sshll.u32 %s1093_s9, 3 }
  0x26   : > { %544 = vmatpush.bf16.msra.mxu2 %v804_v58  ;;  %562 = vmatpush.bf16.msra.mxu3 %v808_v62  ;;  %v862_v21 = vld [vmem:[#allocation4 + $0x4] sm:$0xf]  ;;  %v713_v23 = vld [vmem:[#allocation4 + $0x8] sm:$0xf0]  ;;  %v779_v24 = vld [vmem:[#allocation2] sm:$0xf]  ;;  %v712_v28 = vor.u32 %v863_v20, %v711_v19  ;;  %s277_s13 = scalar_lea.vmem %s1086_s2, %s701_s10  ;;  %s271_s16 = scalar_lea.vmem %s1084_s0, %s701_s10 }
  0x27   : > { %v846_v25 = vld [vmem:[#allocation2 + $0x4] sm:$0xf0]  ;;  %v845_v26 = vld [vmem:[#allocation2 + $0x4] sm:$0xf]  ;;  %v781_v27 = vld [vmem:[#allocation2 + $0x8] sm:$0xf0]  ;;  %v716_v29 = vor.u32 %v862_v21, %v713_v23  ;;  %s284_s23 = scalar_lea.vmem %s1089_s5, %s843_s20 }
  0x28   : > { %419 = vmatpush.bf16.msra.mxu0 %v728_v4  ;;  %v780_v30 = vor.u32 %v846_v25, %v779_v24  ;;  %v784_v31 = vor.u32 %v845_v26, %v781_v27  ;;  %v861_v32 = vld [vmem:[%s277_s13] sm:$0xff]  ;;  %v307_v34 = vld [vmem:[%s277_s13 + $0x8] sm:$0xf] }
  0x29   : > { %437 = vmatpush.bf16.msra.mxu1 %v732_v5  ;;  %v844_v33 = vld [vmem:[%s271_s16] sm:$0xff]  ;;  %v288_v35 = vld [vmem:[%s271_s16 + $0x8] sm:$0xf]  ;;  %v329_v36 = vunpack.c.l.b16 %v307_v34 }
  0x2a   : > { %545 = vmatpush.bf16.msra.mxu2 %v796_v6  ;;  %563 = vmatpush.bf16.msra.mxu3 %v800_v10  ;;  %v455_v37 = vunpack.c.l.b16 %v288_v35  ;;  %v576_v42 = vld [vmem:[%s1088_s4] sm:$0x3] }
  0x2b   : > { %v331_v38 = vpack.c.b16 %v329_v36, %v329_v36  ;;  %v578_v43 = vperm.slane %v576_v42, 0  ;;  %v579_v45 = vperm.slane %v576_v42, 1 }
  0x2c   : > { %420 = vmatpush.bf16.msra.mxu0 %v720_v16  ;;  %v457_v39 = vpack.c.b16 %v455_v37, %v455_v37 }
  0x2d   : > { %438 = vmatpush.bf16.msra.mxu1 %v724_v17 }
  0x2e   : > { %546 = vmatpush.bf16.msra.mxu2 %v788_v18  ;;  %564 = vmatpush.bf16.msra.mxu3 %v792_v22 }
  0x30   : > { %421 = vmatpush.bf16.msra.mxu0 %v712_v28 }
  0x31   : > { %439 = vmatpush.bf16.msra.mxu1 %v716_v29 }
  0x32   : > { %547 = vmatpush.bf16.msra.mxu2 %v780_v30  ;;  %565 = vmatpush.bf16.msra.mxu3 %v784_v31 }
  0x33   : > { %422 = vmatmul.bf16.vlgmr.msra.gmra.mxu0 %v861_v32 }
  0x34   : > { %440 = vmatmul.bf16.vlgmr.msra.gmra.mxu1 %v861_v32 }
  0x35   : > { %548 = vmatmul.bf16.vlgmr.msra.gmra.mxu2 %v844_v33  ;;  %566 = vmatmul.bf16.vlgmr.msra.gmra.mxu3 %v844_v33 }
  0x43   : > { %427 = vmatmul.bf16.gmra.mxu0 %v331_v38 }
  0x44   : > { %445 = vmatmul.bf16.gmra.mxu1 %v331_v38 }
  0x45   : > { %553 = vmatmul.bf16.gmra.mxu2 %v457_v39  ;;  %571 = vmatmul.bf16.gmra.mxu3 %v457_v39 }
  0xb0   : > { %v423_v40 = vpop.f32.mrf.mxu0 }
  0xb1   : > { %v441_v41 = vpop.f32.mrf.mxu1 }
  0xb8   : > { %v549_v44 = vpop.f32.mrf.mxu2  ;;  %v567_v47 = vpop.f32.mrf.mxu3 }
  0xb9   : > { %v550_v46 = vadd.f32 %v549_v44, %v423_v40  ;;  %v425_v48 = vpop.f32.mrf.mxu0  ;;  %v568_v49 = vadd.f32 %v567_v47, %v441_v41  ;;  %v443_v50 = vpop.f32.mrf.mxu1 }
  0xbb   : > { %v582_v51 = vadd.f32 %v578_v43, %v550_v46  ;;  %v583_v52 = vadd.f32 %v579_v45, %v568_v49 }
  0xbd   : > { %v588_v53 = vmax.f32 %v582_v51, 0.0  ;;  %v589_v54 = vmax.f32 %v583_v52, 0.0 }
  0xbf   : > { %v594_v55 = vpack.c.bf16 %v589_v54, %v588_v53 }
  0xc0   : > { %v551_v56 = vpop.f32.mrf.mxu2  ;;  %v569_v58 = vpop.f32.mrf.mxu3 }
  0xc1   : > { %v552_v57 = vadd.f32 %v551_v56, %v425_v48  ;;  %v428_v59 = vpop.f32.mrf.mxu0  ;;  %597 = vst [vmem:[%s284_s23] sm:$0xff] %v594_v55  ;;  %v570_v60 = vadd.f32 %v569_v58, %v443_v50  ;;  %v446_v61 = vpop.f32.mrf.mxu1 }
  0xc3   : > { %v584_v62 = vadd.f32 %v578_v43, %v552_v57  ;;  %v585_v63 = vadd.f32 %v579_v45, %v570_v60 }
  0xc5   : > { %v590_v0 = vmax.f32 %v584_v62, 0.0  ;;  %v591_v1 = vmax.f32 %v585_v63, 0.0 }
  0xc7   : > { %v595_v2 = vpack.c.bf16 %v591_v1, %v590_v0 }
  0xc8   : > { %v554_v3 = vpop.f32.mrf.mxu2  ;;  %v572_v5 = vpop.f32.mrf.mxu3 }
  0xc9   : > { %v555_v4 = vadd.f32 %v554_v3, %v428_v59  ;;  %v430_v6 = vpop.f32.mrf.mxu0  ;;  %598 = vst [vmem:[%s284_s23 + $0x8] sm:$0xff] %v595_v2  ;;  %v573_v7 = vadd.f32 %v572_v5, %v446_v61  ;;  %v448_v8 = vpop.f32.mrf.mxu1 }
  0xcb   : > { %v586_v9 = vadd.f32 %v578_v43, %v555_v4  ;;  %v587_v10 = vadd.f32 %v579_v45, %v573_v7 }
  0xcd   : > { %v592_v11 = vmax.f32 %v586_v9, 0.0  ;;  %v593_v12 = vmax.f32 %v587_v10, 0.0 }
  0xcf   : > { %v596_v13 = vpack.c.bf16 %v593_v12, %v592_v11 }
  0xd0   : > { %v556_v14 = vpop.f32.mrf.mxu2  ;;  %v574_v15 = vpop.f32.mrf.mxu3 }
  0xd1   : > { %599 = vst [vmem:[%s284_s23 + $0x10] sm:$0xff] %v596_v13 }
  0xd2 PF: > { %s17_s18 = sadd.s32 1, %s983_s18  }
  0xd3   : > { %p14_p7 = scmp.ge.s32.totalorder %s17_s18, 4  }
  0xd5   :  { %16 = sbr.rel (!%p14_p7) target bundleno = 2 (0x2), region = 82 }
  0xda   :  { %624 = vsyncpa [#allocation3], 1 }
  0xdb   :  { %626 = vsyncpa [#allocation3 + $0x1], 1 }
  0xdc   :  { %627 = vsyncpa [#allocation5], 1 }

// kernel: fwd.10
= control target key start
LH: loop header
LB: loop body
LE: loop exit
PB: predicated region body
PF: predicated region fallthrough
CT: control target
= control target key end

     0   :  { %s1531_s18 = smov [#allocation3]   ;;  %s1819_s0 = inlined_call_operand.vmem [shape: s32[3], index: 0, kind: input, shape index: {}]   ;;  %s1820_s1 = inlined_call_operand.vmem [shape: bf16[2,16,2048], index: 1, kind: input, shape index: {}]   ;;  %s1821_s2 = inlined_call_operand.vmem [shape: bf16[3,8,16], index: 2, kind: input, shape index: {}]   ;;  %s1822_s3 = inlined_call_operand.vmem [shape: bf16[3,8,16], index: 3, kind: input, shape index: {}]   ;;  %s1823_s4 = inlined_call_operand.vmem [shape: bf16[3,8,8,128], index: 4, kind: output, shape index: {}]  }
   0x1   :  { %s10_s17 = sshll.u32 %s1819_s0, 4  ;;  %s11_s17 = int_to_ptr.vmem [resolvable:$true] %s10_s17 }
   0x2   :  { %13 = dma.vmem_to_smem %s11_s17, 16, %s1531_s18, [#allocation2] }
   0x3   :  { %1525 = dma.done.wait [#allocation2], 16 }
   0x4   :  { %1526 = vsyncadd [#allocation2], 4294967280 }
   0x5   :  { %16 = sfence }
   0x6   :  { %s1576_s19 = smov 0  }
   0x7 LB: > { %s1333_s20 = sadd.s32 4294967295, %s1529_s19   ;;  %p1337_p0 = scmp.ge.s32.totalorder %s1529_s19, 1  ;;  %s1529_s19 = sphi %s1576_s19, %s22_s19  }
   0x8   : > { %p168_p1 = scmp.lt.s32.totalorder %s1529_s19, 4 }
   0xa   : > { %p169_p2 = pnand %p1337_p0, %p168_p1 }
   0xb   : > { %s201_s0 = sld [smem:[#allocation3 + %s1333_s20]] (!%p169_p2)  ;;  %p208_p3 = scmp.lt.s32.totalorder (!%p169_p2), %s1333_s20, 2 }
   0xc   : > { %172 = sbr.rel (%p169_p2) target bundleno = 283 (0x11b), region = 32 }
  0x11   : > { %v1532_v0 = vmov 0   ;;  %v1533_v1 = vmov 2   ;;  %s1825_s20 = smov (!%p208_p3, %s1333_s20), 2  ;;  %p202_p4 = scmp.lt.s32.totalorder %s201_s0, 1  ;;  %vm321_vm0 = vcmask 130048   ;;  %v1534_v28 = vmov 1  }
  0x12   : > { %1492 = vset.pattern.permute.xlu0 %v1532_v0  ;;  %1494 = vset.pattern.permute.xlu1 %v1533_v1  ;;  %s1340_s21 = sshll.u32 %s1825_s20, 2  ;;  %v1535_v42 = vmov 3   ;;  %v1536_v43 = vmov 4   ;;  %v1537_v50 = vmov 8   ;;  %v1538_v54 = vmov 6   ;;  %s1427_s6 = sshll.u32 %s1825_s20, 5 }
  0x13   : > { %s215_s24 = scalar_lea.vmem %s1822_s3, %s1340_s21  ;;  %s1827_s0 = smov (!%p202_p4, %s201_s0), 1  ;;  %1496 = vset.pattern.permute.xlu2 %v1536_v43  ;;  %v1539_v58 = vmov 5   ;;  %v1540_v59 = vmov 13   ;;  %v1541_v60 = vmov 9   ;;  %v1542_v61 = vmov 7  }
  0x14   : > { %v239_v2 = vld [vmem:[%s215_s24] sm:$0xf]  ;;  %s1426_s25 = sshll.u32 %s1827_s0, 7  ;;  %s211_s28 = scalar_lea.vmem %s1821_s2, %s1340_s21  ;;  %v1543_v62 = vmov 15   ;;  %v1544_v63 = vmov 11   ;;  %v1545_v0 = vmov 10  }
  0x15   : > { %v1590_v3 = vunpack.c.l.bf16 %v239_v2  ;;  %s1600_s5 = scalar_lea.vmem %s1820_s1, %s1426_s25  ;;  %v1608_v11 = vld [vmem:[%s211_s28] sm:$0xf]  ;;  %v1546_v1 = vmov 14   ;;  %v1547_v2 = vmov 12   ;;  %s220_s9 = scalar_lea.vmem %s1823_s4, %s1427_s6 }
  0x16   : > { %v1346_v4 = vld [vmem:[%s1600_s5] sm:$0xf]  ;;  %v1428_v6 = vld [vmem:[%s1600_s5 + $0x4] sm:$0xf]  ;;  %v1354_v9 = vld [vmem:[%s1600_s5 + $0x8] sm:$0xf] }
  0x17   : > { %543 = vperm.xlu0 %1492, %v1590_v3   ;;  %631 = vperm.xlu1 %1494, %v1590_v3   ;;  %v1436_v5 = vld [vmem:[%s1600_s5 + $0x3c] sm:$0xf0]  ;;  %v1348_v8 = vld [vmem:[%s1600_s5 + $0x40] sm:$0xf0]  ;;  %v1437_v10 = vld [vmem:[%s1600_s5 + $0x44] sm:$0xf0] }
  0x18   : > { %v1347_v7 = vor.u32 %v1436_v5, %v1346_v4  ;;  %v1351_v12 = vor.u32 %v1428_v6, %v1348_v8  ;;  %v1355_v13 = vor.u32 %v1437_v10, %v1354_v9  ;;  %v1429_v14 = vld [vmem:[%s1600_s5 + $0xc] sm:$0xf]  ;;  %v1370_v16 = vld [vmem:[%s1600_s5 + $0x18] sm:$0xf]  ;;  %v1362_v19 = vld [vmem:[%s1600_s5 + $0x10] sm:$0xf]  ;;  %719 = vperm.xlu2 %1496, %v1590_v3  }
  0x19   : > { %v1356_v15 = vld [vmem:[%s1600_s5 + $0x48] sm:$0xf0]  ;;  %v1439_v18 = vld [vmem:[%s1600_s5 + $0x54] sm:$0xf0]  ;;  %v1438_v20 = vld [vmem:[%s1600_s5 + $0x4c] sm:$0xf0] }
  0x1a   : > { %332 = vmatpush.bf16.msra.mxu0 %v1347_v7  ;;  %v1359_v17 = vor.u32 %v1429_v14, %v1356_v15  ;;  %345 = vmatpush.bf16.msra.mxu1 %v1351_v12  ;;  %v1371_v21 = vor.u32 %v1439_v18, %v1370_v16  ;;  %v1363_v22 = vor.u32 %v1438_v20, %v1362_v19  ;;  %v1431_v23 = vld [vmem:[%s1600_s5 + $0x1c] sm:$0xf]  ;;  %v1430_v25 = vld [vmem:[%s1600_s5 + $0x14] sm:$0xf]  ;;  %v1386_v29 = vld [vmem:[%s1600_s5 + $0x28] sm:$0xf] }
  0x1b   : > { %358 = vmatpush.bf16.msra.mxu2 %v1355_v13  ;;  %v1372_v24 = vld [vmem:[%s1600_s5 + $0x58] sm:$0xf0]  ;;  %v1364_v27 = vld [vmem:[%s1600_s5 + $0x50] sm:$0xf0]  ;;  %v1441_v30 = vld [vmem:[%s1600_s5 + $0x64] sm:$0xf0] }
  0x1c   : > { %371 = vmatpush.bf16.msra.mxu3 %v1359_v17  ;;  %v1375_v26 = vor.u32 %v1431_v23, %v1372_v24  ;;  %v1367_v31 = vor.u32 %v1430_v25, %v1364_v27  ;;  %v1387_v32 = vor.u32 %v1441_v30, %v1386_v29  ;;  %v1378_v33 = vld [vmem:[%s1600_s5 + $0x20] sm:$0xf]  ;;  %v1433_v35 = vld [vmem:[%s1600_s5 + $0x2c] sm:$0xf]  ;;  %v1432_v38 = vld [vmem:[%s1600_s5 + $0x24] sm:$0xf] }
  0x1d   : > { %1408 = vmatmul.msk.bf16.vlgmr.msra.gmra.mxu0 %vm321_vm0, %v1608_v11  ;;  %v1440_v34 = vld [vmem:[%s1600_s5 + $0x5c] sm:$0xf0]  ;;  %1409 = vmatmul.msk.bf16.vlgmr.msra.gmra.mxu1 %vm321_vm0, %v1608_v11  ;;  %v1388_v37 = vld [vmem:[%s1600_s5 + $0x68] sm:$0xf0]  ;;  %v1380_v39 = vld [vmem:[%s1600_s5 + $0x60] sm:$0xf0] }
  0x1e   : > { %1410 = vmatmul.msk.bf16.vlgmr.msra.gmra.mxu2 %vm321_vm0, %v1608_v11  ;;  %v1379_v36 = vor.u32 %v1440_v34, %v1378_v33  ;;  %384 = vmatpush.bf16.msrb.mxu0 %v1363_v22  ;;  %v1391_v40 = vor.u32 %v1433_v35, %v1388_v37  ;;  %v1383_v41 = vor.u32 %v1432_v38, %v1380_v39  ;;  %v1402_v44 = vld [vmem:[%s1600_s5 + $0x38] sm:$0xf]  ;;  %v1394_v46 = vld [vmem:[%s1600_s5 + $0x30] sm:$0xf]  ;;  %v1435_v48 = vld [vmem:[%s1600_s5 + $0x3c] sm:$0xf] }
  0x1f   : > { %1493 = vset.pattern.permute.xlu0 %v1534_v28  ;;  %410 = vmatpush.bf16.msrb.mxu2 %v1371_v21  ;;  %v1443_v45 = vld [vmem:[%s1600_s5 + $0x74] sm:$0xf0]  ;;  %v1442_v47 = vld [vmem:[%s1600_s5 + $0x6c] sm:$0xf0]  ;;  %v1404_v49 = vld [vmem:[%s1600_s5 + $0x78] sm:$0xf0] }
  0x20   : > { %1411 = vmatmul.msk.bf16.vlgmr.msra.gmra.mxu3 %vm321_vm0, %v1608_v11  ;;  %397 = vmatpush.bf16.msrb.mxu1 %v1367_v31  ;;  %v1434_v51 = vld [vmem:[%s1600_s5 + $0x34] sm:$0xf]  ;;  %v1403_v53 = vor.u32 %v1443_v45, %v1402_v44  ;;  %v1395_v55 = vor.u32 %v1442_v47, %v1394_v46  ;;  %v1407_v56 = vor.u32 %v1435_v48, %v1404_v49 }
  0x21   : > { %423 = vmatpush.bf16.msrb.mxu3 %v1375_v26  ;;  %587 = vperm.xlu0 %1493, %v1590_v3   ;;  %v1396_v52 = vld [vmem:[%s1600_s5 + $0x70] sm:$0xf0] }
  0x22   : > { %436 = vmatpush.bf16.msra.mxu0 %v1379_v36  ;;  %1495 = vset.pattern.permute.xlu1 %v1535_v42  ;;  %v1399_v57 = vor.u32 %v1434_v51, %v1396_v52 }
  0x23   : > { %462 = vmatpush.bf16.msra.mxu2 %v1387_v32  ;;  %675 = vperm.xlu1 %1495, %v1590_v3  }
  0x24   : > { %449 = vmatpush.bf16.msra.mxu1 %v1383_v41  ;;  %1497 = vset.pattern.permute.xlu2 %v1539_v58 }
  0x25   : > { %475 = vmatpush.bf16.msra.mxu3 %v1391_v40  ;;  %763 = vperm.xlu2 %1497, %v1590_v3  }
  0x29   : > { %1500 = vset.pattern.permute.xlu0 %v1537_v50 }
  0x2a   : > { %895 = vperm.xlu0 %1500, %v1590_v3  }
  0x2b   : > { %1498 = vset.pattern.permute.xlu1 %v1538_v54 }
  0x2c   : > { %807 = vperm.xlu1 %1498, %v1590_v3  }
  0x2d   : > { %1412 = vmatmul.msk.bf16.vlgmr.msrb.gmra.mxu0 %vm321_vm0, %v1608_v11  ;;  %1413 = vmatmul.msk.bf16.vlgmr.msrb.gmra.mxu1 %vm321_vm0, %v1608_v11 }
  0x2e   : > { %1414 = vmatmul.msk.bf16.vlgmr.msrb.gmra.mxu2 %vm321_vm0, %v1608_v11  ;;  %488 = vmatpush.bf16.msrb.mxu0 %v1395_v55 }
  0x2f   : > { %514 = vmatpush.bf16.msrb.mxu2 %v1403_v53  ;;  %501 = vmatpush.bf16.msrb.mxu1 %v1399_v57 }
  0x30   : > { %1415 = vmatmul.msk.bf16.vlgmr.msrb.gmra.mxu3 %vm321_vm0, %v1608_v11  ;;  %1499 = vset.pattern.permute.xlu2 %v1542_v61 }
  0x31   : > { %527 = vmatpush.bf16.msrb.mxu3 %v1407_v56  ;;  %851 = vperm.xlu2 %1499, %v1590_v3  }
  0x32   : > { %1505 = vset.pattern.permute.xlu0 %v1540_v59 }
  0x33   : > { %1115 = vperm.xlu0 %1505, %v1590_v3  }
  0x34   : > { %1501 = vset.pattern.permute.xlu1 %v1541_v60 }
  0x35   : > { %939 = vperm.xlu1 %1501, %v1590_v3  }
  0x39   : > { %1502 = vset.pattern.permute.xlu2 %v1545_v0 }
  0x3a   : > { %983 = vperm.xlu2 %1502, %v1590_v3  }
  0x3b   : > { %1508 = vset.pattern.permute.xlu0 %v1543_v62 }
  0x3d   : > { %1416 = vmatmul.msk.bf16.vlgmr.msra.gmra.mxu0 %vm321_vm0, %v1608_v11  ;;  %1417 = vmatmul.msk.bf16.vlgmr.msra.gmra.mxu1 %vm321_vm0, %v1608_v11 }
  0x3e   : > { %1418 = vmatmul.msk.bf16.vlgmr.msra.gmra.mxu2 %vm321_vm0, %v1608_v11  ;;  %1503 = vset.pattern.permute.xlu1 %v1544_v63 }
  0x3f   : > { %1027 = vperm.xlu1 %1503, %v1590_v3  }
  0x40   : > { %1419 = vmatmul.msk.bf16.vlgmr.msra.gmra.mxu3 %vm321_vm0, %v1608_v11 }
  0x42   : > { %1504 = vset.pattern.permute.xlu2 %v1547_v2 }
  0x43   : > { %1071 = vperm.xlu2 %1504, %v1590_v3  }
  0x47   : > { %1506 = vset.pattern.permute.xlu1 %v1546_v1 }
  0x48   : > { %1159 = vperm.xlu1 %1506, %v1590_v3  }
  0x4b   : > { %1507 = vset.pattern.permute.xlu2 %v1543_v62 }
  0x4c   : > { %1203 = vperm.xlu2 %1507, %v1590_v3  }
  0x4d   : > { %1420 = vmatmul.msk.bf16.vlgmr.msrb.gmra.mxu0 %vm321_vm0, %v1608_v11  ;;  %1421 = vmatmul.msk.bf16.vlgmr.msrb.gmra.mxu1 %vm321_vm0, %v1608_v11 }
  0x4e   : > { %1422 = vmatmul.msk.bf16.vlgmr.msrb.gmra.mxu2 %vm321_vm0, %v1608_v11 }
  0x50   : > { %1423 = vmatmul.msk.bf16.vlgmr.msrb.gmra.mxu3 %vm321_vm0, %v1608_v11 }
  0x89   : > { %v544_v4 = vpop.permute.xlu0 %543  ;;  %v632_v59 = vpop.permute.xlu1 %631 }
  0x93   : > { %v588_v34 = vpop.permute.xlu0 %587 }
  0x9a   : > { %v334_v5 = vpop.f32.mrf.mxu0  ;;  %v347_v10 = vpop.f32.mrf.mxu1 }
  0x9b   : > { %v534_v6 = vrot.slane %v334_v5, 1  ;;  %v535_v7 = vrot.slane %v334_v5, 2  ;;  %v536_v8 = vrot.slane %v334_v5, 3  ;;  %v537_v9 = vrot.slane %v334_v5, 4 }
  0x9c   : > { %v538_v12 = vrot.slane %v334_v5, 5  ;;  %v539_v13 = vrot.slane %v334_v5, 6  ;;  %v540_v14 = vrot.slane %v334_v5, 7  ;;  %v546_v15 = vperm.slane %v334_v5, 0 }
  0x9d   : > { %v547_v16 = vperm.slane %v534_v6, 0  ;;  %v548_v17 = vperm.slane %v535_v7, 0  ;;  %v549_v18 = vperm.slane %v536_v8, 0  ;;  %v550_v19 = vperm.slane %v537_v9, 0 }
  0x9e   : > { %v551_v20 = vperm.slane %v538_v12, 0  ;;  %v552_v11 = vperm.slane %v539_v13, 0  ;;  %v553_v21 = vperm.slane %v540_v14, 0  ;;  %v562_v22 = vmul.f32 %v546_v15, %v544_v4 }
  0x9f   : > { %v563_v3 = vmul.f32 %v547_v16, %v544_v4  ;;  %v564_v23 = vmul.f32 %v548_v17, %v544_v4  ;;  %v565_v24 = vmul.f32 %v549_v18, %v544_v4  ;;  %v566_v25 = vmul.f32 %v550_v19, %v544_v4 }
  0xa0   : > { %v567_v26 = vmul.f32 %v551_v20, %v544_v4  ;;  %v568_v27 = vmul.f32 %v552_v11, %v544_v4  ;;  %v569_v28 = vmul.f32 %v553_v21, %v544_v4  ;;  %v579_v29 = vrot.slane %v347_v10, 1 }
  0xa1   : > { %v580_v30 = vrot.slane %v347_v10, 2  ;;  %v581_v31 = vrot.slane %v347_v10, 3  ;;  %v582_v32 = vrot.slane %v347_v10, 4  ;;  %v583_v33 = vrot.slane %v347_v10, 5  ;;  %v360_v35 = vpop.f32.mrf.mxu2 }
  0xa2   : > { %v584_v36 = vrot.slane %v347_v10, 6  ;;  %v585_v37 = vrot.slane %v347_v10, 7  ;;  %v590_v38 = vperm.slane %v347_v10, 0  ;;  %v591_v39 = vperm.slane %v579_v29, 0  ;;  %v336_v41 = vpop.f32.mrf.mxu0  ;;  %v349_v46 = vpop.f32.mrf.mxu1 }
  0xa3   : > { %v1682_v40 = vpop.f32.mrf.mxu3  ;;  %v592_v42 = vperm.slane %v580_v30, 0  ;;  %v593_v43 = vperm.slane %v581_v31, 0  ;;  %v594_v44 = vperm.slane %v582_v32, 0  ;;  %v595_v45 = vperm.slane %v583_v33, 0 }
  0xa4   : > { %v596_v47 = vperm.slane %v584_v36, 0  ;;  %v597_v48 = vperm.slane %v585_v37, 0  ;;  %v606_v49 = vmul.f32 %v590_v38, %v588_v34  ;;  %v607_v50 = vmul.f32 %v591_v39, %v588_v34 }
  0xa5   : > { %v608_v51 = vmul.f32 %v592_v42, %v588_v34  ;;  %v609_v52 = vmul.f32 %v593_v43, %v588_v34  ;;  %v610_v53 = vmul.f32 %v594_v44, %v588_v34  ;;  %v611_v54 = vmul.f32 %v595_v45, %v588_v34  ;;  %v676_v45 = vpop.permute.xlu1 %675 }
  0xa6   : > { %v612_v55 = vmul.f32 %v596_v47, %v588_v34  ;;  %v613_v56 = vmul.f32 %v597_v48, %v588_v34  ;;  %v614_v57 = vadd.f32 %v606_v49, %v562_v22  ;;  %v615_v58 = vadd.f32 %v607_v50, %v563_v3 }
  0xa7   : > { %v616_v60 = vadd.f32 %v608_v51, %v564_v23  ;;  %v617_v61 = vadd.f32 %v609_v52, %v565_v24  ;;  %v618_v62 = vadd.f32 %v610_v53, %v566_v25  ;;  %v619_v63 = vadd.f32 %v611_v54, %v567_v26 }
  0xa8   : > { %v620_v0 = vadd.f32 %v612_v55, %v568_v27  ;;  %v621_v1 = vadd.f32 %v613_v56, %v569_v28  ;;  %v623_v2 = vrot.slane %v360_v35, 1  ;;  %v624_v4 = vrot.slane %v360_v35, 2 }
  0xa9   : > { %v625_v5 = vrot.slane %v360_v35, 3  ;;  %v626_v6 = vrot.slane %v360_v35, 4  ;;  %v627_v7 = vrot.slane %v360_v35, 5  ;;  %v628_v8 = vrot.slane %v360_v35, 6  ;;  %v362_v9 = vpop.f32.mrf.mxu2 }
  0xaa   : > { %v629_v10 = vrot.slane %v360_v35, 7  ;;  %v634_v12 = vperm.slane %v360_v35, 0  ;;  %v635_v13 = vperm.slane %v623_v2, 0  ;;  %v636_v14 = vperm.slane %v624_v4, 0  ;;  %v1684_v16 = vpop.f32.mrf.mxu0  ;;  %v1686_v11 = vpop.f32.mrf.mxu1 }
  0xab   : > { %v375_v15 = vpop.f32.mrf.mxu3  ;;  %v637_v17 = vperm.slane %v625_v5, 0  ;;  %v638_v18 = vperm.slane %v626_v6, 0  ;;  %v639_v19 = vperm.slane %v627_v7, 0  ;;  %v640_v20 = vperm.slane %v628_v8, 0 }
  0xac   : > { %v641_v21 = vperm.slane %v629_v10, 0  ;;  %v650_v22 = vmul.f32 %v634_v12, %v632_v59  ;;  %v651_v3 = vmul.f32 %v635_v13, %v632_v59  ;;  %v652_v23 = vmul.f32 %v636_v14, %v632_v59 }
  0xad   : > { %v653_v24 = vmul.f32 %v637_v17, %v632_v59  ;;  %v654_v25 = vmul.f32 %v638_v18, %v632_v59  ;;  %v655_v26 = vmul.f32 %v639_v19, %v632_v59  ;;  %v656_v27 = vmul.f32 %v640_v20, %v632_v59 }
  0xae   : > { %v657_v28 = vmul.f32 %v641_v21, %v632_v59  ;;  %v667_v29 = vrot.slane %v1682_v40, 1  ;;  %v668_v30 = vrot.slane %v1682_v40, 2  ;;  %v669_v31 = vrot.slane %v1682_v40, 3 }
  0xaf   : > { %v670_v32 = vrot.slane %v1682_v40, 4  ;;  %v671_v33 = vrot.slane %v1682_v40, 5  ;;  %v672_v34 = vrot.slane %v1682_v40, 6  ;;  %v673_v35 = vrot.slane %v1682_v40, 7 }
  0xb0   : > { %v678_v36 = vperm.slane %v1682_v40, 0  ;;  %v679_v37 = vperm.slane %v667_v29, 0  ;;  %v680_v38 = vperm.slane %v668_v30, 0  ;;  %v681_v39 = vperm.slane %v669_v31, 0 }
  0xb1   : > { %v682_v41 = vperm.slane %v670_v32, 0  ;;  %v683_v42 = vperm.slane %v671_v33, 0  ;;  %v684_v43 = vperm.slane %v672_v34, 0  ;;  %v685_v44 = vperm.slane %v673_v35, 0  ;;  %v1696_v46 = vpop.f32.mrf.mxu2 }
  0xb2   : > { %v658_v47 = vadd.f32 %v650_v22, %v614_v57  ;;  %v659_v48 = vadd.f32 %v651_v3, %v615_v58  ;;  %v660_v49 = vadd.f32 %v652_v23, %v616_v60  ;;  %v661_v50 = vadd.f32 %v653_v24, %v617_v61  ;;  %v388_v52 = vpop.f32.mrf.mxu0  ;;  %v401_v56 = vpop.f32.mrf.mxu1 }
  0xb3   : > { %v1698_v51 = vpop.f32.mrf.mxu3  ;;  %v662_v53 = vadd.f32 %v654_v25, %v618_v62  ;;  %v663_v54 = vadd.f32 %v655_v26, %v619_v63  ;;  %v664_v40 = vadd.f32 %v656_v27, %v620_v0  ;;  %v665_v55 = vadd.f32 %v657_v28, %v621_v1  ;;  %v720_v63 = vpop.permute.xlu2 %719 }
  0xb4   : > { %v694_v59 = vmul.f32 %v678_v36, %v676_v45  ;;  %v695_v2 = vmul.f32 %v679_v37, %v676_v45  ;;  %v696_v4 = vmul.f32 %v680_v38, %v676_v45  ;;  %v697_v5 = vmul.f32 %v681_v39, %v676_v45 }
  0xb5   : > { %v698_v6 = vmul.f32 %v682_v41, %v676_v45  ;;  %v699_v7 = vmul.f32 %v683_v42, %v676_v45  ;;  %v700_v8 = vmul.f32 %v684_v43, %v676_v45  ;;  %v701_v9 = vmul.f32 %v685_v44, %v676_v45 }
  0xb6   : > { %v702_v57 = vadd.f32 %v694_v59, %v658_v47  ;;  %v703_v58 = vadd.f32 %v695_v2, %v659_v48  ;;  %v704_v60 = vadd.f32 %v696_v4, %v660_v49  ;;  %v705_v61 = vadd.f32 %v697_v5, %v661_v50 }
  0xb7   : > { %v706_v10 = vadd.f32 %v698_v6, %v662_v53  ;;  %v707_v12 = vadd.f32 %v699_v7, %v663_v54  ;;  %v708_v13 = vadd.f32 %v700_v8, %v664_v40  ;;  %v709_v62 = vadd.f32 %v701_v9, %v665_v55 }
  0xb8   : > { %v711_v0 = vrot.slane %v1684_v16, 1  ;;  %v712_v1 = vrot.slane %v1684_v16, 2  ;;  %v713_v14 = vrot.slane %v1684_v16, 3  ;;  %v714_v15 = vrot.slane %v1684_v16, 4 }
  0xb9   : > { %v715_v17 = vrot.slane %v1684_v16, 5  ;;  %v716_v18 = vrot.slane %v1684_v16, 6  ;;  %v717_v19 = vrot.slane %v1684_v16, 7  ;;  %v722_v20 = vperm.slane %v1684_v16, 0  ;;  %v414_v21 = vpop.f32.mrf.mxu2 }
  0xba   : > { %v723_v22 = vperm.slane %v711_v0, 0  ;;  %v724_v3 = vperm.slane %v712_v1, 0  ;;  %v725_v23 = vperm.slane %v713_v14, 0  ;;  %v726_v24 = vperm.slane %v714_v15, 0  ;;  %v1708_v26 = vpop.f32.mrf.mxu0  ;;  %v1710_v31 = vpop.f32.mrf.mxu1 }
  0xbb   : > { %v427_v25 = vpop.f32.mrf.mxu3  ;;  %v727_v27 = vperm.slane %v715_v17, 0  ;;  %v728_v28 = vperm.slane %v716_v18, 0  ;;  %v729_v29 = vperm.slane %v717_v19, 0  ;;  %v738_v30 = vmul.f32 %v722_v20, %v720_v63  ;;  %v764_v59 = vpop.permute.xlu2 %763 }
  0xbc   : > { %v739_v32 = vmul.f32 %v723_v22, %v720_v63  ;;  %v740_v33 = vmul.f32 %v724_v3, %v720_v63  ;;  %v741_v34 = vmul.f32 %v725_v23, %v720_v63  ;;  %v742_v35 = vmul.f32 %v726_v24, %v720_v63 }
  0xbd   : > { %v743_v36 = vmul.f32 %v727_v27, %v720_v63  ;;  %v744_v16 = vmul.f32 %v728_v28, %v720_v63  ;;  %v745_v37 = vmul.f32 %v729_v29, %v720_v63  ;;  %v755_v38 = vrot.slane %v1686_v11, 1 }
  0xbe   : > { %v756_v39 = vrot.slane %v1686_v11, 2  ;;  %v757_v41 = vrot.slane %v1686_v11, 3  ;;  %v758_v42 = vrot.slane %v1686_v11, 4  ;;  %v759_v43 = vrot.slane %v1686_v11, 5 }
  0xbf   : > { %v760_v44 = vrot.slane %v1686_v11, 6  ;;  %v761_v45 = vrot.slane %v1686_v11, 7  ;;  %v766_v47 = vperm.slane %v1686_v11, 0  ;;  %v767_v48 = vperm.slane %v755_v38, 0 }
  0xc0   : > { %v768_v49 = vperm.slane %v756_v39, 0  ;;  %v769_v50 = vperm.slane %v757_v41, 0  ;;  %v770_v52 = vperm.slane %v758_v42, 0  ;;  %v771_v53 = vperm.slane %v759_v43, 0 }
  0xc1   : > { %v772_v54 = vperm.slane %v760_v44, 0  ;;  %v773_v40 = vperm.slane %v761_v45, 0  ;;  %v746_v55 = vadd.f32 %v738_v30, %v702_v57  ;;  %v747_v56 = vadd.f32 %v739_v32, %v703_v58  ;;  %v1720_v11 = vpop.f32.mrf.mxu2  ;;  %v808_v45 = vpop.permute.xlu1 %807 }
  0xc2   : > { %v748_v2 = vadd.f32 %v740_v33, %v704_v60  ;;  %v749_v4 = vadd.f32 %v741_v34, %v705_v61  ;;  %v750_v5 = vadd.f32 %v742_v35, %v706_v10  ;;  %v751_v6 = vadd.f32 %v743_v36, %v707_v12  ;;  %v440_v7 = vpop.f32.mrf.mxu0  ;;  %v453_v1 = vpop.f32.mrf.mxu1 }
  0xc3   : > { %v752_v8 = vadd.f32 %v744_v16, %v708_v13  ;;  %v753_v9 = vadd.f32 %v745_v37, %v709_v62  ;;  %v782_v63 = vmul.f32 %v766_v47, %v764_v59  ;;  %v783_v0 = vmul.f32 %v767_v48, %v764_v59  ;;  %v1722_v60 = vpop.f32.mrf.mxu3 }
  0xc4   : > { %v784_v14 = vmul.f32 %v768_v49, %v764_v59  ;;  %v785_v15 = vmul.f32 %v769_v50, %v764_v59  ;;  %v786_v17 = vmul.f32 %v770_v52, %v764_v59  ;;  %v787_v18 = vmul.f32 %v771_v53, %v764_v59 }
  0xc5   : > { %v788_v19 = vmul.f32 %v772_v54, %v764_v59  ;;  %v789_v57 = vmul.f32 %v773_v40, %v764_v59  ;;  %v790_v58 = vadd.f32 %v782_v63, %v746_v55  ;;  %v791_v20 = vadd.f32 %v783_v0, %v747_v56 }
  0xc6   : > { %v792_v61 = vadd.f32 %v784_v14, %v748_v2  ;;  %v793_v10 = vadd.f32 %v785_v15, %v749_v4  ;;  %v794_v12 = vadd.f32 %v786_v17, %v750_v5  ;;  %v795_v13 = vadd.f32 %v787_v18, %v751_v6 }
  0xc7   : > { %v796_v62 = vadd.f32 %v788_v19, %v752_v8  ;;  %v797_v21 = vadd.f32 %v789_v57, %v753_v9  ;;  %v799_v22 = vrot.slane %v1696_v46, 1  ;;  %v800_v3 = vrot.slane %v1696_v46, 2  ;;  %v852_v9 = vpop.permute.xlu2 %851 }
  0xc8   : > { %v801_v23 = vrot.slane %v1696_v46, 3  ;;  %v802_v24 = vrot.slane %v1696_v46, 4  ;;  %v803_v25 = vrot.slane %v1696_v46, 5  ;;  %v804_v27 = vrot.slane %v1696_v46, 6 }
  0xc9   : > { %v805_v28 = vrot.slane %v1696_v46, 7  ;;  %v810_v29 = vperm.slane %v1696_v46, 0  ;;  %v811_v30 = vperm.slane %v799_v22, 0  ;;  %v812_v32 = vperm.slane %v800_v3, 0  ;;  %v466_v41 = vpop.f32.mrf.mxu2 }
  0xca   : > { %v813_v33 = vperm.slane %v801_v23, 0  ;;  %v814_v34 = vperm.slane %v802_v24, 0  ;;  %v815_v35 = vperm.slane %v803_v25, 0  ;;  %v816_v36 = vperm.slane %v804_v27, 0  ;;  %v1740_v23 = vpop.f32.mrf.mxu0 }
  0xcb   : > { %v817_v16 = vperm.slane %v805_v28, 0  ;;  %v843_v37 = vrot.slane %v1698_v51, 1  ;;  %v844_v38 = vrot.slane %v1698_v51, 2  ;;  %v845_v39 = vrot.slane %v1698_v51, 3  ;;  %v479_v52 = vpop.f32.mrf.mxu3 }
  0xcc   : > { %v846_v42 = vrot.slane %v1698_v51, 4  ;;  %v847_v43 = vrot.slane %v1698_v51, 5  ;;  %v848_v46 = vrot.slane %v1698_v51, 6  ;;  %v849_v44 = vrot.slane %v1698_v51, 7 }
  0xcd   : > { %v854_v47 = vperm.slane %v1698_v51, 0  ;;  %v855_v48 = vperm.slane %v843_v37, 0  ;;  %v856_v49 = vperm.slane %v844_v38, 0  ;;  %v857_v50 = vperm.slane %v845_v39, 0 }
  0xce   : > { %v858_v53 = vperm.slane %v846_v42, 0  ;;  %v859_v54 = vperm.slane %v847_v43, 0  ;;  %v860_v40 = vperm.slane %v848_v46, 0  ;;  %v861_v55 = vperm.slane %v849_v44, 0 }
  0xcf   : > { %v826_v56 = vmul.f32 %v810_v29, %v808_v45  ;;  %v827_v59 = vmul.f32 %v811_v30, %v808_v45  ;;  %v828_v2 = vmul.f32 %v812_v32, %v808_v45  ;;  %v829_v4 = vmul.f32 %v813_v33, %v808_v45 }
  0xd0   : > { %v830_v5 = vmul.f32 %v814_v34, %v808_v45  ;;  %v831_v6 = vmul.f32 %v815_v35, %v808_v45  ;;  %v832_v7 = vmul.f32 %v816_v36, %v808_v45  ;;  %v833_v8 = vmul.f32 %v817_v16, %v808_v45  ;;  %v1746_v34 = vpop.f32.mrf.mxu1 }
  0xd1   : > { %v834_v63 = vadd.f32 %v826_v56, %v790_v58  ;;  %v835_v0 = vadd.f32 %v827_v59, %v791_v20  ;;  %v836_v51 = vadd.f32 %v828_v2, %v792_v61  ;;  %v837_v1 = vadd.f32 %v829_v4, %v793_v10  ;;  %v940_v4 = vpop.permute.xlu1 %939 }
  0xd2   : > { %v838_v14 = vadd.f32 %v830_v5, %v794_v12  ;;  %v839_v15 = vadd.f32 %v831_v6, %v795_v13  ;;  %v840_v17 = vadd.f32 %v832_v7, %v796_v62  ;;  %v841_v18 = vadd.f32 %v833_v8, %v797_v21  ;;  %v492_v52 = vpop.f32.mrf.mxu0  ;;  %v896_v5 = vpop.permute.xlu0 %895 }
  0xd3   : > { %v870_v19 = vmul.f32 %v854_v47, %v852_v9  ;;  %v871_v57 = vmul.f32 %v855_v48, %v852_v9  ;;  %v872_v22 = vmul.f32 %v856_v49, %v852_v9  ;;  %v873_v3 = vmul.f32 %v857_v50, %v852_v9 }
  0xd4   : > { %v874_v24 = vmul.f32 %v858_v53, %v852_v9  ;;  %v875_v25 = vmul.f32 %v859_v54, %v852_v9  ;;  %v876_v27 = vmul.f32 %v860_v40, %v852_v9  ;;  %v877_v28 = vmul.f32 %v861_v55, %v852_v9 }
  0xd5   : > { %v878_v29 = vadd.f32 %v870_v19, %v834_v63  ;;  %v879_v30 = vadd.f32 %v871_v57, %v835_v0  ;;  %v880_v58 = vadd.f32 %v872_v22, %v836_v51  ;;  %v881_v20 = vadd.f32 %v873_v3, %v837_v1 }
  0xd6   : > { %v882_v61 = vadd.f32 %v874_v24, %v838_v14  ;;  %v883_v10 = vadd.f32 %v875_v25, %v839_v15  ;;  %v884_v12 = vadd.f32 %v876_v27, %v840_v17  ;;  %v885_v13 = vadd.f32 %v877_v28, %v841_v18 }
  0xd7   : > { %v887_v62 = vrot.slane %v1708_v26, 1  ;;  %v888_v21 = vrot.slane %v1708_v26, 2  ;;  %v889_v32 = vrot.slane %v1708_v26, 3  ;;  %v890_v33 = vrot.slane %v1708_v26, 4 }
  0xd8   : > { %v891_v35 = vrot.slane %v1708_v26, 5  ;;  %v892_v36 = vrot.slane %v1708_v26, 6  ;;  %v893_v16 = vrot.slane %v1708_v26, 7  ;;  %v898_v37 = vperm.slane %v1708_v26, 0  ;;  %v505_v14 = vpop.f32.mrf.mxu1 }
  0xd9   : > { %v899_v38 = vperm.slane %v887_v62, 0  ;;  %v900_v39 = vperm.slane %v888_v21, 0  ;;  %v901_v41 = vperm.slane %v889_v32, 0  ;;  %v902_v42 = vperm.slane %v890_v33, 0  ;;  %v1760_v62 = vpop.f32.mrf.mxu2  ;;  %v1762_v21 = vpop.f32.mrf.mxu3 }
  0xda   : > { %v903_v43 = vperm.slane %v891_v35, 0  ;;  %v904_v46 = vperm.slane %v892_v36, 0  ;;  %v905_v44 = vperm.slane %v893_v16, 0  ;;  %v931_v45 = vrot.slane %v1710_v31, 1 }
  0xdb   : > { %v932_v47 = vrot.slane %v1710_v31, 2  ;;  %v933_v48 = vrot.slane %v1710_v31, 3  ;;  %v934_v49 = vrot.slane %v1710_v31, 4  ;;  %v935_v50 = vrot.slane %v1710_v31, 5 }
  0xdc   : > { %v936_v26 = vrot.slane %v1710_v31, 6  ;;  %v937_v53 = vrot.slane %v1710_v31, 7  ;;  %v942_v54 = vperm.slane %v1710_v31, 0  ;;  %v943_v40 = vperm.slane %v931_v45, 0 }
  0xdd   : > { %v944_v55 = vperm.slane %v932_v47, 0  ;;  %v945_v56 = vperm.slane %v933_v48, 0  ;;  %v946_v59 = vperm.slane %v934_v49, 0  ;;  %v947_v2 = vperm.slane %v935_v50, 0 }
  0xde   : > { %v948_v6 = vperm.slane %v936_v26, 0  ;;  %v949_v7 = vperm.slane %v937_v53, 0  ;;  %v958_v8 = vmul.f32 %v942_v54, %v940_v4  ;;  %v959_v9 = vmul.f32 %v943_v40, %v940_v4 }
  0xdf   : > { %v960_v63 = vmul.f32 %v944_v55, %v940_v4  ;;  %v961_v0 = vmul.f32 %v945_v56, %v940_v4  ;;  %v962_v51 = vmul.f32 %v946_v59, %v940_v4  ;;  %v963_v1 = vmul.f32 %v947_v2, %v940_v4 }
  0xe0   : > { %v964_v15 = vmul.f32 %v948_v6, %v940_v4  ;;  %v965_v17 = vmul.f32 %v949_v7, %v940_v4  ;;  %v914_v18 = vmul.f32 %v898_v37, %v896_v5  ;;  %v915_v31 = vmul.f32 %v899_v38, %v896_v5 }
  0xe1   : > { %v916_v19 = vmul.f32 %v900_v39, %v896_v5  ;;  %v917_v57 = vmul.f32 %v901_v41, %v896_v5  ;;  %v918_v22 = vmul.f32 %v902_v42, %v896_v5  ;;  %v919_v3 = vmul.f32 %v903_v43, %v896_v5  ;;  %v518_v55 = vpop.f32.mrf.mxu2  ;;  %v531_v6 = vpop.f32.mrf.mxu3 }
  0xe2   : > { %v920_v24 = vmul.f32 %v904_v46, %v896_v5  ;;  %v921_v25 = vmul.f32 %v905_v44, %v896_v5  ;;  %v922_v27 = vadd.f32 %v914_v18, %v878_v29  ;;  %v923_v28 = vadd.f32 %v915_v31, %v879_v30  ;;  %v984_v5 = vpop.permute.xlu2 %983 }
  0xe3   : > { %v924_v32 = vadd.f32 %v916_v19, %v880_v58  ;;  %v925_v33 = vadd.f32 %v917_v57, %v881_v20  ;;  %v926_v35 = vadd.f32 %v918_v22, %v882_v61  ;;  %v927_v36 = vadd.f32 %v919_v3, %v883_v10 }
  0xe4   : > { %v928_v16 = vadd.f32 %v920_v24, %v884_v12  ;;  %v929_v45 = vadd.f32 %v921_v25, %v885_v13  ;;  %v975_v37 = vrot.slane %v1720_v11, 1  ;;  %v976_v38 = vrot.slane %v1720_v11, 2 }
  0xe5   : > { %v977_v39 = vrot.slane %v1720_v11, 3  ;;  %v978_v41 = vrot.slane %v1720_v11, 4  ;;  %v979_v29 = vrot.slane %v1720_v11, 5  ;;  %v980_v30 = vrot.slane %v1720_v11, 6 }
  0xe6   : > { %v981_v42 = vrot.slane %v1720_v11, 7  ;;  %v986_v58 = vperm.slane %v1720_v11, 0  ;;  %v987_v20 = vperm.slane %v975_v37, 0  ;;  %v988_v61 = vperm.slane %v976_v38, 0 }
  0xe7   : > { %v989_v10 = vperm.slane %v977_v39, 0  ;;  %v990_v12 = vperm.slane %v978_v41, 0  ;;  %v991_v13 = vperm.slane %v979_v29, 0  ;;  %v992_v43 = vperm.slane %v980_v30, 0  ;;  %v1028_v30 = vpop.permute.xlu1 %1027 }
  0xe8   : > { %v993_v46 = vperm.slane %v981_v42, 0  ;;  %v1019_v44 = vrot.slane %v1722_v60, 1  ;;  %v1020_v47 = vrot.slane %v1722_v60, 2  ;;  %v1021_v48 = vrot.slane %v1722_v60, 3 }
  0xe9   : > { %v1022_v49 = vrot.slane %v1722_v60, 4  ;;  %v1023_v50 = vrot.slane %v1722_v60, 5  ;;  %v1024_v52 = vrot.slane %v1722_v60, 6  ;;  %v1025_v11 = vrot.slane %v1722_v60, 7 }
  0xea   : > { %v1030_v26 = vperm.slane %v1722_v60, 0  ;;  %v1031_v53 = vperm.slane %v1019_v44, 0  ;;  %v1032_v54 = vperm.slane %v1020_v47, 0  ;;  %v1033_v40 = vperm.slane %v1021_v48, 0 }
  0xeb   : > { %v1034_v56 = vperm.slane %v1022_v49, 0  ;;  %v1035_v59 = vperm.slane %v1023_v50, 0  ;;  %v1036_v2 = vperm.slane %v1024_v52, 0  ;;  %v1037_v4 = vperm.slane %v1025_v11, 0 }
  0xec   : > { %v966_v7 = vadd.f32 %v958_v8, %v922_v27  ;;  %v967_v14 = vadd.f32 %v959_v9, %v923_v28  ;;  %v968_v18 = vadd.f32 %v960_v63, %v924_v32  ;;  %v969_v31 = vadd.f32 %v961_v0, %v925_v33 }
  0xed   : > { %v970_v19 = vadd.f32 %v962_v51, %v926_v35  ;;  %v971_v57 = vadd.f32 %v963_v1, %v927_v36  ;;  %v972_v22 = vadd.f32 %v964_v15, %v928_v16  ;;  %v973_v3 = vadd.f32 %v965_v17, %v929_v45 }
  0xee   : > { %v1002_v24 = vmul.f32 %v986_v58, %v984_v5  ;;  %v1003_v60 = vmul.f32 %v987_v20, %v984_v5  ;;  %v1004_v25 = vmul.f32 %v988_v61, %v984_v5  ;;  %v1005_v37 = vmul.f32 %v989_v10, %v984_v5  ;;  %v1072_v20 = vpop.permute.xlu2 %1071 }
  0xef   : > { %v1006_v38 = vmul.f32 %v990_v12, %v984_v5  ;;  %v1007_v39 = vmul.f32 %v991_v13, %v984_v5  ;;  %v1008_v41 = vmul.f32 %v992_v43, %v984_v5  ;;  %v1009_v29 = vmul.f32 %v993_v46, %v984_v5 }
  0xf0   : > { %v1010_v42 = vadd.f32 %v1002_v24, %v966_v7  ;;  %v1011_v44 = vadd.f32 %v1003_v60, %v967_v14  ;;  %v1012_v47 = vadd.f32 %v1004_v25, %v968_v18  ;;  %v1013_v8 = vadd.f32 %v1005_v37, %v969_v31 }
  0xf1   : > { %v1014_v9 = vadd.f32 %v1006_v38, %v970_v19  ;;  %v1015_v63 = vadd.f32 %v1007_v39, %v971_v57  ;;  %v1016_v0 = vadd.f32 %v1008_v41, %v972_v22  ;;  %v1017_v51 = vadd.f32 %v1009_v29, %v973_v3  ;;  %v1116_v39 = vpop.permute.xlu0 %1115 }
  0xf2   : > { %v1046_v1 = vmul.f32 %v1030_v26, %v1028_v30  ;;  %v1047_v15 = vmul.f32 %v1031_v53, %v1028_v30  ;;  %v1048_v17 = vmul.f32 %v1032_v54, %v1028_v30  ;;  %v1049_v27 = vmul.f32 %v1033_v40, %v1028_v30 }
  0xf3   : > { %v1050_v28 = vmul.f32 %v1034_v56, %v1028_v30  ;;  %v1051_v32 = vmul.f32 %v1035_v59, %v1028_v30  ;;  %v1052_v33 = vmul.f32 %v1036_v2, %v1028_v30  ;;  %v1053_v35 = vmul.f32 %v1037_v4, %v1028_v30 }
  0xf4   : > { %v1063_v36 = vrot.slane %v1740_v23, 1  ;;  %v1064_v16 = vrot.slane %v1740_v23, 2  ;;  %v1065_v45 = vrot.slane %v1740_v23, 3  ;;  %v1066_v58 = vrot.slane %v1740_v23, 4 }
  0xf5   : > { %v1067_v61 = vrot.slane %v1740_v23, 5  ;;  %v1068_v10 = vrot.slane %v1740_v23, 6  ;;  %v1069_v12 = vrot.slane %v1740_v23, 7  ;;  %v1074_v13 = vperm.slane %v1740_v23, 0 }
  0xf6   : > { %v1075_v43 = vperm.slane %v1063_v36, 0  ;;  %v1076_v46 = vperm.slane %v1064_v16, 0  ;;  %v1077_v48 = vperm.slane %v1065_v45, 0  ;;  %v1078_v49 = vperm.slane %v1066_v58, 0 }
  0xf7   : > { %v1079_v50 = vperm.slane %v1067_v61, 0  ;;  %v1080_v52 = vperm.slane %v1068_v10, 0  ;;  %v1081_v11 = vperm.slane %v1069_v12, 0  ;;  %v1090_v26 = vmul.f32 %v1074_v13, %v1072_v20 }
  0xf8   : > { %v1091_v53 = vmul.f32 %v1075_v43, %v1072_v20  ;;  %v1092_v54 = vmul.f32 %v1076_v46, %v1072_v20  ;;  %v1093_v40 = vmul.f32 %v1077_v48, %v1072_v20  ;;  %v1094_v55 = vmul.f32 %v1078_v49, %v1072_v20  ;;  %v1160_v49 = vpop.permute.xlu1 %1159 }
  0xf9   : > { %v1095_v56 = vmul.f32 %v1079_v50, %v1072_v20  ;;  %v1096_v59 = vmul.f32 %v1080_v52, %v1072_v20  ;;  %v1097_v2 = vmul.f32 %v1081_v11, %v1072_v20  ;;  %v1054_v4 = vadd.f32 %v1046_v1, %v1010_v42 }
  0xfa   : > { %v1055_v5 = vadd.f32 %v1047_v15, %v1011_v44  ;;  %v1056_v6 = vadd.f32 %v1048_v17, %v1012_v47  ;;  %v1057_v7 = vadd.f32 %v1049_v27, %v1013_v8  ;;  %v1058_v23 = vadd.f32 %v1050_v28, %v1014_v9 }
  0xfb   : > { %v1059_v14 = vadd.f32 %v1051_v32, %v1015_v63  ;;  %v1060_v18 = vadd.f32 %v1052_v33, %v1016_v0  ;;  %v1061_v31 = vadd.f32 %v1053_v35, %v1017_v51  ;;  %v1098_v19 = vadd.f32 %v1090_v26, %v1054_v4 }
  0xfc   : > { %v1099_v57 = vadd.f32 %v1091_v53, %v1055_v5  ;;  %v1100_v22 = vadd.f32 %v1092_v54, %v1056_v6  ;;  %v1101_v3 = vadd.f32 %v1093_v40, %v1057_v7  ;;  %v1102_v24 = vadd.f32 %v1094_v55, %v1058_v23 }
  0xfd   : > { %v1103_v60 = vadd.f32 %v1095_v56, %v1059_v14  ;;  %v1104_v25 = vadd.f32 %v1096_v59, %v1060_v18  ;;  %v1105_v37 = vadd.f32 %v1097_v2, %v1061_v31  ;;  %v1107_v38 = vrot.slane %v1746_v34, 1 }
  0xfe   : > { %v1108_v41 = vrot.slane %v1746_v34, 2  ;;  %v1109_v29 = vrot.slane %v1746_v34, 3  ;;  %v1110_v30 = vrot.slane %v1746_v34, 4  ;;  %v1111_v42 = vrot.slane %v1746_v34, 5 }
  0xff   : > { %v1112_v44 = vrot.slane %v1746_v34, 6  ;;  %v1113_v47 = vrot.slane %v1746_v34, 7  ;;  %v1118_v8 = vperm.slane %v1746_v34, 0  ;;  %v1119_v9 = vperm.slane %v1107_v38, 0 }
 0x100   : > { %v1120_v63 = vperm.slane %v1108_v41, 0  ;;  %v1121_v0 = vperm.slane %v1109_v29, 0  ;;  %v1122_v51 = vperm.slane %v1110_v30, 0  ;;  %v1123_v1 = vperm.slane %v1111_v42, 0  ;;  %v1204_v30 = vpop.permute.xlu2 %1203 }
 0x101   : > { %v1124_v15 = vperm.slane %v1112_v44, 0  ;;  %v1125_v17 = vperm.slane %v1113_v47, 0  ;;  %v1134_v27 = vmul.f32 %v1118_v8, %v1116_v39  ;;  %v1135_v28 = vmul.f32 %v1119_v9, %v1116_v39 }
 0x102   : > { %v1136_v32 = vmul.f32 %v1120_v63, %v1116_v39  ;;  %v1137_v33 = vmul.f32 %v1121_v0, %v1116_v39  ;;  %v1138_v35 = vmul.f32 %v1122_v51, %v1116_v39  ;;  %v1139_v36 = vmul.f32 %v1123_v1, %v1116_v39 }
 0x103   : > { %v1140_v16 = vmul.f32 %v1124_v15, %v1116_v39  ;;  %v1141_v45 = vmul.f32 %v1125_v17, %v1116_v39  ;;  %v1142_v58 = vadd.f32 %v1134_v27, %v1098_v19  ;;  %v1143_v20 = vadd.f32 %v1135_v28, %v1099_v57 }
 0x104   : > { %v1144_v61 = vadd.f32 %v1136_v32, %v1100_v22  ;;  %v1145_v10 = vadd.f32 %v1137_v33, %v1101_v3  ;;  %v1146_v34 = vadd.f32 %v1138_v35, %v1102_v24  ;;  %v1147_v12 = vadd.f32 %v1139_v36, %v1103_v60 }
 0x105   : > { %v1148_v13 = vadd.f32 %v1140_v16, %v1104_v25  ;;  %v1149_v43 = vadd.f32 %v1141_v45, %v1105_v37  ;;  %v1151_v46 = vrot.slane %v1760_v62, 1  ;;  %v1152_v48 = vrot.slane %v1760_v62, 2 }
 0x106   : > { %v1153_v50 = vrot.slane %v1760_v62, 3  ;;  %v1154_v52 = vrot.slane %v1760_v62, 4  ;;  %v1155_v11 = vrot.slane %v1760_v62, 5  ;;  %v1156_v26 = vrot.slane %v1760_v62, 6 }
 0x107   : > { %v1157_v53 = vrot.slane %v1760_v62, 7  ;;  %v1162_v54 = vperm.slane %v1760_v62, 0  ;;  %v1163_v40 = vperm.slane %v1151_v46, 0  ;;  %v1164_v55 = vperm.slane %v1152_v48, 0 }
 0x108   : > { %v1165_v56 = vperm.slane %v1153_v50, 0  ;;  %v1166_v59 = vperm.slane %v1154_v52, 0  ;;  %v1167_v2 = vperm.slane %v1155_v11, 0  ;;  %v1168_v4 = vperm.slane %v1156_v26, 0 }
 0x109   : > { %v1169_v5 = vperm.slane %v1157_v53, 0  ;;  %v1178_v6 = vmul.f32 %v1162_v54, %v1160_v49  ;;  %v1179_v7 = vmul.f32 %v1163_v40, %v1160_v49  ;;  %v1180_v23 = vmul.f32 %v1164_v55, %v1160_v49 }
 0x10a   : > { %v1181_v14 = vmul.f32 %v1165_v56, %v1160_v49  ;;  %v1182_v18 = vmul.f32 %v1166_v59, %v1160_v49  ;;  %v1183_v31 = vmul.f32 %v1167_v2, %v1160_v49  ;;  %v1184_v19 = vmul.f32 %v1168_v4, %v1160_v49 }
 0x10b   : > { %v1185_v57 = vmul.f32 %v1169_v5, %v1160_v49  ;;  %v1186_v22 = vadd.f32 %v1178_v6, %v1142_v58  ;;  %v1187_v3 = vadd.f32 %v1179_v7, %v1143_v20  ;;  %v1188_v24 = vadd.f32 %v1180_v23, %v1144_v61 }
 0x10c   : > { %v1189_v60 = vadd.f32 %v1181_v14, %v1145_v10  ;;  %v1190_v62 = vadd.f32 %v1182_v18, %v1146_v34  ;;  %v1191_v25 = vadd.f32 %v1183_v31, %v1147_v12  ;;  %v1192_v37 = vadd.f32 %v1184_v19, %v1148_v13 }
 0x10d   : > { %v1193_v38 = vadd.f32 %v1185_v57, %v1149_v43  ;;  %v1195_v39 = vrot.slane %v1762_v21, 1  ;;  %v1196_v41 = vrot.slane %v1762_v21, 2  ;;  %v1197_v29 = vrot.slane %v1762_v21, 3 }
 0x10e   : > { %v1198_v42 = vrot.slane %v1762_v21, 4  ;;  %v1199_v44 = vrot.slane %v1762_v21, 5  ;;  %v1200_v47 = vrot.slane %v1762_v21, 6  ;;  %v1201_v8 = vrot.slane %v1762_v21, 7 }
 0x10f   : > { %v1206_v9 = vperm.slane %v1762_v21, 0  ;;  %v1207_v63 = vperm.slane %v1195_v39, 0  ;;  %v1208_v0 = vperm.slane %v1196_v41, 0  ;;  %v1209_v51 = vperm.slane %v1197_v29, 0 }
 0x110   : > { %v1210_v1 = vperm.slane %v1198_v42, 0  ;;  %v1211_v15 = vperm.slane %v1199_v44, 0  ;;  %v1212_v17 = vperm.slane %v1200_v47, 0  ;;  %v1213_v27 = vperm.slane %v1201_v8, 0 }
 0x111   : > { %v1222_v28 = vmul.f32 %v1206_v9, %v1204_v30  ;;  %v1223_v32 = vmul.f32 %v1207_v63, %v1204_v30  ;;  %v1224_v33 = vmul.f32 %v1208_v0, %v1204_v30  ;;  %v1225_v35 = vmul.f32 %v1209_v51, %v1204_v30 }
 0x112   : > { %v1226_v36 = vmul.f32 %v1210_v1, %v1204_v30  ;;  %v1227_v16 = vmul.f32 %v1211_v15, %v1204_v30  ;;  %v1228_v45 = vmul.f32 %v1212_v17, %v1204_v30  ;;  %v1229_v58 = vmul.f32 %v1213_v27, %v1204_v30 }
 0x113   : > { %v1230_v20 = vadd.f32 %v1222_v28, %v1186_v22  ;;  %v1231_v61 = vadd.f32 %v1223_v32, %v1187_v3  ;;  %v1232_v10 = vadd.f32 %v1224_v33, %v1188_v24  ;;  %v1233_v21 = vadd.f32 %v1225_v35, %v1189_v60 }
 0x114   : > { %v1234_v34 = vadd.f32 %v1226_v36, %v1190_v62  ;;  %v1235_v12 = vadd.f32 %v1227_v16, %v1191_v25  ;;  %v1236_v13 = vadd.f32 %v1228_v45, %v1192_v37  ;;  %v1237_v43 = vadd.f32 %v1229_v58, %v1193_v38 }
 0x115   : > { %v1447_v46 = vpack.c.bf16 %v1231_v61, %v1230_v20  ;;  %v1452_v48 = vpack.c.bf16 %v1233_v21, %v1232_v10 }
 0x116   : > { %v1457_v49 = vpack.c.bf16 %v1235_v12, %v1234_v34  ;;  %v1462_v50 = vpack.c.bf16 %v1237_v43, %v1236_v13 }
 0x117   : > { %1448 = vst [vmem:[%s220_s9] sm:$0xff] %v1447_v46  }
 0x118   : > { %1464 = vst [vmem:[%s220_s9 + $0x8] sm:$0xff] %v1452_v48  }
 0x119   : > { %1465 = vst [vmem:[%s220_s9 + $0x10] sm:$0xff] %v1457_v49  }
 0x11a   : > { %1466 = vst [vmem:[%s220_s9 + $0x18] sm:$0xff] %v1462_v50  }
 0x11b PF: > { %s22_s19 = sadd.s32 1, %s1529_s19  }
 0x11c   : > { %p19_p5 = scmp.ge.s32.totalorder %s22_s19, 5  }
 0x11e   :  { %21 = sbr.rel (!%p19_p5) target bundleno = 7 (0x7), region = 68 }

// kernel: fwd.14
= control target key start
LH: loop header
LB: loop body
LE: loop exit
PB: predicated region body
PF: predicated region fallthrough
CT: control target
= control target key end

     0   :  { %8 = vsyncpa [#allocation3], 0  ;;  %s670_s12 = smov 0   ;;  %s697_s0 = inlined_call_operand.vmem [shape: bf16[48,256], index: 0, kind: input, shape index: {}]   ;;  %s698_s1 = inlined_call_operand.hbm [shape: bf16[256,128], index: 1, kind: input, shape index: {}]   ;;  %s699_s2 = inlined_call_operand.vmem [shape: f32[1,128], index: 2, kind: input, shape index: {}]   ;;  %s700_s3 = inlined_call_operand.vmem [shape: bf16[48,128], index: 3, kind: output, shape index: {}]  }
   0x1 LB: > { %s124_s15 = sshll.u32 %s698_s1, 4  ;;  %s459_s16 = sadd.s32 4294967295, %s645_s12   ;;  %s645_s12 = sphi %s670_s12, %s14_s12   ;;  %s125_s15 = int_to_ptr.hbm [resolvable:$true] %s124_s15 }
   0x2   : > { %p461_p0 = scmp.ge.s32.totalorder %s645_s12, 1  ;;  %p113_p1 = scmp.lt.s32.totalorder %s645_s12, 3 }
   0x3   : > { %p591_p2 = scmp.eq.s32.totalorder %s459_s16, 0  ;;  %s647_s17 = smov [#allocation2]  }
   0x4   : > { %p114_p3 = pnand %p461_p0, %p113_p1  ;;  %s126_s18 = sshll.u32 %s647_s17, 4  ;;  %s127_s18 = int_to_ptr.vmem [resolvable:$true] %s126_s18 }
   0x5   : > { %s648_s19 = smov 64   ;;  %s649_s20 = smov 4  }
   0x6   : > { %p587_p4 = pneg %p114_p3  ;;  %155 = sbr.rel (%p114_p3) target bundleno = 187 (0xbb), region = 32 }
   0x8   : > { %p588_p5 = pnand %p591_p2, %p587_p4 }
   0xa   : > { %590 = dma.hbm_to_vmem [thread:$0]  (!%p588_p5), %s125_s15, 2048, %s127_s18, [#allocation3], %s648_s19, %s648_s19, %s649_s20  }
   0xb   : > { %640 = dma.done.wait (%p591_p2), [#allocation3], 2048  }
   0xc   : > { %642 = vsyncadd (%p591_p2), [#allocation3], 4294965248  ;;  %v553_v0 = vld [vmem:[#allocation2 + $0x38] sm:$0xff]  ;;  %v552_v2 = vld [vmem:[#allocation2 + $0x30] sm:$0xff]  ;;  %s181_s21 = smul.u32 3, %s459_s16 }
   0xd   : > { %v561_v1 = vld [vmem:[#allocation2 + $0x78] sm:$0xff]  ;;  %346 = vmatpush.bf16.msra.mxu0 %v553_v0  ;;  %567 = vmatpush.bf16.msra.mxu2 %v553_v0  ;;  %v560_v3 = vld [vmem:[#allocation2 + $0x70] sm:$0xff]  ;;  %v551_v4 = vld [vmem:[#allocation2 + $0x28] sm:$0xff] }
   0xe   : > { %364 = vmatpush.bf16.msra.mxu1 %v561_v1  ;;  %575 = vmatpush.bf16.msra.mxu3 %v561_v1  ;;  %v559_v5 = vld [vmem:[#allocation2 + $0x68] sm:$0xff]  ;;  %p182_p6 = scmp.lt.s32.totalorder %s181_s21, 5  ;;  %v550_v6 = vld [vmem:[#allocation2 + $0x20] sm:$0xff]  ;;  %v549_v8 = vld [vmem:[#allocation2 + $0x18] sm:$0xff] }
   0xf   : > { %v558_v7 = vld [vmem:[#allocation2 + $0x60] sm:$0xff]  ;;  %v557_v9 = vld [vmem:[#allocation2 + $0x58] sm:$0xff]  ;;  %v548_v10 = vld [vmem:[#allocation2 + $0x10] sm:$0xff] }
  0x10   : > { %s702_s21 = smov (!%p182_p6, %s181_s21), 5  ;;  %v556_v11 = vld [vmem:[#allocation2 + $0x50] sm:$0xff]  ;;  %v547_v12 = vld [vmem:[#allocation2 + $0x8] sm:$0xff]  ;;  %v546_v16 = vld [vmem:[#allocation2] sm:$0xff] }
  0x11   : > { %347 = vmatpush.bf16.msra.mxu0 %v552_v2  ;;  %568 = vmatpush.bf16.msra.mxu2 %v552_v2  ;;  %s543_s22 = sshll.u32 %s702_s21, 3  ;;  %v555_v14 = vld [vmem:[#allocation2 + $0x48] sm:$0xff]  ;;  %v554_v20 = vld [vmem:[#allocation2 + $0x40] sm:$0xff]  ;;  %s468_s28 = sshll.u32 %s702_s21, 2 }
  0x12   : > { %365 = vmatpush.bf16.msra.mxu1 %v560_v3  ;;  %576 = vmatpush.bf16.msra.mxu3 %v560_v3  ;;  %s186_s25 = scalar_lea.vmem %s697_s0, %s543_s22  ;;  %v604_v28 = vld [vmem:[%s699_s2] ss:$0 sm:$0xff]  ;;  %s192_s4 = scalar_lea.vmem %s700_s3, %s468_s28 }
  0x13   : > { %v196_v13 = vld [vmem:[%s186_s25 + $0x10] sm:$0xff]  ;;  %v471_v17 = vld [vmem:[%s186_s25] sm:$0xf]  ;;  %v545_v18 = vld [vmem:[%s186_s25 + $0x4] sm:$0xf0] }
  0x14   : > { %v240_v15 = vunpack.c.l.b16 %v196_v13  ;;  %v241_v19 = vunpack.c.h.b16 %v196_v13  ;;  %v544_v21 = vld [vmem:[%s186_s25 + $0x4] sm:$0xf]  ;;  %v473_v22 = vld [vmem:[%s186_s25 + $0x8] sm:$0xf0]  ;;  %v472_v23 = vor.u32 %v545_v18, %v471_v17 }
  0x15   : > { %348 = vmatpush.bf16.msra.mxu0 %v551_v4  ;;  %569 = vmatpush.bf16.msra.mxu2 %v551_v4  ;;  %v476_v25 = vor.u32 %v544_v21, %v473_v22 }
  0x16   : > { %366 = vmatpush.bf16.msra.mxu1 %v559_v5  ;;  %577 = vmatpush.bf16.msra.mxu3 %v559_v5  ;;  %v244_v24 = vpack.c.b16 %v240_v15, %v240_v15  ;;  %v245_v26 = vpack.c.b16 %v241_v19, %v241_v19 }
  0x19   : > { %349 = vmatpush.bf16.msra.mxu0 %v550_v6  ;;  %570 = vmatpush.bf16.msra.mxu2 %v550_v6 }
  0x1a   : > { %367 = vmatpush.bf16.msra.mxu1 %v558_v7  ;;  %578 = vmatpush.bf16.msra.mxu3 %v558_v7 }
  0x1d   : > { %350 = vmatpush.bf16.msra.mxu0 %v549_v8  ;;  %571 = vmatpush.bf16.msra.mxu2 %v549_v8 }
  0x1e   : > { %368 = vmatpush.bf16.msra.mxu1 %v557_v9  ;;  %579 = vmatpush.bf16.msra.mxu3 %v557_v9 }
  0x21   : > { %351 = vmatpush.bf16.msra.mxu0 %v548_v10  ;;  %572 = vmatpush.bf16.msra.mxu2 %v548_v10 }
  0x22   : > { %369 = vmatpush.bf16.msra.mxu1 %v556_v11  ;;  %580 = vmatpush.bf16.msra.mxu3 %v556_v11 }
  0x25   : > { %352 = vmatpush.bf16.msra.mxu0 %v547_v12  ;;  %573 = vmatpush.bf16.msra.mxu2 %v547_v12 }
  0x26   : > { %370 = vmatpush.bf16.msra.mxu1 %v555_v14  ;;  %581 = vmatpush.bf16.msra.mxu3 %v555_v14 }
  0x29   : > { %353 = vmatpush.bf16.msra.mxu0 %v546_v16  ;;  %574 = vmatpush.bf16.msra.mxu2 %v546_v16 }
  0x2a   : > { %371 = vmatpush.bf16.msra.mxu1 %v554_v20  ;;  %582 = vmatpush.bf16.msra.mxu3 %v554_v20 }
  0x2c   : > { %354 = vmatmul.bf16.vlgmr.msra.gmra.mxu0 %v472_v23  ;;  %359 = vmatmul.bf16.vlgmr.msra.gmra.mxu2 %v244_v24 }
  0x2d   : > { %372 = vmatmul.bf16.vlgmr.msra.gmra.mxu1 %v476_v25  ;;  %377 = vmatmul.bf16.vlgmr.msra.gmra.mxu3 %v245_v26 }
  0xa9   : > { %v355_v27 = vpop.f32.mrf.mxu0 }
  0xaa   : > { %v373_v29 = vpop.f32.mrf.mxu1  ;;  %v356_v30 = vadd.f32 %v604_v28, %v355_v27 }
  0xac   : > { %v374_v35 = vadd.f32 %v373_v29, %v356_v30 }
  0xae   : > { %v382_v41 = vmax.f32 %v374_v35, 0.0 }
  0xaf   : > { %v360_v31 = vpop.f32.mrf.mxu2 }
  0xb0   : > { %v361_v32 = vadd.f32 %v604_v28, %v360_v31  ;;  %v378_v33 = vpop.f32.mrf.mxu3 }
  0xb1   : > { %v357_v34 = vpop.f32.mrf.mxu0 }
  0xb2   : > { %v379_v36 = vadd.f32 %v378_v33, %v361_v32  ;;  %v358_v37 = vadd.f32 %v604_v28, %v357_v34  ;;  %v375_v38 = vpop.f32.mrf.mxu1 }
  0xb4   : > { %v384_v39 = vmax.f32 %v379_v36, 0.0  ;;  %v376_v40 = vadd.f32 %v375_v38, %v358_v37 }
  0xb6   : > { %v387_v42 = vpack.c.bf16 %v384_v39, %v384_v39  ;;  %v383_v43 = vmax.f32 %v376_v40, 0.0 }
  0xb7   : > { %v362_v44 = vpop.f32.mrf.mxu2 }
  0xb8   : > { %390 = vst [vmem:[%s192_s4 + $0x8] sm:$0xf] %v387_v42  ;;  %v565_v45 = vpack.c.bf16 %v383_v43, %v382_v41  ;;  %v380_v46 = vpop.f32.mrf.mxu3 }
  0xba   : > { %566 = vst [vmem:[%s192_s4] sm:$0xff] %v565_v45  }
  0xbb PF: > { %s14_s12 = sadd.s32 1, %s645_s12  }
  0xbc   : > { %p11_p7 = scmp.ge.s32.totalorder %s14_s12, 4  }
  0xbe   :  { %13 = sbr.rel (!%p11_p7) target bundleno = 1 (0x1), region = 67 }
  0xc3   :  { %413 = vsyncpa [#allocation3], 1 }
  0xc4   :  { %415 = vsyncpa [#allocation3 + $0x1], 1 }

// kernel: fwd.16
= control target key start
LH: loop header
LB: loop body
LE: loop exit
PB: predicated region body
PF: predicated region fallthrough
CT: control target
= control target key end

     0   :  { %9 = vsyncpa [#allocation3], 0  ;;  %s707_s15 = smov 0   ;;  %s834_s0 = inlined_call_operand.vmem [shape: bf16[48,128], index: 0, kind: input, shape index: {}]   ;;  %s835_s1 = inlined_call_operand.vmem [shape: bf16[128,256], index: 1, kind: input, shape index: {}]   ;;  %s836_s2 = inlined_call_operand.hbm [shape: f32[1,256], index: 2, kind: input, shape index: {}]   ;;  %s837_s3 = inlined_call_operand.vmem [shape: bf16[48,256], index: 3, kind: input, shape index: {}]   ;;  %s838_s4 = inlined_call_operand.vmem [shape: bf16[48,256], index: 4, kind: output, shape index: {}]  }
   0x1 LB: > { %s503_s16 = sadd.s32 4294967295, %s679_s15   ;;  %p505_p0 = scmp.ge.s32.totalorder %s679_s15, 1  ;;  %s679_s15 = sphi %s707_s15, %s15_s15  }
   0x2   : > { %p140_p1 = scmp.lt.s32.totalorder %s679_s15, 3  ;;  %s155_s19 = sshll.u32 %s836_s2, 4  ;;  %s156_s19 = int_to_ptr.hbm [resolvable:$true] %s155_s19 }
   0x3   : > { %p628_p3 = scmp.eq.s32.totalorder %s503_s16, 0  ;;  %s681_s20 = smov [#allocation2]  }
   0x4   : > { %p141_p2 = pnand %p505_p0, %p140_p1  ;;  %s157_s21 = sshll.u32 %s681_s20, 4  ;;  %s158_s21 = int_to_ptr.vmem [resolvable:$true] %s157_s21 }
   0x6   : > { %p624_p4 = pneg %p141_p2  ;;  %189 = sbr.rel (%p141_p2) target bundleno = 190 (0xbe), region = 36 }
   0x8   : > { %p625_p5 = pnand %p628_p3, %p624_p4 }
   0xa   : > { %627 = dma.hbm_to_vmem [thread:$0]  (!%p625_p5), %s156_s19, 32, %s158_s21, [#allocation3]  }
   0xb   : > { %674 = dma.done.wait (%p628_p3), [#allocation3], 32  }
   0xc   : > { %676 = vsyncadd (%p628_p3), [#allocation3], 4294967264  ;;  %v577_v0 = vld [vmem:[%s835_s1 + $0x70] sm:$0xf]  ;;  %v603_v1 = vld [vmem:[%s835_s1 + $0x74] sm:$0xf0] }
   0xd   : > { %v602_v2 = vld [vmem:[%s835_s1 + $0x74] sm:$0xf]  ;;  %v578_v3 = vor.u32 %v603_v1, %v577_v0  ;;  %v579_v4 = vld [vmem:[%s835_s1 + $0x78] sm:$0xf0]  ;;  %v569_v5 = vld [vmem:[%s835_s1 + $0x60] sm:$0xf] }
   0xe   : > { %v601_v6 = vld [vmem:[%s835_s1 + $0x64] sm:$0xf0]  ;;  %v582_v7 = vor.u32 %v602_v2, %v579_v4  ;;  %v600_v8 = vld [vmem:[%s835_s1 + $0x64] sm:$0xf]  ;;  %v571_v9 = vld [vmem:[%s835_s1 + $0x68] sm:$0xf0] }
   0xf   : > { %358 = vmatpush.bf16.msra.mxu0 %v578_v3  ;;  %604 = vmatpush.bf16.msra.mxu2 %v578_v3  ;;  %v570_v10 = vor.u32 %v601_v6, %v569_v5  ;;  %v574_v11 = vor.u32 %v600_v8, %v571_v9  ;;  %v561_v12 = vld [vmem:[%s835_s1 + $0x50] sm:$0xf]  ;;  %v599_v13 = vld [vmem:[%s835_s1 + $0x54] sm:$0xf0]  ;;  %v598_v14 = vld [vmem:[%s835_s1 + $0x54] sm:$0xf] }
  0x10   : > { %376 = vmatpush.bf16.msra.mxu1 %v582_v7  ;;  %612 = vmatpush.bf16.msra.mxu3 %v582_v7  ;;  %v563_v15 = vld [vmem:[%s835_s1 + $0x58] sm:$0xf0]  ;;  %s223_s22 = smul.u32 3, %s503_s16  ;;  %v562_v16 = vor.u32 %v599_v13, %v561_v12  ;;  %v553_v18 = vld [vmem:[%s835_s1 + $0x40] sm:$0xf] }
  0x11   : > { %v566_v17 = vor.u32 %v598_v14, %v563_v15  ;;  %v597_v19 = vld [vmem:[%s835_s1 + $0x44] sm:$0xf0]  ;;  %v596_v20 = vld [vmem:[%s835_s1 + $0x44] sm:$0xf]  ;;  %v555_v21 = vld [vmem:[%s835_s1 + $0x48] sm:$0xf0] }
  0x12   : > { %p224_p6 = scmp.lt.s32.totalorder %s223_s22, 5  ;;  %v554_v22 = vor.u32 %v597_v19, %v553_v18  ;;  %v558_v23 = vor.u32 %v596_v20, %v555_v21  ;;  %v545_v24 = vld [vmem:[%s835_s1 + $0x30] sm:$0xf]  ;;  %v595_v25 = vld [vmem:[%s835_s1 + $0x34] sm:$0xf0] }
  0x13   : > { %359 = vmatpush.bf16.msra.mxu0 %v570_v10  ;;  %605 = vmatpush.bf16.msra.mxu2 %v570_v10  ;;  %v594_v26 = vld [vmem:[%s835_s1 + $0x34] sm:$0xf]  ;;  %v547_v27 = vld [vmem:[%s835_s1 + $0x38] sm:$0xf0]  ;;  %v546_v28 = vor.u32 %v595_v25, %v545_v24  ;;  %v537_v30 = vld [vmem:[%s835_s1 + $0x20] sm:$0xf] }
  0x14   : > { %377 = vmatpush.bf16.msra.mxu1 %v574_v11  ;;  %613 = vmatpush.bf16.msra.mxu3 %v574_v11  ;;  %s840_s22 = smov (!%p224_p6, %s223_s22), 5  ;;  %v550_v29 = vor.u32 %v594_v26, %v547_v27  ;;  %v593_v31 = vld [vmem:[%s835_s1 + $0x24] sm:$0xf0]  ;;  %v592_v32 = vld [vmem:[%s835_s1 + $0x24] sm:$0xf] }
  0x15   : > { %v539_v33 = vld [vmem:[%s835_s1 + $0x28] sm:$0xf0]  ;;  %s510_s23 = sshll.u32 %s840_s22, 2  ;;  %v538_v34 = vor.u32 %v593_v31, %v537_v30  ;;  %v529_v36 = vld [vmem:[%s835_s1 + $0x10] sm:$0xf]  ;;  %s585_s18 = sshll.u32 %s840_s22, 3 }
  0x16   : > { %v542_v35 = vor.u32 %v592_v32, %v539_v33  ;;  %v591_v37 = vld [vmem:[%s835_s1 + $0x14] sm:$0xf0]  ;;  %s227_s16 = scalar_lea.vmem %s834_s0, %s510_s23  ;;  %v590_v38 = vld [vmem:[%s835_s1 + $0x14] sm:$0xf]  ;;  %v531_v39 = vld [vmem:[%s835_s1 + $0x18] sm:$0xf0]  ;;  %s234_s21 = scalar_lea.vmem %s837_s3, %s585_s18 }
  0x17   : > { %360 = vmatpush.bf16.msra.mxu0 %v562_v16  ;;  %606 = vmatpush.bf16.msra.mxu2 %v562_v16  ;;  %v530_v40 = vor.u32 %v591_v37, %v529_v36  ;;  %v245_v41 = vld [vmem:[%s227_s16 + $0x8] sm:$0xf]  ;;  %v534_v42 = vor.u32 %v590_v38, %v531_v39  ;;  %v521_v43 = vld [vmem:[%s835_s1] sm:$0xf]  ;;  %v588_v45 = vld [vmem:[%s835_s1 + $0x4] sm:$0xf]  ;;  %s241_s24 = scalar_lea.vmem %s838_s4, %s585_s18 }
  0x18   : > { %378 = vmatpush.bf16.msra.mxu1 %v566_v17  ;;  %614 = vmatpush.bf16.msra.mxu3 %v566_v17  ;;  %v589_v44 = vld [vmem:[%s835_s1 + $0x4] sm:$0xf0]  ;;  %v523_v46 = vld [vmem:[%s835_s1 + $0x8] sm:$0xf0]  ;;  %v273_v47 = vunpack.c.l.b16 %v245_v41  ;;  %v587_v50 = vld [vmem:[%s227_s16] sm:$0xff] }
  0x19   : > { %v522_v48 = vor.u32 %v589_v44, %v521_v43  ;;  %v526_v49 = vor.u32 %v588_v45, %v523_v46  ;;  %v262_v52 = vld [vmem:[#allocation2] sm:$0x3]  ;;  %v396_v62 = vld [vmem:[%s234_s21 + $0x10] sm:$0xff]  ;;  %v395_v1 = vld [vmem:[%s234_s21 + $0x8] sm:$0xff] }
  0x1a   : > { %v275_v51 = vpack.c.b16 %v273_v47, %v273_v47  ;;  %v394_v53 = vld [vmem:[%s234_s21] sm:$0xff]  ;;  %v264_v54 = vperm.slane %v262_v52, 0  ;;  %v265_v55 = vperm.slane %v262_v52, 1  ;;  %v401_v3 = vunpack.c.l.bf16 %v396_v62 }
  0x1b   : > { %361 = vmatpush.bf16.msra.mxu0 %v554_v22  ;;  %607 = vmatpush.bf16.msra.mxu2 %v554_v22  ;;  %v397_v56 = vunpack.c.l.bf16 %v394_v53  ;;  %v398_v58 = vunpack.c.h.bf16 %v394_v53  ;;  %v402_v6 = vunpack.c.h.bf16 %v396_v62  ;;  %v399_v9 = vunpack.c.l.bf16 %v395_v1 }
  0x1c   : > { %379 = vmatpush.bf16.msra.mxu1 %v558_v23  ;;  %615 = vmatpush.bf16.msra.mxu3 %v558_v23  ;;  %v400_v13 = vunpack.c.h.bf16 %v395_v1 }
  0x1f   : > { %362 = vmatpush.bf16.msra.mxu0 %v546_v28  ;;  %608 = vmatpush.bf16.msra.mxu2 %v546_v28 }
  0x20   : > { %380 = vmatpush.bf16.msra.mxu1 %v550_v29  ;;  %616 = vmatpush.bf16.msra.mxu3 %v550_v29 }
  0x23   : > { %363 = vmatpush.bf16.msra.mxu0 %v538_v34  ;;  %609 = vmatpush.bf16.msra.mxu2 %v538_v34 }
  0x24   : > { %381 = vmatpush.bf16.msra.mxu1 %v542_v35  ;;  %617 = vmatpush.bf16.msra.mxu3 %v542_v35 }
  0x27   : > { %364 = vmatpush.bf16.msra.mxu0 %v530_v40  ;;  %610 = vmatpush.bf16.msra.mxu2 %v530_v40 }
  0x28   : > { %382 = vmatpush.bf16.msra.mxu1 %v534_v42  ;;  %618 = vmatpush.bf16.msra.mxu3 %v534_v42 }
  0x2b   : > { %365 = vmatpush.bf16.msra.mxu0 %v522_v48  ;;  %611 = vmatpush.bf16.msra.mxu2 %v522_v48 }
  0x2c   : > { %383 = vmatpush.bf16.msra.mxu1 %v526_v49  ;;  %619 = vmatpush.bf16.msra.mxu3 %v526_v49 }
  0x2e   : > { %366 = vmatmul.bf16.vlgmr.msra.gmra.mxu0 %v587_v50  ;;  %371 = vmatmul.bf16.vlgmr.msra.gmra.mxu2 %v275_v51 }
  0x2f   : > { %384 = vmatmul.bf16.vlgmr.msra.gmra.mxu1 %v587_v50  ;;  %389 = vmatmul.bf16.vlgmr.msra.gmra.mxu3 %v275_v51 }
  0xab   : > { %v367_v57 = vpop.f32.mrf.mxu0 }
  0xac   : > { %v368_v59 = vadd.f32 %v367_v57, %v264_v54  ;;  %v385_v60 = vpop.f32.mrf.mxu1 }
  0xad   : > { %v386_v61 = vadd.f32 %v385_v60, %v265_v55 }
  0xae   : > { %v403_v63 = vadd.f32 %v397_v56, %v368_v59 }
  0xaf   : > { %v404_v0 = vadd.f32 %v398_v58, %v386_v61 }
  0xb0   : > { %v409_v2 = vmax.f32 %v403_v63, 0.0 }
  0xb1   : > { %v410_v4 = vmax.f32 %v404_v0, 0.0  ;;  %v372_v5 = vpop.f32.mrf.mxu2 }
  0xb2   : > { %v373_v7 = vadd.f32 %v372_v5, %v264_v54  ;;  %v390_v8 = vpop.f32.mrf.mxu3 }
  0xb3   : > { %v415_v10 = vpack.c.bf16 %v410_v4, %v409_v2  ;;  %v391_v11 = vadd.f32 %v390_v8, %v265_v55  ;;  %v369_v12 = vpop.f32.mrf.mxu0 }
  0xb4   : > { %v407_v14 = vadd.f32 %v401_v3, %v373_v7  ;;  %v370_v15 = vadd.f32 %v369_v12, %v264_v54  ;;  %v387_v16 = vpop.f32.mrf.mxu1 }
  0xb5   : > { %418 = vst [vmem:[%s241_s24] sm:$0xff] %v415_v10  ;;  %v408_v17 = vadd.f32 %v402_v6, %v391_v11  ;;  %v388_v18 = vadd.f32 %v387_v16, %v265_v55 }
  0xb6   : > { %v413_v19 = vmax.f32 %v407_v14, 0.0  ;;  %v405_v20 = vadd.f32 %v399_v9, %v370_v15 }
  0xb7   : > { %v414_v21 = vmax.f32 %v408_v17, 0.0  ;;  %v406_v22 = vadd.f32 %v400_v13, %v388_v18 }
  0xb8   : > { %v411_v23 = vmax.f32 %v405_v20, 0.0 }
  0xb9   : > { %v417_v24 = vpack.c.bf16 %v414_v21, %v413_v19  ;;  %v412_v25 = vmax.f32 %v406_v22, 0.0  ;;  %v374_v26 = vpop.f32.mrf.mxu2 }
  0xba   : > { %v392_v27 = vpop.f32.mrf.mxu3 }
  0xbb   : > { %420 = vst [vmem:[%s241_s24 + $0x10] sm:$0xff] %v417_v24  ;;  %v416_v28 = vpack.c.bf16 %v412_v25, %v411_v23 }
  0xbd   : > { %419 = vst [vmem:[%s241_s24 + $0x8] sm:$0xff] %v416_v28 }
  0xbe PF: > { %s15_s15 = sadd.s32 1, %s679_s15  }
  0xbf   : > { %p12_p7 = scmp.ge.s32.totalorder %s15_s15, 4  }
  0xc1   :  { %14 = sbr.rel (!%p12_p7) target bundleno = 1 (0x1), region = 74 }
  0xc6   :  { %445 = vsyncpa [#allocation3], 1 }
  0xc7   :  { %447 = vsyncpa [#allocation3 + $0x1], 1 }

// kernel: fwd.12
= control target key start
LH: loop header
LB: loop body
LE: loop exit
PB: predicated region body
PF: predicated region fallthrough
CT: control target
= control target key end

     0   :  { %8 = vsyncpa [#allocation5], 0  ;;  %s2527_s15 = smov [#allocation4]   ;;  %s2528_s17 = smov 64   ;;  %s3042_s0 = inlined_call_operand.vmem [shape: bf16[3,4,4,128], index: 0, kind: input, shape index: {}]   ;;  %s3043_s1 = inlined_call_operand.hbm [shape: bf16[3,384,128], index: 1, kind: input, shape index: {}]   ;;  %s3044_s2 = inlined_call_operand.vmem [shape: f32[1,128], index: 2, kind: input, shape index: {}]   ;;  %s3045_s3 = inlined_call_operand.vmem [shape: bf16[3,4,4,128], index: 3, kind: output, shape index: {}]  }
   0x1   :  { %s15_s14 = sshll.u32 %s3043_s1, 4  ;;  %s17_s16 = sshll.u32 %s2527_s15, 4  ;;  %s16_s14 = int_to_ptr.hbm [resolvable:$true] %s15_s14  ;;  %s18_s16 = int_to_ptr.vmem [resolvable:$true] %s17_s16 }
   0x2   :  { %s2529_s18 = smov 4  }
   0x3   :  { %23 = dma.hbm_to_vmem [thread:$0]  %s16_s14, 9216, %s18_s16, [#allocation5], %s2528_s17, %s2528_s17, %s2529_s18  }
   0x4   :  { %2524 = dma.done.wait [#allocation5], 9216  }
   0x5   :  { %2525 = vsyncadd [#allocation5], 4294958080  ;;  %v2530_v0 = vmov 0   ;;  %v2325_v1 = vld [vmem:[#allocation4 + $0x38] sm:$0xff]  ;;  %v2324_v2 = vld [vmem:[#allocation4 + $0x30] sm:$0xff]  ;;  %vm61_vm0 = vcmask 1043459  }
   0x6   :  { %35 = vst [vmem:[#allocation2 + $0x10] sm:$0xf] %v2530_v0  ;;  %2467 = vmatpush.bf16.msra.mxu1 %v2325_v1  ;;  %2468 = vmatpush.bf16.msra.mxu2 %v2325_v1  ;;  %v2323_v3 = vld [vmem:[#allocation4 + $0x28] sm:$0xff]  ;;  %v2322_v4 = vld [vmem:[#allocation4 + $0x20] sm:$0xff]  ;;  %v2321_v6 = vld [vmem:[#allocation4 + $0x18] sm:$0xff]  ;;  %vm67_vm2 = vcmask 1041408  }
   0x7   :  { %36 = vst [vmem:[#allocation2 + $0x14] sm:$0xf] %v2530_v0  ;;  %623 = vmatpush.bf16.msra.mxu0 %v2325_v1  ;;  %2469 = vmatpush.bf16.msra.mxu3 %v2325_v1  ;;  %v47_v5 = vld [vmem:[%s3042_s0] sm:$0x3]  ;;  %v2320_v7 = vld [vmem:[#allocation4 + $0x10] sm:$0xff]  ;;  %v2318_v11 = vld [vmem:[#allocation4] sm:$0xff] }
   0x8   :  { %31 = vst [vmem:[#allocation2] sm:$0xf] %v2530_v0  ;;  %v1963_v8 = vld [vmem:[%s3042_s0 + $0x2] sm:$0x3]  ;;  %v2333_v12 = vld [vmem:[#allocation4 + $0x78] sm:$0xff]  ;;  %v2332_v16 = vld [vmem:[#allocation4 + $0x70] sm:$0xff] }
   0x9   :  { %32 = vst [vmem:[#allocation2 + $0x4] sm:$0xf] %v2530_v0  ;;  %v2319_v9 = vld [vmem:[#allocation4 + $0x8] sm:$0xff]  ;;  %v2330_v20 = vld [vmem:[#allocation4 + $0x60] sm:$0xff]  ;;  %v1966_v21 = vld [vmem:[%s3042_s0 + $0x8] sm:$0x3] }
   0xa   :  { %33 = vst [vmem:[#allocation2 + $0x8] sm:$0xf] %v2530_v0  ;;  %2470 = vmatpush.bf16.msra.mxu1 %v2324_v2  ;;  %2471 = vmatpush.bf16.msra.mxu2 %v2324_v2  ;;  %v1964_v13 = vld [vmem:[%s3042_s0 + $0x4] sm:$0x3]  ;;  %v1965_v18 = vld [vmem:[%s3042_s0 + $0x6] sm:$0x3] }
   0xb   :  { %34 = vst [vmem:[#allocation2 + $0xc] sm:$0xf] %v2530_v0  ;;  %624 = vmatpush.bf16.msra.mxu0 %v2324_v2  ;;  %2472 = vmatpush.bf16.msra.mxu3 %v2324_v2  ;;  %v2331_v17 = vld [vmem:[#allocation4 + $0x68] sm:$0xff]  ;;  %vm62_vm1 = vsmask.f32 7950  ;;  %vm88_vm4 = vcmask 1043458  }
   0xc   :  { %37 = vst [vmem:[#allocation2 + $0x18] sm:$0xf] %v2530_v0  ;;  %vm68_vm3 = vsmask.f32 1280  ;;  %vm89_vm5 = vsmask.f32 7946  ;;  %vm2577_vm10 = vmand %vm61_vm0, %vm62_vm1 }
   0xd   :  { %38 = vst [vmem:[#allocation2 + $0x1c] sm:$0xf] %v2530_v0  ;;  %vm94_vm6 = vcmask 1040384   ;;  %vm95_vm7 = vsmask.f32 256  ;;  %vm113_vm8 = vcmask 1043457   ;;  %vm2595_vm15 = vmand %vm67_vm2, %vm68_vm3 }
   0xe   :  { %39 = vst [vmem:[#allocation2 + $0x20] sm:$0xf] %v2530_v0  ;;  %2473 = vmatpush.bf16.msra.mxu1 %v2323_v3  ;;  %2474 = vmatpush.bf16.msra.mxu2 %v2323_v3  ;;  %v2563_v14 = vld [vmem:[#allocation2 + $0x10] sm:$0xff]  ;;  %v1967_v33 = vld [vmem:[%s3042_s0 + $0xa] sm:$0x3]  ;;  %v2329_v42 = vld [vmem:[#allocation4 + $0x58] sm:$0xff] }
   0xf   :  { %40 = vst [vmem:[#allocation2 + $0x24] sm:$0xf] %v2530_v0  ;;  %625 = vmatpush.bf16.msra.mxu0 %v2323_v3  ;;  %2475 = vmatpush.bf16.msra.mxu3 %v2323_v3  ;;  %vm114_vm9 = vsmask.f32 3334  ;;  %vm132_vm11 = vsmask.f32 2306  ;;  %vm2583_vm12 = vmand %vm94_vm6, %vm95_vm7 }
  0x10   :  { %41 = vst [vmem:[#allocation2 + $0x28] sm:$0xf] %v2530_v0  ;;  %vm131_vm13 = vcmask 1042432   ;;  %v2328_v49 = vld [vmem:[#allocation4 + $0x50] sm:$0xff]  ;;  %vm2589_vm14 = vmand %vm113_vm8, %vm114_vm9  ;;  %vm344_vm2 = vsmask.f32 7424 }
  0x11   :  { %42 = vst [vmem:[#allocation2 + $0x2c] sm:$0xf] %v2530_v0  ;;  %v97_v51 = vld [vmem:[#allocation2 + $0x8] sm:$0x1]  ;;  %v116_v52 = vld [vmem:[#allocation2 + $0x8] sm:$0xe]  ;;  %vm2607_vm0 = vmand %vm131_vm13, %vm132_vm11 }
  0x12   :  { %43 = vst [vmem:[#allocation2 + $0x30] sm:$0xf] %v2530_v0  ;;  %2476 = vmatpush.bf16.msra.mxu1 %v2322_v4  ;;  %2477 = vmatpush.bf16.msra.mxu2 %v2322_v4  ;;  %v64_v53 = vld [vmem:[#allocation2] sm:$0x8]  ;;  %v70_v60 = vld [vmem:[#allocation2 + $0x4] sm:$0x3]  ;;  %vm2615_vm1 = vmand %vm88_vm4, %vm89_vm5 }
  0x13   :  { %44 = vst [vmem:[#allocation2 + $0x34] sm:$0xf] %v2530_v0  ;;  %626 = vmatpush.bf16.msra.mxu0 %v2322_v4  ;;  %2478 = vmatpush.bf16.msra.mxu3 %v2322_v4  ;;  %v149_v62 = vld [vmem:[#allocation2 + $0x18] sm:$0x7]  ;;  %v134_v3 = vld [vmem:[#allocation2 + $0xc] sm:$0x7] }
  0x14   :  { %45 = vst [vmem:[#allocation2 + $0x38] sm:$0xf] %v2530_v0  ;;  %v91_v0 = vld [vmem:[#allocation2 + $0x4] sm:$0xc]  ;;  %vm951_vm3 = vcmask 1044480   ;;  %vm410_vm4 = vcmask 1046528  }
  0x15   :  { %49 = vst [vmem:[#allocation1] ss:$2 sm:$0xff] %v47_v5  ;;  %v1968_v5 = vld [vmem:[%s3042_s0 + $0xc] sm:$0x3]  ;;  %v2359_v44 = vld [vmem:[#allocation4 + $0x148] sm:$0xff]  ;;  %vm1504_vm5 = vcmask 1045504  }
  0x16   :  { %2479 = vmatpush.bf16.msra.mxu1 %v2321_v6  ;;  %2480 = vmatpush.bf16.msra.mxu2 %v2321_v6  ;;  %v2352_v50 = vld [vmem:[#allocation4 + $0x110] sm:$0xff] }
  0x17   :  { %627 = vmatpush.bf16.msra.mxu0 %v2321_v6  ;;  %2481 = vmatpush.bf16.msra.mxu3 %v2321_v6 }
  0x1a   :  { %2482 = vmatpush.bf16.msra.mxu1 %v2320_v7  ;;  %2483 = vmatpush.bf16.msra.mxu2 %v2320_v7 }
  0x1b   :  { %628 = vmatpush.bf16.msra.mxu0 %v2320_v7  ;;  %2484 = vmatpush.bf16.msra.mxu3 %v2320_v7 }
  0x1c   :  { %v50_v10 = vld.sshfl [vmem:[#allocation1] sm:$0xff pattern:$0x75643120] }
  0x1d   :  { %76 = vst [vmem:[#allocation1] ss:$2 sm:$0xff] %v1963_v8  ;;  %v51_v23 = vshll.u32 %v50_v10, 16  ;;  %v54_v24 = vshrl.u32 %v50_v10, 16 }
  0x1e   :  { %2485 = vmatpush.bf16.msra.mxu1 %v2319_v9  ;;  %2486 = vmatpush.bf16.msra.mxu2 %v2319_v9 }
  0x1f   :  { %629 = vmatpush.bf16.msra.mxu0 %v2319_v9  ;;  %2487 = vmatpush.bf16.msra.mxu3 %v2319_v9  ;;  %v53_v26 = vrot.slane %v51_v23, 5  ;;  %v56_v27 = vrot.slane %v54_v24, 4  ;;  %v2327_v9 = vld [vmem:[#allocation4 + $0x48] sm:$0xff]  ;;  %v1969_v23 = vld [vmem:[%s3042_s0 + $0xe] sm:$0x3] }
  0x21   :  { %v57_v36 = vor.u32 %v56_v27, %v53_v26  ;;  %v65_v59 = vsel %vm2577_vm10, %v53_v26, %v64_v53  ;;  %v2339_v26 = vld [vmem:[#allocation4 + $0xa8] sm:$0xff] }
  0x22   :  { %2488 = vmatpush.bf16.msra.mxu1 %v2318_v11  ;;  %2489 = vmatpush.bf16.msra.mxu2 %v2318_v11  ;;  %66 = vst [vmem:[#allocation2] sm:$0x8] %v65_v59 }
  0x23   :  { %630 = vmatpush.bf16.msra.mxu0 %v2318_v11  ;;  %2490 = vmatpush.bf16.msra.mxu3 %v2318_v11  ;;  %v58_v46 = vrot.slane %v57_v36, 4  ;;  %v188_v36 = vld [vmem:[#allocation2 + $0x1c] sm:$0xc] }
  0x24   :  { %v77_v15 = vld.sshfl [vmem:[#allocation1] sm:$0xff pattern:$0x75643120] }
  0x25   :  { %103 = vst [vmem:[#allocation1] ss:$2 sm:$0xff] %v1964_v13  ;;  %641 = vmatmul.bf16.vlgmr.msra.gmra.mxu1 %v2563_v14  ;;  %v78_v25 = vshrl.u32 %v77_v15, 16  ;;  %v81_v28 = vshll.u32 %v77_v15, 16  ;;  %v71_v63 = vsel %vm2595_vm15, %v58_v46, %v70_v60  ;;  %v2341_v13 = vld [vmem:[#allocation4 + $0xb8] sm:$0xff] }
  0x26   :  { %667 = vmatpush.bf16.msrb.mxu1 %v2333_v12  ;;  %72 = vst [vmem:[#allocation2 + $0x4] sm:$0x3] %v71_v63  ;;  %v167_v15 = vld [vmem:[#allocation2 + $0x18] sm:$0x8]  ;;  %711 = vmatpush.bf16.msrb.mxu2 %v2341_v13  ;;  %v1971_v63 = vld [vmem:[%s3042_s0 + $0x12] sm:$0x3] }
  0x27   :  { %v80_v32 = vrot.slane %v78_v25, 5  ;;  %v83_v38 = vrot.slane %v81_v28, 6 }
  0x29   :  { %v85_v43 = vrot.slane %v80_v32, 4  ;;  %v84_v54 = vor.u32 %v83_v38, %v80_v32  ;;  %v191_v38 = vld [vmem:[#allocation2 + $0x20] sm:$0x1] }
  0x2a   :  { %668 = vmatpush.bf16.msrb.mxu1 %v2332_v16  ;;  %v2326_v16 = vld [vmem:[#allocation4 + $0x40] sm:$0xff] }
  0x2b   :  { %v98_v57 = vsel %vm2583_vm12, %v85_v43, %v97_v51  ;;  %v92_v7 = vsel %vm2615_vm1, %v84_v54, %v91_v0  ;;  %v1970_v43 = vld [vmem:[%s3042_s0 + $0x10] sm:$0x3]  ;;  %v2356_v51 = vld [vmem:[#allocation4 + $0x130] sm:$0xff] }
  0x2c   :  { %v104_v19 = vld.sshfl [vmem:[#allocation1] sm:$0xff pattern:$0x75643120]  ;;  %99 = vst [vmem:[#allocation2 + $0x8] sm:$0x1] %v98_v57  ;;  %v2336_v54 = vld [vmem:[#allocation4 + $0x90] sm:$0xff] }
  0x2d   :  { %122 = vst [vmem:[#allocation1] ss:$2 sm:$0xff] %v1965_v18  ;;  %v105_v29 = vshrl.u32 %v104_v19, 16  ;;  %v108_v30 = vshll.u32 %v104_v19, 16  ;;  %v2340_v19 = vld [vmem:[#allocation4 + $0xb0] sm:$0xff] }
  0x2e   :  { %669 = vmatpush.bf16.msrb.mxu1 %v2331_v17  ;;  %93 = vst [vmem:[#allocation2 + $0x4] sm:$0xc] %v92_v7  ;;  %712 = vmatpush.bf16.msrb.mxu2 %v2340_v19  ;;  %v207_v57 = vld [vmem:[#allocation2 + $0x20] sm:$0xe]  ;;  %v2353_v19 = vld [vmem:[#allocation4 + $0x118] sm:$0xff] }
  0x2f   :  { %v107_v34 = vrot.slane %v105_v29, 6  ;;  %v110_v35 = vrot.slane %v108_v30, 7 }
  0x31   :  { %v111_v45 = vor.u32 %v110_v35, %v107_v34  ;;  %v2338_v34 = vld [vmem:[#allocation4 + $0xa0] sm:$0xff]  ;;  %v2357_v35 = vld [vmem:[#allocation4 + $0x138] sm:$0xff] }
  0x32   :  { %670 = vmatpush.bf16.msrb.mxu1 %v2330_v20  ;;  %713 = vmatpush.bf16.msrb.mxu2 %v2339_v26  ;;  %v2344_v26 = vld [vmem:[#allocation4 + $0xd0] sm:$0xff] }
  0x33   :  { %v117_v58 = vsel %vm2589_vm14, %v111_v45, %v116_v52  ;;  %1200 = vmatpush.bf16.msrb.mxu0 %v2357_v35  ;;  %v2343_v35 = vld [vmem:[#allocation4 + $0xc8] sm:$0xff] }
  0x34   :  { %v123_v22 = vld.sshfl [vmem:[#allocation1] sm:$0xff pattern:$0x75643120]  ;;  %118 = vst [vmem:[#allocation2 + $0x8] sm:$0xe] %v117_v58 }
  0x35   :  { %140 = vst [vmem:[#allocation1] ss:$2 sm:$0xff] %v1966_v21  ;;  %v124_v31 = vshrl.u32 %v123_v22, 16  ;;  %v127_v40 = vshll.u32 %v123_v22, 16  ;;  %v170_v22 = vld [vmem:[#allocation2 + $0x1c] sm:$0x3] }
  0x36   :  { %671 = vmatpush.bf16.msrb.mxu1 %v2329_v42  ;;  %v2635_v30 = vld [vmem:[#allocation2] sm:$0xff]   ;;  %714 = vmatpush.bf16.msrb.mxu2 %v2338_v34  ;;  %v2355_v58 = vld [vmem:[#allocation4 + $0x128] sm:$0xff] }
  0x37   :  { %v126_v39 = vrot.slane %v124_v31, 7  ;;  %631 = vmatmul.bf16.vlgmr.msra.gmra.mxu0 %v2635_v30  ;;  %v2349_v31 = vld [vmem:[#allocation4 + $0xf8] sm:$0xff]  ;;  %v346_v13 = vshrl.u32 %v2635_v30, 16 }
  0x38   :  { %1156 = vmatpush.bf16.msrb.mxu3 %v2349_v31  ;;  %1201 = vmatpush.bf16.msrb.mxu0 %v2356_v51 }
  0x39   :  { %v129_v1 = vor.u32 %v127_v40, %v126_v39 }
  0x3a   :  { %672 = vmatpush.bf16.msrb.mxu1 %v2328_v49  ;;  %v2348_v49 = vld [vmem:[#allocation4 + $0xf0] sm:$0xff] }
  0x3b   :  { %v135_v10 = vsel %vm2607_vm0, %v129_v1, %v134_v3  ;;  %v2346_v3 = vld [vmem:[#allocation4 + $0xe0] sm:$0xff] }
  0x3c   :  { %v141_v41 = vld.sshfl [vmem:[#allocation1] sm:$0xff pattern:$0x75643120]  ;;  %136 = vst [vmem:[#allocation2 + $0xc] sm:$0x7] %v135_v10  ;;  %1157 = vmatpush.bf16.msrb.mxu3 %v2348_v49  ;;  %1202 = vmatpush.bf16.msrb.mxu0 %v2355_v58 }
  0x3d   :  { %v142_v47 = vshrl.u32 %v141_v41, 16  ;;  %v145_v48 = vshll.u32 %v141_v41, 16  ;;  %155 = vst [vmem:[#allocation1] ss:$2 sm:$0xff] %v1967_v33 }
  0x3e   :  { %673 = vmatpush.bf16.msrb.mxu1 %v2327_v9 }
  0x3f   :  { %v144_v56 = vrot.slane %v142_v47, 7 }
  0x41   :  { %v147_v2 = vor.u32 %v145_v48, %v144_v56  ;;  %v2337_v48 = vld [vmem:[#allocation4 + $0x98] sm:$0xff]  ;;  %v2347_v56 = vld [vmem:[#allocation4 + $0xe8] sm:$0xff] }
  0x42   :  { %674 = vmatpush.bf16.msrb.mxu1 %v2326_v16  ;;  %715 = vmatpush.bf16.msrb.mxu2 %v2337_v48 }
  0x43   :  { %v150_v6 = vsel %vm2607_vm0, %v147_v2, %v149_v62  ;;  %1158 = vmatpush.bf16.msrb.mxu3 %v2347_v56  ;;  %v2652_v0 = vld [vmem:[#allocation2 + $0x8] sm:$0xff]  ;;  %v2335_v2 = vld [vmem:[#allocation4 + $0x88] sm:$0xff]  ;;  %v2342_v56 = vld [vmem:[#allocation4 + $0xc0] sm:$0xff] }
  0x44   :  { %151 = vst [vmem:[#allocation2 + $0x18] sm:$0x7] %v150_v6  ;;  %v156_v8 = vld.sshfl [vmem:[#allocation1] sm:$0xff pattern:$0x75643120]  ;;  %v353_v16 = vshll.u32 %v2652_v0, 16 }
  0x45   :  { %v157_v11 = vshll.u32 %v156_v8, 16  ;;  %v160_v12 = vshrl.u32 %v156_v8, 16  ;;  %176 = vst [vmem:[#allocation1] ss:$2 sm:$0xff] %v1968_v5  ;;  %v348_v5 = vshll.u32 %v2635_v30, 16  ;;  %v2354_v8 = vld [vmem:[#allocation4 + $0x120] sm:$0xff] }
  0x46   :  { %716 = vmatpush.bf16.msrb.mxu2 %v2336_v54  ;;  %1203 = vmatpush.bf16.msrb.mxu0 %v2354_v8  ;;  %v355_v30 = vrot.slane %v353_v16, 1  ;;  %v357_v8 = vshrl.u32 %v2652_v0, 16 }
  0x47   :  { %v159_v17 = vrot.slane %v157_v11, 5  ;;  %v162_v18 = vrot.slane %v160_v12, 4  ;;  %636 = vmatmul.bf16.gmra.mxu0 %v2652_v0  ;;  %1159 = vmatpush.bf16.msrb.mxu3 %v2346_v3  ;;  %v223_v11 = vld [vmem:[#allocation2 + $0x2c] sm:$0xe]  ;;  %v2334_v12 = vld [vmem:[#allocation4 + $0x80] sm:$0xff] }
  0x49   :  { %v163_v20 = vor.u32 %v162_v18, %v159_v17  ;;  %v168_v21 = vsel %vm2577_vm10, %v159_v17, %v167_v15  ;;  %v350_v15 = vrot.slane %v348_v5, 1  ;;  %v2345_v18 = vld [vmem:[#allocation4 + $0xd8] sm:$0xff] }
  0x4a   :  { %169 = vst [vmem:[#allocation2 + $0x18] sm:$0x8] %v168_v21  ;;  %717 = vmatpush.bf16.msrb.mxu2 %v2335_v2  ;;  %v1972_v21 = vld [vmem:[%s3042_s0 + $0x14] sm:$0x3]  ;;  %1204 = vmatpush.bf16.msrb.mxu0 %v2353_v19  ;;  %v256_v2 = vld [vmem:[#allocation2 + $0x30] sm:$0x8]  ;;  %v359_v19 = vor.u32 %v357_v8, %v355_v30 }
  0x4b   :  { %v164_v24 = vrot.slane %v163_v20, 4  ;;  %1160 = vmatpush.bf16.msrb.mxu3 %v2345_v18 }
  0x4c   :  { %v177_v25 = vld.sshfl [vmem:[#allocation1] sm:$0xff pattern:$0x75643120] }
  0x4d   :  { %v171_v27 = vsel %vm2595_vm15, %v164_v24, %v170_v22  ;;  %v178_v28 = vshrl.u32 %v177_v25, 16  ;;  %v181_v29 = vshll.u32 %v177_v25, 16  ;;  %197 = vst [vmem:[#allocation1] ss:$2 sm:$0xff] %v1969_v23  ;;  %v769_v23 = vld [vmem:[#allocation2] sm:$0x8] }
  0x4e   :  { %172 = vst [vmem:[#allocation2 + $0x1c] sm:$0x3] %v171_v27  ;;  %718 = vmatpush.bf16.msrb.mxu2 %v2334_v12  ;;  %v2666_v24 = vld [vmem:[#allocation2 + $0x4] sm:$0xff]   ;;  %v798_v27 = vunpack.c.l.b16 %v769_v23  ;;  %1205 = vmatpush.bf16.msrb.mxu0 %v2352_v50 }
  0x4f   :  { %v180_v32 = vrot.slane %v178_v28, 5  ;;  %v183_v33 = vrot.slane %v181_v29, 6  ;;  %v799_v28 = vunpack.c.l.b16 %v2666_v24  ;;  %v351_v29 = vor.u32 %v350_v15, %v346_v13  ;;  %1161 = vmatpush.bf16.msrb.mxu3 %v2344_v26  ;;  %v259_v15 = vld [vmem:[#allocation2 + $0x34] sm:$0x3]  ;;  %v2394_v23 = vld [vmem:[#allocation4 + $0x238] sm:$0xff] }
  0x51   :  { %v184_v39 = vor.u32 %v183_v33, %v180_v32  ;;  %v185_v40 = vrot.slane %v180_v32, 4  ;;  %v2672_v33 = vpack.c.b16 %v799_v28, %v798_v27 }
  0x53   :  { %v189_v41 = vsel %vm2615_vm1, %v184_v39, %v188_v36  ;;  %v192_v42 = vsel %vm2583_vm12, %v185_v40, %v191_v38  ;;  %v2351_v36 = vld [vmem:[#allocation4 + $0x108] sm:$0xff]  ;;  %v2674_v38 = vld [vmem:[#allocation2 + $0x8] sm:$0xff]   ;;  %v238_v39 = vld [vmem:[#allocation2 + $0x30] sm:$0x7]  ;;  %v825_v40 = vshll.u32 %v2672_v33, 16  ;;  %1162 = vmatpush.bf16.msrb.mxu3 %v2343_v35 }
  0x54   :  { %190 = vst [vmem:[#allocation2 + $0x1c] sm:$0xc] %v189_v41  ;;  %v198_v45 = vld.sshfl [vmem:[#allocation1] sm:$0xff pattern:$0x75643120]  ;;  %v830_v41 = vshll.u32 %v2674_v38, 16  ;;  %1206 = vmatpush.bf16.msrb.mxu0 %v2351_v36 }
  0x55   :  { %193 = vst [vmem:[#allocation2 + $0x20] sm:$0x1] %v192_v42  ;;  %v199_v46 = vshrl.u32 %v198_v45, 16  ;;  %v202_v47 = vshll.u32 %v198_v45, 16  ;;  %v356_v42 = vsel %vm344_vm2, %v351_v29, %v355_v30  ;;  %v2679_v45 = vld [vmem:[#allocation2 + $0x10] sm:$0xff]   ;;  %v827_v48 = vrot.slane %v825_v40, 1 }
  0x56   :  { %213 = vst [vmem:[#allocation1] ss:$2 sm:$0xff] %v1970_v43  ;;  %v832_v49 = vrot.slane %v830_v41, 1  ;;  %v2423_v29 = vld [vmem:[#allocation2] sm:$0xf0]  ;;  %v842_v40 = vshrl.u32 %v2679_v45, 16 }
  0x57   :  { %v201_v52 = vrot.slane %v199_v46, 6  ;;  %v204_v53 = vrot.slane %v202_v47, 7  ;;  %v1973_v46 = vld [vmem:[%s3042_s0 + $0x16] sm:$0x3]  ;;  %v823_v47 = vshrl.u32 %v2672_v33, 16  ;;  %1163 = vmatpush.bf16.msrb.mxu3 %v2342_v56 }
  0x58   :  { %v277_v30 = vld [vmem:[#allocation2 + $0x34] sm:$0xc]  ;;  %v2386_v56 = vld [vmem:[#allocation4 + $0x1f8] sm:$0xff] }
  0x59   :  { %v205_v59 = vor.u32 %v204_v53, %v201_v52  ;;  %v834_v52 = vshrl.u32 %v2674_v38, 16  ;;  %v838_v53 = vshll.u32 %v2679_v45, 16 }
  0x5b   :  { %v2645_v60 = vld [vmem:[#allocation2 + $0x18] sm:$0xff]  ;;  %v208_v62 = vsel %vm2589_vm14, %v205_v59, %v207_v57  ;;  %v828_v57 = vor.u32 %v827_v48, %v823_v47  ;;  %v2377_v47 = vld [vmem:[#allocation4 + $0x1b0] sm:$0xff] }
  0x5c   :  { %209 = vst [vmem:[#allocation2 + $0x20] sm:$0xe] %v208_v62  ;;  %646 = vmatmul.bf16.gmra.mxu1 %v2645_v60  ;;  %v2350_v62 = vld [vmem:[#allocation4 + $0x100] sm:$0xff] }
  0x5d   :  { %v214_v1 = vld.sshfl [vmem:[#allocation1] sm:$0xff pattern:$0x75643120]  ;;  %v833_v61 = vsel %vm344_vm2, %v828_v57, %v832_v49  ;;  %1207 = vmatpush.bf16.msrb.mxu0 %v2350_v62  ;;  %v365_v62 = vshrl.u32 %v2563_v14, 16 }
  0x5e   :  { %v215_v6 = vshrl.u32 %v214_v1, 16  ;;  %v218_v7 = vshll.u32 %v214_v1, 16  ;;  %229 = vst [vmem:[#allocation1] ss:$2 sm:$0xff] %v1971_v63  ;;  %v2365_v63 = vld [vmem:[#allocation4 + $0x178] sm:$0xff]  ;;  %v836_v1 = vor.u32 %v834_v52, %v832_v49  ;;  %v412_v52 = vrot.slane %v2652_v0, 1 }
  0x5f   :  { %1244 = vmatpush.bf16.msra.mxu1 %v2365_v63  ;;  %v369_v63 = vshll.u32 %v2645_v60, 16 }
  0x60   :  { %v217_v9 = vrot.slane %v215_v6, 6  ;;  %v220_v10 = vrot.slane %v218_v7, 7  ;;  %v840_v6 = vrot.slane %v838_v53, 1 }
  0x61   :  { %1797 = vmatpush.bf16.msra.mxu0 %v2394_v23 }
  0x62   :  { %v221_v17 = vor.u32 %v220_v10, %v217_v9  ;;  %v361_v9 = vshll.u32 %v2563_v14, 16  ;;  %v955_v10 = vrot.slane %v833_v61, 3  ;;  %v841_v13 = vsel %vm344_vm2, %v836_v1, %v840_v6  ;;  %v2385_v1 = vld [vmem:[#allocation4 + $0x1f0] sm:$0xff]  ;;  %v2363_v61 = vld [vmem:[#allocation4 + $0x168] sm:$0xff] }
  0x63   :  { %v2659_v20 = vld [vmem:[#allocation2 + $0x20] sm:$0xff]  ;;  %v956_v16 = vrot.slane %v841_v13, 3  ;;  %v844_v48 = vor.u32 %v842_v40, %v840_v6  ;;  %v2376_v13 = vld [vmem:[#allocation4 + $0x1a8] sm:$0xff] }
  0x64   :  { %v224_v22 = vsel %vm2589_vm14, %v221_v17, %v223_v11  ;;  %651 = vmatmul.bf16.vlgmr.msra.gmra.mxu2 %v2659_v20  ;;  %v2378_v17 = vld [vmem:[#allocation4 + $0x1b8] sm:$0xff]  ;;  %v2723_v8 = vld [vmem:[#allocation2 + $0x20] sm:$0xff]  }
  0x65   :  { %225 = vst [vmem:[#allocation2 + $0x2c] sm:$0xe] %v224_v22  ;;  %v230_v25 = vld.sshfl [vmem:[#allocation1] sm:$0xff pattern:$0x75643120]  ;;  %v957_v22 = vsel %vm951_vm3, %v955_v10, %v956_v16  ;;  %1709 = vmatpush.bf16.msra.mxu2 %v2378_v17  ;;  %v854_v10 = vshll.u32 %v2723_v8, 16 }
  0x66   :  { %v231_v31 = vshrl.u32 %v230_v25, 16  ;;  %v234_v32 = vshll.u32 %v230_v25, 16  ;;  %244 = vst [vmem:[#allocation1] ss:$2 sm:$0xff] %v1972_v21  ;;  %v363_v25 = vrot.slane %v361_v9, 1  ;;  %1208 = vmatmul.bf16.vlgmr.msrb.gmra.mxu0 %v957_v22  ;;  %v858_v40 = vshrl.u32 %v2723_v8, 16 }
  0x67   :  { %v856_v17 = vrot.slane %v854_v10, 1 }
  0x68   :  { %v233_v34 = vrot.slane %v231_v31, 7  ;;  %v2424_v31 = vld [vmem:[#allocation2] sm:$0xe] }
  0x69   :  { %v2425_v55 = vor.u32 %v2424_v31, %v2423_v29  ;;  %1710 = vmatpush.bf16.msra.mxu2 %v2377_v47  ;;  %v2392_v29 = vld [vmem:[#allocation4 + $0x228] sm:$0xff]  ;;  %v2362_v31 = vld [vmem:[#allocation4 + $0x160] sm:$0xff] }
  0x6a   :  { %v236_v43 = vor.u32 %v234_v32, %v233_v34  ;;  %v364_v34 = vsel %vm344_vm2, %v359_v19, %v363_v25 }
  0x6c   :  { %v239_v51 = vsel %vm2607_vm0, %v236_v43, %v238_v39  ;;  %675 = vmatmul.bf16.vlgmr.msrb.gmra.mxu1 %v356_v42  ;;  %v2690_v7 = vld [vmem:[#allocation2 + $0x28] sm:$0xff]  ;;  %v2707_v39 = vld [vmem:[#allocation2 + $0x18] sm:$0xff]  }
  0x6d   :  { %240 = vst [vmem:[#allocation2 + $0x30] sm:$0x7] %v239_v51  ;;  %v245_v54 = vld.sshfl [vmem:[#allocation1] sm:$0xff pattern:$0x75643120]  ;;  %v846_v41 = vshll.u32 %v2707_v39, 16  ;;  %1711 = vmatpush.bf16.msra.mxu2 %v2376_v13 }
  0x6e   :  { %v246_v58 = vshll.u32 %v245_v54, 16  ;;  %v249_v59 = vshrl.u32 %v245_v54, 16  ;;  %265 = vst [vmem:[#allocation1] ss:$2 sm:$0xff] %v1973_v46  ;;  %v2364_v46 = vld [vmem:[#allocation4 + $0x170] sm:$0xff]  ;;  %v411_v51 = vrot.slane %v2425_v55, 1 }
  0x6f   :  { %v848_v53 = vrot.slane %v846_v41, 1  ;;  %1245 = vmatpush.bf16.msra.mxu1 %v2364_v46  ;;  %v850_v9 = vshrl.u32 %v2707_v39, 16  ;;  %v2742_v55 = vld [vmem:[#allocation2 + $0x28] sm:$0xff]   ;;  %v860_v46 = vor.u32 %v858_v40, %v856_v17 }
  0x70   :  { %v248_v3 = vrot.slane %v246_v58, 5  ;;  %v251_v5 = vrot.slane %v249_v59, 4  ;;  %v413_v59 = vsel %vm410_vm4, %v411_v51, %v412_v52  ;;  %v862_v41 = vshll.u32 %v2742_v55, 16 }
  0x71   :  { %v849_v4 = vsel %vm344_vm2, %v844_v48, %v848_v53 }
  0x72   :  { %v252_v11 = vor.u32 %v251_v5, %v248_v3  ;;  %v257_v12 = vsel %vm2577_vm10, %v248_v3, %v256_v2  ;;  %v963_v58 = vrot.slane %v849_v4, 3  ;;  %v2393_v2 = vld [vmem:[#allocation4 + $0x230] sm:$0xff]  ;;  %v367_v3 = vor.u32 %v365_v62, %v363_v25  ;;  %v2391_v4 = vld [vmem:[#allocation4 + $0x220] sm:$0xff]  ;;  %v2382_v62 = vld [vmem:[#allocation4 + $0x1d8] sm:$0xff] }
  0x73   :  { %258 = vst [vmem:[#allocation2 + $0x30] sm:$0x8] %v257_v12  ;;  %v371_v5 = vrot.slane %v369_v63, 1  ;;  %1798 = vmatpush.bf16.msra.mxu0 %v2393_v2  ;;  %1246 = vmatpush.bf16.msra.mxu1 %v2363_v61  ;;  %v953_v12 = vrot.slane %v2674_v38, 3  ;;  %v377_v25 = vshll.u32 %v2659_v20, 16  ;;  %v864_v47 = vrot.slane %v862_v41, 1 }
  0x74   :  { %v253_v18 = vrot.slane %v252_v11, 4  ;;  %656 = vmatmul.bf16.gmra.mxu2 %v2690_v7  ;;  %v964_v0 = vsel %vm951_vm3, %v956_v16, %v963_v58  ;;  %v952_v11 = vrot.slane %v2672_v33, 3  ;;  %v852_v16 = vor.u32 %v850_v9, %v848_v53 }
  0x75   :  { %v266_v21 = vld.sshfl [vmem:[#allocation1] sm:$0xff pattern:$0x75643120]  ;;  %v372_v6 = vsel %vm344_vm2, %v367_v3, %v371_v5  ;;  %v373_v33 = vshrl.u32 %v2645_v60, 16  ;;  %v865_v48 = vsel %vm344_vm2, %v860_v46, %v864_v47  ;;  %v381_v53 = vshrl.u32 %v2659_v20, 16 }
  0x76   :  { %v260_v37 = vsel %vm2595_vm15, %v253_v18, %v259_v15  ;;  %v267_v26 = vshrl.u32 %v266_v21, 16  ;;  %v270_v27 = vshll.u32 %v266_v21, 16  ;;  %1213 = vmatmul.bf16.gmra.mxu0 %v964_v0  ;;  %v2384_v15 = vld [vmem:[#allocation4 + $0x1e8] sm:$0xff]  ;;  %v414_v18 = vrot.slane %v2563_v14, 1 }
  0x77   :  { %261 = vst [vmem:[#allocation2 + $0x34] sm:$0x3] %v260_v37  ;;  %v857_v19 = vsel %vm344_vm2, %v852_v16, %v856_v17  ;;  %v954_v21 = vsel %vm951_vm3, %v952_v11, %v953_v12  ;;  %v416_v37 = vrot.slane %v2645_v60, 1  ;;  %v418_v14 = vrot.slane %v2659_v20, 1  ;;  %1799 = vmatpush.bf16.msra.mxu0 %v2392_v29  ;;  %1247 = vmatpush.bf16.msra.mxu1 %v2362_v31 }
  0x78   :  { %v2701_v32 = vrot.slane %v267_v26, 5  ;;  %v272_v50 = vrot.slane %v270_v27, 6  ;;  %v969_v22 = vrot.slane %v857_v19, 3  ;;  %v415_v23 = vsel %vm410_vm4, %v412_v52, %v414_v18 }
  0x79   :  { %v2739_v27 = vsel %vm410_vm4, %v416_v37, %v418_v14  ;;  %v975_v51 = vrot.slane %v865_v48, 3  ;;  %v417_v52 = vsel %vm410_vm4, %v414_v18, %v416_v37  ;;  %v866_v3 = vshrl.u32 %v2742_v55, 16  ;;  %v2380_v48 = vld [vmem:[#allocation4 + $0x1c8] sm:$0xff] }
  0x7a   :  { %v273_v35 = vor.u32 %v272_v50, %v2701_v32  ;;  %v2705_v36 = vld [vmem:[#allocation2 + $0x30] sm:$0xf]  ;;  %v970_v26 = vsel %vm951_vm3, %v963_v58, %v969_v22  ;;  %v2361_v58 = vld [vmem:[#allocation4 + $0x158] sm:$0xff]  ;;  %v274_v9 = vrot.slane %v2701_v32, 4  ;;  %v389_v32 = vshrl.u32 %v2690_v7, 16 }
  0x7b   :  { %v325_v43 = vunpack.c.l.b16 %v2705_v36  ;;  %v2375_v50 = vld [vmem:[#allocation4 + $0x1a0] sm:$0xff]  ;;  %1800 = vmatpush.bf16.msra.mxu0 %v2391_v4  ;;  %1248 = vmatpush.bf16.msra.mxu1 %v2361_v58  ;;  %v868_v10 = vor.u32 %v866_v3, %v864_v47  ;;  %v2390_v36 = vld [vmem:[#allocation4 + $0x218] sm:$0xff]  ;;  %v2372_v47 = vld [vmem:[#allocation4 + $0x188] sm:$0xff] }
  0x7c   :  { %v278_v42 = vsel %vm2615_vm1, %v273_v35, %v277_v30  ;;  %680 = vmatmul.bf16.gmra.mxu1 %v364_v34  ;;  %v375_v30 = vor.u32 %v373_v33, %v371_v5  ;;  %v379_v34 = vrot.slane %v377_v25, 1  ;;  %v2383_v35 = vld [vmem:[#allocation4 + $0x1e0] sm:$0xff]  ;;  %1712 = vmatpush.bf16.msra.mxu2 %v2375_v50  ;;  %v973_v50 = vrot.slane %v2723_v8, 3  ;;  %v1345_v3 = vld [vmem:[#allocation2 + $0x4] sm:$0x8] }
  0x7d   :  { %279 = vst [vmem:[#allocation2 + $0x34] sm:$0xc] %v278_v42  ;;  %v961_v42 = vrot.slane %v2679_v45, 3  ;;  %v420_v45 = vrot.slane %v2690_v7, 1 }
  0x7e   :  { %v296_v49 = vld [vmem:[#allocation2 + $0x34] sm:$0x1]  ;;  %v380_v60 = vsel %vm344_vm2, %v375_v30, %v379_v34  ;;  %v383_v63 = vor.u32 %v381_v53, %v379_v34  ;;  %v2389_v30 = vld [vmem:[#allocation4 + $0x210] sm:$0xff] }
  0x7f   :  { %v326_v54 = vunpack.c.l.b16 %v296_v49  ;;  %v962_v49 = vsel %vm951_vm3, %v953_v12, %v961_v42  ;;  %v297_v0 = vld [vmem:[#allocation2 + $0x34] sm:$0x3]  ;;  %v280_v12 = vld [vmem:[#allocation2 + $0x38] sm:$0x1]  ;;  %1801 = vmatpush.bf16.msra.mxu0 %v2390_v36 }
  0x81   :  { %v333_v57 = vpack.c.b16 %v326_v54, %v325_v43  ;;  %v385_v54 = vshll.u32 %v2690_v7, 16 }
  0x83   :  { %661 = vmatmul.bf16.vlgmr.msra.gmra.mxu3 %v333_v57  ;;  %v2757_v57 = vsel %vm410_vm4, %v418_v14, %v420_v45  ;;  %v387_v20 = vrot.slane %v385_v54, 1  ;;  %1802 = vmatpush.bf16.msra.mxu0 %v2389_v30  ;;  %v979_v54 = vrot.slane %v2742_v55, 3  ;;  %v2371_v55 = vld [vmem:[#allocation4 + $0x180] sm:$0xff] }
  0x84   :  { %1753 = vmatpush.bf16.msra.mxu3 %v2386_v56  ;;  %719 = vmatmul.bf16.vlgmr.msrb.gmra.mxu2 %v413_v59  ;;  %v976_v56 = vsel %vm951_vm3, %v969_v22, %v975_v51  ;;  %v2374_v59 = vld [vmem:[#allocation4 + $0x198] sm:$0xff]  ;;  %v2760_v61 = vld [vmem:[#allocation2 + $0x30] sm:$0xff]   ;;  %v2381_v22 = vld [vmem:[#allocation4 + $0x1d0] sm:$0xff] }
  0x85   :  { %1713 = vmatpush.bf16.msra.mxu2 %v2374_v59  ;;  %v388_v2 = vsel %vm344_vm2, %v383_v63, %v387_v20  ;;  %v870_v5 = vshll.u32 %v2760_v61, 16 }
  0x86   :  { %1218 = vmatmul.bf16.gmra.mxu0 %v970_v26  ;;  %v2358_v26 = vld [vmem:[#allocation4 + $0x140] sm:$0xff] }
  0x87   :  { %v872_v11 = vrot.slane %v870_v5, 1  ;;  %v1440_v5 = vunpack.c.l.b16 %v1345_v3 }
  0x88   :  { %1754 = vmatpush.bf16.msra.mxu3 %v2385_v1  ;;  %v342_v1 = vunpack.c.l.b16 %v297_v0 }
  0x89   :  { %v873_v16 = vsel %vm344_vm2, %v868_v10, %v872_v11  ;;  %v2461_v10 = vld [vmem:[#allocation2 + $0x14] sm:$0xff]  }
  0x8a   :  { %v2768_v13 = vpack.c.b16 %v342_v1, %v325_v43  ;;  %v981_v18 = vrot.slane %v873_v16, 3  ;;  %v2373_v43 = vld [vmem:[#allocation4 + $0x190] sm:$0xff] }
  0x8b   :  { %1714 = vmatpush.bf16.msra.mxu2 %v2373_v43 }
  0x8c   :  { %685 = vmatmul.bf16.gmra.mxu1 %v372_v6  ;;  %1755 = vmatpush.bf16.msra.mxu3 %v2384_v15  ;;  %v967_v6 = vrot.slane %v2707_v39, 3  ;;  %v281_v15 = vsel %vm2583_vm12, %v274_v9, %v280_v12  ;;  %v2360_v39 = vld [vmem:[#allocation4 + $0x150] sm:$0xff]  ;;  %v393_v19 = vshll.u32 %v2768_v13, 16  ;;  %v397_v46 = vshrl.u32 %v2768_v13, 16  ;;  %v2387_v9 = vld [vmem:[#allocation4 + $0x200] sm:$0xff] }
  0x8d   :  { %282 = vst [vmem:[#allocation2 + $0x38] sm:$0x1] %v281_v15  ;;  %1249 = vmatpush.bf16.msra.mxu1 %v2360_v39  ;;  %v2810_v12 = vld [vmem:[#allocation2 + $0x14] sm:$0xff]  ;;  %v892_v39 = vrot.slane %v2461_v10, 5 }
  0x8e   :  { %v968_v17 = vsel %vm951_vm3, %v961_v42, %v967_v6  ;;  %v395_v33 = vrot.slane %v393_v19, 1  ;;  %v974_v40 = vsel %vm951_vm3, %v967_v6, %v973_v50 }
  0x8f   :  { %1715 = vmatpush.bf16.msra.mxu2 %v2372_v47 }
  0x90   :  { %1756 = vmatpush.bf16.msra.mxu3 %v2383_v35 }
  0x91   :  { %1250 = vmatpush.bf16.msra.mxu1 %v2359_v44 }
  0x93   :  { %1164 = vmatmul.bf16.vlgmr.msrb.gmra.mxu3 %v954_v21  ;;  %v982_v21 = vsel %vm951_vm3, %v975_v51, %v981_v18  ;;  %v399_v51 = vor.u32 %v397_v46, %v395_v33  ;;  %1716 = vmatpush.bf16.msra.mxu2 %v2371_v55 }
  0x94   :  { %724 = vmatmul.bf16.gmra.mxu2 %v415_v23  ;;  %1757 = vmatpush.bf16.msra.mxu3 %v2382_v62  ;;  %v391_v23 = vor.u32 %v389_v32, %v387_v20  ;;  %v783_v25 = vld [vmem:[#allocation2 + $0x38] sm:$0x1]  ;;  %v980_v62 = vsel %vm951_vm3, %v973_v50, %v979_v54  ;;  %v2379_v20 = vld [vmem:[#allocation4 + $0x1c0] sm:$0xff] }
  0x95   :  { %v2778_v37 = vunpack.c.l.b16 %v783_v25  ;;  %1251 = vmatpush.bf16.msra.mxu1 %v2358_v26 }
  0x96   :  { %1223 = vmatmul.bf16.gmra.mxu0 %v976_v56  ;;  %v396_v29 = vsel %vm344_vm2, %v391_v23, %v395_v33  ;;  %v2388_v56 = vld [vmem:[#allocation4 + $0x208] sm:$0xff] }
  0x97   :  { %v821_v14 = vpack.c.b16 %v2778_v37, %v2778_v37  ;;  %1803 = vmatpush.bf16.msra.mxu0 %v2388_v56  ;;  %v1400_v56 = vshll.u32 %v2810_v12, 16 }
  0x98   :  { %1758 = vmatpush.bf16.msra.mxu3 %v2381_v22  ;;  %v1330_v22 = vld [vmem:[#allocation2 + $0x4] sm:$0xc] }
  0x99   :  { %v878_v31 = vshll.u32 %v821_v14, 16  ;;  %v1360_v25 = vunpack.c.l.b16 %v1330_v22 }
  0x9b   :  { %v880_v35 = vrot.slane %v878_v31, 1  ;;  %1804 = vmatpush.bf16.msra.mxu0 %v2387_v9  ;;  %v2465_v9 = vld [vmem:[#allocation2 + $0x24] sm:$0xff]  }
  0x9c   :  { %690 = vmatmul.bf16.gmra.mxu1 %v380_v60  ;;  %1759 = vmatpush.bf16.msra.mxu3 %v2380_v48 }
  0xa0   :  { %1760 = vmatpush.bf16.msra.mxu3 %v2379_v20  ;;  %v1402_v20 = vrot.slane %v1400_v56, 1 }
  0xa2   :  { %v642_v8 = vpop.f32.mrf.mxu1 }
  0xa3   :  { %1169 = vmatmul.bf16.gmra.mxu3 %v962_v49  ;;  %v2401_v49 = vunpack.c.l.b16 %v2674_v38 }
  0xa4   :  { %729 = vmatmul.bf16.gmra.mxu2 %v417_v52  ;;  %v2459_v52 = vld [vmem:[#allocation2 + $0xc] sm:$0xff]  }
  0xa5   :  { %v882_v53 = vpack.c.b16 %v2401_v49, %v799_v28  ;;  %v890_v59 = vrot.slane %v2459_v52, 5 }
  0xa6   :  { %1228 = vmatmul.bf16.gmra.mxu0 %v982_v21 }
  0xa7   :  { %v889_v58 = vrot.slane %v882_v53, 5  ;;  %v893_v23 = vsel %vm131_vm13, %v890_v59, %v892_v39 }
  0xa8   :  { %v965_v26 = vrot.slane %v893_v23, 3 }
  0xa9   :  { %v891_v28 = vsel %vm131_vm13, %v889_v58, %v890_v59  ;;  %v958_v1 = vrot.slane %v889_v58, 3 }
  0xaa   :  { %v2796_v38 = vpop.f32.mrf.mxu1 }
  0xac   :  { %695 = vmatmul.bf16.gmra.mxu1 %v388_v2  ;;  %v959_v2 = vrot.slane %v891_v28, 3 }
  0xae   :  { %v960_v7 = vsel %vm951_vm3, %v958_v1, %v959_v2  ;;  %v966_v50 = vsel %vm951_vm3, %v959_v2, %v965_v26 }
  0xb3   :  { %1174 = vmatmul.bf16.gmra.mxu3 %v968_v17  ;;  %v1445_v17 = vrot.slane %v2810_v12, 1 }
  0xb4   :  { %734 = vmatmul.bf16.gmra.mxu2 %v2739_v27  ;;  %v874_v27 = vshrl.u32 %v2760_v61, 16  ;;  %v632_v4 = vpop.f32.mrf.mxu0 }
  0xb6   :  { %v876_v34 = vor.u32 %v874_v27, %v872_v11  ;;  %v2808_v11 = vld [vmem:[#allocation2 + $0xc] sm:$0xff] }
  0xb7   :  { %v1443_v16 = vrot.slane %v2808_v11, 1  ;;  %v1506_v46 = vrot.slane %v2808_v11, 2 }
  0xb8   :  { %v881_v60 = vsel %vm344_vm2, %v876_v34, %v880_v35  ;;  %v2463_v34 = vld [vmem:[#allocation2 + $0x1c] sm:$0xff]  }
  0xb9   :  { %v987_v41 = vrot.slane %v881_v60, 3  ;;  %v2825_v35 = vld [vmem:[#allocation2 + $0x1c] sm:$0xff]  ;;  %v894_v47 = vrot.slane %v2463_v34, 5 }
  0xba   :  { %v1412_v56 = vshrl.u32 %v2825_v35, 16 }
  0xbb   :  { %v988_v42 = vsel %vm951_vm3, %v981_v18, %v987_v41  ;;  %v895_v59 = vsel %vm131_vm13, %v892_v39, %v894_v47 }
  0xbc   :  { %700 = vmatmul.bf16.gmra.mxu1 %v396_v29  ;;  %1233 = vmatmul.bf16.gmra.mxu0 %v988_v42  ;;  %v2802_v0 = vpop.f32.mrf.mxu0  ;;  %v971_v1 = vrot.slane %v895_v59, 3 }
  0xc3   :  { %1179 = vmatmul.bf16.gmra.mxu3 %v974_v40  ;;  %v1392_v40 = vshll.u32 %v2808_v11, 16 }
  0xc4   :  { %739 = vmatmul.bf16.gmra.mxu2 %v2757_v57  ;;  %v422_v57 = vrot.slane %v2768_v13, 1  ;;  %v985_v13 = vrot.slane %v2760_v61, 3  ;;  %v637_v32 = vpop.f32.mrf.mxu0 }
  0xc5   :  { %v1394_v53 = vrot.slane %v1392_v40, 1  ;;  %v2466_v40 = vld [vmem:[#allocation2 + $0x2c] sm:$0xff]  }
  0xc6   :  { %v423_v63 = vsel %vm410_vm4, %v420_v45, %v422_v57  ;;  %v1361_v45 = vunpack.c.h.b16 %v2666_v24  ;;  %v1446_v24 = vsel %vm410_vm4, %v1443_v16, %v1445_v17  ;;  %v986_v19 = vsel %vm951_vm3, %v979_v54, %v985_v13 }
  0xc7   :  { %v1512_v36 = vrot.slane %v1446_v24, 2  ;;  %v1396_v54 = vshrl.u32 %v2808_v11, 16  ;;  %v2848_v11 = vld [vmem:[#allocation2 + $0x24] sm:$0xff] }
  0xc8   :  { %v1441_v15 = vpack.c.b16 %v1361_v45, %v1440_v5  ;;  %v1374_v29 = vpack.c.b16 %v1361_v45, %v1360_v25 }
  0xc9   :  { %v1398_v55 = vor.u32 %v1396_v54, %v1394_v53 }
  0xca   :  { %v1442_v18 = vrot.slane %v1441_v15, 1  ;;  %v1387_v60 = vshll.u32 %v1374_v29, 16  ;;  %v1505_v42 = vrot.slane %v1374_v29, 2  ;;  %v1385_v49 = vshrl.u32 %v1374_v29, 16 }
  0xcb   :  { %v1403_v5 = vsel %vm344_vm2, %v1398_v55, %v1402_v20 }
  0xcc   :  { %705 = vmatmul.bf16.gmra.mxu1 %v399_v51  ;;  %1238 = vmatmul.bf16.gmra.mxu0 %v987_v41  ;;  %v1444_v21 = vsel %vm410_vm4, %v1442_v18, %v1443_v16  ;;  %v639_v27 = vpop.f32.mrf.mxu0  ;;  %v1447_v41 = vrot.slane %v2825_v35, 1  ;;  %v1389_v52 = vrot.slane %v1387_v60, 1  ;;  %v1509_v15 = vrot.slane %v1403_v5, 2 }
  0xcd   :  { %v1511_v44 = vrot.slane %v1444_v21, 2  ;;  %v1449_v16 = vrot.slane %v2848_v11, 1  ;;  %v896_v18 = vrot.slane %v2465_v9, 5  ;;  %v1404_v21 = vshrl.u32 %v2810_v12, 16 }
  0xce   :  { %v1448_v48 = vsel %vm410_vm4, %v1445_v17, %v1447_v41  ;;  %v1390_v28 = vor.u32 %v1389_v52, %v1385_v49  ;;  %v1514_v17 = vrot.slane %v2810_v12, 2  ;;  %v898_v49 = vrot.slane %v2466_v40, 5 }
  0xcf   :  { %v1513_v33 = vsel %vm1504_vm5, %v1511_v44, %v1512_v36  ;;  %v1518_v51 = vrot.slane %v1448_v48, 2  ;;  %v1450_v39 = vsel %vm410_vm4, %v1447_v41, %v1449_v16  ;;  %v897_v23 = vsel %vm131_vm13, %v894_v47, %v896_v18 }
  0xd0   :  { %v1395_v3 = vsel %vm344_vm2, %v1390_v28, %v1394_v53  ;;  %v1515_v22 = vsel %vm1504_vm5, %v1506_v46, %v1514_v17  ;;  %v977_v27 = vrot.slane %v897_v23, 3  ;;  %v899_v28 = vsel %vm131_vm13, %v896_v18, %v898_v49 }
  0xd1   :  { %v983_v5 = vrot.slane %v899_v28, 3 }
  0xd2   :  { %v978_v60 = vsel %vm951_vm3, %v971_v1, %v977_v27 }
  0xd3   :  { %1184 = vmatmul.bf16.gmra.mxu3 %v980_v62 }
  0xd4   :  { %744 = vmatmul.bf16.gmra.mxu2 %v423_v63  ;;  %v1519_v63 = vsel %vm1504_vm5, %v1512_v36, %v1518_v51  ;;  %v1408_v36 = vshll.u32 %v2825_v35, 16 }
  0xd9   :  { %v2804_v6 = vpop.f32.mrf.mxu1 }
  0xdc   :  { %1252 = vmatmul.bf16.vlgmr.msra.gmra.mxu1 %v960_v7  ;;  %1805 = vmatmul.bf16.vlgmr.msra.gmra.mxu0 %v1513_v33 }
  0xe1   :  { %v2818_v43 = vpop.f32.mrf.mxu1 }
  0xe3   :  { %1189 = vmatmul.bf16.gmra.mxu3 %v986_v19  ;;  %v2836_v62 = vpop.f32.mrf.mxu0  ;;  %v1524_v19 = vrot.slane %v1450_v39, 2 }
  0xe4   :  { %749 = vmatmul.bf16.gmra.mxu2 %v422_v57  ;;  %v1507_v57 = vsel %vm1504_vm5, %v1505_v42, %v1506_v46  ;;  %v2870_v42 = vld [vmem:[#allocation2 + $0x2c] sm:$0xff] }
  0xe5   :  { %v1525_v25 = vsel %vm1504_vm5, %v1518_v51, %v1524_v19  ;;  %v1451_v47 = vrot.slane %v2870_v42, 1 }
  0xe7   :  { %v652_v14 = vpop.f32.mrf.mxu2 }
  0xe8   :  { %v1410_v14 = vrot.slane %v1408_v36, 1 }
  0xe9   :  { %v676_v31 = vpop.f32.mrf.mxu1 }
  0xea   :  { %v2823_v30 = vadd.f32 %v676_v31, %v632_v4 }
  0xeb   :  { %v2846_v10 = vpop.f32.mrf.mxu0 }
  0xec   :  { %1257 = vmatmul.bf16.gmra.mxu1 %v966_v50  ;;  %1810 = vmatmul.bf16.gmra.mxu0 %v1519_v63 }
  0xef   :  { %v654_v8 = vpop.f32.mrf.mxu2 }
  0xf0   :  { %v1520_v8 = vrot.slane %v2825_v35, 2  ;;  %v2886_v35 = vld [vmem:[#allocation2 + $0x34] sm:$0xff]  }
  0xf1   :  { %v678_v4 = vpop.f32.mrf.mxu1 }
  0xf2   :  { %v679_v58 = vadd.f32 %v678_v4, %v2802_v0  ;;  %v972_v0 = vsel %vm951_vm3, %v965_v26, %v971_v1  ;;  %v1406_v26 = vor.u32 %v1404_v21, %v1402_v20  ;;  %v1416_v4 = vshll.u32 %v2848_v11, 16 }
  0xf3   :  { %1194 = vmatmul.bf16.gmra.mxu3 %v985_v13  ;;  %v1508_v13 = vrot.slane %v1395_v3, 2  ;;  %v2860_v33 = vpop.f32.mrf.mxu0  ;;  %v1521_v59 = vsel %vm1504_vm5, %v1514_v17, %v1520_v8  ;;  %v1414_v1 = vor.u32 %v1412_v56, %v1410_v14  ;;  %v984_v17 = vsel %vm951_vm3, %v977_v27, %v983_v5 }
  0xf4   :  { %1717 = vmatmul.bf16.vlgmr.msra.gmra.mxu2 %v1507_v57  ;;  %v1411_v50 = vsel %vm344_vm2, %v1406_v26, %v1410_v14  ;;  %v1418_v3 = vrot.slane %v1416_v4, 1  ;;  %v1526_v21 = vrot.slane %v2848_v11, 2 }
  0xf5   :  { %v1516_v46 = vrot.slane %v1411_v50, 2 }
  0xf6   :  { %v1527_v14 = vsel %vm1504_vm5, %v1520_v8, %v1526_v21 }
  0xf7   :  { %v2839_v2 = vpop.f32.mrf.mxu2  ;;  %v1517_v52 = vsel %vm1504_vm5, %v1509_v15, %v1516_v46 }
  0xf9   :  { %v681_v7 = vpop.f32.mrf.mxu1 }
  0xfa   :  { %v2844_v45 = vadd.f32 %v681_v7, %v637_v32  ;;  %v1510_v32 = vsel %vm1504_vm5, %v1508_v13, %v1509_v15  ;;  %v2888_v7 = vld [vmem:[#allocation2 + $0x34] sm:$0xf]   ;;  %v1419_v15 = vsel %vm344_vm2, %v1414_v1, %v1418_v3 }
  0xfb   :  { %v1216_v41 = vpop.f32.mrf.mxu0 }
  0xfc   :  { %1262 = vmatmul.bf16.gmra.mxu1 %v972_v0  ;;  %1815 = vmatmul.bf16.gmra.mxu0 %v1525_v25  ;;  %v1424_v25 = vshll.u32 %v2870_v42, 16 }
  0xff   :  { %v2853_v24 = vpop.f32.mrf.mxu2 }
 0x101   :  { %v683_v44 = vpop.f32.mrf.mxu1 }
 0x103   :  { %1761 = vmatmul.bf16.vlgmr.msra.gmra.mxu3 %v1510_v32  ;;  %v1219_v55 = vpop.f32.mrf.mxu0 }
 0x104   :  { %1722 = vmatmul.bf16.gmra.mxu2 %v1515_v22 }
 0x106   :  { %v2863_v29 = vpop.f32.mrf.mxu3 }
 0x107   :  { %v720_v12 = vpop.f32.mrf.mxu2 }
 0x108   :  { %v2866_v31 = vadd.f32 %v720_v12, %v2823_v30  ;;  %v1452_v30 = vsel %vm410_vm4, %v1449_v16, %v1451_v47 }
 0x109   :  { %v686_v34 = vpop.f32.mrf.mxu1  ;;  %v1530_v53 = vrot.slane %v1452_v30, 2 }
 0x10b   :  { %v1531_v20 = vsel %vm1504_vm5, %v1524_v19, %v1530_v53  ;;  %v2901_v32 = vpop.f32.mrf.mxu0  ;;  %v1522_v19 = vrot.slane %v1419_v15, 2 }
 0x10c   :  { %1267 = vmatmul.bf16.gmra.mxu1 %v978_v60  ;;  %1820 = vmatmul.bf16.gmra.mxu0 %v1531_v20  ;;  %v1426_v60 = vrot.slane %v1424_v25, 1  ;;  %v2526_v20 = vld [vmem:[#allocation2 + $0x34] sm:$0x70] }
 0x10e   :  { %v2873_v48 = vpop.f32.mrf.mxu3 }
 0x10f   :  { %v722_v51 = vpop.f32.mrf.mxu2 }
 0x110   :  { %v2878_v54 = vadd.f32 %v722_v51, %v679_v58 }
 0x111   :  { %v688_v57 = vpop.f32.mrf.mxu1 }
 0x112   :  { %v689_v63 = vadd.f32 %v688_v57, %v2796_v38  ;;  %v2422_v38 = vunpack.c.h.b16 %v2760_v61 }
 0x113   :  { %1766 = vmatmul.bf16.gmra.mxu3 %v1517_v52  ;;  %v1224_v12 = vpop.f32.mrf.mxu0  ;;  %v1532_v52 = vrot.slane %v2870_v42, 2 }
 0x114   :  { %1727 = vmatmul.bf16.gmra.mxu2 %v1521_v59  ;;  %v888_v39 = vpack.c.b16 %v2778_v37, %v2422_v38  ;;  %v1420_v37 = vshrl.u32 %v2848_v11, 16  ;;  %v1432_v59 = vshll.u32 %v2886_v35, 16 }
 0x115   :  { %v1533_v55 = vsel %vm1504_vm5, %v1526_v21, %v1532_v52 }
 0x116   :  { %v1165_v58 = vpop.f32.mrf.mxu3  ;;  %v900_v36 = vrot.slane %v888_v39, 5  ;;  %v1422_v34 = vor.u32 %v1420_v37, %v1418_v3 }
 0x117   :  { %v2891_v0 = vadd.f32 %v2836_v62, %v1165_v58  ;;  %v725_v9 = vpop.f32.mrf.mxu2  ;;  %v1453_v62 = vrot.slane %v2886_v35, 1 }
 0x118   :  { %v2895_v13 = vadd.f32 %v725_v9, %v2844_v45 }
 0x119   :  { %v691_v16 = vpop.f32.mrf.mxu1  ;;  %v1454_v44 = vsel %vm410_vm4, %v1451_v47, %v1453_v62  ;;  %v1427_v47 = vsel %vm344_vm2, %v1422_v34, %v1426_v60  ;;  %v1542_v4 = vrot.slane %v1453_v62, 2 }
 0x11a   :  { %v692_v18 = vadd.f32 %v691_v16, %v2804_v6  ;;  %v1523_v6 = vsel %vm1504_vm5, %v1516_v46, %v1522_v19  ;;  %v1536_v23 = vrot.slane %v1454_v44, 2  ;;  %v2499_v16 = vor.u32 %v2526_v20, %v2888_v7 }
 0x11b   :  { %v1226_v30 = vpop.f32.mrf.mxu0 }
 0x11c   :  { %1272 = vmatmul.bf16.gmra.mxu1 %v984_v17  ;;  %v1537_v50 = vsel %vm1504_vm5, %v1530_v53, %v1536_v23  ;;  %v1543_v3 = vsel %vm1504_vm5, %v1536_v23, %v1542_v4 }
 0x11d   :  { %1825 = vmatmul.bf16.gmra.mxu0 %v1537_v50 }
 0x11e   :  { %v1167_v61 = vpop.f32.mrf.mxu3 }
 0x11f   :  { %v2906_v45 = vadd.f32 %v2846_v10, %v1167_v61  ;;  %v727_v22 = vpop.f32.mrf.mxu2  ;;  %v901_v10 = vsel %vm131_vm13, %v898_v49, %v900_v36  ;;  %v1528_v49 = vrot.slane %v1427_v47, 2  ;;  %v1538_v61 = vrot.slane %v2499_v16, 2 }
 0x120   :  { %v989_v41 = vrot.slane %v901_v10, 3 }
 0x121   :  { %v693_v26 = vpop.f32.mrf.mxu1  ;;  %v1529_v56 = vsel %vm1504_vm5, %v1522_v19, %v1528_v49 }
 0x122   :  { %v694_v27 = vadd.f32 %v693_v26, %v2818_v43  ;;  %v990_v43 = vsel %vm951_vm3, %v983_v5, %v989_v41  ;;  %v1434_v5 = vrot.slane %v1432_v59, 1 }
 0x123   :  { %1771 = vmatmul.bf16.gmra.mxu3 %v1523_v6  ;;  %v1229_v1 = vpop.f32.mrf.mxu0  ;;  %v1539_v6 = vsel %vm1504_vm5, %v1532_v52, %v1538_v61 }
 0x124   :  { %1732 = vmatmul.bf16.gmra.mxu2 %v1527_v14 }
 0x126   :  { %v1170_v40 = vpop.f32.mrf.mxu3 }
 0x127   :  { %v2917_v11 = vadd.f32 %v2860_v33, %v1170_v40  ;;  %v730_v46 = vpop.f32.mrf.mxu2  ;;  %v1428_v33 = vshrl.u32 %v2870_v42, 16 }
 0x129   :  { %v696_v8 = vpop.f32.mrf.mxu1  ;;  %v1430_v58 = vor.u32 %v1428_v33, %v1426_v60 }
 0x12b   :  { %v1435_v42 = vsel %vm344_vm2, %v1430_v58, %v1434_v5  ;;  %v1231_v19 = vpop.f32.mrf.mxu0 }
 0x12c   :  { %1277 = vmatmul.bf16.gmra.mxu1 %v990_v43  ;;  %v1534_v39 = vrot.slane %v1435_v42, 2 }
 0x12d   :  { %1830 = vmatmul.bf16.gmra.mxu0 %v1543_v3 }
 0x12e   :  { %v1172_v51 = vpop.f32.mrf.mxu3  ;;  %v1535_v44 = vsel %vm1504_vm5, %v1528_v49, %v1534_v39 }
 0x12f   :  { %v732_v53 = vpop.f32.mrf.mxu2 }
 0x130   :  { %v2923_v57 = vadd.f32 %v732_v53, %v689_v63 }
 0x131   :  { %v698_v28 = vpop.f32.mrf.mxu1 }
 0x133   :  { %1776 = vmatmul.bf16.gmra.mxu3 %v1529_v56 }
 0x134   :  { %1737 = vmatmul.bf16.gmra.mxu2 %v1533_v55 }
 0x136   :  { %v1175_v38 = vpop.f32.mrf.mxu3 }
 0x137   :  { %v735_v9 = vpop.f32.mrf.mxu2 }
 0x138   :  { %v2929_v63 = vadd.f32 %v735_v9, %v692_v18 }
 0x139   :  { %v701_v15 = vpop.f32.mrf.mxu1  ;;  %v1234_v37 = vpop.f32.mrf.mxu0 }
 0x13a   :  { %v702_v17 = vadd.f32 %v701_v15, %v2839_v2  ;;  %v1436_v2 = vshrl.u32 %v2886_v35, 16 }
 0x13c   :  { %1282 = vmatmul.bf16.gmra.mxu1 %v989_v41  ;;  %v1438_v26 = vor.u32 %v1436_v2, %v1434_v5 }
 0x13d   :  { %1835 = vmatmul.bf16.gmra.mxu0 %v1542_v4 }
 0x13e   :  { %v1177_v62 = vpop.f32.mrf.mxu3 }
 0x13f   :  { %v2935_v21 = vadd.f32 %v2901_v32, %v1177_v62  ;;  %v737_v36 = vpop.f32.mrf.mxu2 }
 0x140   :  { %v2938_v18 = vadd.f32 %v737_v36, %v694_v27  ;;  %v1540_v27 = vrot.slane %v1438_v26, 2 }
 0x141   :  { %v703_v22 = vpop.f32.mrf.mxu1 }
 0x142   :  { %v704_v7 = vadd.f32 %v703_v22, %v2853_v24  ;;  %v1541_v40 = vsel %vm1504_vm5, %v1534_v39, %v1540_v27  ;;  %v1236_v24 = vpop.f32.mrf.mxu0 }
 0x143   :  { %1781 = vmatmul.bf16.gmra.mxu3 %v1535_v44 }
 0x144   :  { %1742 = vmatmul.bf16.gmra.mxu2 %v1539_v6 }
 0x146   :  { %v1180_v23 = vpop.f32.mrf.mxu3 }
 0x147   :  { %v1225_v25 = vadd.f32 %v1224_v12, %v1180_v23  ;;  %v740_v32 = vpop.f32.mrf.mxu2 }
 0x149   :  { %v706_v14 = vpop.f32.mrf.mxu1 }
 0x14a   :  { %v707_v10 = vadd.f32 %v706_v14, %v2863_v29  ;;  %v1239_v8 = vpop.f32.mrf.mxu0 }
 0x14e   :  { %v1182_v50 = vpop.f32.mrf.mxu3 }
 0x14f   :  { %v2944_v34 = vadd.f32 %v1226_v30, %v1182_v50  ;;  %v742_v60 = vpop.f32.mrf.mxu2 }
 0x151   :  { %v708_v41 = vpop.f32.mrf.mxu1 }
 0x152   :  { %v1241_v56 = vpop.f32.mrf.mxu0  ;;  %v709_v58 = vadd.f32 %v708_v41, %v2873_v48 }
 0x153   :  { %1786 = vmatmul.bf16.gmra.mxu3 %v1541_v40 }
 0x154   :  { %1747 = vmatmul.bf16.gmra.mxu2 %v1538_v61 }
 0x156   :  { %v1185_v35 = vpop.f32.mrf.mxu3 }
 0x157   :  { %v745_v46 = vpop.f32.mrf.mxu2 }
 0x158   :  { %v2947_v47 = vadd.f32 %v745_v46, %v702_v17 }
 0x159   :  { %v1253_v12 = vpop.f32.mrf.mxu1 }
 0x15a   :  { %v1254_v43 = vadd.f32 %v1253_v12, %v2891_v0  ;;  %v1806_v3 = vpop.f32.mrf.mxu0 }
 0x15c   :  { %v1302_v29 = vadd.f32 %v1254_v43, %v2866_v31 }
 0x15e   :  { %v1187_v49 = vpop.f32.mrf.mxu3 }
 0x15f   :  { %v747_v30 = vpop.f32.mrf.mxu2 }
 0x160   :  { %v2951_v51 = vadd.f32 %v747_v30, %v704_v7 }
 0x161   :  { %v1255_v52 = vpop.f32.mrf.mxu1 }
 0x162   :  { %v1256_v53 = vadd.f32 %v1255_v52, %v2906_v45  ;;  %v1808_v16 = vpop.f32.mrf.mxu0 }
 0x163   :  { %1791 = vmatmul.bf16.gmra.mxu3 %v1540_v27 }
 0x164   :  { %v1303_v4 = vadd.f32 %v1256_v53, %v2878_v54 }
 0x166   :  { %v1190_v33 = vpop.f32.mrf.mxu3 }
 0x167   :  { %v2955_v59 = vadd.f32 %v1234_v37, %v1190_v33  ;;  %v750_v28 = vpop.f32.mrf.mxu2 }
 0x168   :  { %v2957_v55 = vadd.f32 %v750_v28, %v707_v10 }
 0x169   :  { %v1258_v0 = vpop.f32.mrf.mxu1 }
 0x16a   :  { %v1259_v31 = vadd.f32 %v1258_v0, %v2917_v11  ;;  %v1811_v62 = vpop.f32.mrf.mxu0 }
 0x16c   :  { %v1304_v20 = vadd.f32 %v1259_v31, %v2895_v13 }
 0x16e   :  { %v1192_v1 = vpop.f32.mrf.mxu3 }
 0x16f   :  { %v2962_v5 = vadd.f32 %v1236_v24, %v1192_v1  ;;  %v752_v45 = vpop.f32.mrf.mxu2 }
 0x170   :  { %v753_v38 = vadd.f32 %v752_v45, %v709_v58 }
 0x171   :  { %v1260_v54 = vpop.f32.mrf.mxu1 }
 0x172   :  { %768 = vst [vmem:[#allocation3 + $0x68] sm:$0x3] %v753_v38  ;;  %v1813_v37 = vpop.f32.mrf.mxu0 }
 0x176   :  { %v1195_v9 = vpop.f32.mrf.mxu3 }
 0x177   :  { %v2964_v42 = vadd.f32 %v1239_v8, %v1195_v9  ;;  %v1718_v15 = vpop.f32.mrf.mxu2 }
 0x179   :  { %v1263_v17 = vpop.f32.mrf.mxu1 }
 0x17a   :  { %v1816_v41 = vpop.f32.mrf.mxu0 }
 0x17e   :  { %v1197_v39 = vpop.f32.mrf.mxu3 }
 0x17f   :  { %v2966_v11 = vadd.f32 %v1241_v56, %v1197_v39  ;;  %v1720_v13 = vpop.f32.mrf.mxu2 }
 0x181   :  { %v1265_v19 = vpop.f32.mrf.mxu1 }
 0x182   :  { %v1266_v48 = vadd.f32 %v1265_v19, %v2935_v21  ;;  %v1818_v28 = vpop.f32.mrf.mxu0 }
 0x184   :  { %v2970_v61 = vadd.f32 %v1266_v48, %v2923_v57  ;;  %v2978_v57 = vld [vmem:[%s3044_s2] ss:$0 sm:$0xff] }
 0x186   :  { %v1762_v36 = vpop.f32.mrf.mxu3 }
 0x187   :  { %v1763_v44 = vadd.f32 %v1762_v36, %v1718_v15  ;;  %v1723_v22 = vpop.f32.mrf.mxu2 }
 0x189   :  { %v1807_v6 = vadd.f32 %v1806_v3, %v1763_v44  ;;  %v1268_v7 = vpop.f32.mrf.mxu1 }
 0x18a   :  { %v1269_v23 = vadd.f32 %v1268_v7, %v1225_v25  ;;  %v1821_v15 = vpop.f32.mrf.mxu0 }
 0x18b   :  { %v1855_v2 = vadd.f32 %v1807_v6, %v1302_v29 }
 0x18c   :  { %v2973_v32 = vadd.f32 %v1269_v23, %v2929_v63 }
 0x18d   :  { %1869 = vst [vmem:[#allocation3] sm:$0xff] %v1855_v2 }
 0x18e   :  { %v1764_v26 = vpop.f32.mrf.mxu3 }
 0x18f   :  { %v1765_v14 = vadd.f32 %v1764_v26, %v1720_v13  ;;  %v1725_v10 = vpop.f32.mrf.mxu2 }
 0x191   :  { %v1809_v21 = vadd.f32 %v1808_v16, %v1765_v14  ;;  %v1270_v27 = vpop.f32.mrf.mxu1 }
 0x192   :  { %v1271_v60 = vadd.f32 %v1270_v27, %v2944_v34 }
 0x193   :  { %v1856_v50 = vadd.f32 %v1809_v21, %v1303_v4 }
 0x194   :  { %v1884_v40 = vld [vmem:[#allocation3] sm:$0xf]  ;;  %v2983_v63 = vadd.f32 %v1271_v60, %v2938_v18 }
 0x195   :  { %v1888_v25 = vadd.f32 %v2978_v57, %v1884_v40  ;;  %1870 = vst [vmem:[#allocation3 + $0x8] sm:$0xff] %v1856_v50 }
 0x196   :  { %v1767_v24 = vpop.f32.mrf.mxu3 }
 0x197   :  { %v1889_v35 = vmax.f32 %v1888_v25, 0.0  ;;  %v1768_v46 = vadd.f32 %v1767_v24, %v1723_v22  ;;  %v1728_v12 = vpop.f32.mrf.mxu2  ;;  %v1823_v22 = vpop.f32.mrf.mxu0  ;;  %v1301_v24 = vld [vmem:[#allocation3 + $0x68] sm:$0x3] }
 0x199   :  { %v1890_v8 = vpack.c.bf16 %v1889_v35, %v1889_v35  ;;  %v1812_v43 = vadd.f32 %v1811_v62, %v1768_v46  ;;  %v1273_v29 = vpop.f32.mrf.mxu1 }
 0x19b   :  { %1891 = vst [vmem:[%s3045_s3] sm:$0x3] %v1890_v8  ;;  %v1857_v34 = vadd.f32 %v1812_v43, %v1304_v20 }
 0x19c   :  { %v1892_v49 = vld [vmem:[#allocation3 + $0x6] sm:$0xf]  ;;  %v1898_v30 = vld [vmem:[#allocation3 + $0xc] sm:$0xf] }
 0x19d   :  { %v1893_v52 = vadd.f32 %v2978_v57, %v1892_v49  ;;  %v1899_v18 = vadd.f32 %v2978_v57, %v1898_v30  ;;  %1871 = vst [vmem:[#allocation3 + $0x10] sm:$0xff] %v1857_v34 }
 0x19e   :  { %v1769_v53 = vpop.f32.mrf.mxu3 }
 0x19f   :  { %v1894_v56 = vmax.f32 %v1893_v52, 0.0  ;;  %v1900_v4 = vmax.f32 %v1899_v18, 0.0  ;;  %v1730_v33 = vpop.f32.mrf.mxu2  ;;  %v1826_v21 = vpop.f32.mrf.mxu0 }
 0x1a1   :  { %v1895_v0 = vpack.c.bf16 %v1894_v56, %v1894_v56  ;;  %v1901_v31 = vpack.c.bf16 %v1900_v4, %v1900_v4  ;;  %v1275_v1 = vpop.f32.mrf.mxu1 }
 0x1a3   :  { %2302 = vst [vmem:[%s3045_s3 + $0x2] sm:$0x3] %v1895_v0 }
 0x1a4   :  { %2303 = vst [vmem:[%s3045_s3 + $0x4] sm:$0x3] %v1901_v31  ;;  %v1904_v20 = vld [vmem:[#allocation3 + $0x12] sm:$0xf] }
 0x1a5   :  { %v1905_v3 = vadd.f32 %v2978_v57, %v1904_v20 }
 0x1a6   :  { %v1772_v58 = vpop.f32.mrf.mxu3 }
 0x1a7   :  { %v1906_v45 = vmax.f32 %v1905_v3, 0.0  ;;  %v1733_v38 = vpop.f32.mrf.mxu2  ;;  %v1828_v8 = vpop.f32.mrf.mxu0 }
 0x1a9   :  { %v1907_v54 = vpack.c.bf16 %v1906_v45, %v1906_v45  ;;  %v1278_v9 = vpop.f32.mrf.mxu1 }
 0x1aa   :  { %v1279_v16 = vadd.f32 %v1278_v9, %v2955_v59 }
 0x1ab   :  { %2304 = vst [vmem:[%s3045_s3 + $0x6] sm:$0x3] %v1907_v54 }
 0x1ac   :  { %v1312_v17 = vadd.f32 %v1279_v16, %v2947_v47 }
 0x1ae   :  { %v1774_v39 = vpop.f32.mrf.mxu3 }
 0x1af   :  { %v1775_v13 = vadd.f32 %v1774_v39, %v1730_v33  ;;  %v1735_v48 = vpop.f32.mrf.mxu2  ;;  %v1831_v4 = vpop.f32.mrf.mxu0 }
 0x1b1   :  { %v1819_v19 = vadd.f32 %v1818_v28, %v1775_v13  ;;  %v1280_v62 = vpop.f32.mrf.mxu1 }
 0x1b2   :  { %v1281_v44 = vadd.f32 %v1280_v62, %v2962_v5 }
 0x1b3   :  { %v1860_v36 = vadd.f32 %v1819_v19, %v2970_v61 }
 0x1b4   :  { %v1313_v6 = vadd.f32 %v1281_v44, %v2951_v51 }
 0x1b5   :  { %1874 = vst [vmem:[#allocation3 + $0x28] sm:$0xff] %v1860_v36 }
 0x1b6   :  { %v1777_v7 = vpop.f32.mrf.mxu3 }
 0x1b7   :  { %v1778_v2 = vadd.f32 %v1777_v7, %v1733_v38  ;;  %v1738_v14 = vpop.f32.mrf.mxu2  ;;  %v1833_v20 = vpop.f32.mrf.mxu0 }
 0x1b9   :  { %v1822_v23 = vadd.f32 %v1821_v15, %v1778_v2  ;;  %v1283_v37 = vpop.f32.mrf.mxu1 }
 0x1ba   :  { %v1284_v47 = vadd.f32 %v1283_v37, %v2964_v42 }
 0x1bb   :  { %v1861_v59 = vadd.f32 %v1822_v23, %v2973_v32 }
 0x1bc   :  { %v1910_v26 = vld [vmem:[#allocation3 + $0x2a] sm:$0xf]  ;;  %v1314_v61 = vadd.f32 %v1284_v47, %v2957_v55 }
 0x1bd   :  { %v1911_v10 = vadd.f32 %v2978_v57, %v1910_v26  ;;  %1875 = vst [vmem:[#allocation3 + $0x30] sm:$0xff] %v1861_v59 }
 0x1be   :  { %v1779_v5 = vpop.f32.mrf.mxu3 }
 0x1bf   :  { %v1912_v27 = vmax.f32 %v1911_v10, 0.0  ;;  %v1780_v50 = vadd.f32 %v1779_v5, %v1735_v48  ;;  %v1740_v35 = vpop.f32.mrf.mxu2  ;;  %v1836_v16 = vpop.f32.mrf.mxu0 }
 0x1c1   :  { %v1913_v51 = vpack.c.bf16 %v1912_v27, %v1912_v27  ;;  %v1824_v60 = vadd.f32 %v1823_v22, %v1780_v50  ;;  %v1285_v40 = vpop.f32.mrf.mxu1 }
 0x1c2   :  { %v1286_v32 = vadd.f32 %v1285_v40, %v2966_v11 }
 0x1c3   :  { %2305 = vst [vmem:[%s3045_s3 + $0x8] sm:$0x3] %v1913_v51  ;;  %v1862_v42 = vadd.f32 %v1824_v60, %v2983_v63 }
 0x1c4   :  { %v1916_v25 = vld [vmem:[#allocation3 + $0x30] sm:$0xf]  ;;  %v1315_v55 = vadd.f32 %v1301_v24, %v1286_v32 }
 0x1c5   :  { %v1917_v41 = vadd.f32 %v2978_v57, %v1916_v25  ;;  %1876 = vst [vmem:[#allocation3 + $0x38] sm:$0xff] %v1862_v42 }
 0x1c6   :  { %v1782_v46 = vpop.f32.mrf.mxu3  ;;  %1329 = vst [vmem:[#allocation3 + $0x68] sm:$0x3] %v1315_v55 }
 0x1c7   :  { %v1918_v12 = vmax.f32 %v1917_v41, 0.0  ;;  %v1743_v18 = vpop.f32.mrf.mxu2  ;;  %v1838_v23 = vpop.f32.mrf.mxu0 }
 0x1c9   :  { %v1919_v43 = vpack.c.bf16 %v1918_v12, %v1918_v12 }
 0x1cb   :  { %2306 = vst [vmem:[%s3045_s3 + $0xa] sm:$0x3] %v1919_v43 }
 0x1cc   :  { %v1922_v29 = vld [vmem:[#allocation3 + $0x36] sm:$0xf]  ;;  %v1928_v63 = vld [vmem:[#allocation3 + $0x3c] sm:$0xf] }
 0x1cd   :  { %v1923_v11 = vadd.f32 %v2978_v57, %v1922_v29  ;;  %v1929_v34 = vadd.f32 %v2978_v57, %v1928_v63  ;;  %v1854_v47 = vld [vmem:[#allocation3 + $0x68] sm:$0x3] }
 0x1ce   :  { %v1784_v49 = vpop.f32.mrf.mxu3 }
 0x1cf   :  { %v1924_v30 = vmax.f32 %v1923_v11, 0.0  ;;  %v1930_v52 = vmax.f32 %v1929_v34, 0.0  ;;  %v1745_v31 = vpop.f32.mrf.mxu2 }
 0x1d1   :  { %v1925_v53 = vpack.c.bf16 %v1924_v30, %v1924_v30  ;;  %v1931_v56 = vpack.c.bf16 %v1930_v52, %v1930_v52 }
 0x1d3   :  { %2307 = vst [vmem:[%s3045_s3 + $0xc] sm:$0x3] %v1925_v53 }
 0x1d4   :  { %2308 = vst [vmem:[%s3045_s3 + $0xe] sm:$0x3] %v1931_v56 }
 0x1d6   :  { %v1787_v33 = vpop.f32.mrf.mxu3 }
 0x1d7   :  { %v1788_v28 = vadd.f32 %v1787_v33, %v1743_v18  ;;  %v1748_v9 = vpop.f32.mrf.mxu2 }
 0x1d9   :  { %v1832_v0 = vadd.f32 %v1831_v4, %v1788_v28 }
 0x1db   :  { %v1865_v1 = vadd.f32 %v1832_v0, %v1312_v17 }
 0x1dd   :  { %1879 = vst [vmem:[#allocation3 + $0x50] sm:$0xff] %v1865_v1 }
 0x1de   :  { %v1789_v3 = vpop.f32.mrf.mxu3 }
 0x1df   :  { %v1790_v58 = vadd.f32 %v1789_v3, %v1745_v31  ;;  %v1750_v22 = vpop.f32.mrf.mxu2 }
 0x1e1   :  { %v1834_v45 = vadd.f32 %v1833_v20, %v1790_v58 }
 0x1e3   :  { %v1866_v38 = vadd.f32 %v1834_v45, %v1313_v6 }
 0x1e4   :  { %v1934_v54 = vld [vmem:[#allocation3 + $0x54] sm:$0xf] }
 0x1e5   :  { %v1935_v15 = vadd.f32 %v2978_v57, %v1934_v54  ;;  %1880 = vst [vmem:[#allocation3 + $0x58] sm:$0xff] %v1866_v38 }
 0x1e6   :  { %v1792_v39 = vpop.f32.mrf.mxu3 }
 0x1e7   :  { %v1936_v13 = vmax.f32 %v1935_v15, 0.0  ;;  %v1793_v19 = vadd.f32 %v1792_v39, %v1748_v9 }
 0x1e9   :  { %v1937_v62 = vpack.c.bf16 %v1936_v13, %v1936_v13  ;;  %v1837_v48 = vadd.f32 %v1836_v16, %v1793_v19 }
 0x1eb   :  { %2309 = vst [vmem:[%s3045_s3 + $0x10] sm:$0x3] %v1937_v62  ;;  %v1867_v17 = vadd.f32 %v1837_v48, %v1314_v61 }
 0x1ec   :  { %v1940_v36 = vld [vmem:[#allocation3 + $0x5a] sm:$0xf] }
 0x1ed   :  { %v1941_v44 = vadd.f32 %v2978_v57, %v1940_v36  ;;  %1881 = vst [vmem:[#allocation3 + $0x60] sm:$0xff] %v1867_v17 }
 0x1ee   :  { %v1794_v6 = vpop.f32.mrf.mxu3 }
 0x1ef   :  { %v1942_v7 = vmax.f32 %v1941_v44, 0.0  ;;  %v1795_v2 = vadd.f32 %v1794_v6, %v1750_v22 }
 0x1f1   :  { %v1943_v37 = vpack.c.bf16 %v1942_v7, %v1942_v7  ;;  %v1839_v59 = vadd.f32 %v1838_v23, %v1795_v2 }
 0x1f3   :  { %2310 = vst [vmem:[%s3045_s3 + $0x12] sm:$0x3] %v1943_v37  ;;  %v1868_v26 = vadd.f32 %v1854_v47, %v1839_v59 }
 0x1f4   :  { %v1946_v14 = vld [vmem:[#allocation3 + $0x60] sm:$0xf] }
 0x1f5   :  { %v1947_v10 = vadd.f32 %v2978_v57, %v1946_v14  ;;  %1882 = vst [vmem:[#allocation3 + $0x68] sm:$0x3] %v1868_v26 }
 0x1f7   :  { %v1948_v61 = vmax.f32 %v1947_v10, 0.0 }
 0x1f9   :  { %v1949_v5 = vpack.c.bf16 %v1948_v61, %v1948_v61 }
 0x1fb   :  { %2311 = vst [vmem:[%s3045_s3 + $0x14] sm:$0x3] %v1949_v5 }
 0x1fc   :  { %v1952_v21 = vld [vmem:[#allocation3 + $0x66] sm:$0xf] }
 0x1fd   :  { %v1953_v27 = vadd.f32 %v2978_v57, %v1952_v21 }
 0x1ff   :  { %v1954_v50 = vmax.f32 %v1953_v27, 0.0 }
 0x201   :  { %v1955_v51 = vpack.c.bf16 %v1954_v50, %v1954_v50 }
 0x203   :  { %2312 = vst [vmem:[%s3045_s3 + $0x16] sm:$0x3] %v1955_v51 }
 0x204   :  { %1962 = vsyncpa [#allocation5], 1 }

// kernel: fwd.17
= control target key start
LH: loop header
LB: loop body
LE: loop exit
PB: predicated region body
PF: predicated region fallthrough
CT: control target
= control target key end

     0   :  { %8 = vsyncpa [#allocation3], 0  ;;  %s664_s12 = smov 0   ;;  %s736_s0 = inlined_call_operand.vmem [shape: bf16[48,256], index: 0, kind: input, shape index: {}]   ;;  %s737_s1 = inlined_call_operand.vmem [shape: bf16[256,128], index: 1, kind: input, shape index: {}]   ;;  %s738_s2 = inlined_call_operand.hbm [shape: f32[1,128], index: 2, kind: input, shape index: {}]   ;;  %s739_s3 = inlined_call_operand.vmem [shape: bf16[48,128], index: 3, kind: output, shape index: {}]  }
   0x1 LB: > { %s457_s13 = sadd.s32 4294967295, %s641_s12   ;;  %p459_p0 = scmp.ge.s32.totalorder %s641_s12, 1  ;;  %s641_s12 = sphi %s664_s12, %s14_s12  }
   0x2   : > { %p113_p1 = scmp.lt.s32.totalorder %s641_s12, 3  ;;  %s128_s16 = sshll.u32 %s738_s2, 4  ;;  %s129_s16 = int_to_ptr.hbm [resolvable:$true] %s128_s16 }
   0x3   : > { %p589_p3 = scmp.eq.s32.totalorder %s457_s13, 0  ;;  %s643_s17 = smov [#allocation2]  }
   0x4   : > { %p114_p2 = pnand %p459_p0, %p113_p1  ;;  %s130_s18 = sshll.u32 %s643_s17, 4  ;;  %s131_s18 = int_to_ptr.vmem [resolvable:$true] %s130_s18 }
   0x6   : > { %p585_p4 = pneg %p114_p2  ;;  %153 = sbr.rel (%p114_p2) target bundleno = 187 (0xbb), region = 32 }
   0x8   : > { %p586_p5 = pnand %p589_p3, %p585_p4 }
   0xa   : > { %588 = dma.hbm_to_vmem [thread:$0]  (!%p586_p5), %s129_s16, 16, %s131_s18, [#allocation3]  }
   0xb   : > { %636 = dma.done.wait (%p589_p3), [#allocation3], 16  }
   0xc   : > { %638 = vsyncadd (%p589_p3), [#allocation3], 4294967280  ;;  %v551_v0 = vld [vmem:[%s737_s1 + $0x38] sm:$0xff]  ;;  %v550_v2 = vld [vmem:[%s737_s1 + $0x30] sm:$0xff]  ;;  %s179_s27 = smul.u32 3, %s457_s13 }
   0xd   : > { %v559_v1 = vld [vmem:[%s737_s1 + $0x78] sm:$0xff]  ;;  %344 = vmatpush.bf16.msra.mxu0 %v551_v0  ;;  %565 = vmatpush.bf16.msra.mxu2 %v551_v0  ;;  %v558_v3 = vld [vmem:[%s737_s1 + $0x70] sm:$0xff]  ;;  %v549_v4 = vld [vmem:[%s737_s1 + $0x28] sm:$0xff] }
   0xe   : > { %362 = vmatpush.bf16.msra.mxu1 %v559_v1  ;;  %573 = vmatpush.bf16.msra.mxu3 %v559_v1  ;;  %v557_v5 = vld [vmem:[%s737_s1 + $0x68] sm:$0xff]  ;;  %p180_p6 = scmp.lt.s32.totalorder %s179_s27, 5  ;;  %v548_v6 = vld [vmem:[%s737_s1 + $0x20] sm:$0xff]  ;;  %v547_v8 = vld [vmem:[%s737_s1 + $0x18] sm:$0xff] }
   0xf   : > { %v556_v7 = vld [vmem:[%s737_s1 + $0x60] sm:$0xff]  ;;  %v555_v9 = vld [vmem:[%s737_s1 + $0x58] sm:$0xff]  ;;  %v546_v10 = vld [vmem:[%s737_s1 + $0x10] sm:$0xff] }
  0x10   : > { %s741_s27 = smov (!%p180_p6, %s179_s27), 5  ;;  %v554_v11 = vld [vmem:[%s737_s1 + $0x50] sm:$0xff]  ;;  %v545_v12 = vld [vmem:[%s737_s1 + $0x8] sm:$0xff]  ;;  %v544_v16 = vld [vmem:[%s737_s1] sm:$0xff] }
  0x11   : > { %345 = vmatpush.bf16.msra.mxu0 %v550_v2  ;;  %566 = vmatpush.bf16.msra.mxu2 %v550_v2  ;;  %s541_s14 = sshll.u32 %s741_s27, 3  ;;  %v553_v14 = vld [vmem:[%s737_s1 + $0x48] sm:$0xff]  ;;  %v552_v20 = vld [vmem:[%s737_s1 + $0x40] sm:$0xff]  ;;  %s466_s4 = sshll.u32 %s741_s27, 2 }
  0x12   : > { %363 = vmatpush.bf16.msra.mxu1 %v558_v3  ;;  %574 = vmatpush.bf16.msra.mxu3 %v558_v3  ;;  %s184_s21 = scalar_lea.vmem %s736_s0, %s541_s14  ;;  %v600_v28 = vld [vmem:[#allocation2] ss:$0 sm:$0xff]  ;;  %s190_s7 = scalar_lea.vmem %s739_s3, %s466_s4 }
  0x13   : > { %v194_v13 = vld [vmem:[%s184_s21 + $0x10] sm:$0xff]  ;;  %v469_v17 = vld [vmem:[%s184_s21] sm:$0xf]  ;;  %v543_v18 = vld [vmem:[%s184_s21 + $0x4] sm:$0xf0] }
  0x14   : > { %v238_v15 = vunpack.c.l.b16 %v194_v13  ;;  %v239_v19 = vunpack.c.h.b16 %v194_v13  ;;  %v542_v21 = vld [vmem:[%s184_s21 + $0x4] sm:$0xf]  ;;  %v471_v22 = vld [vmem:[%s184_s21 + $0x8] sm:$0xf0]  ;;  %v470_v23 = vor.u32 %v543_v18, %v469_v17 }
  0x15   : > { %346 = vmatpush.bf16.msra.mxu0 %v549_v4  ;;  %567 = vmatpush.bf16.msra.mxu2 %v549_v4  ;;  %v474_v25 = vor.u32 %v542_v21, %v471_v22 }
  0x16   : > { %364 = vmatpush.bf16.msra.mxu1 %v557_v5  ;;  %575 = vmatpush.bf16.msra.mxu3 %v557_v5  ;;  %v242_v24 = vpack.c.b16 %v238_v15, %v238_v15  ;;  %v243_v26 = vpack.c.b16 %v239_v19, %v239_v19 }
  0x19   : > { %347 = vmatpush.bf16.msra.mxu0 %v548_v6  ;;  %568 = vmatpush.bf16.msra.mxu2 %v548_v6 }
  0x1a   : > { %365 = vmatpush.bf16.msra.mxu1 %v556_v7  ;;  %576 = vmatpush.bf16.msra.mxu3 %v556_v7 }
  0x1d   : > { %348 = vmatpush.bf16.msra.mxu0 %v547_v8  ;;  %569 = vmatpush.bf16.msra.mxu2 %v547_v8 }
  0x1e   : > { %366 = vmatpush.bf16.msra.mxu1 %v555_v9  ;;  %577 = vmatpush.bf16.msra.mxu3 %v555_v9 }
  0x21   : > { %349 = vmatpush.bf16.msra.mxu0 %v546_v10  ;;  %570 = vmatpush.bf16.msra.mxu2 %v546_v10 }
  0x22   : > { %367 = vmatpush.bf16.msra.mxu1 %v554_v11  ;;  %578 = vmatpush.bf16.msra.mxu3 %v554_v11 }
  0x25   : > { %350 = vmatpush.bf16.msra.mxu0 %v545_v12  ;;  %571 = vmatpush.bf16.msra.mxu2 %v545_v12 }
  0x26   : > { %368 = vmatpush.bf16.msra.mxu1 %v553_v14  ;;  %579 = vmatpush.bf16.msra.mxu3 %v553_v14 }
  0x29   : > { %351 = vmatpush.bf16.msra.mxu0 %v544_v16  ;;  %572 = vmatpush.bf16.msra.mxu2 %v544_v16 }
  0x2a   : > { %369 = vmatpush.bf16.msra.mxu1 %v552_v20  ;;  %580 = vmatpush.bf16.msra.mxu3 %v552_v20 }
  0x2c   : > { %352 = vmatmul.bf16.vlgmr.msra.gmra.mxu0 %v470_v23  ;;  %357 = vmatmul.bf16.vlgmr.msra.gmra.mxu2 %v242_v24 }
  0x2d   : > { %370 = vmatmul.bf16.vlgmr.msra.gmra.mxu1 %v474_v25  ;;  %375 = vmatmul.bf16.vlgmr.msra.gmra.mxu3 %v243_v26 }
  0xa9   : > { %v353_v27 = vpop.f32.mrf.mxu0 }
  0xaa   : > { %v371_v29 = vpop.f32.mrf.mxu1  ;;  %v354_v30 = vadd.f32 %v600_v28, %v353_v27 }
  0xac   : > { %v372_v35 = vadd.f32 %v371_v29, %v354_v30 }
  0xae   : > { %v380_v41 = vmax.f32 %v372_v35, 0.0 }
  0xaf   : > { %v358_v31 = vpop.f32.mrf.mxu2 }
  0xb0   : > { %v359_v32 = vadd.f32 %v600_v28, %v358_v31  ;;  %v376_v33 = vpop.f32.mrf.mxu3 }
  0xb1   : > { %v355_v34 = vpop.f32.mrf.mxu0 }
  0xb2   : > { %v377_v36 = vadd.f32 %v376_v33, %v359_v32  ;;  %v356_v37 = vadd.f32 %v600_v28, %v355_v34  ;;  %v373_v38 = vpop.f32.mrf.mxu1 }
  0xb4   : > { %v382_v39 = vmax.f32 %v377_v36, 0.0  ;;  %v374_v40 = vadd.f32 %v373_v38, %v356_v37 }
  0xb6   : > { %v385_v42 = vpack.c.bf16 %v382_v39, %v382_v39  ;;  %v381_v43 = vmax.f32 %v374_v40, 0.0 }
  0xb7   : > { %v360_v44 = vpop.f32.mrf.mxu2 }
  0xb8   : > { %388 = vst [vmem:[%s190_s7 + $0x8] sm:$0xf] %v385_v42  ;;  %v563_v45 = vpack.c.bf16 %v381_v43, %v380_v41  ;;  %v378_v46 = vpop.f32.mrf.mxu3 }
  0xba   : > { %564 = vst [vmem:[%s190_s7] sm:$0xff] %v563_v45  }
  0xbb PF: > { %s14_s12 = sadd.s32 1, %s641_s12  }
  0xbc   : > { %p11_p7 = scmp.ge.s32.totalorder %s14_s12, 4  }
  0xbe   :  { %13 = sbr.rel (!%p11_p7) target bundleno = 1 (0x1), region = 67 }
  0xc3   :  { %411 = vsyncpa [#allocation3], 1 }
  0xc4   :  { %413 = vsyncpa [#allocation3 + $0x1], 1 }

// kernel: fwd.15
= control target key start
LH: loop header
LB: loop body
LE: loop exit
PB: predicated region body
PF: predicated region fallthrough
CT: control target
= control target key end

     0   :  { %8 = vsyncpa [#allocation5], 0  ;;  %s2619_s15 = smov [#allocation4]   ;;  %s3345_s0 = inlined_call_operand.vmem [shape: bf16[3,4,4,128], index: 0, kind: input, shape index: {}]   ;;  %s3346_s1 = inlined_call_operand.vmem [shape: bf16[3,384,128], index: 1, kind: input, shape index: {}]   ;;  %s3347_s2 = inlined_call_operand.hbm [shape: f32[1,128], index: 2, kind: input, shape index: {}]   ;;  %s3348_s3 = inlined_call_operand.vmem [shape: bf16[3,4,4,128], index: 3, kind: output, shape index: {}]  }
   0x1   :  { %s18_s14 = sshll.u32 %s3347_s2, 4  ;;  %s20_s16 = sshll.u32 %s2619_s15, 4  ;;  %s19_s14 = int_to_ptr.hbm [resolvable:$true] %s18_s14  ;;  %s21_s16 = int_to_ptr.vmem [resolvable:$true] %s20_s16 }
   0x2   :  { %23 = dma.hbm_to_vmem [thread:$0]  %s19_s14, 16, %s21_s16, [#allocation5]  }
   0x3   :  { %2616 = dma.done.wait [#allocation5], 16  }
   0x4   :  { %2617 = vsyncadd [#allocation5], 4294967280  ;;  %v2620_v0 = vmov 0   ;;  %v2419_v1 = vld [vmem:[%s3346_s1 + $0x38] sm:$0xff]  ;;  %v2418_v2 = vld [vmem:[%s3346_s1 + $0x30] sm:$0xff]  ;;  %vm59_vm0 = vcmask 1043459  }
   0x5   :  { %33 = vst [vmem:[#allocation2 + $0x10] sm:$0xf] %v2620_v0  ;;  %2561 = vmatpush.bf16.msra.mxu1 %v2419_v1  ;;  %2562 = vmatpush.bf16.msra.mxu2 %v2419_v1  ;;  %v2417_v3 = vld [vmem:[%s3346_s1 + $0x28] sm:$0xff]  ;;  %v2416_v4 = vld [vmem:[%s3346_s1 + $0x20] sm:$0xff]  ;;  %v2415_v6 = vld [vmem:[%s3346_s1 + $0x18] sm:$0xff]  ;;  %vm65_vm2 = vcmask 1041408  }
   0x6   :  { %34 = vst [vmem:[#allocation2 + $0x14] sm:$0xf] %v2620_v0  ;;  %621 = vmatpush.bf16.msra.mxu0 %v2419_v1  ;;  %2563 = vmatpush.bf16.msra.mxu3 %v2419_v1  ;;  %v45_v5 = vld [vmem:[%s3345_s0] sm:$0x3]  ;;  %v2414_v7 = vld [vmem:[%s3346_s1 + $0x10] sm:$0xff]  ;;  %v2413_v9 = vld [vmem:[%s3346_s1 + $0x8] sm:$0xff] }
   0x7   :  { %29 = vst [vmem:[#allocation2] sm:$0xf] %v2620_v0  ;;  %v1961_v8 = vld [vmem:[%s3345_s0 + $0x2] sm:$0x3]  ;;  %v2427_v12 = vld [vmem:[%s3346_s1 + $0x78] sm:$0xff]  ;;  %v2426_v16 = vld [vmem:[%s3346_s1 + $0x70] sm:$0xff] }
   0x8   :  { %30 = vst [vmem:[#allocation2 + $0x4] sm:$0xf] %v2620_v0  ;;  %v2412_v11 = vld [vmem:[%s3346_s1] sm:$0xff]  ;;  %v2425_v17 = vld [vmem:[%s3346_s1 + $0x68] sm:$0xff]  ;;  %vm60_vm1 = vsmask.f32 7950 }
   0x9   :  { %31 = vst [vmem:[#allocation2 + $0x8] sm:$0xf] %v2620_v0  ;;  %2564 = vmatpush.bf16.msra.mxu1 %v2418_v2  ;;  %2565 = vmatpush.bf16.msra.mxu2 %v2418_v2  ;;  %v1962_v13 = vld [vmem:[%s3345_s0 + $0x4] sm:$0x3]  ;;  %v1963_v18 = vld [vmem:[%s3345_s0 + $0x6] sm:$0x3]  ;;  %vm2703_vm10 = vmand %vm59_vm0, %vm60_vm1 }
   0xa   :  { %32 = vst [vmem:[#allocation2 + $0xc] sm:$0xf] %v2620_v0  ;;  %622 = vmatpush.bf16.msra.mxu0 %v2418_v2  ;;  %2566 = vmatpush.bf16.msra.mxu3 %v2418_v2  ;;  %v2424_v20 = vld [vmem:[%s3346_s1 + $0x60] sm:$0xff]  ;;  %v1964_v21 = vld [vmem:[%s3345_s0 + $0x8] sm:$0x3]  ;;  %vm86_vm4 = vcmask 1043458  }
   0xb   :  { %35 = vst [vmem:[#allocation2 + $0x18] sm:$0xf] %v2620_v0  ;;  %vm66_vm3 = vsmask.f32 1280  ;;  %vm87_vm5 = vsmask.f32 7946 }
   0xc   :  { %36 = vst [vmem:[#allocation2 + $0x1c] sm:$0xf] %v2620_v0  ;;  %vm92_vm6 = vcmask 1040384   ;;  %vm93_vm7 = vsmask.f32 256  ;;  %vm111_vm8 = vcmask 1043457   ;;  %vm2727_vm15 = vmand %vm65_vm2, %vm66_vm3 }
   0xd   :  { %37 = vst [vmem:[#allocation2 + $0x20] sm:$0xf] %v2620_v0  ;;  %2567 = vmatpush.bf16.msra.mxu1 %v2417_v3  ;;  %2568 = vmatpush.bf16.msra.mxu2 %v2417_v3  ;;  %v2680_v14 = vld [vmem:[#allocation2 + $0x10] sm:$0xff]  ;;  %v1965_v33 = vld [vmem:[%s3345_s0 + $0xa] sm:$0x3]  ;;  %vm2712_vm12 = vmand %vm92_vm6, %vm93_vm7  ;;  %vm129_vm13 = vcmask 1042432  }
   0xe   :  { %38 = vst [vmem:[#allocation2 + $0x24] sm:$0xf] %v2620_v0  ;;  %623 = vmatpush.bf16.msra.mxu0 %v2417_v3  ;;  %2569 = vmatpush.bf16.msra.mxu3 %v2417_v3  ;;  %vm112_vm9 = vsmask.f32 3334  ;;  %vm130_vm11 = vsmask.f32 2306  ;;  %vm2747_vm1 = vmand %vm86_vm4, %vm87_vm5 }
   0xf   :  { %39 = vst [vmem:[#allocation2 + $0x28] sm:$0xf] %v2620_v0  ;;  %v2423_v42 = vld [vmem:[%s3346_s1 + $0x58] sm:$0xff]  ;;  %v2422_v49 = vld [vmem:[%s3346_s1 + $0x50] sm:$0xff]  ;;  %vm2721_vm14 = vmand %vm111_vm8, %vm112_vm9  ;;  %vm342_vm2 = vsmask.f32 7424 }
  0x10   :  { %40 = vst [vmem:[#allocation2 + $0x2c] sm:$0xf] %v2620_v0  ;;  %v95_v51 = vld [vmem:[#allocation2 + $0x8] sm:$0x1]  ;;  %v114_v52 = vld [vmem:[#allocation2 + $0x8] sm:$0xe]  ;;  %vm2739_vm0 = vmand %vm129_vm13, %vm130_vm11 }
  0x11   :  { %41 = vst [vmem:[#allocation2 + $0x30] sm:$0xf] %v2620_v0  ;;  %2570 = vmatpush.bf16.msra.mxu1 %v2416_v4  ;;  %2571 = vmatpush.bf16.msra.mxu2 %v2416_v4  ;;  %v62_v53 = vld [vmem:[#allocation2] sm:$0x8]  ;;  %v68_v60 = vld [vmem:[#allocation2 + $0x4] sm:$0x3] }
  0x12   :  { %42 = vst [vmem:[#allocation2 + $0x34] sm:$0xf] %v2620_v0  ;;  %624 = vmatpush.bf16.msra.mxu0 %v2416_v4  ;;  %2572 = vmatpush.bf16.msra.mxu3 %v2416_v4  ;;  %v147_v62 = vld [vmem:[#allocation2 + $0x18] sm:$0x7]  ;;  %v132_v3 = vld [vmem:[#allocation2 + $0xc] sm:$0x7] }
  0x13   :  { %43 = vst [vmem:[#allocation2 + $0x38] sm:$0xf] %v2620_v0  ;;  %v89_v0 = vld [vmem:[#allocation2 + $0x4] sm:$0xc]  ;;  %v2444_v61 = vld [vmem:[%s3346_s1 + $0x100] sm:$0xff]  ;;  %vm949_vm3 = vcmask 1044480  }
  0x14   :  { %47 = vst [vmem:[#allocation1] ss:$2 sm:$0xff] %v45_v5  ;;  %v1966_v5 = vld [vmem:[%s3345_s0 + $0xc] sm:$0x3]  ;;  %v2488_v37 = vld [vmem:[%s3346_s1 + $0x238] sm:$0xff]  ;;  %vm408_vm4 = vcmask 1046528  }
  0x15   :  { %2573 = vmatpush.bf16.msra.mxu1 %v2415_v6  ;;  %2574 = vmatpush.bf16.msra.mxu2 %v2415_v6  ;;  %v2484_v44 = vld [vmem:[%s3346_s1 + $0x218] sm:$0xff]  ;;  %vm1502_vm5 = vcmask 1045504  }
  0x16   :  { %625 = vmatpush.bf16.msra.mxu0 %v2415_v6  ;;  %2575 = vmatpush.bf16.msra.mxu3 %v2415_v6 }
  0x19   :  { %2576 = vmatpush.bf16.msra.mxu1 %v2414_v7  ;;  %2577 = vmatpush.bf16.msra.mxu2 %v2414_v7 }
  0x1a   :  { %626 = vmatpush.bf16.msra.mxu0 %v2414_v7  ;;  %2578 = vmatpush.bf16.msra.mxu3 %v2414_v7 }
  0x1b   :  { %v48_v10 = vld.sshfl [vmem:[#allocation1] sm:$0xff pattern:$0x75643120] }
  0x1c   :  { %74 = vst [vmem:[#allocation1] ss:$2 sm:$0xff] %v1961_v8  ;;  %v49_v23 = vshll.u32 %v48_v10, 16  ;;  %v52_v24 = vshrl.u32 %v48_v10, 16 }
  0x1d   :  { %2579 = vmatpush.bf16.msra.mxu1 %v2413_v9  ;;  %2580 = vmatpush.bf16.msra.mxu2 %v2413_v9 }
  0x1e   :  { %627 = vmatpush.bf16.msra.mxu0 %v2413_v9  ;;  %2581 = vmatpush.bf16.msra.mxu3 %v2413_v9  ;;  %v51_v26 = vrot.slane %v49_v23, 5  ;;  %v54_v27 = vrot.slane %v52_v24, 4  ;;  %v2421_v9 = vld [vmem:[%s3346_s1 + $0x48] sm:$0xff] }
  0x1f   :  { %v1967_v23 = vld [vmem:[%s3345_s0 + $0xe] sm:$0x3] }
  0x20   :  { %v55_v36 = vor.u32 %v54_v27, %v51_v26  ;;  %v63_v59 = vsel %vm2703_vm10, %v51_v26, %v62_v53  ;;  %v2433_v26 = vld [vmem:[%s3346_s1 + $0xa8] sm:$0xff] }
  0x21   :  { %2582 = vmatpush.bf16.msra.mxu1 %v2412_v11  ;;  %2583 = vmatpush.bf16.msra.mxu2 %v2412_v11  ;;  %64 = vst [vmem:[#allocation2] sm:$0x8] %v63_v59 }
  0x22   :  { %628 = vmatpush.bf16.msra.mxu0 %v2412_v11  ;;  %2584 = vmatpush.bf16.msra.mxu3 %v2412_v11  ;;  %v56_v46 = vrot.slane %v55_v36, 4  ;;  %v186_v36 = vld [vmem:[#allocation2 + $0x1c] sm:$0xc] }
  0x23   :  { %v75_v15 = vld.sshfl [vmem:[#allocation1] sm:$0xff pattern:$0x75643120] }
  0x24   :  { %101 = vst [vmem:[#allocation1] ss:$2 sm:$0xff] %v1962_v13  ;;  %639 = vmatmul.bf16.vlgmr.msra.gmra.mxu1 %v2680_v14  ;;  %v76_v25 = vshrl.u32 %v75_v15, 16  ;;  %v79_v28 = vshll.u32 %v75_v15, 16  ;;  %v69_v63 = vsel %vm2727_vm15, %v56_v46, %v68_v60  ;;  %v2435_v13 = vld [vmem:[%s3346_s1 + $0xb8] sm:$0xff] }
  0x25   :  { %665 = vmatpush.bf16.msrb.mxu1 %v2427_v12  ;;  %70 = vst [vmem:[#allocation2 + $0x4] sm:$0x3] %v69_v63  ;;  %v165_v15 = vld [vmem:[#allocation2 + $0x18] sm:$0x8]  ;;  %709 = vmatpush.bf16.msrb.mxu2 %v2435_v13  ;;  %v1969_v63 = vld [vmem:[%s3345_s0 + $0x12] sm:$0x3] }
  0x26   :  { %v78_v32 = vrot.slane %v76_v25, 5  ;;  %v81_v38 = vrot.slane %v79_v28, 6 }
  0x28   :  { %v83_v43 = vrot.slane %v78_v32, 4  ;;  %v82_v54 = vor.u32 %v81_v38, %v78_v32  ;;  %v189_v38 = vld [vmem:[#allocation2 + $0x20] sm:$0x1] }
  0x29   :  { %666 = vmatpush.bf16.msrb.mxu1 %v2426_v16  ;;  %v2420_v16 = vld [vmem:[%s3346_s1 + $0x40] sm:$0xff] }
  0x2a   :  { %v96_v57 = vsel %vm2712_vm12, %v83_v43, %v95_v51  ;;  %v90_v7 = vsel %vm2747_vm1, %v82_v54, %v89_v0  ;;  %v1968_v43 = vld [vmem:[%s3345_s0 + $0x10] sm:$0x3] }
  0x2b   :  { %v102_v19 = vld.sshfl [vmem:[#allocation1] sm:$0xff pattern:$0x75643120]  ;;  %97 = vst [vmem:[#allocation2 + $0x8] sm:$0x1] %v96_v57  ;;  %v2450_v51 = vld [vmem:[%s3346_s1 + $0x130] sm:$0xff] }
  0x2c   :  { %120 = vst [vmem:[#allocation1] ss:$2 sm:$0xff] %v1963_v18  ;;  %v103_v29 = vshrl.u32 %v102_v19, 16  ;;  %v106_v30 = vshll.u32 %v102_v19, 16  ;;  %v2434_v19 = vld [vmem:[%s3346_s1 + $0xb0] sm:$0xff] }
  0x2d   :  { %667 = vmatpush.bf16.msrb.mxu1 %v2425_v17  ;;  %91 = vst [vmem:[#allocation2 + $0x4] sm:$0xc] %v90_v7  ;;  %710 = vmatpush.bf16.msrb.mxu2 %v2434_v19  ;;  %v2430_v54 = vld [vmem:[%s3346_s1 + $0x90] sm:$0xff]  ;;  %v205_v57 = vld [vmem:[#allocation2 + $0x20] sm:$0xe]  ;;  %v2447_v19 = vld [vmem:[%s3346_s1 + $0x118] sm:$0xff] }
  0x2e   :  { %v105_v34 = vrot.slane %v103_v29, 6  ;;  %v108_v35 = vrot.slane %v106_v30, 7 }
  0x30   :  { %v109_v45 = vor.u32 %v108_v35, %v105_v34  ;;  %v2432_v34 = vld [vmem:[%s3346_s1 + $0xa0] sm:$0xff]  ;;  %v2451_v35 = vld [vmem:[%s3346_s1 + $0x138] sm:$0xff] }
  0x31   :  { %668 = vmatpush.bf16.msrb.mxu1 %v2424_v20  ;;  %711 = vmatpush.bf16.msrb.mxu2 %v2433_v26  ;;  %v2438_v26 = vld [vmem:[%s3346_s1 + $0xd0] sm:$0xff] }
  0x32   :  { %v115_v58 = vsel %vm2721_vm14, %v109_v45, %v114_v52  ;;  %1198 = vmatpush.bf16.msrb.mxu0 %v2451_v35  ;;  %v2437_v35 = vld [vmem:[%s3346_s1 + $0xc8] sm:$0xff] }
  0x33   :  { %v121_v22 = vld.sshfl [vmem:[#allocation1] sm:$0xff pattern:$0x75643120]  ;;  %116 = vst [vmem:[#allocation2 + $0x8] sm:$0xe] %v115_v58  ;;  %v2449_v58 = vld [vmem:[%s3346_s1 + $0x128] sm:$0xff] }
  0x34   :  { %138 = vst [vmem:[#allocation1] ss:$2 sm:$0xff] %v1964_v21  ;;  %v122_v31 = vshrl.u32 %v121_v22, 16  ;;  %v125_v40 = vshll.u32 %v121_v22, 16  ;;  %v168_v22 = vld [vmem:[#allocation2 + $0x1c] sm:$0x3] }
  0x35   :  { %669 = vmatpush.bf16.msrb.mxu1 %v2423_v42  ;;  %v2782_v30 = vld [vmem:[#allocation2] sm:$0xff]   ;;  %712 = vmatpush.bf16.msrb.mxu2 %v2432_v34 }
  0x36   :  { %v124_v39 = vrot.slane %v122_v31, 7  ;;  %629 = vmatmul.bf16.vlgmr.msra.gmra.mxu0 %v2782_v30  ;;  %v2443_v31 = vld [vmem:[%s3346_s1 + $0xf8] sm:$0xff]  ;;  %v344_v13 = vshrl.u32 %v2782_v30, 16 }
  0x37   :  { %1154 = vmatpush.bf16.msrb.mxu3 %v2443_v31  ;;  %1199 = vmatpush.bf16.msrb.mxu0 %v2450_v51 }
  0x38   :  { %v127_v1 = vor.u32 %v125_v40, %v124_v39 }
  0x39   :  { %670 = vmatpush.bf16.msrb.mxu1 %v2422_v49  ;;  %v2442_v49 = vld [vmem:[%s3346_s1 + $0xf0] sm:$0xff] }
  0x3a   :  { %v133_v10 = vsel %vm2739_vm0, %v127_v1, %v132_v3  ;;  %v2440_v3 = vld [vmem:[%s3346_s1 + $0xe0] sm:$0xff] }
  0x3b   :  { %v139_v41 = vld.sshfl [vmem:[#allocation1] sm:$0xff pattern:$0x75643120]  ;;  %134 = vst [vmem:[#allocation2 + $0xc] sm:$0x7] %v133_v10  ;;  %1155 = vmatpush.bf16.msrb.mxu3 %v2442_v49  ;;  %1200 = vmatpush.bf16.msrb.mxu0 %v2449_v58 }
  0x3c   :  { %v140_v47 = vshrl.u32 %v139_v41, 16  ;;  %v143_v48 = vshll.u32 %v139_v41, 16  ;;  %153 = vst [vmem:[#allocation1] ss:$2 sm:$0xff] %v1965_v33 }
  0x3d   :  { %671 = vmatpush.bf16.msrb.mxu1 %v2421_v9 }
  0x3e   :  { %v142_v56 = vrot.slane %v140_v47, 7 }
  0x40   :  { %v145_v2 = vor.u32 %v143_v48, %v142_v56  ;;  %v2431_v48 = vld [vmem:[%s3346_s1 + $0x98] sm:$0xff]  ;;  %v2441_v56 = vld [vmem:[%s3346_s1 + $0xe8] sm:$0xff] }
  0x41   :  { %672 = vmatpush.bf16.msrb.mxu1 %v2420_v16  ;;  %713 = vmatpush.bf16.msrb.mxu2 %v2431_v48 }
  0x42   :  { %v148_v6 = vsel %vm2739_vm0, %v145_v2, %v147_v62  ;;  %1156 = vmatpush.bf16.msrb.mxu3 %v2441_v56  ;;  %v2826_v0 = vld [vmem:[#allocation2 + $0x8] sm:$0xff]  ;;  %v2429_v2 = vld [vmem:[%s3346_s1 + $0x88] sm:$0xff]  ;;  %v2436_v56 = vld [vmem:[%s3346_s1 + $0xc0] sm:$0xff] }
  0x43   :  { %149 = vst [vmem:[#allocation2 + $0x18] sm:$0x7] %v148_v6  ;;  %v154_v8 = vld.sshfl [vmem:[#allocation1] sm:$0xff pattern:$0x75643120]  ;;  %v351_v16 = vshll.u32 %v2826_v0, 16 }
  0x44   :  { %v155_v11 = vshll.u32 %v154_v8, 16  ;;  %v158_v12 = vshrl.u32 %v154_v8, 16  ;;  %174 = vst [vmem:[#allocation1] ss:$2 sm:$0xff] %v1966_v5  ;;  %v346_v5 = vshll.u32 %v2782_v30, 16  ;;  %v2448_v8 = vld [vmem:[%s3346_s1 + $0x120] sm:$0xff] }
  0x45   :  { %714 = vmatpush.bf16.msrb.mxu2 %v2430_v54  ;;  %1201 = vmatpush.bf16.msrb.mxu0 %v2448_v8  ;;  %v353_v30 = vrot.slane %v351_v16, 1  ;;  %v355_v8 = vshrl.u32 %v2826_v0, 16 }
  0x46   :  { %v157_v17 = vrot.slane %v155_v11, 5  ;;  %v160_v18 = vrot.slane %v158_v12, 4  ;;  %634 = vmatmul.bf16.gmra.mxu0 %v2826_v0  ;;  %1157 = vmatpush.bf16.msrb.mxu3 %v2440_v3  ;;  %v221_v11 = vld [vmem:[#allocation2 + $0x2c] sm:$0xe]  ;;  %v2428_v12 = vld [vmem:[%s3346_s1 + $0x80] sm:$0xff] }
  0x48   :  { %v161_v20 = vor.u32 %v160_v18, %v157_v17  ;;  %v166_v21 = vsel %vm2703_vm10, %v157_v17, %v165_v15  ;;  %v348_v15 = vrot.slane %v346_v5, 1  ;;  %v2439_v18 = vld [vmem:[%s3346_s1 + $0xd8] sm:$0xff] }
  0x49   :  { %167 = vst [vmem:[#allocation2 + $0x18] sm:$0x8] %v166_v21  ;;  %715 = vmatpush.bf16.msrb.mxu2 %v2429_v2  ;;  %v1970_v21 = vld [vmem:[%s3345_s0 + $0x14] sm:$0x3]  ;;  %1202 = vmatpush.bf16.msrb.mxu0 %v2447_v19  ;;  %v357_v19 = vor.u32 %v355_v8, %v353_v30 }
  0x4a   :  { %v162_v24 = vrot.slane %v161_v20, 4  ;;  %1158 = vmatpush.bf16.msrb.mxu3 %v2439_v18 }
  0x4b   :  { %v175_v25 = vld.sshfl [vmem:[#allocation1] sm:$0xff pattern:$0x75643120] }
  0x4c   :  { %v169_v27 = vsel %vm2727_vm15, %v162_v24, %v168_v22  ;;  %v176_v28 = vshrl.u32 %v175_v25, 16  ;;  %v179_v29 = vshll.u32 %v175_v25, 16  ;;  %195 = vst [vmem:[#allocation1] ss:$2 sm:$0xff] %v1967_v23  ;;  %v767_v23 = vld [vmem:[#allocation2] sm:$0x8] }
  0x4d   :  { %170 = vst [vmem:[#allocation2 + $0x1c] sm:$0x3] %v169_v27  ;;  %716 = vmatpush.bf16.msrb.mxu2 %v2428_v12  ;;  %v2858_v24 = vld [vmem:[#allocation2 + $0x4] sm:$0xff]   ;;  %v796_v27 = vunpack.c.l.b16 %v767_v23 }
  0x4e   :  { %v178_v32 = vrot.slane %v176_v28, 5  ;;  %v181_v33 = vrot.slane %v179_v29, 6  ;;  %v797_v28 = vunpack.c.l.b16 %v2858_v24  ;;  %v349_v29 = vor.u32 %v348_v15, %v344_v13  ;;  %1159 = vmatpush.bf16.msrb.mxu3 %v2438_v26  ;;  %v257_v15 = vld [vmem:[#allocation2 + $0x34] sm:$0x3] }
  0x50   :  { %v182_v39 = vor.u32 %v181_v33, %v178_v32  ;;  %v183_v40 = vrot.slane %v178_v32, 4  ;;  %v2446_v32 = vld [vmem:[%s3346_s1 + $0x110] sm:$0xff]  ;;  %v2870_v33 = vpack.c.b16 %v797_v28, %v796_v27 }
  0x51   :  { %1203 = vmatpush.bf16.msrb.mxu0 %v2446_v32  ;;  %v275_v32 = vld [vmem:[#allocation2 + $0x34] sm:$0xc] }
  0x52   :  { %v187_v41 = vsel %vm2747_vm1, %v182_v39, %v186_v36  ;;  %v190_v42 = vsel %vm2712_vm12, %v183_v40, %v189_v38  ;;  %v2445_v36 = vld [vmem:[%s3346_s1 + $0x108] sm:$0xff]  ;;  %v2878_v38 = vld [vmem:[#allocation2 + $0x8] sm:$0xff]   ;;  %v236_v39 = vld [vmem:[#allocation2 + $0x30] sm:$0x7]  ;;  %v823_v40 = vshll.u32 %v2870_v33, 16  ;;  %1160 = vmatpush.bf16.msrb.mxu3 %v2437_v35 }
  0x53   :  { %188 = vst [vmem:[#allocation2 + $0x1c] sm:$0xc] %v187_v41  ;;  %v196_v45 = vld.sshfl [vmem:[#allocation1] sm:$0xff pattern:$0x75643120]  ;;  %v828_v41 = vshll.u32 %v2878_v38, 16 }
  0x54   :  { %191 = vst [vmem:[#allocation2 + $0x20] sm:$0x1] %v190_v42  ;;  %v197_v46 = vshrl.u32 %v196_v45, 16  ;;  %v200_v47 = vshll.u32 %v196_v45, 16  ;;  %v354_v42 = vsel %vm342_vm2, %v349_v29, %v353_v30  ;;  %v2883_v45 = vld [vmem:[#allocation2 + $0x10] sm:$0xff]   ;;  %v825_v48 = vrot.slane %v823_v40, 1 }
  0x55   :  { %211 = vst [vmem:[#allocation1] ss:$2 sm:$0xff] %v1968_v43  ;;  %v830_v49 = vrot.slane %v828_v41, 1  ;;  %1204 = vmatpush.bf16.msrb.mxu0 %v2445_v36  ;;  %v2517_v29 = vld [vmem:[#allocation2] sm:$0xf0]  ;;  %v840_v40 = vshrl.u32 %v2883_v45, 16 }
  0x56   :  { %v199_v52 = vrot.slane %v197_v46, 6  ;;  %v202_v53 = vrot.slane %v200_v47, 7  ;;  %v1971_v46 = vld [vmem:[%s3345_s0 + $0x16] sm:$0x3]  ;;  %v821_v47 = vshrl.u32 %v2870_v33, 16  ;;  %1161 = vmatpush.bf16.msrb.mxu3 %v2436_v56 }
  0x58   :  { %v203_v59 = vor.u32 %v202_v53, %v199_v52  ;;  %v832_v52 = vshrl.u32 %v2878_v38, 16  ;;  %v836_v53 = vshll.u32 %v2883_v45, 16 }
  0x59   :  { %1205 = vmatpush.bf16.msrb.mxu0 %v2444_v61  ;;  %v363_v61 = vshrl.u32 %v2680_v14, 16 }
  0x5a   :  { %v2819_v60 = vld [vmem:[#allocation2 + $0x18] sm:$0xff]  ;;  %v206_v62 = vsel %vm2721_vm14, %v203_v59, %v205_v57  ;;  %v826_v57 = vor.u32 %v825_v48, %v821_v47  ;;  %v2471_v47 = vld [vmem:[%s3346_s1 + $0x1b0] sm:$0xff] }
  0x5b   :  { %207 = vst [vmem:[#allocation2 + $0x20] sm:$0xe] %v206_v62  ;;  %644 = vmatmul.bf16.gmra.mxu1 %v2819_v60  ;;  %v2459_v62 = vld [vmem:[%s3346_s1 + $0x178] sm:$0xff] }
  0x5c   :  { %v212_v1 = vld.sshfl [vmem:[#allocation1] sm:$0xff pattern:$0x75643120]  ;;  %v831_v2 = vsel %vm342_vm2, %v826_v57, %v830_v49  ;;  %1242 = vmatpush.bf16.msra.mxu1 %v2459_v62 }
  0x5d   :  { %v213_v6 = vshrl.u32 %v212_v1, 16  ;;  %v216_v7 = vshll.u32 %v212_v1, 16  ;;  %227 = vst [vmem:[#allocation1] ss:$2 sm:$0xff] %v1969_v63  ;;  %v834_v63 = vor.u32 %v832_v52, %v830_v49  ;;  %v254_v1 = vld [vmem:[#allocation2 + $0x30] sm:$0x8]  ;;  %1795 = vmatpush.bf16.msra.mxu0 %v2488_v37 }
  0x5e   :  { %v410_v52 = vrot.slane %v2826_v0, 1  ;;  %v367_v0 = vshll.u32 %v2819_v60, 16  ;;  %v371_v37 = vshrl.u32 %v2819_v60, 16 }
  0x5f   :  { %v215_v9 = vrot.slane %v213_v6, 6  ;;  %v218_v10 = vrot.slane %v216_v7, 7  ;;  %v838_v6 = vrot.slane %v836_v53, 1 }
  0x61   :  { %v219_v17 = vor.u32 %v218_v10, %v215_v9  ;;  %v359_v9 = vshll.u32 %v2680_v14, 16  ;;  %v953_v10 = vrot.slane %v831_v2, 3  ;;  %v839_v13 = vsel %vm342_vm2, %v834_v63, %v838_v6  ;;  %v2479_v63 = vld [vmem:[%s3346_s1 + $0x1f0] sm:$0xff]  ;;  %v2457_v2 = vld [vmem:[%s3346_s1 + $0x168] sm:$0xff] }
  0x62   :  { %v2851_v20 = vld [vmem:[#allocation2 + $0x20] sm:$0xff]  ;;  %v954_v16 = vrot.slane %v839_v13, 3  ;;  %v842_v48 = vor.u32 %v840_v40, %v838_v6 }
  0x63   :  { %v222_v22 = vsel %vm2721_vm14, %v219_v17, %v221_v11  ;;  %649 = vmatmul.bf16.vlgmr.msra.gmra.mxu2 %v2851_v20  ;;  %v2472_v17 = vld [vmem:[%s3346_s1 + $0x1b8] sm:$0xff]  ;;  %v361_v23 = vrot.slane %v359_v9, 1  ;;  %v2960_v8 = vld [vmem:[#allocation2 + $0x20] sm:$0xff]  }
  0x64   :  { %223 = vst [vmem:[#allocation2 + $0x2c] sm:$0xe] %v222_v22  ;;  %v228_v25 = vld.sshfl [vmem:[#allocation1] sm:$0xff pattern:$0x75643120]  ;;  %v955_v22 = vsel %vm949_vm3, %v953_v10, %v954_v16  ;;  %1707 = vmatpush.bf16.msra.mxu2 %v2472_v17  ;;  %v852_v10 = vshll.u32 %v2960_v8, 16 }
  0x65   :  { %v229_v50 = vshrl.u32 %v228_v25, 16  ;;  %v232_v31 = vshll.u32 %v228_v25, 16  ;;  %242 = vst [vmem:[#allocation1] ss:$2 sm:$0xff] %v1970_v21  ;;  %1206 = vmatmul.bf16.vlgmr.msrb.gmra.mxu0 %v955_v22  ;;  %v2470_v13 = vld [vmem:[%s3346_s1 + $0x1a8] sm:$0xff]  ;;  %v856_v40 = vshrl.u32 %v2960_v8, 16 }
  0x66   :  { %v854_v17 = vrot.slane %v852_v10, 1 }
  0x67   :  { %v231_v34 = vrot.slane %v229_v50, 7  ;;  %v2518_v50 = vld [vmem:[#allocation2] sm:$0xe] }
  0x68   :  { %v2519_v55 = vor.u32 %v2518_v50, %v2517_v29  ;;  %1708 = vmatpush.bf16.msra.mxu2 %v2471_v47  ;;  %v2486_v29 = vld [vmem:[%s3346_s1 + $0x228] sm:$0xff]  ;;  %v2456_v50 = vld [vmem:[%s3346_s1 + $0x160] sm:$0xff] }
  0x69   :  { %v234_v43 = vor.u32 %v232_v31, %v231_v34  ;;  %v362_v34 = vsel %vm342_vm2, %v357_v19, %v361_v23 }
  0x6b   :  { %v237_v51 = vsel %vm2739_vm0, %v234_v43, %v236_v39  ;;  %673 = vmatmul.bf16.vlgmr.msrb.gmra.mxu1 %v354_v42  ;;  %v2903_v7 = vld [vmem:[#allocation2 + $0x28] sm:$0xff]  ;;  %v2926_v39 = vld [vmem:[#allocation2 + $0x18] sm:$0xff]  }
  0x6c   :  { %238 = vst [vmem:[#allocation2 + $0x30] sm:$0x7] %v237_v51  ;;  %v243_v54 = vld.sshfl [vmem:[#allocation1] sm:$0xff pattern:$0x75643120]  ;;  %v844_v41 = vshll.u32 %v2926_v39, 16  ;;  %1709 = vmatpush.bf16.msra.mxu2 %v2470_v13 }
  0x6d   :  { %v244_v58 = vshll.u32 %v243_v54, 16  ;;  %v247_v59 = vshrl.u32 %v243_v54, 16  ;;  %263 = vst [vmem:[#allocation1] ss:$2 sm:$0xff] %v1971_v46  ;;  %v2458_v46 = vld [vmem:[%s3346_s1 + $0x170] sm:$0xff]  ;;  %v409_v51 = vrot.slane %v2519_v55, 1 }
  0x6e   :  { %v846_v53 = vrot.slane %v844_v41, 1  ;;  %1243 = vmatpush.bf16.msra.mxu1 %v2458_v46  ;;  %v2480_v54 = vld [vmem:[%s3346_s1 + $0x1f8] sm:$0xff]  ;;  %v848_v9 = vshrl.u32 %v2926_v39, 16  ;;  %v2997_v55 = vld [vmem:[#allocation2 + $0x28] sm:$0xff]   ;;  %v858_v46 = vor.u32 %v856_v40, %v854_v17 }
  0x6f   :  { %v246_v3 = vrot.slane %v244_v58, 5  ;;  %v249_v5 = vrot.slane %v247_v59, 4  ;;  %v411_v59 = vsel %vm408_vm4, %v409_v51, %v410_v52  ;;  %v860_v41 = vshll.u32 %v2997_v55, 16 }
  0x70   :  { %v847_v56 = vsel %vm342_vm2, %v842_v48, %v846_v53 }
  0x71   :  { %v250_v11 = vor.u32 %v249_v5, %v246_v3  ;;  %v255_v12 = vsel %vm2703_vm10, %v246_v3, %v254_v1  ;;  %v961_v58 = vrot.slane %v847_v56, 3  ;;  %v2487_v1 = vld [vmem:[%s3346_s1 + $0x230] sm:$0xff]  ;;  %v365_v3 = vor.u32 %v363_v61, %v361_v23 }
  0x72   :  { %256 = vst [vmem:[#allocation2 + $0x30] sm:$0x8] %v255_v12  ;;  %v369_v5 = vrot.slane %v367_v0, 1  ;;  %1796 = vmatpush.bf16.msra.mxu0 %v2487_v1  ;;  %1244 = vmatpush.bf16.msra.mxu1 %v2457_v2  ;;  %v951_v12 = vrot.slane %v2878_v38, 3  ;;  %v375_v23 = vshll.u32 %v2851_v20, 16  ;;  %v862_v47 = vrot.slane %v860_v41, 1 }
  0x73   :  { %v251_v18 = vrot.slane %v250_v11, 4  ;;  %654 = vmatmul.bf16.gmra.mxu2 %v2903_v7  ;;  %v962_v62 = vsel %vm949_vm3, %v954_v16, %v961_v58  ;;  %v950_v11 = vrot.slane %v2870_v33, 3  ;;  %v850_v16 = vor.u32 %v848_v9, %v846_v53 }
  0x74   :  { %v264_v21 = vld.sshfl [vmem:[#allocation1] sm:$0xff pattern:$0x75643120]  ;;  %v370_v6 = vsel %vm342_vm2, %v365_v3, %v369_v5  ;;  %v863_v48 = vsel %vm342_vm2, %v858_v46, %v862_v47  ;;  %v379_v53 = vshrl.u32 %v2851_v20, 16  ;;  %v418_v56 = vrot.slane %v2903_v7, 1  ;;  %v2466_v46 = vld [vmem:[%s3346_s1 + $0x188] sm:$0xff] }
  0x75   :  { %v258_v25 = vsel %vm2727_vm15, %v251_v18, %v257_v15  ;;  %v265_v26 = vshrl.u32 %v264_v21, 16  ;;  %v268_v27 = vshll.u32 %v264_v21, 16  ;;  %1211 = vmatmul.bf16.gmra.mxu0 %v962_v62  ;;  %v2478_v15 = vld [vmem:[%s3346_s1 + $0x1e8] sm:$0xff]  ;;  %v412_v18 = vrot.slane %v2680_v14, 1 }
  0x76   :  { %259 = vst [vmem:[#allocation2 + $0x34] sm:$0x3] %v258_v25  ;;  %v855_v19 = vsel %vm342_vm2, %v850_v16, %v854_v17  ;;  %v952_v33 = vsel %vm949_vm3, %v950_v11, %v951_v12  ;;  %v414_v25 = vrot.slane %v2819_v60, 1  ;;  %v416_v14 = vrot.slane %v2851_v20, 1  ;;  %v2469_v60 = vld [vmem:[%s3346_s1 + $0x1a0] sm:$0xff]  ;;  %1797 = vmatpush.bf16.msra.mxu0 %v2486_v29  ;;  %1245 = vmatpush.bf16.msra.mxu1 %v2456_v50  ;;  %v2455_v20 = vld [vmem:[%s3346_s1 + $0x158] sm:$0xff] }
  0x77   :  { %v2920_v30 = vrot.slane %v265_v26, 5  ;;  %v270_v31 = vrot.slane %v268_v27, 6  ;;  %v967_v21 = vrot.slane %v855_v19, 3  ;;  %v413_v22 = vsel %vm408_vm4, %v410_v52, %v412_v18  ;;  %1710 = vmatpush.bf16.msra.mxu2 %v2469_v60 }
  0x78   :  { %v2982_v27 = vsel %vm408_vm4, %v414_v25, %v416_v14  ;;  %v973_v51 = vrot.slane %v863_v48, 3  ;;  %v415_v52 = vsel %vm408_vm4, %v412_v18, %v414_v25  ;;  %v864_v3 = vshrl.u32 %v2997_v55, 16 }
  0x79   :  { %v271_v35 = vor.u32 %v270_v31, %v2920_v30  ;;  %v2924_v36 = vld [vmem:[#allocation2 + $0x30] sm:$0xf]  ;;  %v968_v26 = vsel %vm949_vm3, %v961_v58, %v967_v21  ;;  %v373_v31 = vor.u32 %v371_v37, %v369_v5  ;;  %v272_v9 = vrot.slane %v2920_v30, 4  ;;  %v2454_v30 = vld [vmem:[%s3346_s1 + $0x150] sm:$0xff] }
  0x7a   :  { %v323_v43 = vunpack.c.l.b16 %v2924_v36  ;;  %v2468_v58 = vld [vmem:[%s3346_s1 + $0x198] sm:$0xff]  ;;  %1246 = vmatpush.bf16.msra.mxu1 %v2455_v20  ;;  %v866_v10 = vor.u32 %v864_v3, %v862_v47  ;;  %v971_v60 = vrot.slane %v2960_v8, 3  ;;  %v2474_v47 = vld [vmem:[%s3346_s1 + $0x1c8] sm:$0xff] }
  0x7b   :  { %v276_v42 = vsel %vm2747_vm1, %v271_v35, %v275_v32  ;;  %678 = vmatmul.bf16.gmra.mxu1 %v362_v34  ;;  %v377_v32 = vrot.slane %v375_v23, 1  ;;  %v2477_v34 = vld [vmem:[%s3346_s1 + $0x1e0] sm:$0xff]  ;;  %1711 = vmatpush.bf16.msra.mxu2 %v2468_v58 }
  0x7c   :  { %277 = vst [vmem:[#allocation2 + $0x34] sm:$0xc] %v276_v42  ;;  %v959_v42 = vrot.slane %v2883_v45, 3  ;;  %v2485_v45 = vld [vmem:[%s3346_s1 + $0x220] sm:$0xff] }
  0x7d   :  { %v294_v49 = vld [vmem:[#allocation2 + $0x34] sm:$0x1]  ;;  %v378_v35 = vsel %vm342_vm2, %v373_v31, %v377_v32  ;;  %1798 = vmatpush.bf16.msra.mxu0 %v2485_v45  ;;  %v381_v61 = vor.u32 %v379_v53, %v377_v32  ;;  %v2483_v31 = vld [vmem:[%s3346_s1 + $0x210] sm:$0xff] }
  0x7e   :  { %v324_v4 = vunpack.c.l.b16 %v294_v49  ;;  %v960_v49 = vsel %vm949_vm3, %v951_v12, %v959_v42  ;;  %v295_v62 = vld [vmem:[#allocation2 + $0x34] sm:$0x3]  ;;  %v278_v12 = vld [vmem:[#allocation2 + $0x38] sm:$0x1]  ;;  %1247 = vmatpush.bf16.msra.mxu1 %v2454_v30 }
  0x80   :  { %v331_v57 = vpack.c.b16 %v324_v4, %v323_v43  ;;  %v383_v4 = vshll.u32 %v2903_v7, 16 }
  0x81   :  { %1799 = vmatpush.bf16.msra.mxu0 %v2484_v44 }
  0x82   :  { %659 = vmatmul.bf16.vlgmr.msra.gmra.mxu3 %v331_v57  ;;  %v3015_v57 = vsel %vm408_vm4, %v416_v14, %v418_v56  ;;  %v385_v0 = vrot.slane %v383_v4, 1  ;;  %v977_v4 = vrot.slane %v2997_v55, 3 }
  0x83   :  { %1751 = vmatpush.bf16.msra.mxu3 %v2480_v54  ;;  %717 = vmatmul.bf16.vlgmr.msrb.gmra.mxu2 %v411_v59  ;;  %v974_v54 = vsel %vm949_vm3, %v967_v21, %v973_v51  ;;  %v2476_v59 = vld [vmem:[%s3346_s1 + $0x1d8] sm:$0xff]  ;;  %v2475_v21 = vld [vmem:[%s3346_s1 + $0x1d0] sm:$0xff] }
  0x84   :  { %v386_v1 = vsel %vm342_vm2, %v381_v61, %v385_v0  ;;  %v3027_v2 = vld [vmem:[#allocation2 + $0x30] sm:$0xff]   ;;  %v2465_v61 = vld [vmem:[%s3346_s1 + $0x180] sm:$0xff] }
  0x85   :  { %1216 = vmatmul.bf16.gmra.mxu0 %v968_v26  ;;  %v868_v5 = vshll.u32 %v3027_v2, 16  ;;  %v2452_v26 = vld [vmem:[%s3346_s1 + $0x140] sm:$0xff]  ;;  %v872_v29 = vshrl.u32 %v3027_v2, 16 }
  0x86   :  { %1800 = vmatpush.bf16.msra.mxu0 %v2483_v31 }
  0x87   :  { %1752 = vmatpush.bf16.msra.mxu3 %v2479_v63  ;;  %v340_v63 = vunpack.c.l.b16 %v295_v62  ;;  %v870_v11 = vrot.slane %v868_v5, 1 }
  0x89   :  { %v3035_v13 = vpack.c.b16 %v340_v63, %v323_v43  ;;  %v871_v16 = vsel %vm342_vm2, %v866_v10, %v870_v11  ;;  %v2453_v43 = vld [vmem:[%s3346_s1 + $0x148] sm:$0xff]  ;;  %v874_v32 = vor.u32 %v872_v29, %v870_v11  ;;  %v2555_v10 = vld [vmem:[#allocation2 + $0x14] sm:$0xff]   ;;  %v3114_v11 = vld [vmem:[#allocation2 + $0xc] sm:$0xff] }
  0x8a   :  { %v979_v18 = vrot.slane %v871_v16, 3  ;;  %1248 = vmatpush.bf16.msra.mxu1 %v2453_v43  ;;  %v1441_v16 = vrot.slane %v3114_v11, 1 }
  0x8b   :  { %683 = vmatmul.bf16.gmra.mxu1 %v370_v6  ;;  %1753 = vmatpush.bf16.msra.mxu3 %v2478_v15  ;;  %v965_v6 = vrot.slane %v2926_v39, 3  ;;  %v279_v15 = vsel %vm2712_vm12, %v272_v9, %v278_v12  ;;  %v387_v39 = vshrl.u32 %v2903_v7, 16  ;;  %v391_v19 = vshll.u32 %v3035_v13, 16  ;;  %v1343_v7 = vld [vmem:[#allocation2 + $0x4] sm:$0x8]  ;;  %v2481_v9 = vld [vmem:[%s3346_s1 + $0x200] sm:$0xff] }
  0x8c   :  { %280 = vst [vmem:[#allocation2 + $0x38] sm:$0x1] %v279_v15  ;;  %v980_v36 = vsel %vm949_vm3, %v973_v51, %v979_v18  ;;  %v395_v8 = vshrl.u32 %v3035_v13, 16  ;;  %v3116_v12 = vld [vmem:[#allocation2 + $0x14] sm:$0xff] }
  0x8d   :  { %v966_v17 = vsel %vm949_vm3, %v959_v42, %v965_v6  ;;  %v393_v37 = vrot.slane %v391_v19, 1  ;;  %v972_v40 = vsel %vm949_vm3, %v965_v6, %v971_v60  ;;  %v1359_v6 = vunpack.c.h.b16 %v2858_v24 }
  0x8e   :  { %1249 = vmatpush.bf16.msra.mxu1 %v2452_v26  ;;  %v890_v24 = vrot.slane %v2555_v10, 5 }
  0x8f   :  { %1754 = vmatpush.bf16.msra.mxu3 %v2477_v34  ;;  %v397_v51 = vor.u32 %v395_v8, %v393_v37  ;;  %v1504_v8 = vrot.slane %v3114_v11, 2 }
  0x92   :  { %1162 = vmatmul.bf16.vlgmr.msrb.gmra.mxu3 %v952_v33  ;;  %v2467_v33 = vld [vmem:[%s3346_s1 + $0x190] sm:$0xff] }
  0x93   :  { %722 = vmatmul.bf16.gmra.mxu2 %v413_v22  ;;  %1755 = vmatpush.bf16.msra.mxu3 %v2476_v59  ;;  %v389_v22 = vor.u32 %v387_v39, %v385_v0  ;;  %v781_v23 = vld [vmem:[#allocation2 + $0x38] sm:$0x1] }
  0x94   :  { %1712 = vmatpush.bf16.msra.mxu2 %v2467_v33  ;;  %v3060_v25 = vunpack.c.l.b16 %v781_v23  ;;  %v2473_v0 = vld [vmem:[%s3346_s1 + $0x1c0] sm:$0xff] }
  0x95   :  { %1221 = vmatmul.bf16.gmra.mxu0 %v974_v54  ;;  %v2482_v54 = vld [vmem:[%s3346_s1 + $0x208] sm:$0xff] }
  0x96   :  { %v819_v14 = vpack.c.b16 %v3060_v25, %v3060_v25  ;;  %1801 = vmatpush.bf16.msra.mxu0 %v2482_v54  ;;  %v1398_v54 = vshll.u32 %v3116_v12, 16 }
  0x97   :  { %1756 = vmatpush.bf16.msra.mxu3 %v2475_v21  ;;  %v1328_v21 = vld [vmem:[#allocation2 + $0x4] sm:$0xc] }
  0x98   :  { %v876_v50 = vshll.u32 %v819_v14, 16  ;;  %1713 = vmatpush.bf16.msra.mxu2 %v2466_v46  ;;  %v1358_v23 = vunpack.c.l.b16 %v1328_v21 }
  0x9a   :  { %v878_v34 = vrot.slane %v876_v50, 1  ;;  %1802 = vmatpush.bf16.msra.mxu0 %v2481_v9  ;;  %v2559_v9 = vld [vmem:[#allocation2 + $0x24] sm:$0xff]  }
  0x9b   :  { %688 = vmatmul.bf16.gmra.mxu1 %v378_v35  ;;  %1757 = vmatpush.bf16.msra.mxu3 %v2474_v47 }
  0x9c   :  { %v879_v35 = vsel %vm342_vm2, %v874_v32, %v878_v34  ;;  %1714 = vmatpush.bf16.msra.mxu2 %v2465_v61  ;;  %v2557_v32 = vld [vmem:[#allocation2 + $0x1c] sm:$0xff]  }
  0x9d   :  { %v985_v41 = vrot.slane %v879_v35, 3  ;;  %v3131_v34 = vld [vmem:[#allocation2 + $0x1c] sm:$0xff]  ;;  %v892_v46 = vrot.slane %v2557_v32, 5 }
  0x9f   :  { %v986_v42 = vsel %vm949_vm3, %v979_v18, %v985_v41  ;;  %1758 = vmatpush.bf16.msra.mxu3 %v2473_v0  ;;  %v1400_v0 = vrot.slane %v1398_v54, 1  ;;  %v1410_v54 = vshrl.u32 %v3131_v34, 16 }
  0xa1   :  { %v640_v48 = vpop.f32.mrf.mxu1 }
  0xa2   :  { %1167 = vmatmul.bf16.gmra.mxu3 %v960_v49  ;;  %v2495_v49 = vunpack.c.l.b16 %v2878_v38  ;;  %v978_v38 = vsel %vm949_vm3, %v971_v60, %v977_v4 }
  0xa3   :  { %727 = vmatmul.bf16.gmra.mxu2 %v415_v52  ;;  %v2553_v52 = vld [vmem:[#allocation2 + $0xc] sm:$0xff]  }
  0xa4   :  { %v880_v53 = vpack.c.b16 %v2495_v49, %v797_v28  ;;  %v888_v58 = vrot.slane %v2553_v52, 5 }
  0xa5   :  { %1226 = vmatmul.bf16.gmra.mxu0 %v980_v36 }
  0xa6   :  { %v887_v20 = vrot.slane %v880_v53, 5 }
  0xa8   :  { %v889_v55 = vsel %vm129_vm13, %v887_v20, %v888_v58  ;;  %v956_v63 = vrot.slane %v887_v20, 3 }
  0xa9   :  { %v3093_v59 = vpop.f32.mrf.mxu1 }
  0xab   :  { %693 = vmatmul.bf16.gmra.mxu1 %v386_v1  ;;  %v957_v1 = vrot.slane %v889_v55, 3 }
  0xad   :  { %v958_v5 = vsel %vm949_vm3, %v956_v63, %v957_v1 }
  0xb2   :  { %1172 = vmatmul.bf16.gmra.mxu3 %v966_v17  ;;  %v1443_v17 = vrot.slane %v3116_v12, 1 }
  0xb3   :  { %732 = vmatmul.bf16.gmra.mxu2 %v2982_v27  ;;  %v394_v27 = vsel %vm342_vm2, %v389_v22, %v393_v37  ;;  %v630_v45 = vpop.f32.mrf.mxu0  ;;  %v891_v22 = vsel %vm129_vm13, %v888_v58, %v890_v24  ;;  %v893_v58 = vsel %vm129_vm13, %v890_v24, %v892_v46 }
  0xb4   :  { %v1444_v39 = vsel %vm408_vm4, %v1441_v16, %v1443_v17  ;;  %v963_v26 = vrot.slane %v891_v22, 3  ;;  %v969_v63 = vrot.slane %v893_v58, 3 }
  0xb5   :  { %1231 = vmatmul.bf16.gmra.mxu0 %v986_v42  ;;  %v1510_v44 = vrot.slane %v1444_v39, 2 }
  0xb6   :  { %v964_v60 = vsel %vm949_vm3, %v957_v1, %v963_v26 }
  0xbb   :  { %698 = vmatmul.bf16.gmra.mxu1 %v394_v27  ;;  %v3105_v62 = vpop.f32.mrf.mxu0  ;;  %v1372_v27 = vpack.c.b16 %v1359_v6, %v1358_v23 }
  0xbd   :  { %v1385_v35 = vshll.u32 %v1372_v27, 16  ;;  %v1503_v42 = vrot.slane %v1372_v27, 2  ;;  %v1383_v49 = vshrl.u32 %v1372_v27, 16 }
  0xbf   :  { %v1387_v52 = vrot.slane %v1385_v35, 1 }
  0xc1   :  { %v1388_v55 = vor.u32 %v1387_v52, %v1383_v49 }
  0xc2   :  { %1177 = vmatmul.bf16.gmra.mxu3 %v972_v40  ;;  %v1390_v40 = vshll.u32 %v3114_v11, 16 }
  0xc3   :  { %737 = vmatmul.bf16.gmra.mxu2 %v3015_v57  ;;  %v420_v57 = vrot.slane %v3035_v13, 1  ;;  %v983_v13 = vrot.slane %v3027_v2, 3  ;;  %v635_v30 = vpop.f32.mrf.mxu0 }
  0xc4   :  { %v1392_v53 = vrot.slane %v1390_v40, 1  ;;  %v2560_v40 = vld [vmem:[#allocation2 + $0x2c] sm:$0xff]  }
  0xc5   :  { %v421_v28 = vsel %vm408_vm4, %v418_v56, %v420_v57  ;;  %1236 = vmatmul.bf16.gmra.mxu0 %v985_v41  ;;  %v1438_v56 = vunpack.c.l.b16 %v1343_v7  ;;  %v984_v19 = vsel %vm949_vm3, %v977_v4, %v983_v13  ;;  %v1445_v41 = vrot.slane %v3131_v34, 1 }
  0xc6   :  { %v1394_v4 = vshrl.u32 %v3114_v11, 16  ;;  %v1393_v7 = vsel %vm342_vm2, %v1388_v55, %v1392_v53  ;;  %v3154_v11 = vld [vmem:[#allocation2 + $0x24] sm:$0xff]  ;;  %v896_v49 = vrot.slane %v2560_v40, 5 }
  0xc7   :  { %v1439_v15 = vpack.c.b16 %v1359_v6, %v1438_v56  ;;  %v1446_v47 = vsel %vm408_vm4, %v1443_v17, %v1445_v41  ;;  %v1512_v17 = vrot.slane %v3116_v12, 2 }
  0xc8   :  { %v1396_v61 = vor.u32 %v1394_v4, %v1392_v53 }
  0xc9   :  { %v1440_v18 = vrot.slane %v1439_v15, 1  ;;  %v1513_v21 = vsel %vm1502_vm5, %v1504_v8, %v1512_v17 }
  0xca   :  { %v1401_v56 = vsel %vm342_vm2, %v1396_v61, %v1400_v0 }
  0xcb   :  { %703 = vmatmul.bf16.gmra.mxu1 %v397_v51  ;;  %v1442_v36 = vsel %vm408_vm4, %v1440_v18, %v1441_v16  ;;  %v637_v29 = vpop.f32.mrf.mxu0  ;;  %v1516_v51 = vrot.slane %v1446_v47, 2  ;;  %v1507_v15 = vrot.slane %v1401_v56, 2  ;;  %v1447_v16 = vrot.slane %v3154_v11, 1 }
  0xcc   :  { %v1509_v43 = vrot.slane %v1442_v36, 2  ;;  %v894_v18 = vrot.slane %v2559_v9, 5  ;;  %v1402_v36 = vshrl.u32 %v3116_v12, 16 }
  0xcd   :  { %v1448_v24 = vsel %vm408_vm4, %v1445_v41, %v1447_v16 }
  0xce   :  { %v1511_v37 = vsel %vm1502_vm5, %v1509_v43, %v1510_v44  ;;  %v895_v22 = vsel %vm129_vm13, %v892_v46, %v894_v18  ;;  %v897_v55 = vsel %vm129_vm13, %v894_v18, %v896_v49 }
  0xcf   :  { %v975_v29 = vrot.slane %v895_v22, 3  ;;  %v981_v56 = vrot.slane %v897_v55, 3 }
  0xd1   :  { %v976_v35 = vsel %vm949_vm3, %v969_v63, %v975_v29 }
  0xd2   :  { %1182 = vmatmul.bf16.gmra.mxu3 %v978_v38 }
  0xd3   :  { %742 = vmatmul.bf16.gmra.mxu2 %v421_v28  ;;  %v1517_v28 = vsel %vm1502_vm5, %v1510_v44, %v1516_v51  ;;  %v1406_v44 = vshll.u32 %v3131_v34, 16 }
  0xd5   :  { %1803 = vmatmul.bf16.vlgmr.msra.gmra.mxu0 %v1511_v37 }
  0xd8   :  { %v3107_v3 = vpop.f32.mrf.mxu1 }
  0xdb   :  { %1250 = vmatmul.bf16.vlgmr.msra.gmra.mxu1 %v958_v5 }
  0xe0   :  { %v3124_v33 = vpop.f32.mrf.mxu1 }
  0xe2   :  { %1187 = vmatmul.bf16.gmra.mxu3 %v984_v19  ;;  %v3142_v38 = vpop.f32.mrf.mxu0  ;;  %v1522_v19 = vrot.slane %v1448_v24, 2 }
  0xe3   :  { %747 = vmatmul.bf16.gmra.mxu2 %v420_v57  ;;  %v1505_v57 = vsel %vm1502_vm5, %v1503_v42, %v1504_v8  ;;  %v3176_v42 = vld [vmem:[#allocation2 + $0x2c] sm:$0xff] }
  0xe4   :  { %v1523_v23 = vsel %vm1502_vm5, %v1516_v51, %v1522_v19  ;;  %v1449_v46 = vrot.slane %v3176_v42, 1 }
  0xe5   :  { %1808 = vmatmul.bf16.gmra.mxu0 %v1517_v28 }
  0xe6   :  { %v650_v14 = vpop.f32.mrf.mxu2 }
  0xe7   :  { %v1408_v14 = vrot.slane %v1406_v44, 1 }
  0xe8   :  { %v674_v50 = vpop.f32.mrf.mxu1 }
  0xe9   :  { %v3129_v31 = vadd.f32 %v674_v50, %v630_v45 }
  0xea   :  { %v3152_v10 = vpop.f32.mrf.mxu0 }
  0xeb   :  { %1255 = vmatmul.bf16.gmra.mxu1 %v964_v60 }
  0xee   :  { %v652_v48 = vpop.f32.mrf.mxu2 }
  0xef   :  { %v1518_v48 = vrot.slane %v3131_v34, 2  ;;  %v3192_v34 = vld [vmem:[#allocation2 + $0x34] sm:$0xff]  }
  0xf0   :  { %v676_v45 = vpop.f32.mrf.mxu1 }
  0xf1   :  { %v677_v20 = vadd.f32 %v676_v45, %v3105_v62  ;;  %v970_v62 = vsel %vm949_vm3, %v963_v26, %v969_v63  ;;  %v1404_v26 = vor.u32 %v1402_v36, %v1400_v0  ;;  %v1414_v45 = vshll.u32 %v3154_v11, 16 }
  0xf2   :  { %1192 = vmatmul.bf16.gmra.mxu3 %v983_v13  ;;  %v1506_v13 = vrot.slane %v1393_v7, 2  ;;  %v3166_v37 = vpop.f32.mrf.mxu0  ;;  %v1519_v58 = vsel %vm1502_vm5, %v1512_v17, %v1518_v48  ;;  %v1412_v63 = vor.u32 %v1410_v54, %v1408_v14  ;;  %v982_v17 = vsel %vm949_vm3, %v975_v29, %v981_v56 }
  0xf3   :  { %1715 = vmatmul.bf16.vlgmr.msra.gmra.mxu2 %v1505_v57  ;;  %v1409_v60 = vsel %vm342_vm2, %v1404_v26, %v1408_v14  ;;  %v1416_v7 = vrot.slane %v1414_v45, 1  ;;  %v1524_v36 = vrot.slane %v3154_v11, 2 }
  0xf4   :  { %v1514_v8 = vrot.slane %v1409_v60, 2 }
  0xf5   :  { %1813 = vmatmul.bf16.gmra.mxu0 %v1523_v23  ;;  %v1422_v23 = vshll.u32 %v3176_v42, 16  ;;  %v1525_v14 = vsel %vm1502_vm5, %v1518_v48, %v1524_v36 }
  0xf6   :  { %v3145_v1 = vpop.f32.mrf.mxu2  ;;  %v1515_v52 = vsel %vm1502_vm5, %v1507_v15, %v1514_v8 }
  0xf8   :  { %v679_v5 = vpop.f32.mrf.mxu1 }
  0xf9   :  { %v3150_v6 = vadd.f32 %v679_v5, %v635_v30  ;;  %v1508_v30 = vsel %vm1502_vm5, %v1506_v13, %v1507_v15  ;;  %v3194_v5 = vld [vmem:[#allocation2 + $0x34] sm:$0xf]   ;;  %v1417_v15 = vsel %vm342_vm2, %v1412_v63, %v1416_v7 }
  0xfa   :  { %v1214_v41 = vpop.f32.mrf.mxu0 }
  0xfb   :  { %1260 = vmatmul.bf16.gmra.mxu1 %v970_v62 }
  0xfe   :  { %v3159_v39 = vpop.f32.mrf.mxu2 }
 0x100   :  { %v681_v43 = vpop.f32.mrf.mxu1 }
 0x102   :  { %1759 = vmatmul.bf16.vlgmr.msra.gmra.mxu3 %v1508_v30  ;;  %v1217_v61 = vpop.f32.mrf.mxu0 }
 0x103   :  { %1720 = vmatmul.bf16.gmra.mxu2 %v1513_v21 }
 0x105   :  { %v3169_v27 = vpop.f32.mrf.mxu3 }
 0x106   :  { %v718_v12 = vpop.f32.mrf.mxu2 }
 0x107   :  { %v3172_v50 = vadd.f32 %v718_v12, %v3129_v31  ;;  %v1450_v31 = vsel %vm408_vm4, %v1447_v16, %v1449_v46 }
 0x108   :  { %v684_v32 = vpop.f32.mrf.mxu1  ;;  %v1528_v53 = vrot.slane %v1450_v31, 2 }
 0x10a   :  { %v1529_v0 = vsel %vm1502_vm5, %v1522_v19, %v1528_v53  ;;  %v3207_v30 = vpop.f32.mrf.mxu0  ;;  %v1520_v19 = vrot.slane %v1417_v15, 2 }
 0x10b   :  { %1265 = vmatmul.bf16.gmra.mxu1 %v976_v35  ;;  %1818 = vmatmul.bf16.gmra.mxu0 %v1529_v0  ;;  %v1424_v35 = vrot.slane %v1422_v23, 1  ;;  %v2618_v0 = vld [vmem:[#allocation2 + $0x34] sm:$0x70] }
 0x10d   :  { %v3179_v47 = vpop.f32.mrf.mxu3 }
 0x10e   :  { %v720_v51 = vpop.f32.mrf.mxu2 }
 0x10f   :  { %v3184_v4 = vadd.f32 %v720_v51, %v677_v20 }
 0x110   :  { %v686_v57 = vpop.f32.mrf.mxu1 }
 0x111   :  { %v687_v28 = vadd.f32 %v686_v57, %v3093_v59  ;;  %v2516_v59 = vunpack.c.h.b16 %v3027_v2 }
 0x112   :  { %1764 = vmatmul.bf16.gmra.mxu3 %v1515_v52  ;;  %v1222_v12 = vpop.f32.mrf.mxu0  ;;  %v1530_v52 = vrot.slane %v3176_v42, 2 }
 0x113   :  { %1725 = vmatmul.bf16.gmra.mxu2 %v1519_v58  ;;  %v886_v24 = vpack.c.b16 %v3060_v25, %v2516_v59  ;;  %v1418_v25 = vshrl.u32 %v3154_v11, 16  ;;  %v1430_v58 = vshll.u32 %v3192_v34, 16 }
 0x114   :  { %v1531_v61 = vsel %vm1502_vm5, %v1524_v36, %v1530_v52 }
 0x115   :  { %v1163_v20 = vpop.f32.mrf.mxu3  ;;  %v898_v44 = vrot.slane %v886_v24, 5  ;;  %v1420_v32 = vor.u32 %v1418_v25, %v1416_v7 }
 0x116   :  { %v3197_v62 = vadd.f32 %v3142_v38, %v1163_v20  ;;  %v723_v9 = vpop.f32.mrf.mxu2  ;;  %v1451_v38 = vrot.slane %v3192_v34, 1 }
 0x117   :  { %v3201_v13 = vadd.f32 %v723_v9, %v3150_v6 }
 0x118   :  { %v689_v16 = vpop.f32.mrf.mxu1  ;;  %v1452_v43 = vsel %vm408_vm4, %v1449_v46, %v1451_v38  ;;  %v1425_v46 = vsel %vm342_vm2, %v1420_v32, %v1424_v35  ;;  %v1540_v45 = vrot.slane %v1451_v38, 2 }
 0x119   :  { %v690_v18 = vadd.f32 %v689_v16, %v3107_v3  ;;  %v1521_v3 = vsel %vm1502_vm5, %v1514_v8, %v1520_v19  ;;  %v1534_v22 = vrot.slane %v1452_v43, 2  ;;  %v2591_v16 = vor.u32 %v2618_v0, %v3194_v5 }
 0x11a   :  { %v1224_v31 = vpop.f32.mrf.mxu0 }
 0x11b   :  { %1270 = vmatmul.bf16.gmra.mxu1 %v982_v17  ;;  %v1535_v60 = vsel %vm1502_vm5, %v1528_v53, %v1534_v22  ;;  %v1541_v7 = vsel %vm1502_vm5, %v1534_v22, %v1540_v45 }
 0x11c   :  { %1823 = vmatmul.bf16.gmra.mxu0 %v1535_v60 }
 0x11d   :  { %v1165_v2 = vpop.f32.mrf.mxu3 }
 0x11e   :  { %v3212_v6 = vadd.f32 %v3152_v10, %v1165_v2  ;;  %v725_v21 = vpop.f32.mrf.mxu2  ;;  %v899_v10 = vsel %vm129_vm13, %v896_v49, %v898_v44  ;;  %v1526_v49 = vrot.slane %v1425_v46, 2  ;;  %v1536_v2 = vrot.slane %v2591_v16, 2 }
 0x11f   :  { %v987_v41 = vrot.slane %v899_v10, 3 }
 0x120   :  { %v691_v26 = vpop.f32.mrf.mxu1  ;;  %v1527_v54 = vsel %vm1502_vm5, %v1520_v19, %v1526_v49 }
 0x121   :  { %v692_v29 = vadd.f32 %v691_v26, %v3124_v33  ;;  %v988_v33 = vsel %vm949_vm3, %v981_v56, %v987_v41  ;;  %v1432_v56 = vrot.slane %v1430_v58, 1 }
 0x122   :  { %1769 = vmatmul.bf16.gmra.mxu3 %v1521_v3  ;;  %v1227_v63 = vpop.f32.mrf.mxu0  ;;  %v1537_v3 = vsel %vm1502_vm5, %v1530_v52, %v1536_v2 }
 0x123   :  { %1730 = vmatmul.bf16.gmra.mxu2 %v1525_v14 }
 0x125   :  { %v1168_v40 = vpop.f32.mrf.mxu3 }
 0x126   :  { %v3223_v11 = vadd.f32 %v3166_v37, %v1168_v40  ;;  %v728_v8 = vpop.f32.mrf.mxu2  ;;  %v1426_v37 = vshrl.u32 %v3176_v42, 16 }
 0x128   :  { %v694_v48 = vpop.f32.mrf.mxu1  ;;  %v1428_v20 = vor.u32 %v1426_v37, %v1424_v35 }
 0x12a   :  { %v1433_v42 = vsel %vm342_vm2, %v1428_v20, %v1432_v56  ;;  %v1229_v19 = vpop.f32.mrf.mxu0 }
 0x12b   :  { %1275 = vmatmul.bf16.gmra.mxu1 %v988_v33  ;;  %v1532_v24 = vrot.slane %v1433_v42, 2 }
 0x12c   :  { %1828 = vmatmul.bf16.gmra.mxu0 %v1541_v7 }
 0x12d   :  { %v1170_v51 = vpop.f32.mrf.mxu3  ;;  %v1533_v43 = vsel %vm1502_vm5, %v1526_v49, %v1532_v24 }
 0x12e   :  { %v730_v53 = vpop.f32.mrf.mxu2 }
 0x12f   :  { %v3229_v57 = vadd.f32 %v730_v53, %v687_v28 }
 0x130   :  { %v696_v55 = vpop.f32.mrf.mxu1 }
 0x132   :  { %1774 = vmatmul.bf16.gmra.mxu3 %v1527_v54  ;;  %v1232_v25 = vpop.f32.mrf.mxu0 }
 0x133   :  { %1735 = vmatmul.bf16.gmra.mxu2 %v1531_v61 }
 0x135   :  { %v1173_v59 = vpop.f32.mrf.mxu3 }
 0x136   :  { %v733_v9 = vpop.f32.mrf.mxu2 }
 0x137   :  { %v3235_v28 = vadd.f32 %v733_v9, %v690_v18 }
 0x138   :  { %v699_v15 = vpop.f32.mrf.mxu1 }
 0x139   :  { %v700_v17 = vadd.f32 %v699_v15, %v3145_v1  ;;  %v1434_v1 = vshrl.u32 %v3192_v34, 16 }
 0x13b   :  { %1280 = vmatmul.bf16.gmra.mxu1 %v987_v41  ;;  %v1436_v26 = vor.u32 %v1434_v1, %v1432_v56 }
 0x13c   :  { %1833 = vmatmul.bf16.gmra.mxu0 %v1540_v45 }
 0x13d   :  { %v1175_v38 = vpop.f32.mrf.mxu3 }
 0x13e   :  { %v3241_v36 = vadd.f32 %v3207_v30, %v1175_v38  ;;  %v735_v44 = vpop.f32.mrf.mxu2 }
 0x13f   :  { %v3244_v18 = vadd.f32 %v735_v44, %v692_v29  ;;  %v1538_v29 = vrot.slane %v1436_v26, 2 }
 0x140   :  { %v701_v21 = vpop.f32.mrf.mxu1 }
 0x141   :  { %v702_v5 = vadd.f32 %v701_v21, %v3159_v39  ;;  %v1539_v40 = vsel %vm1502_vm5, %v1532_v24, %v1538_v29  ;;  %v1234_v39 = vpop.f32.mrf.mxu0 }
 0x142   :  { %1779 = vmatmul.bf16.gmra.mxu3 %v1533_v43 }
 0x143   :  { %1740 = vmatmul.bf16.gmra.mxu2 %v1537_v3 }
 0x145   :  { %v1178_v22 = vpop.f32.mrf.mxu3 }
 0x146   :  { %v1223_v23 = vadd.f32 %v1222_v12, %v1178_v22  ;;  %v738_v30 = vpop.f32.mrf.mxu2 }
 0x148   :  { %v704_v14 = vpop.f32.mrf.mxu1 }
 0x149   :  { %v705_v10 = vadd.f32 %v704_v14, %v3169_v27  ;;  %v1237_v48 = vpop.f32.mrf.mxu0 }
 0x14d   :  { %v1180_v60 = vpop.f32.mrf.mxu3 }
 0x14e   :  { %v3250_v32 = vadd.f32 %v1224_v31, %v1180_v60  ;;  %v740_v35 = vpop.f32.mrf.mxu2 }
 0x150   :  { %v706_v41 = vpop.f32.mrf.mxu1 }
 0x151   :  { %v1239_v54 = vpop.f32.mrf.mxu0  ;;  %v707_v20 = vadd.f32 %v706_v41, %v3179_v47 }
 0x152   :  { %1784 = vmatmul.bf16.gmra.mxu3 %v1539_v40 }
 0x153   :  { %1745 = vmatmul.bf16.gmra.mxu2 %v1536_v2 }
 0x155   :  { %v1183_v34 = vpop.f32.mrf.mxu3 }
 0x156   :  { %v743_v8 = vpop.f32.mrf.mxu2 }
 0x157   :  { %v3253_v46 = vadd.f32 %v743_v8, %v700_v17 }
 0x158   :  { %v1251_v12 = vpop.f32.mrf.mxu1 }
 0x159   :  { %v1252_v33 = vadd.f32 %v1251_v12, %v3197_v62  ;;  %v1804_v7 = vpop.f32.mrf.mxu0 }
 0x15b   :  { %v1300_v27 = vadd.f32 %v1252_v33, %v3172_v50 }
 0x15d   :  { %v1185_v49 = vpop.f32.mrf.mxu3 }
 0x15e   :  { %v745_v31 = vpop.f32.mrf.mxu2 }
 0x15f   :  { %v3257_v51 = vadd.f32 %v745_v31, %v702_v5 }
 0x160   :  { %v1253_v52 = vpop.f32.mrf.mxu1 }
 0x161   :  { %v1254_v53 = vadd.f32 %v1253_v52, %v3212_v6  ;;  %v1806_v16 = vpop.f32.mrf.mxu0 }
 0x162   :  { %1789 = vmatmul.bf16.gmra.mxu3 %v1538_v29  ;;  %v3281_v29 = vld [vmem:[#allocation4] ss:$0 sm:$0xff] }
 0x163   :  { %v1301_v45 = vadd.f32 %v1254_v53, %v3184_v4 }
 0x165   :  { %v1188_v37 = vpop.f32.mrf.mxu3 }
 0x166   :  { %v3261_v58 = vadd.f32 %v1232_v25, %v1188_v37  ;;  %v748_v55 = vpop.f32.mrf.mxu2 }
 0x167   :  { %v3263_v61 = vadd.f32 %v748_v55, %v705_v10 }
 0x168   :  { %v1256_v62 = vpop.f32.mrf.mxu1 }
 0x169   :  { %v1257_v50 = vadd.f32 %v1256_v62, %v3223_v11  ;;  %v1809_v38 = vpop.f32.mrf.mxu0 }
 0x16b   :  { %v1302_v0 = vadd.f32 %v1257_v50, %v3201_v13 }
 0x16d   :  { %v1190_v63 = vpop.f32.mrf.mxu3 }
 0x16e   :  { %v3268_v56 = vadd.f32 %v1234_v39, %v1190_v63  ;;  %v750_v6 = vpop.f32.mrf.mxu2 }
 0x16f   :  { %v751_v59 = vadd.f32 %v750_v6, %v707_v20 }
 0x170   :  { %v1258_v4 = vpop.f32.mrf.mxu1 }
 0x171   :  { %766 = vst [vmem:[#allocation3 + $0x68] sm:$0x3] %v751_v59  ;;  %v1811_v25 = vpop.f32.mrf.mxu0 }
 0x175   :  { %v1193_v9 = vpop.f32.mrf.mxu3 }
 0x176   :  { %v3270_v42 = vadd.f32 %v1237_v48, %v1193_v9  ;;  %v1716_v15 = vpop.f32.mrf.mxu2 }
 0x178   :  { %v1261_v17 = vpop.f32.mrf.mxu1 }
 0x17d   :  { %v1195_v24 = vpop.f32.mrf.mxu3 }
 0x17e   :  { %v3272_v11 = vadd.f32 %v1239_v54, %v1195_v24  ;;  %v1718_v13 = vpop.f32.mrf.mxu2 }
 0x180   :  { %v1263_v19 = vpop.f32.mrf.mxu1 }
 0x181   :  { %v1264_v47 = vadd.f32 %v1263_v19, %v3241_v36 }
 0x183   :  { %v3276_v2 = vadd.f32 %v1264_v47, %v3229_v57 }
 0x185   :  { %v1760_v44 = vpop.f32.mrf.mxu3 }
 0x186   :  { %v1761_v43 = vadd.f32 %v1760_v44, %v1716_v15  ;;  %v1721_v21 = vpop.f32.mrf.mxu2 }
 0x188   :  { %v1805_v3 = vadd.f32 %v1804_v7, %v1761_v43  ;;  %v1266_v5 = vpop.f32.mrf.mxu1 }
 0x189   :  { %v1267_v22 = vadd.f32 %v1266_v5, %v1223_v23 }
 0x18a   :  { %v1853_v1 = vadd.f32 %v1805_v3, %v1300_v27 }
 0x18b   :  { %v3279_v30 = vadd.f32 %v1267_v22, %v3235_v28  ;;  %v1814_v28 = vpop.f32.mrf.mxu0 }
 0x18c   :  { %1867 = vst [vmem:[#allocation3] sm:$0xff] %v1853_v1 }
 0x18d   :  { %v1762_v26 = vpop.f32.mrf.mxu3 }
 0x18e   :  { %v1763_v14 = vadd.f32 %v1762_v26, %v1718_v13  ;;  %v1723_v10 = vpop.f32.mrf.mxu2 }
 0x190   :  { %v1807_v36 = vadd.f32 %v1806_v16, %v1763_v14  ;;  %v1268_v57 = vpop.f32.mrf.mxu1 }
 0x191   :  { %v1269_v35 = vadd.f32 %v1268_v57, %v3250_v32 }
 0x192   :  { %v1854_v60 = vadd.f32 %v1807_v36, %v1301_v45 }
 0x193   :  { %v1882_v40 = vld [vmem:[#allocation3] sm:$0xf]  ;;  %v3286_v23 = vadd.f32 %v1269_v35, %v3244_v18  ;;  %v1816_v55 = vpop.f32.mrf.mxu0 }
 0x194   :  { %v1886_v39 = vadd.f32 %v3281_v29, %v1882_v40  ;;  %1868 = vst [vmem:[#allocation3 + $0x8] sm:$0xff] %v1854_v60 }
 0x195   :  { %v1765_v41 = vpop.f32.mrf.mxu3 }
 0x196   :  { %v1887_v34 = vmax.f32 %v1886_v39, 0.0  ;;  %v1766_v8 = vadd.f32 %v1765_v41, %v1721_v21  ;;  %v1726_v12 = vpop.f32.mrf.mxu2  ;;  %v1299_v41 = vld [vmem:[#allocation3 + $0x68] sm:$0x3] }
 0x198   :  { %v1888_v48 = vpack.c.bf16 %v1887_v34, %v1887_v34  ;;  %v1810_v33 = vadd.f32 %v1809_v38, %v1766_v8  ;;  %v1271_v27 = vpop.f32.mrf.mxu1 }
 0x19a   :  { %1889 = vst [vmem:[%s3348_s3] sm:$0x3] %v1888_v48  ;;  %v1855_v32 = vadd.f32 %v1810_v33, %v1302_v0 }
 0x19b   :  { %v1890_v49 = vld [vmem:[#allocation3 + $0x6] sm:$0xf]  ;;  %v1896_v31 = vld [vmem:[#allocation3 + $0xc] sm:$0xf]  ;;  %v1819_v15 = vpop.f32.mrf.mxu0 }
 0x19c   :  { %v1891_v52 = vadd.f32 %v3281_v29, %v1890_v49  ;;  %v1897_v18 = vadd.f32 %v3281_v29, %v1896_v31  ;;  %1869 = vst [vmem:[#allocation3 + $0x10] sm:$0xff] %v1855_v32 }
 0x19d   :  { %v1767_v53 = vpop.f32.mrf.mxu3 }
 0x19e   :  { %v1892_v54 = vmax.f32 %v1891_v52, 0.0  ;;  %v1898_v45 = vmax.f32 %v1897_v18, 0.0  ;;  %v1728_v37 = vpop.f32.mrf.mxu2 }
 0x1a0   :  { %v1893_v62 = vpack.c.bf16 %v1892_v54, %v1892_v54  ;;  %v1899_v50 = vpack.c.bf16 %v1898_v45, %v1898_v45  ;;  %v1273_v63 = vpop.f32.mrf.mxu1 }
 0x1a2   :  { %2396 = vst [vmem:[%s3348_s3 + $0x2] sm:$0x3] %v1893_v62 }
 0x1a3   :  { %2397 = vst [vmem:[%s3348_s3 + $0x4] sm:$0x3] %v1899_v50  ;;  %v1902_v0 = vld [vmem:[#allocation3 + $0x12] sm:$0xf]  ;;  %v1821_v21 = vpop.f32.mrf.mxu0 }
 0x1a4   :  { %v1903_v7 = vadd.f32 %v3281_v29, %v1902_v0 }
 0x1a5   :  { %v1770_v20 = vpop.f32.mrf.mxu3 }
 0x1a6   :  { %v1904_v6 = vmax.f32 %v1903_v7, 0.0  ;;  %v1731_v59 = vpop.f32.mrf.mxu2 }
 0x1a8   :  { %v1905_v4 = vpack.c.bf16 %v1904_v6, %v1904_v6  ;;  %v1276_v9 = vpop.f32.mrf.mxu1 }
 0x1a9   :  { %v1277_v16 = vadd.f32 %v1276_v9, %v3261_v58 }
 0x1aa   :  { %2398 = vst [vmem:[%s3348_s3 + $0x6] sm:$0x3] %v1905_v4 }
 0x1ab   :  { %v1310_v17 = vadd.f32 %v1277_v16, %v3253_v46  ;;  %v1824_v36 = vpop.f32.mrf.mxu0 }
 0x1ad   :  { %v1772_v24 = vpop.f32.mrf.mxu3 }
 0x1ae   :  { %v1773_v13 = vadd.f32 %v1772_v24, %v1728_v37  ;;  %v1733_v47 = vpop.f32.mrf.mxu2 }
 0x1b0   :  { %v1817_v19 = vadd.f32 %v1816_v55, %v1773_v13  ;;  %v1278_v38 = vpop.f32.mrf.mxu1 }
 0x1b1   :  { %v1279_v43 = vadd.f32 %v1278_v38, %v3268_v56 }
 0x1b2   :  { %v1858_v44 = vadd.f32 %v1817_v19, %v3276_v2 }
 0x1b3   :  { %v1311_v3 = vadd.f32 %v1279_v43, %v3257_v51  ;;  %v1826_v48 = vpop.f32.mrf.mxu0 }
 0x1b4   :  { %1872 = vst [vmem:[#allocation3 + $0x28] sm:$0xff] %v1858_v44 }
 0x1b5   :  { %v1775_v5 = vpop.f32.mrf.mxu3 }
 0x1b6   :  { %v1776_v1 = vadd.f32 %v1775_v5, %v1731_v59  ;;  %v1736_v14 = vpop.f32.mrf.mxu2 }
 0x1b8   :  { %v1820_v22 = vadd.f32 %v1819_v15, %v1776_v1  ;;  %v1281_v25 = vpop.f32.mrf.mxu1 }
 0x1b9   :  { %v1282_v46 = vadd.f32 %v1281_v25, %v3270_v42 }
 0x1ba   :  { %v1859_v58 = vadd.f32 %v1820_v22, %v3279_v30 }
 0x1bb   :  { %v1908_v26 = vld [vmem:[#allocation3 + $0x2a] sm:$0xf]  ;;  %v1312_v2 = vadd.f32 %v1282_v46, %v3263_v61  ;;  %v1829_v45 = vpop.f32.mrf.mxu0 }
 0x1bc   :  { %v1909_v10 = vadd.f32 %v3281_v29, %v1908_v26  ;;  %1873 = vst [vmem:[#allocation3 + $0x30] sm:$0xff] %v1859_v58 }
 0x1bd   :  { %v1777_v56 = vpop.f32.mrf.mxu3 }
 0x1be   :  { %v1910_v57 = vmax.f32 %v1909_v10, 0.0  ;;  %v1778_v60 = vadd.f32 %v1777_v56, %v1733_v47  ;;  %v1738_v34 = vpop.f32.mrf.mxu2 }
 0x1c0   :  { %v1911_v51 = vpack.c.bf16 %v1910_v57, %v1910_v57  ;;  %v1822_v35 = vadd.f32 %v1821_v21, %v1778_v60  ;;  %v1283_v40 = vpop.f32.mrf.mxu1 }
 0x1c1   :  { %v1284_v30 = vadd.f32 %v1283_v40, %v3272_v11 }
 0x1c2   :  { %2399 = vst [vmem:[%s3348_s3 + $0x8] sm:$0x3] %v1911_v51  ;;  %v1860_v42 = vadd.f32 %v1822_v35, %v3286_v23 }
 0x1c3   :  { %v1914_v39 = vld [vmem:[#allocation3 + $0x30] sm:$0xf]  ;;  %v1313_v61 = vadd.f32 %v1299_v41, %v1284_v30  ;;  %v1831_v0 = vpop.f32.mrf.mxu0 }
 0x1c4   :  { %v1915_v28 = vadd.f32 %v3281_v29, %v1914_v39  ;;  %1874 = vst [vmem:[#allocation3 + $0x38] sm:$0xff] %v1860_v42 }
 0x1c5   :  { %v1780_v8 = vpop.f32.mrf.mxu3  ;;  %1327 = vst [vmem:[#allocation3 + $0x68] sm:$0x3] %v1313_v61 }
 0x1c6   :  { %v1916_v12 = vmax.f32 %v1915_v28, 0.0  ;;  %v1741_v18 = vpop.f32.mrf.mxu2 }
 0x1c8   :  { %v1917_v33 = vpack.c.bf16 %v1916_v12, %v1916_v12 }
 0x1ca   :  { %2400 = vst [vmem:[%s3348_s3 + $0xa] sm:$0x3] %v1917_v33 }
 0x1cb   :  { %v1920_v27 = vld [vmem:[#allocation3 + $0x36] sm:$0xf]  ;;  %v1926_v23 = vld [vmem:[#allocation3 + $0x3c] sm:$0xf]  ;;  %v1834_v16 = vpop.f32.mrf.mxu0 }
 0x1cc   :  { %v1921_v11 = vadd.f32 %v3281_v29, %v1920_v27  ;;  %v1927_v32 = vadd.f32 %v3281_v29, %v1926_v23  ;;  %v1852_v46 = vld [vmem:[#allocation3 + $0x68] sm:$0x3] }
 0x1cd   :  { %v1782_v49 = vpop.f32.mrf.mxu3 }
 0x1ce   :  { %v1922_v31 = vmax.f32 %v1921_v11, 0.0  ;;  %v1928_v52 = vmax.f32 %v1927_v32, 0.0  ;;  %v1743_v50 = vpop.f32.mrf.mxu2 }
 0x1d0   :  { %v1923_v53 = vpack.c.bf16 %v1922_v31, %v1922_v31  ;;  %v1929_v54 = vpack.c.bf16 %v1928_v52, %v1928_v52 }
 0x1d2   :  { %2401 = vst [vmem:[%s3348_s3 + $0xc] sm:$0x3] %v1923_v53 }
 0x1d3   :  { %2402 = vst [vmem:[%s3348_s3 + $0xe] sm:$0x3] %v1929_v54  ;;  %v1836_v22 = vpop.f32.mrf.mxu0 }
 0x1d5   :  { %v1785_v37 = vpop.f32.mrf.mxu3 }
 0x1d6   :  { %v1786_v55 = vadd.f32 %v1785_v37, %v1741_v18  ;;  %v1746_v9 = vpop.f32.mrf.mxu2 }
 0x1d8   :  { %v1830_v62 = vadd.f32 %v1829_v45, %v1786_v55 }
 0x1da   :  { %v1863_v63 = vadd.f32 %v1830_v62, %v1310_v17 }
 0x1dc   :  { %1877 = vst [vmem:[#allocation3 + $0x50] sm:$0xff] %v1863_v63 }
 0x1dd   :  { %v1787_v7 = vpop.f32.mrf.mxu3 }
 0x1de   :  { %v1788_v20 = vadd.f32 %v1787_v7, %v1743_v50  ;;  %v1748_v21 = vpop.f32.mrf.mxu2 }
 0x1e0   :  { %v1832_v6 = vadd.f32 %v1831_v0, %v1788_v20 }
 0x1e2   :  { %v1864_v59 = vadd.f32 %v1832_v6, %v1311_v3 }
 0x1e3   :  { %v1932_v4 = vld [vmem:[#allocation3 + $0x54] sm:$0xf] }
 0x1e4   :  { %v1933_v15 = vadd.f32 %v3281_v29, %v1932_v4  ;;  %1878 = vst [vmem:[#allocation3 + $0x58] sm:$0xff] %v1864_v59 }
 0x1e5   :  { %v1790_v24 = vpop.f32.mrf.mxu3 }
 0x1e6   :  { %v1934_v13 = vmax.f32 %v1933_v15, 0.0  ;;  %v1791_v19 = vadd.f32 %v1790_v24, %v1746_v9 }
 0x1e8   :  { %v1935_v38 = vpack.c.bf16 %v1934_v13, %v1934_v13  ;;  %v1835_v47 = vadd.f32 %v1834_v16, %v1791_v19 }
 0x1ea   :  { %2403 = vst [vmem:[%s3348_s3 + $0x10] sm:$0x3] %v1935_v38  ;;  %v1865_v17 = vadd.f32 %v1835_v47, %v1312_v2 }
 0x1eb   :  { %v1938_v44 = vld [vmem:[#allocation3 + $0x5a] sm:$0xf] }
 0x1ec   :  { %v1939_v43 = vadd.f32 %v3281_v29, %v1938_v44  ;;  %1879 = vst [vmem:[#allocation3 + $0x60] sm:$0xff] %v1865_v17 }
 0x1ed   :  { %v1792_v3 = vpop.f32.mrf.mxu3 }
 0x1ee   :  { %v1940_v5 = vmax.f32 %v1939_v43, 0.0  ;;  %v1793_v1 = vadd.f32 %v1792_v3, %v1748_v21 }
 0x1f0   :  { %v1941_v25 = vpack.c.bf16 %v1940_v5, %v1940_v5  ;;  %v1837_v58 = vadd.f32 %v1836_v22, %v1793_v1 }
 0x1f2   :  { %2404 = vst [vmem:[%s3348_s3 + $0x12] sm:$0x3] %v1941_v25  ;;  %v1866_v26 = vadd.f32 %v1852_v46, %v1837_v58 }
 0x1f3   :  { %v1944_v14 = vld [vmem:[#allocation3 + $0x60] sm:$0xf] }
 0x1f4   :  { %v1945_v10 = vadd.f32 %v3281_v29, %v1944_v14  ;;  %1880 = vst [vmem:[#allocation3 + $0x68] sm:$0x3] %v1866_v26 }
 0x1f6   :  { %v1946_v2 = vmax.f32 %v1945_v10, 0.0 }
 0x1f8   :  { %v1947_v56 = vpack.c.bf16 %v1946_v2, %v1946_v2 }
 0x1fa   :  { %2405 = vst [vmem:[%s3348_s3 + $0x14] sm:$0x3] %v1947_v56 }
 0x1fb   :  { %v1950_v36 = vld [vmem:[#allocation3 + $0x66] sm:$0xf] }
 0x1fc   :  { %v1951_v57 = vadd.f32 %v3281_v29, %v1950_v36 }
 0x1fe   :  { %v1952_v60 = vmax.f32 %v1951_v57, 0.0 }
 0x200   :  { %v1953_v51 = vpack.c.bf16 %v1952_v60, %v1952_v60 }
 0x202   :  { %2406 = vst [vmem:[%s3348_s3 + $0x16] sm:$0x3] %v1953_v51 }
 0x203   :  { %1960 = vsyncpa [#allocation5], 1 }

</bundles_post_ra>
